<compile_context>
chip_gen: v5e
topology: v5e:2x2
jax: 0.10.0
libtpu: 0.0.40
codegen_flags: <defaults>
</compile_context>

<pallas_src>
import functools

import numpy as np
import jax
import jax.numpy as jnp
from jax.experimental import pallas as pl
from jax.experimental.pallas import tpu as pltpu


_HP = 128  # padded per-gate lane width: one full vreg lane block per gate

_VMEM = pl.BlockSpec(memory_space=pltpu.MemorySpace.VMEM)
_SMEM = pl.BlockSpec(memory_space=pltpu.MemorySpace.SMEM)


def _sigmoid1(x):
    # sigmoid(x) == 0.5 * tanh(0.5 * x) + 0.5 : single EUP pass (tanh) instead of
    # exp + reciprocal — the EUP sits on the serialized recurrent chain.
    return 0.5 * jnp.tanh(0.5 * x) + 0.5


# ----------------------------------------------------------------------------- kernel
def encoder_kernel(x_ref, w_ih1_ref, w_hh1_ref, b1_ref,
                   w_ih2_ref, w_hh2_ref, b2_ref, out_ref):
    """Fused 2-layer stacked LSTM encoder (batch = 1, n_features = 1).

    Kernel gate order is [i, f, o, g]; each gate padded to 128 lanes.
    Pre-gate pad lanes are exactly 0 (zero-padded weights/bias), so the padded
    lanes of h/c stay 0 for all steps (g_pad = tanh(0) = 0 -> c_pad stays 0).

    x_ref     : (seq_len,)   f32 SMEM  (n_features == 1 -> one scalar per step)
    w_ih1_ref : (1,  4*HP)   f32 VMEM  (layer-1 input row; scalar-splat path)
    w_hh1_ref : (HP, 4*HP)   f32 VMEM
    b1_ref    : (1,  4*HP)   f32 VMEM  (bias_ih + bias_hh, padded)
    w_ih2_ref : (HP, 4*HP)   f32 VMEM
    w_hh2_ref : (HP, 4*HP)   f32 VMEM
    b2_ref    : (1,  4*HP)   f32 VMEM
    out_ref   : (1,  HP)     f32 VMEM  (padded final hidden of layer 2)
    """
    seq_len = x_ref.shape[0]
    HP = _HP

    # Hoist all weight/bias loads out of the recurrence.
    w_ih1 = w_ih1_ref[...]
    w_hh1 = w_hh1_ref[...]
    b1 = b1_ref[...]
    w_ih2 = w_ih2_ref[...]
    w_hh2 = w_hh2_ref[...]
    b2 = b2_ref[...]

    def cell(pre, h, c, w_hh):
        # `pre` already holds x_t @ W_ih + (b_ih + b_hh); only h @ W_hh stays on
        # the serialized critical path.
        gates = pre + jnp.dot(h, w_hh, preferred_element_type=jnp.float32)
        sig = _sigmoid1(gates[:, : 3 * HP])            # [i | f | o], one EUP pass
        i = sig[:, 0 * HP:1 * HP]
        f = sig[:, 1 * HP:2 * HP]
        o = sig[:, 2 * HP:3 * HP]
        g = jnp.tanh(gates[:, 3 * HP:4 * HP])
        c_new = f * c + i * g
        h_new = o * jnp.tanh(c_new)
        return h_new, c_new

    zeros = jnp.zeros((1, HP), jnp.float32)
    h1, c1 = zeros, zeros
    h2, c2 = zeros, zeros

    # seq_len is static and tiny -> fully unrolled wavefront.  Layer-2 step t
    # depends only on layer-1 step t and layer-2 step t-1, so its work overlaps
    # layer-1 step t+1.  All intermediates stay in vregs (no VMEM scratch).
    # TODO(synk): cap the unroll (blocks of ~8) if seq_len ever grows beyond ~32.
    for t in range(seq_len):
        # n_features == 1: the K=1 input projection is a scalar-splat VPU op,
        # independent of the recurrence (scheduler can hoist it arbitrarily early).
        pre1 = x_ref[t] * w_ih1 + b1
        h1, c1 = cell(pre1, h1, c1, w_hh1)
        # Layer-2 pre-gates: (1,HP)x(HP,4*HP) matvec, independent of layer-1's
        # next step -> overlaps it on the MXU.
        pre2 = jnp.dot(h1, w_ih2, preferred_element_type=jnp.float32) + b2
        h2, c2 = cell(pre2, h2, c2, w_hh2)

    out_ref[...] = h2


# ----------------------------------------------------------------------------- wrapper
def encoder_pallas(x_scalars, params):
    return pl.pallas_call(
        encoder_kernel,
        out_shape=jax.ShapeDtypeStruct((1, _HP), jnp.float32),
        in_specs=[_SMEM] + [_VMEM] * 6,
        out_specs=_VMEM,
    )(x_scalars, params["w_ih1"], params["w_hh1"], params["b1"],
      params["w_ih2"], params["w_hh2"], params["b2"])


# ----------------------------------------------------------------------------- params
def _raw_lstm_params(key, input_dim, hidden_dim):
    """PyTorch nn.LSTM init: uniform(-1/sqrt(H), 1/sqrt(H)); gate order [i,f,g,o]."""
    k1, k2, k3, k4 = jax.random.split(key, 4)
    bound = 1.0 / float(np.sqrt(hidden_dim))
    w_ih = jax.random.uniform(k1, (4 * hidden_dim, input_dim), jnp.float32, -bound, bound)
    w_hh = jax.random.uniform(k2, (4 * hidden_dim, hidden_dim), jnp.float32, -bound, bound)
    b_ih = jax.random.uniform(k3, (4 * hidden_dim,), jnp.float32, -bound, bound)
    b_hh = jax.random.uniform(k4, (4 * hidden_dim,), jnp.float32, -bound, bound)
    return w_ih, w_hh, b_ih, b_hh


def _pack_gates(w, b, hidden_dim, in_pad):
    """PyTorch (4H, in) [i,f,g,o] -> kernel (in_pad, 4*HP) [i,f,o,g].

    Each gate block is transposed to (in, H), zero-padded to (in_pad, HP), and
    concatenated along lanes; bias is padded the same way."""
    wi, wf, wg, wo = jnp.split(w, 4, axis=0)          # (H, in) each
    bi, bf, bg, bo = jnp.split(b, 4)                  # (H,) each
    in_dim = w.shape[1]

    def pad_w(g_w):                                   # (H, in) -> (in_pad, HP)
        return jnp.pad(g_w.T, ((0, in_pad - in_dim), (0, _HP - hidden_dim)))

    def pad_b(g_b):
        return jnp.pad(g_b, (0, _HP - hidden_dim))

    w_packed = jnp.concatenate([pad_w(wi), pad_w(wf), pad_w(wo), pad_w(wg)], axis=1)
    b_packed = jnp.concatenate(
        [pad_b(bi), pad_b(bf), pad_b(bo), pad_b(bg)]).reshape(1, 4 * _HP)
    return w_packed, b_packed


def init_params(key, n_features, embedding_dim):
    assert n_features == 1, "Encoder's final reshape requires n_features == 1"
    hidden_dim = 2 * embedding_dim
    k1, k2 = jax.random.split(key)
    raw1 = _raw_lstm_params(k1, n_features, hidden_dim)        # rnn1
    raw2 = _raw_lstm_params(k2, hidden_dim, embedding_dim)     # rnn2

    w_ih1, w_hh1, b_ih1, b_hh1 = raw1
    w_ih2, w_hh2, b_ih2, b_hh2 = raw2

    w_ih1_p, b1_p = _pack_gates(w_ih1, b_ih1 + b_hh1, hidden_dim, in_pad=n_features)
    w_hh1_p, _ = _pack_gates(w_hh1, b_ih1 + b_hh1, hidden_dim, in_pad=_HP)
    w_ih2_p, b2_p = _pack_gates(w_ih2, b_ih2 + b_hh2, embedding_dim, in_pad=_HP)
    w_hh2_p, _ = _pack_gates(w_hh2, b_ih2 + b_hh2, embedding_dim, in_pad=_HP)

    params = {"w_ih1": w_ih1_p, "w_hh1": w_hh1_p, "b1": b1_p,
              "w_ih2": w_ih2_p, "w_hh2": w_hh2_p, "b2": b2_p}
    return params, (raw1, raw2)


# ----------------------------------------------------------------------------- model
@functools.partial(jax.jit, static_argnums=(2, 3, 4))
def encoder_forward(x, params, seq_len, n_features, embedding_dim):
    # PyTorch: x.reshape((1, seq_len, n_features)) -> batch = 1.  The module's
    # final hidden_n.reshape((n_features, embedding_dim)) requires n_features==1.
    assert n_features == 1, "Encoder's final reshape requires n_features == 1"
    x_scalars = x.reshape(seq_len * n_features).astype(jnp.float32)
    h_n = encoder_pallas(x_scalars, params)               # (1, 128) padded
    return h_n[:, :embedding_dim].reshape(n_features, embedding_dim)


# ----------------------------------------------------------------------------- reference
def _lstm_ref(x_seq, w_ih, w_hh, b_ih, b_hh):
    """Pure-JAX PyTorch-semantics LSTM (batch = 1), gate order [i, f, g, o]."""
    H = w_hh.shape[1]
    hp = jax.lax.Precision.HIGHEST

    def step(carry, x_t):
        h, c = carry
        gates = (jnp.dot(x_t, w_ih.T, precision=hp) + b_ih
                 + jnp.dot(h, w_hh.T, precision=hp) + b_hh)
        i = jax.nn.sigmoid(gates[0 * H:1 * H])
        f = jax.nn.sigmoid(gates[1 * H:2 * H])
        g = jnp.tanh(gates[2 * H:3 * H])
        o = jax.nn.sigmoid(gates[3 * H:4 * H])
        c = f * c + i * g
        h = o * jnp.tanh(c)
        return (h, c), h

    init = (jnp.zeros((H,), jnp.float32), jnp.zeros((H,), jnp.float32))
    (h, _), hs = jax.lax.scan(step, init, x_seq)
    return hs, h


def encoder_reference(x, raw_params, n_features, embedding_dim):
    (w_ih1, w_hh1, b_ih1, b_hh1), (w_ih2, w_hh2, b_ih2, b_hh2) = raw_params
    hs1, _ = _lstm_ref(x, w_ih1, w_hh1, b_ih1, b_hh1)
    _, h2 = _lstm_ref(hs1, w_ih2, w_hh2, b_ih2, b_hh2)
    return h2.reshape(n_features, embedding_dim)


# ----------------------------------------------------------------------------- main
if __name__ == "__main__":
    seq_len = 8
    n_features = 1        # the module's final reshape requires n_features == 1
    embedding_dim = 32    # hidden_dim = 64

    key = jax.random.PRNGKey(0)
    k_param, k_x = jax.random.split(key)
    params, raw_params = init_params(k_param, n_features, embedding_dim)
    x = jax.random.normal(k_x, (seq_len, n_features), jnp.float32)

    out = encoder_forward(x, params, seq_len, n_features, embedding_dim)
    out = jax.block_until_ready(out)

    assert out.shape == (n_features, embedding_dim), out.shape
    assert bool(jnp.all(jnp.isfinite(out)))

    ref = encoder_reference(x.reshape(seq_len, n_features), raw_params,
                            n_features, embedding_dim)
    max_err = float(jnp.max(jnp.abs(out - ref)))
    assert max_err < 5e-3, f"kernel vs reference mismatch: max_abs_err={max_err}"

    print("KERNEL_OK")
</pallas_src>

<mosaic_0001>
module attributes {stable_mosaic.version = 11 : i64} {
  func.func @encoder_kernel(%arg0: memref<8xf32, #tpu.memory_space<smem>>, %arg1: memref<1x512xf32, #tpu.memory_space<vmem>>, %arg2: memref<128x512xf32, #tpu.memory_space<vmem>>, %arg3: memref<1x512xf32, #tpu.memory_space<vmem>>, %arg4: memref<128x512xf32, #tpu.memory_space<vmem>>, %arg5: memref<128x512xf32, #tpu.memory_space<vmem>>, %arg6: memref<1x512xf32, #tpu.memory_space<vmem>>, %arg7: memref<1x128xf32, #tpu.memory_space<vmem>>) attributes {dimension_semantics = [], scalar_prefetch = 0 : i64, scratch_operands = 0 : i64, tpu.core_type = #tpu.core_type<tc>} {
    %c0 = arith.constant 0 : index
    %c0_0 = arith.constant 0 : index
    %0 = vector.load %arg1[%c0, %c0_0] : memref<1x512xf32, #tpu.memory_space<vmem>>, vector<1x512xf32>
    %c0_1 = arith.constant 0 : index
    %c0_2 = arith.constant 0 : index
    %1 = vector.load %arg2[%c0_1, %c0_2] : memref<128x512xf32, #tpu.memory_space<vmem>>, vector<128x512xf32>
    %c0_3 = arith.constant 0 : index
    %c0_4 = arith.constant 0 : index
    %2 = vector.load %arg3[%c0_3, %c0_4] : memref<1x512xf32, #tpu.memory_space<vmem>>, vector<1x512xf32>
    %c0_5 = arith.constant 0 : index
    %c0_6 = arith.constant 0 : index
    %3 = vector.load %arg4[%c0_5, %c0_6] : memref<128x512xf32, #tpu.memory_space<vmem>>, vector<128x512xf32>
    %c0_7 = arith.constant 0 : index
    %c0_8 = arith.constant 0 : index
    %4 = vector.load %arg5[%c0_7, %c0_8] : memref<128x512xf32, #tpu.memory_space<vmem>>, vector<128x512xf32>
    %c0_9 = arith.constant 0 : index
    %c0_10 = arith.constant 0 : index
    %5 = vector.load %arg6[%c0_9, %c0_10] : memref<1x512xf32, #tpu.memory_space<vmem>>, vector<1x512xf32>
    %cst = arith.constant 0.000000e+00 : f32
    %6 = vector.broadcast %cst : f32 to vector<1x128xf32>
    %c0_11 = arith.constant 0 : index
    %7 = memref.load %arg0[%c0_11] : memref<8xf32, #tpu.memory_space<smem>>
    %8 = vector.broadcast %7 : f32 to vector<1x512xf32>
    %9 = arith.mulf %8, %0 : vector<1x512xf32>
    %10 = arith.addf %9, %2 : vector<1x512xf32>
    %cst_12 = arith.constant dense<0.000000e+00> : vector<1x512xf32>
    %11 = tpu.matmul %6, %1, %cst_12 {dimension_numbers = #tpu.dot_dimension_numbers<[1], [0], [0], [1], [0, 0, 1, 1], [], []>} : vector<1x128xf32>, vector<128x512xf32>, vector<1x512xf32> -> vector<1x512xf32>
    %12 = arith.addf %10, %11 : vector<1x512xf32>
    %13 = vector.extract_strided_slice %12 {offsets = [0, 0], sizes = [1, 384], strides = [1, 1]} : vector<1x512xf32> to vector<1x384xf32>
    %cst_13 = arith.constant 5.000000e-01 : f32
    %14 = vector.broadcast %cst_13 : f32 to vector<1x384xf32>
    %15 = arith.mulf %14, %13 : vector<1x384xf32>
    %16 = math.tanh %15 : vector<1x384xf32>
    %cst_14 = arith.constant 5.000000e-01 : f32
    %17 = vector.broadcast %cst_14 : f32 to vector<1x384xf32>
    %18 = arith.mulf %17, %16 : vector<1x384xf32>
    %cst_15 = arith.constant 5.000000e-01 : f32
    %19 = vector.broadcast %cst_15 : f32 to vector<1x384xf32>
    %20 = arith.addf %18, %19 : vector<1x384xf32>
    %21 = vector.extract_strided_slice %20 {offsets = [0, 0], sizes = [1, 128], strides = [1, 1]} : vector<1x384xf32> to vector<1x128xf32>
    %22 = vector.extract_strided_slice %20 {offsets = [0, 128], sizes = [1, 128], strides = [1, 1]} : vector<1x384xf32> to vector<1x128xf32>
    %23 = vector.extract_strided_slice %20 {offsets = [0, 256], sizes = [1, 128], strides = [1, 1]} : vector<1x384xf32> to vector<1x128xf32>
    %24 = vector.extract_strided_slice %12 {offsets = [0, 384], sizes = [1, 128], strides = [1, 1]} : vector<1x512xf32> to vector<1x128xf32>
    %25 = math.tanh %24 : vector<1x128xf32>
    %26 = arith.mulf %22, %6 : vector<1x128xf32>
    %27 = arith.mulf %21, %25 : vector<1x128xf32>
    %28 = arith.addf %26, %27 : vector<1x128xf32>
    %29 = math.tanh %28 : vector<1x128xf32>
    %30 = arith.mulf %23, %29 : vector<1x128xf32>
    %cst_16 = arith.constant dense<0.000000e+00> : vector<1x512xf32>
    %31 = tpu.matmul %30, %3, %cst_16 {dimension_numbers = #tpu.dot_dimension_numbers<[1], [0], [0], [1], [0, 0, 1, 1], [], []>} : vector<1x128xf32>, vector<128x512xf32>, vector<1x512xf32> -> vector<1x512xf32>
    %32 = arith.addf %31, %5 : vector<1x512xf32>
    %cst_17 = arith.constant dense<0.000000e+00> : vector<1x512xf32>
    %33 = tpu.matmul %6, %4, %cst_17 {dimension_numbers = #tpu.dot_dimension_numbers<[1], [0], [0], [1], [0, 0, 1, 1], [], []>} : vector<1x128xf32>, vector<128x512xf32>, vector<1x512xf32> -> vector<1x512xf32>
    %34 = arith.addf %32, %33 : vector<1x512xf32>
    %35 = vector.extract_strided_slice %34 {offsets = [0, 0], sizes = [1, 384], strides = [1, 1]} : vector<1x512xf32> to vector<1x384xf32>
    %cst_18 = arith.constant 5.000000e-01 : f32
    %36 = vector.broadcast %cst_18 : f32 to vector<1x384xf32>
    %37 = arith.mulf %36, %35 : vector<1x384xf32>
    %38 = math.tanh %37 : vector<1x384xf32>
    %cst_19 = arith.constant 5.000000e-01 : f32
    %39 = vector.broadcast %cst_19 : f32 to vector<1x384xf32>
    %40 = arith.mulf %39, %38 : vector<1x384xf32>
    %cst_20 = arith.constant 5.000000e-01 : f32
    %41 = vector.broadcast %cst_20 : f32 to vector<1x384xf32>
    %42 = arith.addf %40, %41 : vector<1x384xf32>
    %43 = vector.extract_strided_slice %42 {offsets = [0, 0], sizes = [1, 128], strides = [1, 1]} : vector<1x384xf32> to vector<1x128xf32>
    %44 = vector.extract_strided_slice %42 {offsets = [0, 128], sizes = [1, 128], strides = [1, 1]} : vector<1x384xf32> to vector<1x128xf32>
    %45 = vector.extract_strided_slice %42 {offsets = [0, 256], sizes = [1, 128], strides = [1, 1]} : vector<1x384xf32> to vector<1x128xf32>
    %46 = vector.extract_strided_slice %34 {offsets = [0, 384], sizes = [1, 128], strides = [1, 1]} : vector<1x512xf32> to vector<1x128xf32>
    %47 = math.tanh %46 : vector<1x128xf32>
    %48 = arith.mulf %44, %6 : vector<1x128xf32>
    %49 = arith.mulf %43, %47 : vector<1x128xf32>
    %50 = arith.addf %48, %49 : vector<1x128xf32>
    %51 = math.tanh %50 : vector<1x128xf32>
    %52 = arith.mulf %45, %51 : vector<1x128xf32>
    %c1 = arith.constant 1 : index
    %53 = memref.load %arg0[%c1] : memref<8xf32, #tpu.memory_space<smem>>
    %54 = vector.broadcast %53 : f32 to vector<1x512xf32>
    %55 = arith.mulf %54, %0 : vector<1x512xf32>
    %56 = arith.addf %55, %2 : vector<1x512xf32>
    %cst_21 = arith.constant dense<0.000000e+00> : vector<1x512xf32>
    %57 = tpu.matmul %30, %1, %cst_21 {dimension_numbers = #tpu.dot_dimension_numbers<[1], [0], [0], [1], [0, 0, 1, 1], [], []>} : vector<1x128xf32>, vector<128x512xf32>, vector<1x512xf32> -> vector<1x512xf32>
    %58 = arith.addf %56, %57 : vector<1x512xf32>
    %59 = vector.extract_strided_slice %58 {offsets = [0, 0], sizes = [1, 384], strides = [1, 1]} : vector<1x512xf32> to vector<1x384xf32>
    %cst_22 = arith.constant 5.000000e-01 : f32
    %60 = vector.broadcast %cst_22 : f32 to vector<1x384xf32>
    %61 = arith.mulf %60, %59 : vector<1x384xf32>
    %62 = math.tanh %61 : vector<1x384xf32>
    %cst_23 = arith.constant 5.000000e-01 : f32
    %63 = vector.broadcast %cst_23 : f32 to vector<1x384xf32>
    %64 = arith.mulf %63, %62 : vector<1x384xf32>
    %cst_24 = arith.constant 5.000000e-01 : f32
    %65 = vector.broadcast %cst_24 : f32 to vector<1x384xf32>
    %66 = arith.addf %64, %65 : vector<1x384xf32>
    %67 = vector.extract_strided_slice %66 {offsets = [0, 0], sizes = [1, 128], strides = [1, 1]} : vector<1x384xf32> to vector<1x128xf32>
    %68 = vector.extract_strided_slice %66 {offsets = [0, 128], sizes = [1, 128], strides = [1, 1]} : vector<1x384xf32> to vector<1x128xf32>
    %69 = vector.extract_strided_slice %66 {offsets = [0, 256], sizes = [1, 128], strides = [1, 1]} : vector<1x384xf32> to vector<1x128xf32>
    %70 = vector.extract_strided_slice %58 {offsets = [0, 384], sizes = [1, 128], strides = [1, 1]} : vector<1x512xf32> to vector<1x128xf32>
    %71 = math.tanh %70 : vector<1x128xf32>
    %72 = arith.mulf %68, %28 : vector<1x128xf32>
    %73 = arith.mulf %67, %71 : vector<1x128xf32>
    %74 = arith.addf %72, %73 : vector<1x128xf32>
    %75 = math.tanh %74 : vector<1x128xf32>
    %76 = arith.mulf %69, %75 : vector<1x128xf32>
    %cst_25 = arith.constant dense<0.000000e+00> : vector<1x512xf32>
    %77 = tpu.matmul %76, %3, %cst_25 {dimension_numbers = #tpu.dot_dimension_numbers<[1], [0], [0], [1], [0, 0, 1, 1], [], []>} : vector<1x128xf32>, vector<128x512xf32>, vector<1x512xf32> -> vector<1x512xf32>
    %78 = arith.addf %77, %5 : vector<1x512xf32>
    %cst_26 = arith.constant dense<0.000000e+00> : vector<1x512xf32>
    %79 = tpu.matmul %52, %4, %cst_26 {dimension_numbers = #tpu.dot_dimension_numbers<[1], [0], [0], [1], [0, 0, 1, 1], [], []>} : vector<1x128xf32>, vector<128x512xf32>, vector<1x512xf32> -> vector<1x512xf32>
    %80 = arith.addf %78, %79 : vector<1x512xf32>
    %81 = vector.extract_strided_slice %80 {offsets = [0, 0], sizes = [1, 384], strides = [1, 1]} : vector<1x512xf32> to vector<1x384xf32>
    %cst_27 = arith.constant 5.000000e-01 : f32
    %82 = vector.broadcast %cst_27 : f32 to vector<1x384xf32>
    %83 = arith.mulf %82, %81 : vector<1x384xf32>
    %84 = math.tanh %83 : vector<1x384xf32>
    %cst_28 = arith.constant 5.000000e-01 : f32
    %85 = vector.broadcast %cst_28 : f32 to vector<1x384xf32>
    %86 = arith.mulf %85, %84 : vector<1x384xf32>
    %cst_29 = arith.constant 5.000000e-01 : f32
    %87 = vector.broadcast %cst_29 : f32 to vector<1x384xf32>
    %88 = arith.addf %86, %87 : vector<1x384xf32>
    %89 = vector.extract_strided_slice %88 {offsets = [0, 0], sizes = [1, 128], strides = [1, 1]} : vector<1x384xf32> to vector<1x128xf32>
    %90 = vector.extract_strided_slice %88 {offsets = [0, 128], sizes = [1, 128], strides = [1, 1]} : vector<1x384xf32> to vector<1x128xf32>
    %91 = vector.extract_strided_slice %88 {offsets = [0, 256], sizes = [1, 128], strides = [1, 1]} : vector<1x384xf32> to vector<1x128xf32>
    %92 = vector.extract_strided_slice %80 {offsets = [0, 384], sizes = [1, 128], strides = [1, 1]} : vector<1x512xf32> to vector<1x128xf32>
    %93 = math.tanh %92 : vector<1x128xf32>
    %94 = arith.mulf %90, %50 : vector<1x128xf32>
    %95 = arith.mulf %89, %93 : vector<1x128xf32>
    %96 = arith.addf %94, %95 : vector<1x128xf32>
    %97 = math.tanh %96 : vector<1x128xf32>
    %98 = arith.mulf %91, %97 : vector<1x128xf32>
    %c2 = arith.constant 2 : index
    %99 = memref.load %arg0[%c2] : memref<8xf32, #tpu.memory_space<smem>>
    %100 = vector.broadcast %99 : f32 to vector<1x512xf32>
    %101 = arith.mulf %100, %0 : vector<1x512xf32>
    %102 = arith.addf %101, %2 : vector<1x512xf32>
    %cst_30 = arith.constant dense<0.000000e+00> : vector<1x512xf32>
    %103 = tpu.matmul %76, %1, %cst_30 {dimension_numbers = #tpu.dot_dimension_numbers<[1], [0], [0], [1], [0, 0, 1, 1], [], []>} : vector<1x128xf32>, vector<128x512xf32>, vector<1x512xf32> -> vector<1x512xf32>
    %104 = arith.addf %102, %103 : vector<1x512xf32>
    %105 = vector.extract_strided_slice %104 {offsets = [0, 0], sizes = [1, 384], strides = [1, 1]} : vector<1x512xf32> to vector<1x384xf32>
    %cst_31 = arith.constant 5.000000e-01 : f32
    %106 = vector.broadcast %cst_31 : f32 to vector<1x384xf32>
    %107 = arith.mulf %106, %105 : vector<1x384xf32>
    %108 = math.tanh %107 : vector<1x384xf32>
    %cst_32 = arith.constant 5.000000e-01 : f32
    %109 = vector.broadcast %cst_32 : f32 to vector<1x384xf32>
    %110 = arith.mulf %109, %108 : vector<1x384xf32>
    %cst_33 = arith.constant 5.000000e-01 : f32
    %111 = vector.broadcast %cst_33 : f32 to vector<1x384xf32>
    %112 = arith.addf %110, %111 : vector<1x384xf32>
    %113 = vector.extract_strided_slice %112 {offsets = [0, 0], sizes = [1, 128], strides = [1, 1]} : vector<1x384xf32> to vector<1x128xf32>
    %114 = vector.extract_strided_slice %112 {offsets = [0, 128], sizes = [1, 128], strides = [1, 1]} : vector<1x384xf32> to vector<1x128xf32>
    %115 = vector.extract_strided_slice %112 {offsets = [0, 256], sizes = [1, 128], strides = [1, 1]} : vector<1x384xf32> to vector<1x128xf32>
    %116 = vector.extract_strided_slice %104 {offsets = [0, 384], sizes = [1, 128], strides = [1, 1]} : vector<1x512xf32> to vector<1x128xf32>
    %117 = math.tanh %116 : vector<1x128xf32>
    %118 = arith.mulf %114, %74 : vector<1x128xf32>
    %119 = arith.mulf %113, %117 : vector<1x128xf32>
    %120 = arith.addf %118, %119 : vector<1x128xf32>
    %121 = math.tanh %120 : vector<1x128xf32>
    %122 = arith.mulf %115, %121 : vector<1x128xf32>
    %cst_34 = arith.constant dense<0.000000e+00> : vector<1x512xf32>
    %123 = tpu.matmul %122, %3, %cst_34 {dimension_numbers = #tpu.dot_dimension_numbers<[1], [0], [0], [1], [0, 0, 1, 1], [], []>} : vector<1x128xf32>, vector<128x512xf32>, vector<1x512xf32> -> vector<1x512xf32>
    %124 = arith.addf %123, %5 : vector<1x512xf32>
    %cst_35 = arith.constant dense<0.000000e+00> : vector<1x512xf32>
    %125 = tpu.matmul %98, %4, %cst_35 {dimension_numbers = #tpu.dot_dimension_numbers<[1], [0], [0], [1], [0, 0, 1, 1], [], []>} : vector<1x128xf32>, vector<128x512xf32>, vector<1x512xf32> -> vector<1x512xf32>
    %126 = arith.addf %124, %125 : vector<1x512xf32>
    %127 = vector.extract_strided_slice %126 {offsets = [0, 0], sizes = [1, 384], strides = [1, 1]} : vector<1x512xf32> to vector<1x384xf32>
    %cst_36 = arith.constant 5.000000e-01 : f32
    %128 = vector.broadcast %cst_36 : f32 to vector<1x384xf32>
    %129 = arith.mulf %128, %127 : vector<1x384xf32>
    %130 = math.tanh %129 : vector<1x384xf32>
    %cst_37 = arith.constant 5.000000e-01 : f32
    %131 = vector.broadcast %cst_37 : f32 to vector<1x384xf32>
    %132 = arith.mulf %131, %130 : vector<1x384xf32>
    %cst_38 = arith.constant 5.000000e-01 : f32
    %133 = vector.broadcast %cst_38 : f32 to vector<1x384xf32>
    %134 = arith.addf %132, %133 : vector<1x384xf32>
    %135 = vector.extract_strided_slice %134 {offsets = [0, 0], sizes = [1, 128], strides = [1, 1]} : vector<1x384xf32> to vector<1x128xf32>
    %136 = vector.extract_strided_slice %134 {offsets = [0, 128], sizes = [1, 128], strides = [1, 1]} : vector<1x384xf32> to vector<1x128xf32>
    %137 = vector.extract_strided_slice %134 {offsets = [0, 256], sizes = [1, 128], strides = [1, 1]} : vector<1x384xf32> to vector<1x128xf32>
    %138 = vector.extract_strided_slice %126 {offsets = [0, 384], sizes = [1, 128], strides = [1, 1]} : vector<1x512xf32> to vector<1x128xf32>
    %139 = math.tanh %138 : vector<1x128xf32>
    %140 = arith.mulf %136, %96 : vector<1x128xf32>
    %141 = arith.mulf %135, %139 : vector<1x128xf32>
    %142 = arith.addf %140, %141 : vector<1x128xf32>
    %143 = math.tanh %142 : vector<1x128xf32>
    %144 = arith.mulf %137, %143 : vector<1x128xf32>
    %c3 = arith.constant 3 : index
    %145 = memref.load %arg0[%c3] : memref<8xf32, #tpu.memory_space<smem>>
    %146 = vector.broadcast %145 : f32 to vector<1x512xf32>
    %147 = arith.mulf %146, %0 : vector<1x512xf32>
    %148 = arith.addf %147, %2 : vector<1x512xf32>
    %cst_39 = arith.constant dense<0.000000e+00> : vector<1x512xf32>
    %149 = tpu.matmul %122, %1, %cst_39 {dimension_numbers = #tpu.dot_dimension_numbers<[1], [0], [0], [1], [0, 0, 1, 1], [], []>} : vector<1x128xf32>, vector<128x512xf32>, vector<1x512xf32> -> vector<1x512xf32>
    %150 = arith.addf %148, %149 : vector<1x512xf32>
    %151 = vector.extract_strided_slice %150 {offsets = [0, 0], sizes = [1, 384], strides = [1, 1]} : vector<1x512xf32> to vector<1x384xf32>
    %cst_40 = arith.constant 5.000000e-01 : f32
    %152 = vector.broadcast %cst_40 : f32 to vector<1x384xf32>
    %153 = arith.mulf %152, %151 : vector<1x384xf32>
    %154 = math.tanh %153 : vector<1x384xf32>
    %cst_41 = arith.constant 5.000000e-01 : f32
    %155 = vector.broadcast %cst_41 : f32 to vector<1x384xf32>
    %156 = arith.mulf %155, %154 : vector<1x384xf32>
    %cst_42 = arith.constant 5.000000e-01 : f32
    %157 = vector.broadcast %cst_42 : f32 to vector<1x384xf32>
    %158 = arith.addf %156, %157 : vector<1x384xf32>
    %159 = vector.extract_strided_slice %158 {offsets = [0, 0], sizes = [1, 128], strides = [1, 1]} : vector<1x384xf32> to vector<1x128xf32>
    %160 = vector.extract_strided_slice %158 {offsets = [0, 128], sizes = [1, 128], strides = [1, 1]} : vector<1x384xf32> to vector<1x128xf32>
    %161 = vector.extract_strided_slice %158 {offsets = [0, 256], sizes = [1, 128], strides = [1, 1]} : vector<1x384xf32> to vector<1x128xf32>
    %162 = vector.extract_strided_slice %150 {offsets = [0, 384], sizes = [1, 128], strides = [1, 1]} : vector<1x512xf32> to vector<1x128xf32>
    %163 = math.tanh %162 : vector<1x128xf32>
    %164 = arith.mulf %160, %120 : vector<1x128xf32>
    %165 = arith.mulf %159, %163 : vector<1x128xf32>
    %166 = arith.addf %164, %165 : vector<1x128xf32>
    %167 = math.tanh %166 : vector<1x128xf32>
    %168 = arith.mulf %161, %167 : vector<1x128xf32>
    %cst_43 = arith.constant dense<0.000000e+00> : vector<1x512xf32>
    %169 = tpu.matmul %168, %3, %cst_43 {dimension_numbers = #tpu.dot_dimension_numbers<[1], [0], [0], [1], [0, 0, 1, 1], [], []>} : vector<1x128xf32>, vector<128x512xf32>, vector<1x512xf32> -> vector<1x512xf32>
    %170 = arith.addf %169, %5 : vector<1x512xf32>
    %cst_44 = arith.constant dense<0.000000e+00> : vector<1x512xf32>
    %171 = tpu.matmul %144, %4, %cst_44 {dimension_numbers = #tpu.dot_dimension_numbers<[1], [0], [0], [1], [0, 0, 1, 1], [], []>} : vector<1x128xf32>, vector<128x512xf32>, vector<1x512xf32> -> vector<1x512xf32>
    %172 = arith.addf %170, %171 : vector<1x512xf32>
    %173 = vector.extract_strided_slice %172 {offsets = [0, 0], sizes = [1, 384], strides = [1, 1]} : vector<1x512xf32> to vector<1x384xf32>
    %cst_45 = arith.constant 5.000000e-01 : f32
    %174 = vector.broadcast %cst_45 : f32 to vector<1x384xf32>
    %175 = arith.mulf %174, %173 : vector<1x384xf32>
    %176 = math.tanh %175 : vector<1x384xf32>
    %cst_46 = arith.constant 5.000000e-01 : f32
    %177 = vector.broadcast %cst_46 : f32 to vector<1x384xf32>
    %178 = arith.mulf %177, %176 : vector<1x384xf32>
    %cst_47 = arith.constant 5.000000e-01 : f32
    %179 = vector.broadcast %cst_47 : f32 to vector<1x384xf32>
    %180 = arith.addf %178, %179 : vector<1x384xf32>
    %181 = vector.extract_strided_slice %180 {offsets = [0, 0], sizes = [1, 128], strides = [1, 1]} : vector<1x384xf32> to vector<1x128xf32>
    %182 = vector.extract_strided_slice %180 {offsets = [0, 128], sizes = [1, 128], strides = [1, 1]} : vector<1x384xf32> to vector<1x128xf32>
    %183 = vector.extract_strided_slice %180 {offsets = [0, 256], sizes = [1, 128], strides = [1, 1]} : vector<1x384xf32> to vector<1x128xf32>
    %184 = vector.extract_strided_slice %172 {offsets = [0, 384], sizes = [1, 128], strides = [1, 1]} : vector<1x512xf32> to vector<1x128xf32>
    %185 = math.tanh %184 : vector<1x128xf32>
    %186 = arith.mulf %182, %142 : vector<1x128xf32>
    %187 = arith.mulf %181, %185 : vector<1x128xf32>
    %188 = arith.addf %186, %187 : vector<1x128xf32>
    %189 = math.tanh %188 : vector<1x128xf32>
    %190 = arith.mulf %183, %189 : vector<1x128xf32>
    %c4 = arith.constant 4 : index
    %191 = memref.load %arg0[%c4] : memref<8xf32, #tpu.memory_space<smem>>
    %192 = vector.broadcast %191 : f32 to vector<1x512xf32>
    %193 = arith.mulf %192, %0 : vector<1x512xf32>
    %194 = arith.addf %193, %2 : vector<1x512xf32>
    %cst_48 = arith.constant dense<0.000000e+00> : vector<1x512xf32>
    %195 = tpu.matmul %168, %1, %cst_48 {dimension_numbers = #tpu.dot_dimension_numbers<[1], [0], [0], [1], [0, 0, 1, 1], [], []>} : vector<1x128xf32>, vector<128x512xf32>, vector<1x512xf32> -> vector<1x512xf32>
    %196 = arith.addf %194, %195 : vector<1x512xf32>
    %197 = vector.extract_strided_slice %196 {offsets = [0, 0], sizes = [1, 384], strides = [1, 1]} : vector<1x512xf32> to vector<1x384xf32>
    %cst_49 = arith.constant 5.000000e-01 : f32
    %198 = vector.broadcast %cst_49 : f32 to vector<1x384xf32>
    %199 = arith.mulf %198, %197 : vector<1x384xf32>
    %200 = math.tanh %199 : vector<1x384xf32>
    %cst_50 = arith.constant 5.000000e-01 : f32
    %201 = vector.broadcast %cst_50 : f32 to vector<1x384xf32>
    %202 = arith.mulf %201, %200 : vector<1x384xf32>
    %cst_51 = arith.constant 5.000000e-01 : f32
    %203 = vector.broadcast %cst_51 : f32 to vector<1x384xf32>
    %204 = arith.addf %202, %203 : vector<1x384xf32>
    %205 = vector.extract_strided_slice %204 {offsets = [0, 0], sizes = [1, 128], strides = [1, 1]} : vector<1x384xf32> to vector<1x128xf32>
    %206 = vector.extract_strided_slice %204 {offsets = [0, 128], sizes = [1, 128], strides = [1, 1]} : vector<1x384xf32> to vector<1x128xf32>
    %207 = vector.extract_strided_slice %204 {offsets = [0, 256], sizes = [1, 128], strides = [1, 1]} : vector<1x384xf32> to vector<1x128xf32>
    %208 = vector.extract_strided_slice %196 {offsets = [0, 384], sizes = [1, 128], strides = [1, 1]} : vector<1x512xf32> to vector<1x128xf32>
    %209 = math.tanh %208 : vector<1x128xf32>
    %210 = arith.mulf %206, %166 : vector<1x128xf32>
    %211 = arith.mulf %205, %209 : vector<1x128xf32>
    %212 = arith.addf %210, %211 : vector<1x128xf32>
    %213 = math.tanh %212 : vector<1x128xf32>
    %214 = arith.mulf %207, %213 : vector<1x128xf32>
    %cst_52 = arith.constant dense<0.000000e+00> : vector<1x512xf32>
    %215 = tpu.matmul %214, %3, %cst_52 {dimension_numbers = #tpu.dot_dimension_numbers<[1], [0], [0], [1], [0, 0, 1, 1], [], []>} : vector<1x128xf32>, vector<128x512xf32>, vector<1x512xf32> -> vector<1x512xf32>
    %216 = arith.addf %215, %5 : vector<1x512xf32>
    %cst_53 = arith.constant dense<0.000000e+00> : vector<1x512xf32>
    %217 = tpu.matmul %190, %4, %cst_53 {dimension_numbers = #tpu.dot_dimension_numbers<[1], [0], [0], [1], [0, 0, 1, 1], [], []>} : vector<1x128xf32>, vector<128x512xf32>, vector<1x512xf32> -> vector<1x512xf32>
    %218 = arith.addf %216, %217 : vector<1x512xf32>
    %219 = vector.extract_strided_slice %218 {offsets = [0, 0], sizes = [1, 384], strides = [1, 1]} : vector<1x512xf32> to vector<1x384xf32>
    %cst_54 = arith.constant 5.000000e-01 : f32
    %220 = vector.broadcast %cst_54 : f32 to vector<1x384xf32>
    %221 = arith.mulf %220, %219 : vector<1x384xf32>
    %222 = math.tanh %221 : vector<1x384xf32>
    %cst_55 = arith.constant 5.000000e-01 : f32
    %223 = vector.broadcast %cst_55 : f32 to vector<1x384xf32>
    %224 = arith.mulf %223, %222 : vector<1x384xf32>
    %cst_56 = arith.constant 5.000000e-01 : f32
    %225 = vector.broadcast %cst_56 : f32 to vector<1x384xf32>
    %226 = arith.addf %224, %225 : vector<1x384xf32>
    %227 = vector.extract_strided_slice %226 {offsets = [0, 0], sizes = [1, 128], strides = [1, 1]} : vector<1x384xf32> to vector<1x128xf32>
    %228 = vector.extract_strided_slice %226 {offsets = [0, 128], sizes = [1, 128], strides = [1, 1]} : vector<1x384xf32> to vector<1x128xf32>
    %229 = vector.extract_strided_slice %226 {offsets = [0, 256], sizes = [1, 128], strides = [1, 1]} : vector<1x384xf32> to vector<1x128xf32>
    %230 = vector.extract_strided_slice %218 {offsets = [0, 384], sizes = [1, 128], strides = [1, 1]} : vector<1x512xf32> to vector<1x128xf32>
    %231 = math.tanh %230 : vector<1x128xf32>
    %232 = arith.mulf %228, %188 : vector<1x128xf32>
    %233 = arith.mulf %227, %231 : vector<1x128xf32>
    %234 = arith.addf %232, %233 : vector<1x128xf32>
    %235 = math.tanh %234 : vector<1x128xf32>
    %236 = arith.mulf %229, %235 : vector<1x128xf32>
    %c5 = arith.constant 5 : index
    %237 = memref.load %arg0[%c5] : memref<8xf32, #tpu.memory_space<smem>>
    %238 = vector.broadcast %237 : f32 to vector<1x512xf32>
    %239 = arith.mulf %238, %0 : vector<1x512xf32>
    %240 = arith.addf %239, %2 : vector<1x512xf32>
    %cst_57 = arith.constant dense<0.000000e+00> : vector<1x512xf32>
    %241 = tpu.matmul %214, %1, %cst_57 {dimension_numbers = #tpu.dot_dimension_numbers<[1], [0], [0], [1], [0, 0, 1, 1], [], []>} : vector<1x128xf32>, vector<128x512xf32>, vector<1x512xf32> -> vector<1x512xf32>
    %242 = arith.addf %240, %241 : vector<1x512xf32>
    %243 = vector.extract_strided_slice %242 {offsets = [0, 0], sizes = [1, 384], strides = [1, 1]} : vector<1x512xf32> to vector<1x384xf32>
    %cst_58 = arith.constant 5.000000e-01 : f32
    %244 = vector.broadcast %cst_58 : f32 to vector<1x384xf32>
    %245 = arith.mulf %244, %243 : vector<1x384xf32>
    %246 = math.tanh %245 : vector<1x384xf32>
    %cst_59 = arith.constant 5.000000e-01 : f32
    %247 = vector.broadcast %cst_59 : f32 to vector<1x384xf32>
    %248 = arith.mulf %247, %246 : vector<1x384xf32>
    %cst_60 = arith.constant 5.000000e-01 : f32
    %249 = vector.broadcast %cst_60 : f32 to vector<1x384xf32>
    %250 = arith.addf %248, %249 : vector<1x384xf32>
    %251 = vector.extract_strided_slice %250 {offsets = [0, 0], sizes = [1, 128], strides = [1, 1]} : vector<1x384xf32> to vector<1x128xf32>
    %252 = vector.extract_strided_slice %250 {offsets = [0, 128], sizes = [1, 128], strides = [1, 1]} : vector<1x384xf32> to vector<1x128xf32>
    %253 = vector.extract_strided_slice %250 {offsets = [0, 256], sizes = [1, 128], strides = [1, 1]} : vector<1x384xf32> to vector<1x128xf32>
    %254 = vector.extract_strided_slice %242 {offsets = [0, 384], sizes = [1, 128], strides = [1, 1]} : vector<1x512xf32> to vector<1x128xf32>
    %255 = math.tanh %254 : vector<1x128xf32>
    %256 = arith.mulf %252, %212 : vector<1x128xf32>
    %257 = arith.mulf %251, %255 : vector<1x128xf32>
    %258 = arith.addf %256, %257 : vector<1x128xf32>
    %259 = math.tanh %258 : vector<1x128xf32>
    %260 = arith.mulf %253, %259 : vector<1x128xf32>
    %cst_61 = arith.constant dense<0.000000e+00> : vector<1x512xf32>
    %261 = tpu.matmul %260, %3, %cst_61 {dimension_numbers = #tpu.dot_dimension_numbers<[1], [0], [0], [1], [0, 0, 1, 1], [], []>} : vector<1x128xf32>, vector<128x512xf32>, vector<1x512xf32> -> vector<1x512xf32>
    %262 = arith.addf %261, %5 : vector<1x512xf32>
    %cst_62 = arith.constant dense<0.000000e+00> : vector<1x512xf32>
    %263 = tpu.matmul %236, %4, %cst_62 {dimension_numbers = #tpu.dot_dimension_numbers<[1], [0], [0], [1], [0, 0, 1, 1], [], []>} : vector<1x128xf32>, vector<128x512xf32>, vector<1x512xf32> -> vector<1x512xf32>
    %264 = arith.addf %262, %263 : vector<1x512xf32>
    %265 = vector.extract_strided_slice %264 {offsets = [0, 0], sizes = [1, 384], strides = [1, 1]} : vector<1x512xf32> to vector<1x384xf32>
    %cst_63 = arith.constant 5.000000e-01 : f32
    %266 = vector.broadcast %cst_63 : f32 to vector<1x384xf32>
    %267 = arith.mulf %266, %265 : vector<1x384xf32>
    %268 = math.tanh %267 : vector<1x384xf32>
    %cst_64 = arith.constant 5.000000e-01 : f32
    %269 = vector.broadcast %cst_64 : f32 to vector<1x384xf32>
    %270 = arith.mulf %269, %268 : vector<1x384xf32>
    %cst_65 = arith.constant 5.000000e-01 : f32
    %271 = vector.broadcast %cst_65 : f32 to vector<1x384xf32>
    %272 = arith.addf %270, %271 : vector<1x384xf32>
    %273 = vector.extract_strided_slice %272 {offsets = [0, 0], sizes = [1, 128], strides = [1, 1]} : vector<1x384xf32> to vector<1x128xf32>
    %274 = vector.extract_strided_slice %272 {offsets = [0, 128], sizes = [1, 128], strides = [1, 1]} : vector<1x384xf32> to vector<1x128xf32>
    %275 = vector.extract_strided_slice %272 {offsets = [0, 256], sizes = [1, 128], strides = [1, 1]} : vector<1x384xf32> to vector<1x128xf32>
    %276 = vector.extract_strided_slice %264 {offsets = [0, 384], sizes = [1, 128], strides = [1, 1]} : vector<1x512xf32> to vector<1x128xf32>
    %277 = math.tanh %276 : vector<1x128xf32>
    %278 = arith.mulf %274, %234 : vector<1x128xf32>
    %279 = arith.mulf %273, %277 : vector<1x128xf32>
    %280 = arith.addf %278, %279 : vector<1x128xf32>
    %281 = math.tanh %280 : vector<1x128xf32>
    %282 = arith.mulf %275, %281 : vector<1x128xf32>
    %c6 = arith.constant 6 : index
    %283 = memref.load %arg0[%c6] : memref<8xf32, #tpu.memory_space<smem>>
    %284 = vector.broadcast %283 : f32 to vector<1x512xf32>
    %285 = arith.mulf %284, %0 : vector<1x512xf32>
    %286 = arith.addf %285, %2 : vector<1x512xf32>
    %cst_66 = arith.constant dense<0.000000e+00> : vector<1x512xf32>
    %287 = tpu.matmul %260, %1, %cst_66 {dimension_numbers = #tpu.dot_dimension_numbers<[1], [0], [0], [1], [0, 0, 1, 1], [], []>} : vector<1x128xf32>, vector<128x512xf32>, vector<1x512xf32> -> vector<1x512xf32>
    %288 = arith.addf %286, %287 : vector<1x512xf32>
    %289 = vector.extract_strided_slice %288 {offsets = [0, 0], sizes = [1, 384], strides = [1, 1]} : vector<1x512xf32> to vector<1x384xf32>
    %cst_67 = arith.constant 5.000000e-01 : f32
    %290 = vector.broadcast %cst_67 : f32 to vector<1x384xf32>
    %291 = arith.mulf %290, %289 : vector<1x384xf32>
    %292 = math.tanh %291 : vector<1x384xf32>
    %cst_68 = arith.constant 5.000000e-01 : f32
    %293 = vector.broadcast %cst_68 : f32 to vector<1x384xf32>
    %294 = arith.mulf %293, %292 : vector<1x384xf32>
    %cst_69 = arith.constant 5.000000e-01 : f32
    %295 = vector.broadcast %cst_69 : f32 to vector<1x384xf32>
    %296 = arith.addf %294, %295 : vector<1x384xf32>
    %297 = vector.extract_strided_slice %296 {offsets = [0, 0], sizes = [1, 128], strides = [1, 1]} : vector<1x384xf32> to vector<1x128xf32>
    %298 = vector.extract_strided_slice %296 {offsets = [0, 128], sizes = [1, 128], strides = [1, 1]} : vector<1x384xf32> to vector<1x128xf32>
    %299 = vector.extract_strided_slice %296 {offsets = [0, 256], sizes = [1, 128], strides = [1, 1]} : vector<1x384xf32> to vector<1x128xf32>
    %300 = vector.extract_strided_slice %288 {offsets = [0, 384], sizes = [1, 128], strides = [1, 1]} : vector<1x512xf32> to vector<1x128xf32>
    %301 = math.tanh %300 : vector<1x128xf32>
    %302 = arith.mulf %298, %258 : vector<1x128xf32>
    %303 = arith.mulf %297, %301 : vector<1x128xf32>
    %304 = arith.addf %302, %303 : vector<1x128xf32>
    %305 = math.tanh %304 : vector<1x128xf32>
    %306 = arith.mulf %299, %305 : vector<1x128xf32>
    %cst_70 = arith.constant dense<0.000000e+00> : vector<1x512xf32>
    %307 = tpu.matmul %306, %3, %cst_70 {dimension_numbers = #tpu.dot_dimension_numbers<[1], [0], [0], [1], [0, 0, 1, 1], [], []>} : vector<1x128xf32>, vector<128x512xf32>, vector<1x512xf32> -> vector<1x512xf32>
    %308 = arith.addf %307, %5 : vector<1x512xf32>
    %cst_71 = arith.constant dense<0.000000e+00> : vector<1x512xf32>
    %309 = tpu.matmul %282, %4, %cst_71 {dimension_numbers = #tpu.dot_dimension_numbers<[1], [0], [0], [1], [0, 0, 1, 1], [], []>} : vector<1x128xf32>, vector<128x512xf32>, vector<1x512xf32> -> vector<1x512xf32>
    %310 = arith.addf %308, %309 : vector<1x512xf32>
    %311 = vector.extract_strided_slice %310 {offsets = [0, 0], sizes = [1, 384], strides = [1, 1]} : vector<1x512xf32> to vector<1x384xf32>
    %cst_72 = arith.constant 5.000000e-01 : f32
    %312 = vector.broadcast %cst_72 : f32 to vector<1x384xf32>
    %313 = arith.mulf %312, %311 : vector<1x384xf32>
    %314 = math.tanh %313 : vector<1x384xf32>
    %cst_73 = arith.constant 5.000000e-01 : f32
    %315 = vector.broadcast %cst_73 : f32 to vector<1x384xf32>
    %316 = arith.mulf %315, %314 : vector<1x384xf32>
    %cst_74 = arith.constant 5.000000e-01 : f32
    %317 = vector.broadcast %cst_74 : f32 to vector<1x384xf32>
    %318 = arith.addf %316, %317 : vector<1x384xf32>
    %319 = vector.extract_strided_slice %318 {offsets = [0, 0], sizes = [1, 128], strides = [1, 1]} : vector<1x384xf32> to vector<1x128xf32>
    %320 = vector.extract_strided_slice %318 {offsets = [0, 128], sizes = [1, 128], strides = [1, 1]} : vector<1x384xf32> to vector<1x128xf32>
    %321 = vector.extract_strided_slice %318 {offsets = [0, 256], sizes = [1, 128], strides = [1, 1]} : vector<1x384xf32> to vector<1x128xf32>
    %322 = vector.extract_strided_slice %310 {offsets = [0, 384], sizes = [1, 128], strides = [1, 1]} : vector<1x512xf32> to vector<1x128xf32>
    %323 = math.tanh %322 : vector<1x128xf32>
    %324 = arith.mulf %320, %280 : vector<1x128xf32>
    %325 = arith.mulf %319, %323 : vector<1x128xf32>
    %326 = arith.addf %324, %325 : vector<1x128xf32>
    %327 = math.tanh %326 : vector<1x128xf32>
    %328 = arith.mulf %321, %327 : vector<1x128xf32>
    %c7 = arith.constant 7 : index
    %329 = memref.load %arg0[%c7] : memref<8xf32, #tpu.memory_space<smem>>
    %330 = vector.broadcast %329 : f32 to vector<1x512xf32>
    %331 = arith.mulf %330, %0 : vector<1x512xf32>
    %332 = arith.addf %331, %2 : vector<1x512xf32>
    %cst_75 = arith.constant dense<0.000000e+00> : vector<1x512xf32>
    %333 = tpu.matmul %306, %1, %cst_75 {dimension_numbers = #tpu.dot_dimension_numbers<[1], [0], [0], [1], [0, 0, 1, 1], [], []>} : vector<1x128xf32>, vector<128x512xf32>, vector<1x512xf32> -> vector<1x512xf32>
    %334 = arith.addf %332, %333 : vector<1x512xf32>
    %335 = vector.extract_strided_slice %334 {offsets = [0, 0], sizes = [1, 384], strides = [1, 1]} : vector<1x512xf32> to vector<1x384xf32>
    %cst_76 = arith.constant 5.000000e-01 : f32
    %336 = vector.broadcast %cst_76 : f32 to vector<1x384xf32>
    %337 = arith.mulf %336, %335 : vector<1x384xf32>
    %338 = math.tanh %337 : vector<1x384xf32>
    %cst_77 = arith.constant 5.000000e-01 : f32
    %339 = vector.broadcast %cst_77 : f32 to vector<1x384xf32>
    %340 = arith.mulf %339, %338 : vector<1x384xf32>
    %cst_78 = arith.constant 5.000000e-01 : f32
    %341 = vector.broadcast %cst_78 : f32 to vector<1x384xf32>
    %342 = arith.addf %340, %341 : vector<1x384xf32>
    %343 = vector.extract_strided_slice %342 {offsets = [0, 0], sizes = [1, 128], strides = [1, 1]} : vector<1x384xf32> to vector<1x128xf32>
    %344 = vector.extract_strided_slice %342 {offsets = [0, 128], sizes = [1, 128], strides = [1, 1]} : vector<1x384xf32> to vector<1x128xf32>
    %345 = vector.extract_strided_slice %342 {offsets = [0, 256], sizes = [1, 128], strides = [1, 1]} : vector<1x384xf32> to vector<1x128xf32>
    %346 = vector.extract_strided_slice %334 {offsets = [0, 384], sizes = [1, 128], strides = [1, 1]} : vector<1x512xf32> to vector<1x128xf32>
    %347 = math.tanh %346 : vector<1x128xf32>
    %348 = arith.mulf %344, %304 : vector<1x128xf32>
    %349 = arith.mulf %343, %347 : vector<1x128xf32>
    %350 = arith.addf %348, %349 : vector<1x128xf32>
    %351 = math.tanh %350 : vector<1x128xf32>
    %352 = arith.mulf %345, %351 : vector<1x128xf32>
    %cst_79 = arith.constant dense<0.000000e+00> : vector<1x512xf32>
    %353 = tpu.matmul %352, %3, %cst_79 {dimension_numbers = #tpu.dot_dimension_numbers<[1], [0], [0], [1], [0, 0, 1, 1], [], []>} : vector<1x128xf32>, vector<128x512xf32>, vector<1x512xf32> -> vector<1x512xf32>
    %354 = arith.addf %353, %5 : vector<1x512xf32>
    %cst_80 = arith.constant dense<0.000000e+00> : vector<1x512xf32>
    %355 = tpu.matmul %328, %4, %cst_80 {dimension_numbers = #tpu.dot_dimension_numbers<[1], [0], [0], [1], [0, 0, 1, 1], [], []>} : vector<1x128xf32>, vector<128x512xf32>, vector<1x512xf32> -> vector<1x512xf32>
    %356 = arith.addf %354, %355 : vector<1x512xf32>
    %357 = vector.extract_strided_slice %356 {offsets = [0, 0], sizes = [1, 384], strides = [1, 1]} : vector<1x512xf32> to vector<1x384xf32>
    %cst_81 = arith.constant 5.000000e-01 : f32
    %358 = vector.broadcast %cst_81 : f32 to vector<1x384xf32>
    %359 = arith.mulf %358, %357 : vector<1x384xf32>
    %360 = math.tanh %359 : vector<1x384xf32>
    %cst_82 = arith.constant 5.000000e-01 : f32
    %361 = vector.broadcast %cst_82 : f32 to vector<1x384xf32>
    %362 = arith.mulf %361, %360 : vector<1x384xf32>
    %cst_83 = arith.constant 5.000000e-01 : f32
    %363 = vector.broadcast %cst_83 : f32 to vector<1x384xf32>
    %364 = arith.addf %362, %363 : vector<1x384xf32>
    %365 = vector.extract_strided_slice %364 {offsets = [0, 0], sizes = [1, 128], strides = [1, 1]} : vector<1x384xf32> to vector<1x128xf32>
    %366 = vector.extract_strided_slice %364 {offsets = [0, 128], sizes = [1, 128], strides = [1, 1]} : vector<1x384xf32> to vector<1x128xf32>
    %367 = vector.extract_strided_slice %364 {offsets = [0, 256], sizes = [1, 128], strides = [1, 1]} : vector<1x384xf32> to vector<1x128xf32>
    %368 = vector.extract_strided_slice %356 {offsets = [0, 384], sizes = [1, 128], strides = [1, 1]} : vector<1x512xf32> to vector<1x128xf32>
    %369 = math.tanh %368 : vector<1x128xf32>
    %370 = arith.mulf %366, %326 : vector<1x128xf32>
    %371 = arith.mulf %365, %369 : vector<1x128xf32>
    %372 = arith.addf %370, %371 : vector<1x128xf32>
    %373 = math.tanh %372 : vector<1x128xf32>
    %374 = arith.mulf %367, %373 : vector<1x128xf32>
    %c0_84 = arith.constant 0 : index
    %c0_85 = arith.constant 0 : index
    %375 = vector.load %arg7[%c0_84, %c0_85] : memref<1x128xf32, #tpu.memory_space<vmem>>, vector<1x128xf32>
    tpu.vector_store %arg7[%c0_84, %c0_85], %374 {strides = array<i32>} : memref<1x128xf32, #tpu.memory_space<vmem>>, vector<1x128xf32>,
    return
  }
}

</mosaic_0001>

<bundles_post_ra>
// kernel: encoder_forward.1
= control target key start
LH: loop header
LB: loop body
LE: loop exit
PB: predicated region body
PF: predicated region fallthrough
CT: control target
= control target key end

     0   :  { %12 = vsyncpa [#allocation5], 0  ;;  %s6972_s0 = inlined_call_operand.hbm [shape: f32[8], index: 0, kind: input, shape index: {}]   ;;  %s6973_s1 = inlined_call_operand.vmem [shape: f32[1,512], index: 1, kind: input, shape index: {}]   ;;  %s6974_s2 = inlined_call_operand.hbm [shape: f32[128,512], index: 2, kind: input, shape index: {}]   ;;  %s6975_s3 = inlined_call_operand.hbm [shape: f32[1,512], index: 3, kind: input, shape index: {}]   ;;  %s6976_s4 = inlined_call_operand.hbm [shape: f32[128,512], index: 4, kind: input, shape index: {}]   ;;  %s6977_s5 = inlined_call_operand.hbm [shape: f32[128,512], index: 5, kind: input, shape index: {}]   ;;  %s6978_s6 = inlined_call_operand.hbm [shape: f32[1,512], index: 6, kind: input, shape index: {}]   ;;  %s6979_s7 = inlined_call_operand.hbm [shape: f32[1,128], index: 7, kind: output, shape index: {}]  }
   0x1   :  { %13 = vsyncpa [#allocation3], 0 }
   0x2   :  { %14 = vsyncpa [#allocation8], 0 }
   0x3   :  { %15 = vsyncpa [#allocation11], 0  ;;  %s46_s26 = sshll.u32 %s6975_s3, 4  ;;  %s47_s26 = int_to_ptr.hbm [resolvable:$true] %s46_s26 }
   0x4   :  { %16 = vsyncpa [#allocation4], 0  ;;  %s3603_s27 = smov [#allocation7]   ;;  %s69_s8 = sshll.u32 %s6977_s5, 4  ;;  %s70_s8 = int_to_ptr.hbm [resolvable:$true] %s69_s8 }
   0x5   :  { %s48_s28 = sshll.u32 %s3603_s27, 4  ;;  %s3604_s9 = smov [#allocation10]   ;;  %s49_s28 = int_to_ptr.vmem [resolvable:$true] %s48_s28 }
   0x6   :  { %51 = dma.hbm_to_vmem [thread:$0]  %s47_s26, 64, %s49_s28, [#allocation8]  }
   0x7   :  { %s71_s10 = sshll.u32 %s3604_s9, 4  ;;  %s22_s13 = sshll.u32 %s6972_s0, 4  ;;  %s72_s10 = int_to_ptr.vmem [resolvable:$true] %s71_s10  ;;  %s23_s13 = int_to_ptr.hbm [resolvable:$true] %s22_s13 }
   0x8   :  { %s3605_s3 = smov 512   ;;  %s3606_s14 = smov 32  }
   0x9   :  { %77 = dma.hbm_to_vmem [thread:$0]  %s70_s8, 8192, %s72_s10, [#allocation11], %s3605_s3, %s3605_s3, %s3606_s14  }
   0xa   :  { %s32_s17 = sshll.u32 %s6974_s2, 4  ;;  %s3607_s18 = smov [#allocation2]   ;;  %s33_s17 = int_to_ptr.hbm [resolvable:$true] %s32_s17 }
   0xb   :  { %25 = dma.hbm_to_smem %s23_s13, 16, %s3607_s18, [#allocation5]  }
   0xc   :  { %s3608_s5 = smov [#allocation6]   ;;  %s56_s22 = sshll.u32 %s6976_s4, 4  ;;  %s57_s22 = int_to_ptr.hbm [resolvable:$true] %s56_s22 }
   0xd   :  { %s34_s19 = sshll.u32 %s3608_s5, 4  ;;  %s83_s24 = sshll.u32 %s6978_s6, 4  ;;  %s35_s19 = int_to_ptr.vmem [resolvable:$true] %s34_s19  ;;  %s84_s24 = int_to_ptr.hbm [resolvable:$true] %s83_s24 }
   0xe   :  { %40 = dma.hbm_to_vmem [thread:$0]  %s33_s17, 8192, %s35_s19, [#allocation3], %s3605_s3, %s3605_s3, %s3606_s14  }
   0xf   :  { %s3609_s25 = smov [#allocation9]   ;;  %s3610_s2 = smov [#allocation12]  }
  0x10   :  { %s58_s26 = sshll.u32 %s3609_s25, 4  ;;  %s85_s27 = sshll.u32 %s3610_s2, 4  ;;  %s59_s26 = int_to_ptr.vmem [resolvable:$true] %s58_s26  ;;  %s86_s27 = int_to_ptr.vmem [resolvable:$true] %s85_s27 }
  0x11   :  { %64 = dma.hbm_to_vmem [thread:$0]  %s57_s22, 8192, %s59_s26, [#allocation8], %s3605_s3, %s3605_s3, %s3606_s14  }
  0x12   :  { %88 = dma.hbm_to_vmem [thread:$0]  %s84_s24, 64, %s86_s27, [#allocation11]  }
  0x13   :  { %3593 = dma.done.wait [#allocation5], 16  }
  0x14   :  { %3594 = vsyncadd [#allocation5], 4294967280 }
  0x15   :  { %3595 = dma.done.wait [#allocation3], 8192  }
  0x16   :  { %3596 = vsyncadd [#allocation3], 4294959104 }
  0x17   :  { %3597 = dma.done.wait [#allocation8], 8256  }
  0x18   :  { %3598 = vsyncadd [#allocation8], 4294959040 }
  0x19   :  { %3599 = dma.done.wait [#allocation11], 8256  }
  0x1a   :  { %3600 = vsyncadd [#allocation11], 4294959040 }
  0x1b   :  { %113 = sfence }
  0x1c   :  { %v3671_v0 = vld [vmem:[#allocation6 + $0x1f0] sm:$0xff]  ;;  %v3673_v1 = vld [vmem:[#allocation6 + $0x1f8] sm:$0xff]  ;;  %v3685_v6 = vld [vmem:[#allocation6 + $0x1e8] sm:$0xff]  ;;  %s4139_s4 = sld [smem:[#allocation2]]  ;;  %vm400_vm0 = vcmask 1040384   ;;  %vm402_vm1 = vcmask 1042434  }
  0x1d   :  { %v3675_v2 = vld [vmem:[#allocation6 + $0x1d0] sm:$0xff]  ;;  %353 = vmatpush.msra.mxu2 %v3671_v0  ;;  %373 = vmatpush.msra.mxu3 %v3673_v1  ;;  %v3679_v3 = vld [vmem:[#allocation6 + $0x1d8] sm:$0xff]  ;;  %v3689_v7 = vld [vmem:[#allocation6 + $0x1e0] sm:$0xff]  ;;  %vm404_vm2 = vcmask 1041408   ;;  %s2710_s29 = sld [smem:[#allocation2 + $0x1]]  ;;  %s3612_s17 = smov [#allocation13]  }
  0x1e   :  { %v3681_v4 = vld [vmem:[#allocation6 + $0x1b0] sm:$0xff]  ;;  %v3683_v5 = vld [vmem:[#allocation6 + $0x1b8] sm:$0xff]  ;;  %v3691_v8 = vld [vmem:[#allocation6 + $0x1c8] sm:$0xff]  ;;  %333 = vmatpush.msra.mxu1 %v3685_v6  ;;  %313 = vmatpush.msra.mxu0 %v3689_v7  ;;  %s2711_s30 = sld [smem:[#allocation2 + $0x2]]  ;;  %s2695_s18 = sshll.u32 %s3612_s17, 4  ;;  %s2696_s18 = int_to_ptr.vmem [resolvable:$true] %s2695_s18 }
  0x1f   :  { %354 = vmatpush.msra.mxu2 %v3675_v2  ;;  %374 = vmatpush.msra.mxu3 %v3679_v3  ;;  %v3694_v9 = vld [vmem:[#allocation6 + $0x190] sm:$0xff]  ;;  %v3696_v10 = vld [vmem:[#allocation6 + $0x198] sm:$0xff]  ;;  %v3699_v11 = vld [vmem:[#allocation6 + $0x1c0] sm:$0xff]  ;;  %s2712_s10 = sld [smem:[#allocation2 + $0x3]]  ;;  %s2697_s20 = sshll.u32 %s6979_s7, 4  ;;  %s2698_s20 = int_to_ptr.hbm [resolvable:$true] %s2697_s20 }
  0x20   :  { %v3703_v12 = vld [vmem:[#allocation6 + $0x1a8] sm:$0xff]  ;;  %v3705_v13 = vld [vmem:[#allocation6 + $0x1a0] sm:$0xff]  ;;  %334 = vmatpush.msra.mxu1 %v3691_v8  ;;  %v3708_v14 = vld [vmem:[#allocation6 + $0x170] sm:$0xff]  ;;  %314 = vmatpush.msra.mxu0 %v3699_v11  ;;  %s2713_s11 = sld [smem:[#allocation2 + $0x4]] }
  0x21   :  { %355 = vmatpush.msra.mxu2 %v3681_v4  ;;  %375 = vmatpush.msra.mxu3 %v3683_v5  ;;  %v3710_v15 = vld [vmem:[#allocation6 + $0x178] sm:$0xff]  ;;  %v3715_v16 = vld [vmem:[#allocation6 + $0x188] sm:$0xff]  ;;  %v3717_v17 = vld [vmem:[#allocation6 + $0x180] sm:$0xff]  ;;  %s2714_s3 = sld [smem:[#allocation2 + $0x5]] }
  0x22   :  { %335 = vmatpush.msra.mxu1 %v3703_v12  ;;  %v3720_v18 = vld [vmem:[#allocation6 + $0x150] sm:$0xff]  ;;  %v3722_v19 = vld [vmem:[#allocation6 + $0x158] sm:$0xff]  ;;  %315 = vmatpush.msra.mxu0 %v3705_v13  ;;  %v3727_v20 = vld [vmem:[#allocation6 + $0x168] sm:$0xff]  ;;  %s2715_s14 = sld [smem:[#allocation2 + $0x6]] }
  0x23   :  { %356 = vmatpush.msra.mxu2 %v3694_v9  ;;  %376 = vmatpush.msra.mxu3 %v3696_v10  ;;  %v3729_v21 = vld [vmem:[#allocation6 + $0x160] sm:$0xff]  ;;  %v3732_v22 = vld [vmem:[#allocation6 + $0x130] sm:$0xff]  ;;  %v3734_v23 = vld [vmem:[#allocation6 + $0x138] sm:$0xff] }
  0x24   :  { %336 = vmatpush.msra.mxu1 %v3715_v16  ;;  %316 = vmatpush.msra.mxu0 %v3717_v17  ;;  %v3739_v24 = vld [vmem:[#allocation6 + $0x148] sm:$0xff]  ;;  %v3741_v25 = vld [vmem:[#allocation6 + $0x140] sm:$0xff]  ;;  %v3744_v26 = vld [vmem:[#allocation6 + $0x110] sm:$0xff] }
  0x25   :  { %357 = vmatpush.msra.mxu2 %v3708_v14  ;;  %377 = vmatpush.msra.mxu3 %v3710_v15  ;;  %v3746_v27 = vld [vmem:[#allocation6 + $0x118] sm:$0xff]  ;;  %v3751_v28 = vld [vmem:[#allocation6 + $0x128] sm:$0xff]  ;;  %v3753_v29 = vld [vmem:[#allocation6 + $0x120] sm:$0xff] }
  0x26   :  { %337 = vmatpush.msra.mxu1 %v3727_v20  ;;  %317 = vmatpush.msra.mxu0 %v3729_v21  ;;  %v3756_v30 = vld [vmem:[#allocation6 + $0xf0] sm:$0xff]  ;;  %v3758_v31 = vld [vmem:[#allocation6 + $0xf8] sm:$0xff]  ;;  %v3763_v32 = vld [vmem:[#allocation6 + $0x108] sm:$0xff] }
  0x27   :  { %358 = vmatpush.msra.mxu2 %v3720_v18  ;;  %378 = vmatpush.msra.mxu3 %v3722_v19  ;;  %v3765_v33 = vld [vmem:[#allocation6 + $0x100] sm:$0xff]  ;;  %v3768_v34 = vld [vmem:[#allocation6 + $0xd0] sm:$0xff]  ;;  %v3770_v35 = vld [vmem:[#allocation6 + $0xd8] sm:$0xff] }
  0x28   :  { %338 = vmatpush.msra.mxu1 %v3739_v24  ;;  %318 = vmatpush.msra.mxu0 %v3741_v25  ;;  %v3775_v36 = vld [vmem:[#allocation6 + $0xe8] sm:$0xff]  ;;  %v3777_v37 = vld [vmem:[#allocation6 + $0xe0] sm:$0xff]  ;;  %v3780_v38 = vld [vmem:[#allocation6 + $0xb0] sm:$0xff] }
  0x29   :  { %359 = vmatpush.msra.mxu2 %v3732_v22  ;;  %379 = vmatpush.msra.mxu3 %v3734_v23  ;;  %v3782_v39 = vld [vmem:[#allocation6 + $0xb8] sm:$0xff]  ;;  %v3787_v40 = vld [vmem:[#allocation6 + $0xc8] sm:$0xff]  ;;  %v3789_v41 = vld [vmem:[#allocation6 + $0xc0] sm:$0xff] }
  0x2a   :  { %339 = vmatpush.msra.mxu1 %v3751_v28  ;;  %319 = vmatpush.msra.mxu0 %v3753_v29  ;;  %v3792_v42 = vld [vmem:[#allocation6 + $0x90] sm:$0xff]  ;;  %v3794_v43 = vld [vmem:[#allocation6 + $0x98] sm:$0xff]  ;;  %v3799_v44 = vld [vmem:[#allocation6 + $0xa8] sm:$0xff] }
  0x2b   :  { %360 = vmatpush.msra.mxu2 %v3744_v26  ;;  %380 = vmatpush.msra.mxu3 %v3746_v27  ;;  %7595 = vst [vmem:[#allocation19_spill] sm:$0xff] %v3792_v42  ;;  %v3801_v45 = vld [vmem:[#allocation6 + $0xa0] sm:$0xff]  ;;  %v3804_v46 = vld [vmem:[#allocation6 + $0x70] sm:$0xff]  ;;  %v3806_v47 = vld [vmem:[#allocation6 + $0x78] sm:$0xff] }
  0x2c   :  { %340 = vmatpush.msra.mxu1 %v3763_v32  ;;  %320 = vmatpush.msra.mxu0 %v3765_v33  ;;  %7596 = vst [vmem:[#allocation20_spill] sm:$0xff] %v3794_v43  ;;  %v3811_v48 = vld [vmem:[#allocation6 + $0x88] sm:$0xff]  ;;  %v3813_v49 = vld [vmem:[#allocation6 + $0x80] sm:$0xff]  ;;  %v3816_v50 = vld [vmem:[#allocation6 + $0x50] sm:$0xff] }
  0x2d   :  { %361 = vmatpush.msra.mxu2 %v3756_v30  ;;  %381 = vmatpush.msra.mxu3 %v3758_v31  ;;  %7597 = vst [vmem:[#allocation21_spill] sm:$0xff] %v3804_v46  ;;  %v3818_v51 = vld [vmem:[#allocation6 + $0x58] sm:$0xff]  ;;  %v3823_v52 = vld [vmem:[#allocation6 + $0x68] sm:$0xff]  ;;  %v3825_v53 = vld [vmem:[#allocation6 + $0x60] sm:$0xff] }
  0x2e   :  { %341 = vmatpush.msra.mxu1 %v3775_v36  ;;  %321 = vmatpush.msra.mxu0 %v3777_v37  ;;  %7598 = vst [vmem:[#allocation22_spill] sm:$0xff] %v3806_v47  ;;  %v3828_v54 = vld [vmem:[#allocation6 + $0x30] sm:$0xff]  ;;  %v3830_v55 = vld [vmem:[#allocation6 + $0x38] sm:$0xff]  ;;  %v3835_v56 = vld [vmem:[#allocation6 + $0x48] sm:$0xff] }
  0x2f   :  { %362 = vmatpush.msra.mxu2 %v3768_v34  ;;  %382 = vmatpush.msra.mxu3 %v3770_v35  ;;  %7599 = vst [vmem:[#allocation23_spill] sm:$0xff] %v3811_v48  ;;  %v3837_v57 = vld [vmem:[#allocation6 + $0x40] sm:$0xff]  ;;  %v3840_v58 = vld [vmem:[#allocation6 + $0x10] sm:$0xff]  ;;  %v3842_v59 = vld [vmem:[#allocation6 + $0x18] sm:$0xff] }
  0x30   :  { %342 = vmatpush.msra.mxu1 %v3787_v40  ;;  %322 = vmatpush.msra.mxu0 %v3789_v41  ;;  %7600 = vst [vmem:[#allocation24_spill] sm:$0xff] %v3816_v50  ;;  %v3849_v60 = vld [vmem:[#allocation6 + $0x28] sm:$0xff]  ;;  %v3851_v61 = vld [vmem:[#allocation6 + $0x20] sm:$0xff]  ;;  %v3855_v62 = vld [vmem:[#allocation9 + $0x1f0] sm:$0xff] }
  0x31   :  { %363 = vmatpush.msra.mxu2 %v3780_v38  ;;  %383 = vmatpush.msra.mxu3 %v3782_v39  ;;  %7601 = vst [vmem:[#allocation25_spill] sm:$0xff] %v3818_v51  ;;  %v3857_v63 = vld [vmem:[#allocation9 + $0x1f8] sm:$0xff] }
  0x32   :  { %343 = vmatpush.msra.mxu1 %v3799_v44  ;;  %323 = vmatpush.msra.mxu0 %v3801_v45  ;;  %7602 = vst [vmem:[#allocation26_spill] sm:$0xff] %v3823_v52 }
  0x33   :  { %364 = vmatpush.msra.mxu2 %v3792_v42  ;;  %384 = vmatpush.msra.mxu3 %v3794_v43  ;;  %7603 = vst [vmem:[#allocation27_spill] sm:$0xff] %v3825_v53  ;;  %v4240_v43 = vld [vmem:[#allocation10 + $0x30] sm:$0xff] }
  0x34   :  { %344 = vmatpush.msra.mxu1 %v3811_v48  ;;  %7604 = vst [vmem:[#allocation28_spill] sm:$0xff] %v3828_v54  ;;  %324 = vmatpush.msra.mxu0 %v3813_v49  ;;  %v4246_v48 = vld [vmem:[#allocation10 + $0x38] sm:$0xff] }
  0x35   :  { %365 = vmatpush.msra.mxu2 %v3804_v46  ;;  %385 = vmatpush.msra.mxu3 %v3806_v47  ;;  %7605 = vst [vmem:[#allocation29_spill] sm:$0xff] %v3830_v55  ;;  %v4215_v47 = vld [vmem:[#allocation7] sm:$0xf] }
  0x36   :  { %7606 = vst [vmem:[#allocation30_spill] sm:$0xff] %v3835_v56  ;;  %345 = vmatpush.msra.mxu1 %v3823_v52  ;;  %325 = vmatpush.msra.mxu0 %v3825_v53  ;;  %v4226_v52 = vld [vmem:[#allocation10 + $0x48] sm:$0xff]  ;;  %v4228_v53 = vld [vmem:[#allocation10 + $0x50] sm:$0xff] }
  0x37   :  { %366 = vmatpush.msra.mxu2 %v3816_v50  ;;  %386 = vmatpush.msra.mxu3 %v3818_v51  ;;  %7607 = vst [vmem:[#allocation31_spill] sm:$0xff] %v3837_v57  ;;  %v6985_v51 = vmov 0.0   ;;  %v3877_v50 = vld [vmem:[#allocation9 + $0x1d8] sm:$0xff] }
  0x38   :  { %7608 = vst [vmem:[#allocation32_spill] sm:$0xff] %v3840_v58  ;;  %346 = vmatpush.msra.mxu1 %v3835_v56  ;;  %326 = vmatpush.msra.mxu0 %v3837_v57  ;;  %v7620_v56 = vmov 0.0   ;;  %v3899_v57 = vld [vmem:[#allocation9 + $0x190] sm:$0xff] }
  0x39   :  { %7609 = vst [vmem:[#allocation33_spill] sm:$0xff] %v3842_v59  ;;  %367 = vmatpush.msra.mxu2 %v3828_v54  ;;  %387 = vmatpush.msra.mxu3 %v3830_v55  ;;  %v3861_v55 = vld [vmem:[#allocation6 + $0x8] sm:$0xff]  ;;  %v3863_v54 = vld [vmem:[#allocation6] sm:$0xff] }
  0x3a   :  { %7610 = vst [vmem:[#allocation34_spill] sm:$0xff] %v3849_v60  ;;  %347 = vmatpush.msra.mxu1 %v3849_v60  ;;  %327 = vmatpush.msra.mxu0 %v3851_v61  ;;  %v3881_v60 = vld [vmem:[#allocation9 + $0x1c0] sm:$0xff] }
  0x3b   :  { %7611 = vst [vmem:[#allocation35_spill] sm:$0xff] %v3851_v61  ;;  %368 = vmatpush.msra.mxu2 %v3840_v58  ;;  %388 = vmatpush.msra.mxu3 %v3842_v59  ;;  %v3867_v58 = vld [vmem:[#allocation9 + $0x1e0] sm:$0xff]  ;;  %v3869_v59 = vld [vmem:[#allocation9 + $0x1e8] sm:$0xff] }
  0x3c   :  { %7612 = vst [vmem:[#allocation36_spill] sm:$0xff] %v3855_v62  ;;  %369 = vmatmul.f32.vlgmr.msra.gmra.mxu2 %v6985_v51  ;;  %389 = vmatmul.f32.vlgmr.msra.gmra.mxu3 %v6985_v51  ;;  %v3875_v51 = vld [vmem:[#allocation9 + $0x1d0] sm:$0xff]  ;;  %v3883_v61 = vld [vmem:[#allocation9 + $0x1c8] sm:$0xff] }
  0x3d   :  { %7613 = vst [vmem:[#allocation37_spill] sm:$0xff] %v3857_v63  ;;  %475 = vmatpush.msrb.mxu2 %v3855_v62  ;;  %495 = vmatpush.msrb.mxu3 %v3857_v63  ;;  %v3887_v63 = vld [vmem:[#allocation9 + $0x1b0] sm:$0xff]  ;;  %v3889_v62 = vld [vmem:[#allocation9 + $0x1b8] sm:$0xff] }
  0x3e   :  { %7614 = vst [vmem:[#allocation38_spill] sm:$0xff] %v3861_v55  ;;  %348 = vmatpush.msra.mxu1 %v3861_v55  ;;  %328 = vmatpush.msra.mxu0 %v3863_v54  ;;  %v3893_v55 = vld [vmem:[#allocation9 + $0x1a0] sm:$0xff] }
  0x3f   :  { %7615 = vst [vmem:[#allocation39_spill] sm:$0xff] %v3863_v54  ;;  %349 = vmatmul.f32.vlgmr.msra.gmra.mxu1 %v7620_v56  ;;  %329 = vmatmul.f32.vlgmr.msra.gmra.mxu0 %v7620_v56  ;;  %v3895_v54 = vld [vmem:[#allocation9 + $0x1a8] sm:$0xff] }
  0x40   :  { %7616 = vst [vmem:[#allocation40_spill] sm:$0xff] %v3867_v58  ;;  %435 = vmatpush.msrb.mxu0 %v3867_v58  ;;  %455 = vmatpush.msrb.mxu1 %v3869_v59  ;;  %v3901_v58 = vld [vmem:[#allocation9 + $0x198] sm:$0xff] }
  0x41   :  { %7617 = vst [vmem:[#allocation41_spill] sm:$0xff] %v3869_v59  ;;  %476 = vmatpush.msrb.mxu2 %v3875_v51  ;;  %496 = vmatpush.msrb.mxu3 %v3877_v50  ;;  %v3905_v59 = vld [vmem:[#allocation9 + $0x180] sm:$0xff] }
  0x42   :  { %7618 = vst [vmem:[#allocation42_spill] sm:$0xff] %v3875_v51  ;;  %436 = vmatpush.msrb.mxu0 %v3881_v60  ;;  %456 = vmatpush.msrb.mxu1 %v3883_v61  ;;  %v3907_v51 = vld [vmem:[#allocation9 + $0x188] sm:$0xff] }
  0x43   :  { %7619 = vst [vmem:[#allocation43_spill] sm:$0xff] %v3877_v50  ;;  %477 = vmatpush.msrb.mxu2 %v3887_v63  ;;  %497 = vmatpush.msrb.mxu3 %v3889_v62  ;;  %v3911_v50 = vld [vmem:[#allocation9 + $0x170] sm:$0xff] }
  0x44   :  { %7621 = vst [vmem:[#allocation44_spill] sm:$0xff] %v3881_v60  ;;  %437 = vmatpush.msrb.mxu0 %v3893_v55  ;;  %457 = vmatpush.msrb.mxu1 %v3895_v54  ;;  %v3913_v60 = vld [vmem:[#allocation9 + $0x178] sm:$0xff] }
  0x45   :  { %7622 = vst [vmem:[#allocation45_spill] sm:$0xff] %v3883_v61  ;;  %478 = vmatpush.msrb.mxu2 %v3899_v57  ;;  %498 = vmatpush.msrb.mxu3 %v3901_v58  ;;  %v3917_v61 = vld [vmem:[#allocation9 + $0x160] sm:$0xff] }
  0x46   :  { %7623 = vst [vmem:[#allocation46_spill] sm:$0xff] %v3887_v63  ;;  %v3919_v63 = vld [vmem:[#allocation9 + $0x168] sm:$0xff]  ;;  %438 = vmatpush.msrb.mxu0 %v3905_v59  ;;  %458 = vmatpush.msrb.mxu1 %v3907_v51 }
  0x47   :  { %7624 = vst [vmem:[#allocation47_spill] sm:$0xff] %v3889_v62  ;;  %v3923_v62 = vld [vmem:[#allocation9 + $0x150] sm:$0xff]  ;;  %479 = vmatpush.msrb.mxu2 %v3911_v50  ;;  %499 = vmatpush.msrb.mxu3 %v3913_v60 }
  0x48   :  { %7625 = vst [vmem:[#allocation48_spill] sm:$0xff] %v3893_v55  ;;  %v3925_v55 = vld [vmem:[#allocation9 + $0x158] sm:$0xff]  ;;  %439 = vmatpush.msrb.mxu0 %v3917_v61  ;;  %459 = vmatpush.msrb.mxu1 %v3919_v63 }
  0x49   :  { %7626 = vst [vmem:[#allocation49_spill] sm:$0xff] %v3895_v54  ;;  %v3929_v54 = vld [vmem:[#allocation9 + $0x140] sm:$0xff]  ;;  %480 = vmatpush.msrb.mxu2 %v3923_v62  ;;  %500 = vmatpush.msrb.mxu3 %v3925_v55 }
  0x4a   :  { %7627 = vst [vmem:[#allocation50_spill] sm:$0xff] %v3899_v57  ;;  %v3931_v57 = vld [vmem:[#allocation9 + $0x148] sm:$0xff]  ;;  %440 = vmatpush.msrb.mxu0 %v3929_v54 }
  0x4b   :  { %7628 = vst [vmem:[#allocation51_spill] sm:$0xff] %v3901_v58  ;;  %v3935_v58 = vld [vmem:[#allocation9 + $0x130] sm:$0xff]  ;;  %460 = vmatpush.msrb.mxu1 %v3931_v57 }
  0x4c   :  { %7629 = vst [vmem:[#allocation52_spill] sm:$0xff] %v3905_v59  ;;  %v3937_v59 = vld [vmem:[#allocation9 + $0x138] sm:$0xff]  ;;  %481 = vmatpush.msrb.mxu2 %v3935_v58 }
  0x4d   :  { %7630 = vst [vmem:[#allocation53_spill] sm:$0xff] %v3907_v51  ;;  %v3941_v51 = vld [vmem:[#allocation9 + $0x120] sm:$0xff]  ;;  %501 = vmatpush.msrb.mxu3 %v3937_v59 }
  0x4e   :  { %7631 = vst [vmem:[#allocation54_spill] sm:$0xff] %v3911_v50  ;;  %v3943_v50 = vld [vmem:[#allocation9 + $0x128] sm:$0xff]  ;;  %441 = vmatpush.msrb.mxu0 %v3941_v51 }
  0x4f   :  { %7632 = vst [vmem:[#allocation55_spill] sm:$0xff] %v3913_v60  ;;  %v3947_v60 = vld [vmem:[#allocation9 + $0x110] sm:$0xff]  ;;  %461 = vmatpush.msrb.mxu1 %v3943_v50 }
  0x50   :  { %7633 = vst [vmem:[#allocation56_spill] sm:$0xff] %v3917_v61  ;;  %v3949_v61 = vld [vmem:[#allocation9 + $0x118] sm:$0xff]  ;;  %482 = vmatpush.msrb.mxu2 %v3947_v60 }
  0x51   :  { %7634 = vst [vmem:[#allocation57_spill] sm:$0xff] %v3919_v63  ;;  %v3953_v63 = vld [vmem:[#allocation9 + $0x100] sm:$0xff]  ;;  %502 = vmatpush.msrb.mxu3 %v3949_v61 }
  0x52   :  { %7635 = vst [vmem:[#allocation58_spill] sm:$0xff] %v3923_v62  ;;  %v3955_v62 = vld [vmem:[#allocation9 + $0x108] sm:$0xff]  ;;  %442 = vmatpush.msrb.mxu0 %v3953_v63 }
  0x53   :  { %7636 = vst [vmem:[#allocation59_spill] sm:$0xff] %v3925_v55  ;;  %v3959_v55 = vld [vmem:[#allocation9 + $0xf0] sm:$0xff]  ;;  %462 = vmatpush.msrb.mxu1 %v3955_v62 }
  0x54   :  { %7637 = vst [vmem:[#allocation60_spill] sm:$0xff] %v3929_v54  ;;  %v3961_v54 = vld [vmem:[#allocation9 + $0xf8] sm:$0xff]  ;;  %483 = vmatpush.msrb.mxu2 %v3959_v55 }
  0x55   :  { %7638 = vst [vmem:[#allocation61_spill] sm:$0xff] %v3931_v57  ;;  %v3965_v57 = vld [vmem:[#allocation9 + $0xe0] sm:$0xff]  ;;  %503 = vmatpush.msrb.mxu3 %v3961_v54 }
  0x56   :  { %7639 = vst [vmem:[#allocation62_spill] sm:$0xff] %v3935_v58  ;;  %v3967_v58 = vld [vmem:[#allocation9 + $0xe8] sm:$0xff]  ;;  %443 = vmatpush.msrb.mxu0 %v3965_v57 }
  0x57   :  { %7640 = vst [vmem:[#allocation63_spill] sm:$0xff] %v3937_v59  ;;  %v3971_v59 = vld [vmem:[#allocation9 + $0xd0] sm:$0xff]  ;;  %463 = vmatpush.msrb.mxu1 %v3967_v58 }
  0x58   :  { %7641 = vst [vmem:[#allocation64_spill] sm:$0xff] %v3941_v51  ;;  %v3973_v51 = vld [vmem:[#allocation9 + $0xd8] sm:$0xff]  ;;  %484 = vmatpush.msrb.mxu2 %v3971_v59 }
  0x59   :  { %7642 = vst [vmem:[#allocation65_spill] sm:$0xff] %v3943_v50  ;;  %v3977_v50 = vld [vmem:[#allocation9 + $0xc0] sm:$0xff]  ;;  %504 = vmatpush.msrb.mxu3 %v3973_v51 }
  0x5a   :  { %7643 = vst [vmem:[#allocation66_spill] sm:$0xff] %v3947_v60  ;;  %v3979_v60 = vld [vmem:[#allocation9 + $0xc8] sm:$0xff]  ;;  %444 = vmatpush.msrb.mxu0 %v3977_v50 }
  0x5b   :  { %7644 = vst [vmem:[#allocation67_spill] sm:$0xff] %v3949_v61  ;;  %v3983_v61 = vld [vmem:[#allocation9 + $0xb0] sm:$0xff]  ;;  %464 = vmatpush.msrb.mxu1 %v3979_v60 }
  0x5c   :  { %7645 = vst [vmem:[#allocation68_spill] sm:$0xff] %v3953_v63  ;;  %v3985_v63 = vld [vmem:[#allocation9 + $0xb8] sm:$0xff]  ;;  %485 = vmatpush.msrb.mxu2 %v3983_v61 }
  0x5d   :  { %7646 = vst [vmem:[#allocation69_spill] sm:$0xff] %v3955_v62  ;;  %v3989_v62 = vld [vmem:[#allocation9 + $0xa0] sm:$0xff]  ;;  %505 = vmatpush.msrb.mxu3 %v3985_v63 }
  0x5e   :  { %7647 = vst [vmem:[#allocation70_spill] sm:$0xff] %v3959_v55  ;;  %v3991_v55 = vld [vmem:[#allocation9 + $0xa8] sm:$0xff]  ;;  %445 = vmatpush.msrb.mxu0 %v3989_v62 }
  0x5f   :  { %7648 = vst [vmem:[#allocation71_spill] sm:$0xff] %v3961_v54  ;;  %v3995_v54 = vld [vmem:[#allocation9 + $0x90] sm:$0xff]  ;;  %465 = vmatpush.msrb.mxu1 %v3991_v55 }
  0x60   :  { %7649 = vst [vmem:[#allocation72_spill] sm:$0xff] %v3965_v57  ;;  %v3997_v57 = vld [vmem:[#allocation9 + $0x98] sm:$0xff]  ;;  %486 = vmatpush.msrb.mxu2 %v3995_v54 }
  0x61   :  { %7650 = vst [vmem:[#allocation73_spill] sm:$0xff] %v3967_v58  ;;  %v4001_v58 = vld [vmem:[#allocation9 + $0x80] sm:$0xff]  ;;  %506 = vmatpush.msrb.mxu3 %v3997_v57 }
  0x62   :  { %7651 = vst [vmem:[#allocation74_spill] sm:$0xff] %v3971_v59  ;;  %v4003_v59 = vld [vmem:[#allocation9 + $0x88] sm:$0xff]  ;;  %446 = vmatpush.msrb.mxu0 %v4001_v58 }
  0x63   :  { %7652 = vst [vmem:[#allocation75_spill] sm:$0xff] %v3973_v51  ;;  %v4007_v51 = vld [vmem:[#allocation9 + $0x70] sm:$0xff]  ;;  %466 = vmatpush.msrb.mxu1 %v4003_v59 }
  0x64   :  { %7653 = vst [vmem:[#allocation76_spill] sm:$0xff] %v3977_v50  ;;  %v4009_v50 = vld [vmem:[#allocation9 + $0x78] sm:$0xff]  ;;  %487 = vmatpush.msrb.mxu2 %v4007_v51 }
  0x65   :  { %7654 = vst [vmem:[#allocation77_spill] sm:$0xff] %v3979_v60  ;;  %v4013_v60 = vld [vmem:[#allocation9 + $0x60] sm:$0xff]  ;;  %507 = vmatpush.msrb.mxu3 %v4009_v50 }
  0x66   :  { %7655 = vst [vmem:[#allocation78_spill] sm:$0xff] %v3983_v61  ;;  %v4015_v61 = vld [vmem:[#allocation9 + $0x68] sm:$0xff]  ;;  %447 = vmatpush.msrb.mxu0 %v4013_v60 }
  0x67   :  { %7656 = vst [vmem:[#allocation79_spill] sm:$0xff] %v3985_v63  ;;  %v4019_v63 = vld [vmem:[#allocation9 + $0x50] sm:$0xff]  ;;  %467 = vmatpush.msrb.mxu1 %v4015_v61 }
  0x68   :  { %7657 = vst [vmem:[#allocation80_spill] sm:$0xff] %v3989_v62  ;;  %v4021_v62 = vld [vmem:[#allocation9 + $0x58] sm:$0xff]  ;;  %488 = vmatpush.msrb.mxu2 %v4019_v63 }
  0x69   :  { %7658 = vst [vmem:[#allocation81_spill] sm:$0xff] %v3991_v55  ;;  %v4025_v55 = vld [vmem:[#allocation9 + $0x40] sm:$0xff]  ;;  %508 = vmatpush.msrb.mxu3 %v4021_v62 }
  0x6a   :  { %7659 = vst [vmem:[#allocation82_spill] sm:$0xff] %v3995_v54  ;;  %v4027_v54 = vld [vmem:[#allocation9 + $0x48] sm:$0xff]  ;;  %448 = vmatpush.msrb.mxu0 %v4025_v55 }
  0x6b   :  { %7660 = vst [vmem:[#allocation83_spill] sm:$0xff] %v3997_v57  ;;  %468 = vmatpush.msrb.mxu1 %v4027_v54  ;;  %v4035_v57 = vld [vmem:[#allocation9 + $0x20] sm:$0xff] }
  0x6c   :  { %7661 = vst [vmem:[#allocation84_spill] sm:$0xff] %v4001_v58  ;;  %449 = vmatpush.msrb.mxu0 %v4035_v57  ;;  %v4201_v58 = vld [vmem:[#allocation10 + $0x90] sm:$0xff] }
  0x6d   :  { %7662 = vst [vmem:[#allocation85_spill] sm:$0xff] %v4003_v59  ;;  %v4089_v59 = vld [vmem:[#allocation10 + $0x1b8] sm:$0xff] }
  0x6e   :  { %7663 = vst [vmem:[#allocation86_spill] sm:$0xff] %v4007_v51  ;;  %v4037_v51 = vld [vmem:[#allocation9 + $0x28] sm:$0xff] }
  0x6f   :  { %7664 = vst [vmem:[#allocation87_spill] sm:$0xff] %v4009_v50  ;;  %v4039_v50 = vld [vmem:[#allocation9 + $0x30] sm:$0xff]  ;;  %469 = vmatpush.msrb.mxu1 %v4037_v51 }
  0x70   :  { %7665 = vst [vmem:[#allocation88_spill] sm:$0xff] %v4013_v60  ;;  %v4043_v60 = vld [vmem:[#allocation9 + $0x38] sm:$0xff]  ;;  %489 = vmatpush.msrb.mxu2 %v4039_v50 }
  0x71   :  { %7666 = vst [vmem:[#allocation89_spill] sm:$0xff] %v4015_v61  ;;  %509 = vmatpush.msrb.mxu3 %v4043_v60  ;;  %v4073_v61 = vld [vmem:[#allocation10 + $0x1d0] sm:$0xff] }
  0x72   :  { %7667 = vst [vmem:[#allocation90_spill] sm:$0xff] %v4019_v63  ;;  %v4049_v63 = vld [vmem:[#allocation9 + $0x8] sm:$0xff] }
  0x73   :  { %7668 = vst [vmem:[#allocation91_spill] sm:$0xff] %v4021_v62  ;;  %v4047_v62 = vld [vmem:[#allocation9] sm:$0xff]  ;;  %470 = vmatpush.msrb.mxu1 %v4049_v63 }
  0x74   :  { %7669 = vst [vmem:[#allocation92_spill] sm:$0xff] %v4025_v55  ;;  %450 = vmatpush.msrb.mxu0 %v4047_v62  ;;  %v4055_v55 = vld [vmem:[#allocation9 + $0x18] sm:$0xff] }
  0x75   :  { %7670 = vst [vmem:[#allocation93_spill] sm:$0xff] %v4027_v54  ;;  %v4051_v54 = vld [vmem:[#allocation9 + $0x10] sm:$0xff]  ;;  %510 = vmatpush.msrb.mxu3 %v4055_v55 }
  0x76   :  { %7671 = vst [vmem:[#allocation94_spill] sm:$0xff] %v4035_v57  ;;  %v4057_v57 = vld [vmem:[#allocation10 + $0x1e0] sm:$0xff]  ;;  %490 = vmatpush.msrb.mxu2 %v4051_v54 }
  0x77   :  { %7672 = vst [vmem:[#allocation95_spill] sm:$0xff] %v4037_v51  ;;  %v4059_v51 = vld [vmem:[#allocation10 + $0x1e8] sm:$0xff]  ;;  %515 = vmatpush.msra.mxu0 %v4057_v57 }
  0x78   :  { %7673 = vst [vmem:[#allocation96_spill] sm:$0xff] %v4039_v50  ;;  %v4065_v50 = vld [vmem:[#allocation10 + $0x1f8] sm:$0xff]  ;;  %535 = vmatpush.msra.mxu1 %v4059_v51 }
  0x79   :  { %7674 = vst [vmem:[#allocation97_spill] sm:$0xff] %v4043_v60  ;;  %v4063_v60 = vld [vmem:[#allocation10 + $0x1f0] sm:$0xff]  ;;  %575 = vmatpush.msra.mxu3 %v4065_v50 }
  0x7a   :  { %7675 = vst [vmem:[#allocation98_spill] sm:$0xff] %v4047_v62  ;;  %v4069_v62 = vld [vmem:[#allocation10 + $0x1c0] sm:$0xff]  ;;  %555 = vmatpush.msra.mxu2 %v4063_v60 }
  0x7b   :  { %7676 = vst [vmem:[#allocation99_spill] sm:$0xff] %v4049_v63  ;;  %v4071_v63 = vld [vmem:[#allocation10 + $0x1c8] sm:$0xff]  ;;  %516 = vmatpush.msra.mxu0 %v4069_v62 }
  0x7c   :  { %7677 = vst [vmem:[#allocation100_spill] sm:$0xff] %v4051_v54  ;;  %v4077_v54 = vld [vmem:[#allocation10 + $0x1d8] sm:$0xff]  ;;  %536 = vmatpush.msra.mxu1 %v4071_v63  ;;  %556 = vmatpush.msra.mxu2 %v4073_v61 }
  0x7d   :  { %7678 = vst [vmem:[#allocation101_spill] sm:$0xff] %v4055_v55  ;;  %v4081_v55 = vld [vmem:[#allocation10 + $0x1a0] sm:$0xff]  ;;  %576 = vmatpush.msra.mxu3 %v4077_v54 }
  0x7e   :  { %7679 = vst [vmem:[#allocation102_spill] sm:$0xff] %v4057_v57  ;;  %v4083_v57 = vld [vmem:[#allocation10 + $0x1a8] sm:$0xff]  ;;  %517 = vmatpush.msra.mxu0 %v4081_v55 }
  0x7f   :  { %7680 = vst [vmem:[#allocation103_spill] sm:$0xff] %v4059_v51  ;;  %v4085_v51 = vld [vmem:[#allocation10 + $0x1b0] sm:$0xff]  ;;  %537 = vmatpush.msra.mxu1 %v4083_v57  ;;  %577 = vmatpush.msra.mxu3 %v4089_v59 }
  0x80   :  { %7681 = vst [vmem:[#allocation104_spill] sm:$0xff] %v4063_v60  ;;  %557 = vmatpush.msra.mxu2 %v4085_v51  ;;  %v4101_v60 = vld [vmem:[#allocation10 + $0x198] sm:$0xff] }
  0x81   :  { %7682 = vst [vmem:[#allocation105_spill] sm:$0xff] %v4065_v50  ;;  %v4093_v50 = vld [vmem:[#allocation10 + $0x180] sm:$0xff]  ;;  %578 = vmatpush.msra.mxu3 %v4101_v60 }
  0x82   :  { %7683 = vst [vmem:[#allocation106_spill] sm:$0xff] %v4069_v62  ;;  %v4095_v62 = vld [vmem:[#allocation10 + $0x188] sm:$0xff]  ;;  %518 = vmatpush.msra.mxu0 %v4093_v50 }
  0x83   :  { %7684 = vst [vmem:[#allocation107_spill] sm:$0xff] %v4071_v63  ;;  %v4097_v63 = vld [vmem:[#allocation10 + $0x190] sm:$0xff]  ;;  %538 = vmatpush.msra.mxu1 %v4095_v62 }
  0x84   :  { %7685 = vst [vmem:[#allocation108_spill] sm:$0xff] %v4073_v61  ;;  %558 = vmatpush.msra.mxu2 %v4097_v63  ;;  %v4113_v61 = vld [vmem:[#allocation10 + $0x178] sm:$0xff] }
  0x85   :  { %7686 = vst [vmem:[#allocation109_spill] sm:$0xff] %v4077_v54  ;;  %v4105_v54 = vld [vmem:[#allocation10 + $0x160] sm:$0xff]  ;;  %579 = vmatpush.msra.mxu3 %v4113_v61 }
  0x86   :  { %7687 = vst [vmem:[#allocation110_spill] sm:$0xff] %v4081_v55  ;;  %v4107_v55 = vld [vmem:[#allocation10 + $0x168] sm:$0xff]  ;;  %519 = vmatpush.msra.mxu0 %v4105_v54 }
  0x87   :  { %7688 = vst [vmem:[#allocation111_spill] sm:$0xff] %v4083_v57  ;;  %v4109_v57 = vld [vmem:[#allocation10 + $0x170] sm:$0xff]  ;;  %539 = vmatpush.msra.mxu1 %v4107_v55 }
  0x88   :  { %7689 = vst [vmem:[#allocation112_spill] sm:$0xff] %v4085_v51  ;;  %559 = vmatpush.msra.mxu2 %v4109_v57  ;;  %v4125_v51 = vld [vmem:[#allocation10 + $0x158] sm:$0xff] }
  0x89   :  { %7690 = vst [vmem:[#allocation113_spill] sm:$0xff] %v4089_v59  ;;  %v4117_v59 = vld [vmem:[#allocation10 + $0x140] sm:$0xff]  ;;  %580 = vmatpush.msra.mxu3 %v4125_v51 }
  0x8a   :  { %7691 = vst [vmem:[#allocation114_spill] sm:$0xff] %v4093_v50  ;;  %v4119_v50 = vld [vmem:[#allocation10 + $0x148] sm:$0xff]  ;;  %520 = vmatpush.msra.mxu0 %v4117_v59 }
  0x8b   :  { %7692 = vst [vmem:[#allocation115_spill] sm:$0xff] %v4095_v62  ;;  %v4121_v62 = vld [vmem:[#allocation10 + $0x150] sm:$0xff]  ;;  %540 = vmatpush.msra.mxu1 %v4119_v50 }
  0x8c   :  { %7693 = vst [vmem:[#allocation116_spill] sm:$0xff] %v4097_v63  ;;  %560 = vmatpush.msra.mxu2 %v4121_v62  ;;  %v4137_v63 = vld [vmem:[#allocation10 + $0x138] sm:$0xff] }
  0x8d   :  { %7694 = vst [vmem:[#allocation117_spill] sm:$0xff] %v4101_v60  ;;  %v4129_v60 = vld [vmem:[#allocation10 + $0x120] sm:$0xff]  ;;  %581 = vmatpush.msra.mxu3 %v4137_v63 }
  0x8e   :  { %7695 = vst [vmem:[#allocation118_spill] sm:$0xff] %v4105_v54  ;;  %v4131_v54 = vld [vmem:[#allocation10 + $0x128] sm:$0xff]  ;;  %521 = vmatpush.msra.mxu0 %v4129_v60 }
  0x8f   :  { %7696 = vst [vmem:[#allocation119_spill] sm:$0xff] %v4107_v55  ;;  %v4133_v55 = vld [vmem:[#allocation10 + $0x130] sm:$0xff]  ;;  %541 = vmatpush.msra.mxu1 %v4131_v54 }
  0x90   :  { %7697 = vst [vmem:[#allocation120_spill] sm:$0xff] %v4109_v57  ;;  %561 = vmatpush.msra.mxu2 %v4133_v55  ;;  %v4163_v57 = vld [vmem:[#allocation10 + $0xf8] sm:$0xff] }
  0x91   :  { %7698 = vst [vmem:[#allocation121_spill] sm:$0xff] %v4113_v61  ;;  %v4147_v61 = vld [vmem:[#allocation10 + $0x110] sm:$0xff] }
  0x92   :  { %7699 = vst [vmem:[#allocation122_spill] sm:$0xff] %v4117_v59  ;;  %v4143_v59 = vld [vmem:[#allocation10 + $0x100] sm:$0xff]  ;;  %562 = vmatpush.msra.mxu2 %v4147_v61 }
  0x93   :  { %7700 = vst [vmem:[#allocation123_spill] sm:$0xff] %v4119_v50  ;;  %v4145_v50 = vld [vmem:[#allocation10 + $0x108] sm:$0xff]  ;;  %522 = vmatpush.msra.mxu0 %v4143_v59 }
  0x94   :  { %7701 = vst [vmem:[#allocation124_spill] sm:$0xff] %v4121_v62  ;;  %v4151_v62 = vld [vmem:[#allocation10 + $0x118] sm:$0xff]  ;;  %542 = vmatpush.msra.mxu1 %v4145_v50 }
  0x95   :  { %7702 = vst [vmem:[#allocation125_spill] sm:$0xff] %v4125_v51  ;;  %v4155_v51 = vld [vmem:[#allocation10 + $0xe0] sm:$0xff]  ;;  %582 = vmatpush.msra.mxu3 %v4151_v62 }
  0x96   :  { %7703 = vst [vmem:[#allocation126_spill] sm:$0xff] %v4129_v60  ;;  %v4157_v60 = vld [vmem:[#allocation10 + $0xe8] sm:$0xff]  ;;  %523 = vmatpush.msra.mxu0 %v4155_v51 }
  0x97   :  { %7704 = vst [vmem:[#allocation127_spill] sm:$0xff] %v4131_v54  ;;  %v4159_v54 = vld [vmem:[#allocation10 + $0xf0] sm:$0xff]  ;;  %543 = vmatpush.msra.mxu1 %v4157_v60  ;;  %583 = vmatpush.msra.mxu3 %v4163_v57 }
  0x98   :  { %7705 = vst [vmem:[#allocation128_spill] sm:$0xff] %v4133_v55  ;;  %563 = vmatpush.msra.mxu2 %v4159_v54  ;;  %v4188_v55 = vld [vmem:[%s6973_s1] sm:$0xf] }
  0x99   :  { %7706 = vst [vmem:[#allocation129_spill] sm:$0xff] %v4137_v63  ;;  %v4171_v63 = vld [vmem:[#allocation10 + $0xd0] sm:$0xff] }
  0x9a   :  { %7707 = vst [vmem:[#allocation130_spill] sm:$0xff] %v4143_v59  ;;  %v4167_v59 = vld [vmem:[#allocation10 + $0xc0] sm:$0xff]  ;;  %564 = vmatpush.msra.mxu2 %v4171_v63 }
  0x9b   :  { %7708 = vst [vmem:[#allocation131_spill] sm:$0xff] %v4145_v50  ;;  %v4169_v50 = vld [vmem:[#allocation10 + $0xc8] sm:$0xff]  ;;  %524 = vmatpush.msra.mxu0 %v4167_v59 }
  0x9c   :  { %7709 = vst [vmem:[#allocation132_spill] sm:$0xff] %v4147_v61  ;;  %v4175_v61 = vld [vmem:[#allocation10 + $0xd8] sm:$0xff]  ;;  %544 = vmatpush.msra.mxu1 %v4169_v50 }
  0x9d   :  { %7710 = vst [vmem:[#allocation133_spill] sm:$0xff] %v4151_v62  ;;  %v4183_v62 = vld [vmem:[#allocation10 + $0xb0] sm:$0xff]  ;;  %584 = vmatpush.msra.mxu3 %v4175_v61 }
  0x9e   :  { %7711 = vst [vmem:[#allocation134_spill] sm:$0xff] %v4155_v51  ;;  %v4179_v51 = vld [vmem:[#allocation10 + $0xa0] sm:$0xff]  ;;  %565 = vmatpush.msra.mxu2 %v4183_v62 }
  0x9f   :  { %7712 = vst [vmem:[#allocation135_spill] sm:$0xff] %v4157_v60  ;;  %v4181_v60 = vld [vmem:[#allocation10 + $0xa8] sm:$0xff]  ;;  %525 = vmatpush.msra.mxu0 %v4179_v51 }
  0xa0   :  { %7713 = vst [vmem:[#allocation136_spill] sm:$0xff] %v4159_v54  ;;  %545 = vmatpush.msra.mxu1 %v4181_v60  ;;  %v4199_v54 = vld [vmem:[#allocation10 + $0x88] sm:$0xff]  ;;  %566 = vmatpush.msra.mxu2 %v4201_v58 }
  0xa1   :  { %7714 = vst [vmem:[#allocation137_spill] sm:$0xff] %v4163_v57  ;;  %v4192_v57 = vld [vmem:[#allocation10 + $0xb8] sm:$0xff] }
  0xa2   :  { %7715 = vst [vmem:[#allocation138_spill] sm:$0xff] %v4167_v59  ;;  %v310_v59 = vstv %s4139_s4  ;;  %585 = vmatpush.msra.mxu3 %v4192_v57  ;;  %546 = vmatpush.msra.mxu1 %v4199_v54 }
  0xa3   :  { %7716 = vst [vmem:[#allocation139_spill] sm:$0xff] %v4169_v50  ;;  %v4197_v50 = vld [vmem:[#allocation10 + $0x80] sm:$0xff]  ;;  %v311_v46 = vmul.f32 %v310_v59, %v4188_v55 }
  0xa4   :  { %7717 = vst [vmem:[#allocation140_spill] sm:$0xff] %v4171_v63  ;;  %v4205_v63 = vld [vmem:[#allocation10 + $0x98] sm:$0xff]  ;;  %526 = vmatpush.msra.mxu0 %v4197_v50 }
  0xa5   :  { %7718 = vst [vmem:[#allocation141_spill] sm:$0xff] %v4175_v61  ;;  %v4209_v61 = vld [vmem:[#allocation10 + $0x60] sm:$0xff]  ;;  %586 = vmatpush.msra.mxu3 %v4205_v63 }
  0xa6   :  { %7719 = vst [vmem:[#allocation142_spill] sm:$0xff] %v4179_v51  ;;  %v4211_v51 = vld [vmem:[#allocation10 + $0x68] sm:$0xff]  ;;  %527 = vmatpush.msra.mxu0 %v4209_v61 }
  0xa7   :  { %7720 = vst [vmem:[#allocation143_spill] sm:$0xff] %v4181_v60  ;;  %v4213_v60 = vld [vmem:[#allocation10 + $0x70] sm:$0xff]  ;;  %547 = vmatpush.msra.mxu1 %v4211_v51 }
  0xa8   :  { %7721 = vst [vmem:[#allocation144_spill] sm:$0xff] %v4183_v62  ;;  %567 = vmatpush.msra.mxu2 %v4213_v60 }
  0xa9   :  { %7722 = vst [vmem:[#allocation145_spill] sm:$0xff] %v4188_v55  ;;  %v4232_v55 = vld [vmem:[#allocation10 + $0x58] sm:$0xff]  ;;  %548 = vmatpush.msra.mxu1 %v4226_v52 }
  0xaa   :  { %7723 = vst [vmem:[#allocation146_spill] sm:$0xff] %v4192_v57  ;;  %v4220_v57 = vld [vmem:[#allocation10 + $0x78] sm:$0xff]  ;;  %568 = vmatpush.msra.mxu2 %v4228_v53 }
  0xab   :  { %7724 = vst [vmem:[#allocation147_spill] sm:$0xff] %v4197_v50  ;;  %587 = vmatpush.msra.mxu3 %v4220_v57 }
  0xac   :  { %7725 = vst [vmem:[#allocation148_spill] sm:$0xff] %v4199_v54  ;;  %v4224_v54 = vld [vmem:[#allocation10 + $0x40] sm:$0xff]  ;;  %569 = vmatpush.msra.mxu2 %v4240_v43 }
  0xad   :  { %7726 = vst [vmem:[#allocation149_spill] sm:$0xff] %v4201_v58  ;;  %528 = vmatpush.msra.mxu0 %v4224_v54  ;;  %588 = vmatpush.msra.mxu3 %v4232_v55 }
  0xae   :  { %7727 = vst [vmem:[#allocation150_spill] sm:$0xff] %v4205_v63 }
  0xaf   :  { %7728 = vst [vmem:[#allocation151_spill] sm:$0xff] %v4209_v61  ;;  %v4238_v61 = vld [vmem:[#allocation10 + $0x28] sm:$0xff]  ;;  %589 = vmatpush.msra.mxu3 %v4246_v48 }
  0xb0   :  { %7729 = vst [vmem:[#allocation152_spill] sm:$0xff] %v4211_v51  ;;  %v4236_v51 = vld [vmem:[#allocation10 + $0x20] sm:$0xff]  ;;  %549 = vmatpush.msra.mxu1 %v4238_v61 }
  0xb1   :  { %7730 = vst [vmem:[#allocation153_spill] sm:$0xff] %v4213_v60  ;;  %529 = vmatpush.msra.mxu0 %v4236_v51 }
  0xb2   :  { %7731 = vst [vmem:[#allocation154_spill] sm:$0xff] %v4215_v47 }
  0xb3   :  { %7732 = vst [vmem:[#allocation155_spill] sm:$0xff] %v4220_v57  ;;  %v312_v57 = vadd.f32 %v311_v46, %v4215_v47 }
  0xb4   :  { %7733 = vst [vmem:[#allocation156_spill] sm:$0xff] %v4224_v54  ;;  %v4248_v54 = vld [vmem:[#allocation10] sm:$0xff] }
  0xb5   :  { %7734 = vst [vmem:[#allocation157_spill] sm:$0xff] %v4226_v52  ;;  %v4250_v52 = vld [vmem:[#allocation10 + $0x8] sm:$0xff]  ;;  %530 = vmatpush.msra.mxu0 %v4248_v54 }
  0xb6   :  { %7735 = vst [vmem:[#allocation158_spill] sm:$0xff] %v4232_v55  ;;  %550 = vmatpush.msra.mxu1 %v4250_v52 }
  0xb7   :  { %7736 = vst [vmem:[#allocation159_spill] sm:$0xff] %v4236_v51 }
  0xb8   :  { %7737 = vst [vmem:[#allocation160_spill] sm:$0xff] %v4238_v61 }
  0xb9   :  { %7738 = vst [vmem:[#allocation161_spill] sm:$0xff] %v4240_v43 }
  0xba   :  { %7739 = vst [vmem:[#allocation162_spill] sm:$0xff] %v4246_v48 }
  0xbc   :  { %v350_v62 = vpop.f32.mrf.mxu1  ;;  %v330_v50 = vpop.f32.mrf.mxu0 }
  0xbd   :  { %v397_v59 = vrot.slane %v350_v62, 7 }
  0xbf   :  { %v370_v63 = vpop.f32.mrf.mxu2  ;;  %v390_v58 = vpop.f32.mrf.mxu3  ;;  %v401_v42 = vsel %vm400_vm0, %v330_v50, %v397_v59 }
  0xc0   :  { %v398_v62 = vrot.slane %v370_v63, 6  ;;  %v399_v60 = vrot.slane %v390_v58, 5  ;;  %v4254_v63 = vld [vmem:[#allocation10 + $0x10] sm:$0xff]  ;;  %v4256_v58 = vld [vmem:[#allocation10 + $0x18] sm:$0xff] }
  0xc1   :  { %7740 = vst [vmem:[#allocation163_spill] sm:$0xff] %v4254_v63  ;;  %570 = vmatpush.msra.mxu2 %v4254_v63  ;;  %590 = vmatpush.msra.mxu3 %v4256_v58 }
  0xc2   :  { %v403_v46 = vsel %vm402_vm1, %v398_v62, %v399_v60 }
  0xc3   :  { %v405_v50 = vsel %vm404_vm2, %v401_v42, %v403_v46 }
  0xc4   :  { %v407_v59 = vadd.f32 %v405_v50, %v312_v57 }
  0xc6   :  { %v408_v47 = vmul.f32 0.5, %v407_v59  ;;  %v413_v61 = vrot.slane %v407_v59, 3  ;;  %v7794_v59 = vld [vmem:[#allocation70_spill] sm:$0xff] }
  0xc8   :  { %2727 = vtanh.f32 %v408_v47  ;;  %v7786_v47 = vld [vmem:[#allocation62_spill] sm:$0xff] }
  0xc9   :  { %2729 = vtanh.f32 %v413_v61  ;;  %v7792_v61 = vld [vmem:[#allocation72_spill] sm:$0xff] }
  0xce   :  { %v2728_v51 = vpop.eup %2727 }
  0xcf   :  { %v410_v60 = vmul.f32 0.5, %v2728_v51  ;;  %v2730_v48 = vpop.eup %2729  ;;  %v7789_v51 = vld [vmem:[#allocation69_spill] sm:$0xff] }
  0xd1   :  { %v411_v62 = vadd.f32 0.5, %v410_v60  ;;  %v7795_v60 = vld [vmem:[#allocation71_spill] sm:$0xff] }
  0xd3   :  { %v417_v43 = vrot.slane %v411_v62, 1  ;;  %v420_v42 = vmul.f32 %v2730_v48, %v411_v62  ;;  %v423_v57 = vrot.slane %v411_v62, 2  ;;  %v7787_v48 = vld [vmem:[#allocation63_spill] sm:$0xff]  ;;  %v7796_v62 = vld [vmem:[#allocation76_spill] sm:$0xff] }
  0xd5   :  { %v419_v55 = vmul.f32 0.0, %v417_v43  ;;  %v7783_v43 = vld [vmem:[#allocation59_spill] sm:$0xff] }
  0xd7   :  { %v4266_v46 = vadd.f32 %v420_v42, %v419_v55  ;;  %v7790_v55 = vld [vmem:[#allocation66_spill] sm:$0xff]  ;;  %v7797_v42 = vld [vmem:[#allocation77_spill] sm:$0xff] }
  0xd9   :  { %2731 = vtanh.f32 %v4266_v46 }
  0xdf   :  { %v2732_v50 = vpop.eup %2731 }
  0xe0   :  { %v4269_v63 = vmul.f32 %v2732_v50, %v423_v57  ;;  %v7798_v57 = vld [vmem:[#allocation74_spill] sm:$0xff]  ;;  %v7799_v50 = vld [vmem:[#allocation75_spill] sm:$0xff] }
  0xe2   :  { %451 = vmatmul.f32.vlgmr.msrb.gmra.mxu0 %v4269_v63  ;;  %471 = vmatmul.f32.vlgmr.msrb.gmra.mxu1 %v4269_v63 }
  0xe3   :  { %491 = vmatmul.f32.vlgmr.msrb.gmra.mxu2 %v4269_v63  ;;  %511 = vmatmul.f32.vlgmr.msrb.gmra.mxu3 %v4269_v63 }
  0xe4   :  { %621 = vmatpush.msrb.mxu0 %v3689_v7  ;;  %641 = vmatpush.msrb.mxu1 %v3685_v6  ;;  %v7747_v6 = vld [vmem:[#allocation22_spill] sm:$0xff]  ;;  %v7748_v7 = vld [vmem:[#allocation31_spill] sm:$0xff] }
  0xe5   :  { %661 = vmatpush.msrb.mxu2 %v3671_v0  ;;  %681 = vmatpush.msrb.mxu3 %v3673_v1  ;;  %v7741_v0 = vld [vmem:[#allocation23_spill] sm:$0xff] }
  0xe6   :  { %622 = vmatpush.msrb.mxu0 %v3699_v11  ;;  %642 = vmatpush.msrb.mxu1 %v3691_v8  ;;  %v7742_v1 = vld [vmem:[#allocation19_spill] sm:$0xff]  ;;  %v7749_v8 = vld [vmem:[#allocation30_spill] sm:$0xff] }
  0xe7   :  { %662 = vmatpush.msrb.mxu2 %v3675_v2  ;;  %682 = vmatpush.msrb.mxu3 %v3679_v3  ;;  %v7743_v2 = vld [vmem:[#allocation20_spill] sm:$0xff]  ;;  %v7744_v3 = vld [vmem:[#allocation27_spill] sm:$0xff] }
  0xe8   :  { %623 = vmatpush.msrb.mxu0 %v3705_v13  ;;  %643 = vmatpush.msrb.mxu1 %v3703_v12  ;;  %v7752_v11 = vld [vmem:[#allocation35_spill] sm:$0xff]  ;;  %v7753_v12 = vld [vmem:[#allocation34_spill] sm:$0xff]  ;;  %v7754_v13 = vld [vmem:[#allocation28_spill] sm:$0xff] }
  0xe9   :  { %663 = vmatpush.msrb.mxu2 %v3681_v4  ;;  %683 = vmatpush.msrb.mxu3 %v3683_v5  ;;  %v7745_v4 = vld [vmem:[#allocation26_spill] sm:$0xff]  ;;  %v7746_v5 = vld [vmem:[#allocation21_spill] sm:$0xff] }
  0xea   :  { %624 = vmatpush.msrb.mxu0 %v3717_v17  ;;  %644 = vmatpush.msrb.mxu1 %v3715_v16  ;;  %v7757_v16 = vld [vmem:[#allocation38_spill] sm:$0xff]  ;;  %v7758_v17 = vld [vmem:[#allocation32_spill] sm:$0xff] }
  0xeb   :  { %664 = vmatpush.msrb.mxu2 %v3694_v9  ;;  %684 = vmatpush.msrb.mxu3 %v3696_v10  ;;  %v7750_v9 = vld [vmem:[#allocation24_spill] sm:$0xff]  ;;  %v7751_v10 = vld [vmem:[#allocation25_spill] sm:$0xff] }
  0xec   :  { %531 = vmatmul.f32.vlgmr.msra.gmra.mxu0 %v7620_v56  ;;  %551 = vmatmul.f32.vlgmr.msra.gmra.mxu1 %v7620_v56 }
  0xed   :  { %571 = vmatmul.f32.vlgmr.msra.gmra.mxu2 %v7620_v56  ;;  %591 = vmatmul.f32.vlgmr.msra.gmra.mxu3 %v7620_v56  ;;  %v7791_v56 = vld [vmem:[#allocation67_spill] sm:$0xff] }
  0xee   :  { %625 = vmatpush.msrb.mxu0 %v3729_v21  ;;  %645 = vmatpush.msrb.mxu1 %v3727_v20  ;;  %v7761_v20 = vld [vmem:[#allocation41_spill] sm:$0xff]  ;;  %v7762_v21 = vld [vmem:[#allocation36_spill] sm:$0xff] }
  0xef   :  { %665 = vmatpush.msrb.mxu2 %v3708_v14  ;;  %685 = vmatpush.msrb.mxu3 %v3710_v15  ;;  %v7755_v14 = vld [vmem:[#allocation29_spill] sm:$0xff]  ;;  %v7756_v15 = vld [vmem:[#allocation39_spill] sm:$0xff] }
  0xf0   :  { %626 = vmatpush.msrb.mxu0 %v3741_v25  ;;  %646 = vmatpush.msrb.mxu1 %v3739_v24  ;;  %v7765_v24 = vld [vmem:[#allocation45_spill] sm:$0xff]  ;;  %v7766_v25 = vld [vmem:[#allocation42_spill] sm:$0xff] }
  0xf1   :  { %666 = vmatpush.msrb.mxu2 %v3720_v18  ;;  %686 = vmatpush.msrb.mxu3 %v3722_v19  ;;  %v7759_v18 = vld [vmem:[#allocation33_spill] sm:$0xff]  ;;  %v7760_v19 = vld [vmem:[#allocation40_spill] sm:$0xff] }
  0xf2   :  { %627 = vmatpush.msrb.mxu0 %v3753_v29  ;;  %647 = vmatpush.msrb.mxu1 %v3751_v28  ;;  %v7769_v28 = vld [vmem:[#allocation49_spill] sm:$0xff]  ;;  %v7770_v29 = vld [vmem:[#allocation46_spill] sm:$0xff] }
  0xf3   :  { %667 = vmatpush.msrb.mxu2 %v3732_v22  ;;  %687 = vmatpush.msrb.mxu3 %v3734_v23  ;;  %v7763_v22 = vld [vmem:[#allocation37_spill] sm:$0xff]  ;;  %v7764_v23 = vld [vmem:[#allocation44_spill] sm:$0xff] }
  0xf4   :  { %628 = vmatpush.msrb.mxu0 %v3765_v33  ;;  %648 = vmatpush.msrb.mxu1 %v3763_v32  ;;  %v7773_v32 = vld [vmem:[#allocation53_spill] sm:$0xff]  ;;  %v7774_v33 = vld [vmem:[#allocation50_spill] sm:$0xff] }
  0xf5   :  { %668 = vmatpush.msrb.mxu2 %v3744_v26  ;;  %688 = vmatpush.msrb.mxu3 %v3746_v27  ;;  %v7767_v26 = vld [vmem:[#allocation43_spill] sm:$0xff]  ;;  %v7768_v27 = vld [vmem:[#allocation48_spill] sm:$0xff] }
  0xf6   :  { %629 = vmatpush.msrb.mxu0 %v3777_v37  ;;  %649 = vmatpush.msrb.mxu1 %v3775_v36  ;;  %v7777_v36 = vld [vmem:[#allocation57_spill] sm:$0xff]  ;;  %v7778_v37 = vld [vmem:[#allocation54_spill] sm:$0xff] }
  0xf7   :  { %669 = vmatpush.msrb.mxu2 %v3756_v30  ;;  %689 = vmatpush.msrb.mxu3 %v3758_v31  ;;  %v7771_v30 = vld [vmem:[#allocation47_spill] sm:$0xff]  ;;  %v7772_v31 = vld [vmem:[#allocation52_spill] sm:$0xff] }
  0xf8   :  { %630 = vmatpush.msrb.mxu0 %v3789_v41  ;;  %650 = vmatpush.msrb.mxu1 %v3787_v40  ;;  %v7781_v40 = vld [vmem:[#allocation61_spill] sm:$0xff]  ;;  %v7782_v41 = vld [vmem:[#allocation58_spill] sm:$0xff] }
  0xf9   :  { %670 = vmatpush.msrb.mxu2 %v3768_v34  ;;  %690 = vmatpush.msrb.mxu3 %v3770_v35  ;;  %v7775_v34 = vld [vmem:[#allocation51_spill] sm:$0xff]  ;;  %v7776_v35 = vld [vmem:[#allocation56_spill] sm:$0xff] }
  0xfa   :  { %631 = vmatpush.msrb.mxu0 %v3801_v45  ;;  %651 = vmatpush.msrb.mxu1 %v3799_v44  ;;  %v7784_v44 = vld [vmem:[#allocation64_spill] sm:$0xff]  ;;  %v7785_v45 = vld [vmem:[#allocation65_spill] sm:$0xff] }
  0xfb   :  { %671 = vmatpush.msrb.mxu2 %v3780_v38  ;;  %691 = vmatpush.msrb.mxu3 %v3782_v39  ;;  %v7779_v38 = vld [vmem:[#allocation55_spill] sm:$0xff]  ;;  %v7780_v39 = vld [vmem:[#allocation60_spill] sm:$0xff] }
  0xfc   :  { %632 = vmatpush.msrb.mxu0 %v3813_v49  ;;  %652 = vmatpush.msrb.mxu1 %v7741_v0  ;;  %v7788_v49 = vld [vmem:[#allocation68_spill] sm:$0xff] }
  0xfd   :  { %672 = vmatpush.msrb.mxu2 %v7742_v1  ;;  %692 = vmatpush.msrb.mxu3 %v7743_v2  ;;  %v7800_v0 = vld [vmem:[#allocation80_spill] sm:$0xff]  ;;  %v7801_v1 = vld [vmem:[#allocation81_spill] sm:$0xff]  ;;  %v7802_v2 = vld [vmem:[#allocation78_spill] sm:$0xff] }
  0xfe   :  { %633 = vmatpush.msrb.mxu0 %v7744_v3  ;;  %653 = vmatpush.msrb.mxu1 %v7745_v4  ;;  %v7803_v3 = vld [vmem:[#allocation79_spill] sm:$0xff]  ;;  %v7804_v4 = vld [vmem:[#allocation84_spill] sm:$0xff] }
  0xff   :  { %673 = vmatpush.msrb.mxu2 %v7746_v5  ;;  %693 = vmatpush.msrb.mxu3 %v7747_v6  ;;  %v7805_v5 = vld [vmem:[#allocation85_spill] sm:$0xff]  ;;  %v7806_v6 = vld [vmem:[#allocation82_spill] sm:$0xff] }
 0x100   :  { %634 = vmatpush.msrb.mxu0 %v7748_v7  ;;  %654 = vmatpush.msrb.mxu1 %v7749_v8  ;;  %v7807_v7 = vld [vmem:[#allocation83_spill] sm:$0xff]  ;;  %v7808_v8 = vld [vmem:[#allocation88_spill] sm:$0xff] }
 0x101   :  { %674 = vmatpush.msrb.mxu2 %v7750_v9  ;;  %694 = vmatpush.msrb.mxu3 %v7751_v10  ;;  %v7809_v9 = vld [vmem:[#allocation89_spill] sm:$0xff]  ;;  %v7810_v10 = vld [vmem:[#allocation86_spill] sm:$0xff] }
 0x102   :  { %635 = vmatpush.msrb.mxu0 %v7752_v11  ;;  %655 = vmatpush.msrb.mxu1 %v7753_v12  ;;  %v7811_v11 = vld [vmem:[#allocation87_spill] sm:$0xff]  ;;  %v7812_v12 = vld [vmem:[#allocation92_spill] sm:$0xff] }
 0x103   :  { %675 = vmatpush.msrb.mxu2 %v7754_v13  ;;  %695 = vmatpush.msrb.mxu3 %v7755_v14  ;;  %v7813_v13 = vld [vmem:[#allocation93_spill] sm:$0xff]  ;;  %v7814_v14 = vld [vmem:[#allocation90_spill] sm:$0xff] }
 0x104   :  { %636 = vmatpush.msrb.mxu0 %v7756_v15  ;;  %656 = vmatpush.msrb.mxu1 %v7757_v16  ;;  %v7815_v15 = vld [vmem:[#allocation91_spill] sm:$0xff]  ;;  %v7816_v16 = vld [vmem:[#allocation94_spill] sm:$0xff] }
 0x105   :  { %676 = vmatpush.msrb.mxu2 %v7758_v17  ;;  %696 = vmatpush.msrb.mxu3 %v7759_v18  ;;  %v7817_v17 = vld [vmem:[#allocation95_spill] sm:$0xff]  ;;  %v7818_v18 = vld [vmem:[#allocation96_spill] sm:$0xff] }
 0x106   :  { %637 = vmatmul.f32.vlgmr.msrb.gmra.mxu0 %v4269_v63  ;;  %657 = vmatmul.f32.vlgmr.msrb.gmra.mxu1 %v4269_v63 }
 0x107   :  { %677 = vmatmul.f32.vlgmr.msrb.gmra.mxu2 %v4269_v63  ;;  %697 = vmatmul.f32.vlgmr.msrb.gmra.mxu3 %v4269_v63  ;;  %v7793_v63 = vld [vmem:[#allocation73_spill] sm:$0xff] }
 0x108   :  { %731 = vmatpush.msra.mxu0 %v7760_v19  ;;  %751 = vmatpush.msra.mxu1 %v7761_v20  ;;  %v7819_v19 = vld [vmem:[#allocation97_spill] sm:$0xff]  ;;  %v7820_v20 = vld [vmem:[#allocation98_spill] sm:$0xff] }
 0x109   :  { %771 = vmatpush.msra.mxu2 %v7762_v21  ;;  %791 = vmatpush.msra.mxu3 %v7763_v22  ;;  %v7821_v21 = vld [vmem:[#allocation99_spill] sm:$0xff]  ;;  %v7822_v22 = vld [vmem:[#allocation100_spill] sm:$0xff] }
 0x10a   :  { %732 = vmatpush.msra.mxu0 %v7764_v23  ;;  %752 = vmatpush.msra.mxu1 %v7765_v24  ;;  %v7823_v23 = vld [vmem:[#allocation101_spill] sm:$0xff]  ;;  %v7824_v24 = vld [vmem:[#allocation102_spill] sm:$0xff] }
 0x10b   :  { %772 = vmatpush.msra.mxu2 %v7766_v25  ;;  %792 = vmatpush.msra.mxu3 %v7767_v26  ;;  %v7825_v25 = vld [vmem:[#allocation103_spill] sm:$0xff]  ;;  %v7826_v26 = vld [vmem:[#allocation104_spill] sm:$0xff] }
 0x10c   :  { %733 = vmatpush.msra.mxu0 %v7768_v27  ;;  %753 = vmatpush.msra.mxu1 %v7769_v28  ;;  %v7827_v27 = vld [vmem:[#allocation105_spill] sm:$0xff]  ;;  %v7828_v28 = vld [vmem:[#allocation106_spill] sm:$0xff] }
 0x10d   :  { %773 = vmatpush.msra.mxu2 %v7770_v29  ;;  %793 = vmatpush.msra.mxu3 %v7771_v30  ;;  %v7829_v29 = vld [vmem:[#allocation107_spill] sm:$0xff]  ;;  %v7830_v30 = vld [vmem:[#allocation108_spill] sm:$0xff] }
 0x10e   :  { %734 = vmatpush.msra.mxu0 %v7772_v31  ;;  %754 = vmatpush.msra.mxu1 %v7773_v32  ;;  %v7831_v31 = vld [vmem:[#allocation109_spill] sm:$0xff]  ;;  %v7832_v32 = vld [vmem:[#allocation110_spill] sm:$0xff] }
 0x10f   :  { %774 = vmatpush.msra.mxu2 %v7774_v33  ;;  %794 = vmatpush.msra.mxu3 %v7775_v34  ;;  %v7833_v33 = vld [vmem:[#allocation111_spill] sm:$0xff]  ;;  %v7834_v34 = vld [vmem:[#allocation112_spill] sm:$0xff] }
 0x110   :  { %735 = vmatpush.msra.mxu0 %v7776_v35  ;;  %755 = vmatpush.msra.mxu1 %v7777_v36  ;;  %v7835_v35 = vld [vmem:[#allocation113_spill] sm:$0xff]  ;;  %v7836_v36 = vld [vmem:[#allocation114_spill] sm:$0xff] }
 0x111   :  { %775 = vmatpush.msra.mxu2 %v7778_v37  ;;  %795 = vmatpush.msra.mxu3 %v7779_v38  ;;  %v7837_v37 = vld [vmem:[#allocation115_spill] sm:$0xff]  ;;  %v7838_v38 = vld [vmem:[#allocation116_spill] sm:$0xff] }
 0x112   :  { %736 = vmatpush.msra.mxu0 %v7780_v39  ;;  %756 = vmatpush.msra.mxu1 %v7781_v40  ;;  %v7839_v39 = vld [vmem:[#allocation117_spill] sm:$0xff]  ;;  %v7840_v40 = vld [vmem:[#allocation118_spill] sm:$0xff] }
 0x113   :  { %776 = vmatpush.msra.mxu2 %v7782_v41  ;;  %796 = vmatpush.msra.mxu3 %v7783_v43  ;;  %v7841_v41 = vld [vmem:[#allocation119_spill] sm:$0xff]  ;;  %v7842_v43 = vld [vmem:[#allocation120_spill] sm:$0xff] }
 0x114   :  { %737 = vmatpush.msra.mxu0 %v7784_v44  ;;  %757 = vmatpush.msra.mxu1 %v7785_v45  ;;  %v7843_v44 = vld [vmem:[#allocation121_spill] sm:$0xff]  ;;  %v7844_v45 = vld [vmem:[#allocation122_spill] sm:$0xff] }
 0x115   :  { %777 = vmatpush.msra.mxu2 %v7786_v47  ;;  %797 = vmatpush.msra.mxu3 %v7787_v48  ;;  %v7845_v47 = vld [vmem:[#allocation123_spill] sm:$0xff]  ;;  %v7846_v48 = vld [vmem:[#allocation124_spill] sm:$0xff] }
 0x116   :  { %738 = vmatpush.msra.mxu0 %v7788_v49  ;;  %758 = vmatpush.msra.mxu1 %v7789_v51  ;;  %v7847_v49 = vld [vmem:[#allocation125_spill] sm:$0xff]  ;;  %v7848_v51 = vld [vmem:[#allocation126_spill] sm:$0xff] }
 0x117   :  { %778 = vmatpush.msra.mxu2 %v7790_v55  ;;  %798 = vmatpush.msra.mxu3 %v7791_v56  ;;  %v7849_v55 = vld [vmem:[#allocation127_spill] sm:$0xff]  ;;  %v7850_v56 = vld [vmem:[#allocation128_spill] sm:$0xff] }
 0x118   :  { %739 = vmatpush.msra.mxu0 %v7792_v61  ;;  %759 = vmatpush.msra.mxu1 %v7793_v63  ;;  %v7851_v61 = vld [vmem:[#allocation129_spill] sm:$0xff]  ;;  %v7852_v63 = vld [vmem:[#allocation130_spill] sm:$0xff] }
 0x119   :  { %779 = vmatpush.msra.mxu2 %v7794_v59  ;;  %799 = vmatpush.msra.mxu3 %v7795_v60  ;;  %v7853_v59 = vld [vmem:[#allocation131_spill] sm:$0xff]  ;;  %v7854_v60 = vld [vmem:[#allocation132_spill] sm:$0xff] }
 0x11a   :  { %740 = vmatpush.msra.mxu0 %v7796_v62  ;;  %760 = vmatpush.msra.mxu1 %v7797_v42  ;;  %v7855_v62 = vld [vmem:[#allocation133_spill] sm:$0xff]  ;;  %v7856_v42 = vld [vmem:[#allocation134_spill] sm:$0xff] }
 0x11b   :  { %780 = vmatpush.msra.mxu2 %v7798_v57  ;;  %800 = vmatpush.msra.mxu3 %v7799_v50  ;;  %v7857_v57 = vld [vmem:[#allocation135_spill] sm:$0xff]  ;;  %v7858_v50 = vld [vmem:[#allocation136_spill] sm:$0xff] }
 0x11c   :  { %741 = vmatpush.msra.mxu0 %v7800_v0  ;;  %761 = vmatpush.msra.mxu1 %v7801_v1  ;;  %v7859_v0 = vld [vmem:[#allocation137_spill] sm:$0xff]  ;;  %v7860_v1 = vld [vmem:[#allocation138_spill] sm:$0xff] }
 0x11d   :  { %781 = vmatpush.msra.mxu2 %v7802_v2  ;;  %801 = vmatpush.msra.mxu3 %v7803_v3  ;;  %v7861_v2 = vld [vmem:[#allocation139_spill] sm:$0xff]  ;;  %v7862_v3 = vld [vmem:[#allocation140_spill] sm:$0xff] }
 0x11e   :  { %742 = vmatpush.msra.mxu0 %v7804_v4  ;;  %762 = vmatpush.msra.mxu1 %v7805_v5  ;;  %v7863_v4 = vld [vmem:[#allocation141_spill] sm:$0xff]  ;;  %v7864_v5 = vld [vmem:[#allocation142_spill] sm:$0xff] }
 0x11f   :  { %782 = vmatpush.msra.mxu2 %v7806_v6  ;;  %802 = vmatpush.msra.mxu3 %v7807_v7  ;;  %v7865_v6 = vld [vmem:[#allocation143_spill] sm:$0xff]  ;;  %v7866_v7 = vld [vmem:[#allocation144_spill] sm:$0xff] }
 0x120   :  { %743 = vmatpush.msra.mxu0 %v7808_v8  ;;  %763 = vmatpush.msra.mxu1 %v7809_v9  ;;  %v7867_v8 = vld [vmem:[#allocation146_spill] sm:$0xff]  ;;  %v7868_v9 = vld [vmem:[#allocation147_spill] sm:$0xff] }
 0x121   :  { %783 = vmatpush.msra.mxu2 %v7810_v10  ;;  %803 = vmatpush.msra.mxu3 %v7811_v11  ;;  %v7869_v10 = vld [vmem:[#allocation148_spill] sm:$0xff]  ;;  %v7870_v11 = vld [vmem:[#allocation149_spill] sm:$0xff] }
 0x122   :  { %744 = vmatpush.msra.mxu0 %v7812_v12  ;;  %764 = vmatpush.msra.mxu1 %v7813_v13  ;;  %v7871_v12 = vld [vmem:[#allocation150_spill] sm:$0xff]  ;;  %v7872_v13 = vld [vmem:[#allocation151_spill] sm:$0xff] }
 0x123   :  { %784 = vmatpush.msra.mxu2 %v7814_v14  ;;  %804 = vmatpush.msra.mxu3 %v7815_v15  ;;  %v7873_v14 = vld [vmem:[#allocation152_spill] sm:$0xff]  ;;  %v7874_v15 = vld [vmem:[#allocation153_spill] sm:$0xff] }
 0x124   :  { %745 = vmatpush.msra.mxu0 %v7816_v16  ;;  %765 = vmatpush.msra.mxu1 %v7817_v17  ;;  %v7875_v16 = vld [vmem:[#allocation155_spill] sm:$0xff]  ;;  %v7876_v17 = vld [vmem:[#allocation156_spill] sm:$0xff] }
 0x125   :  { %785 = vmatpush.msra.mxu2 %v7818_v18  ;;  %805 = vmatpush.msra.mxu3 %v7819_v19  ;;  %v7877_v18 = vld [vmem:[#allocation157_spill] sm:$0xff]  ;;  %v7878_v19 = vld [vmem:[#allocation158_spill] sm:$0xff] }
 0x126   :  { %746 = vmatpush.msra.mxu0 %v7820_v20  ;;  %766 = vmatpush.msra.mxu1 %v7821_v21  ;;  %v7879_v20 = vld [vmem:[#allocation159_spill] sm:$0xff]  ;;  %v7880_v21 = vld [vmem:[#allocation160_spill] sm:$0xff] }
 0x127   :  { %786 = vmatpush.msra.mxu2 %v7822_v22  ;;  %806 = vmatpush.msra.mxu3 %v7823_v23  ;;  %v7881_v22 = vld [vmem:[#allocation161_spill] sm:$0xff]  ;;  %v7882_v23 = vld [vmem:[#allocation162_spill] sm:$0xff] }
 0x128   :  { %811 = vmatpush.msrb.mxu0 %v7824_v24  ;;  %831 = vmatpush.msrb.mxu1 %v7825_v25  ;;  %v7883_v24 = vld [vmem:[#allocation163_spill] sm:$0xff] }
 0x129   :  { %851 = vmatpush.msrb.mxu2 %v7826_v26  ;;  %871 = vmatpush.msrb.mxu3 %v7827_v27 }
 0x12a   :  { %812 = vmatpush.msrb.mxu0 %v7828_v28  ;;  %832 = vmatpush.msrb.mxu1 %v7829_v29  ;;  %v308_v29 = vld [vmem:[#allocation12] sm:$0xf] }
 0x12b   :  { %852 = vmatpush.msrb.mxu2 %v7830_v30  ;;  %872 = vmatpush.msrb.mxu3 %v7831_v31 }
 0x12c   :  { %813 = vmatpush.msrb.mxu0 %v7832_v32  ;;  %833 = vmatpush.msrb.mxu1 %v7833_v33  ;;  %v4475_v32 = vperm.slane %v308_v29, 0  ;;  %v4477_v33 = vperm.slane %v308_v29, 1 }
 0x12d   :  { %853 = vmatpush.msrb.mxu2 %v7834_v34  ;;  %873 = vmatpush.msrb.mxu3 %v7835_v35  ;;  %v618_v35 = vstv %s2710_s29 }
 0x12e   :  { %814 = vmatpush.msrb.mxu0 %v7836_v36  ;;  %834 = vmatpush.msrb.mxu1 %v7837_v37  ;;  %7884 = vst [vmem:[#allocation23_spill] sm:$0xff] %v4475_v32 }
 0x12f   :  { %854 = vmatpush.msrb.mxu2 %v7838_v38  ;;  %874 = vmatpush.msrb.mxu3 %v7839_v39  ;;  %v7885_v38 = vld [vmem:[#allocation145_spill] sm:$0xff] }
 0x130   :  { %815 = vmatpush.msrb.mxu0 %v7840_v40  ;;  %835 = vmatpush.msrb.mxu1 %v7841_v41  ;;  %v619_v39 = vmul.f32 %v618_v35, %v7885_v38  ;;  %v4514_v35 = vld [vmem:[#allocation6 + $0x1f8] sm:$0xff] }
 0x131   :  { %855 = vmatpush.msrb.mxu2 %v7842_v43  ;;  %875 = vmatpush.msrb.mxu3 %v7843_v44 }
 0x132   :  { %816 = vmatpush.msrb.mxu0 %v7844_v45  ;;  %836 = vmatpush.msrb.mxu1 %v7845_v47 }
 0x133   :  { %856 = vmatpush.msrb.mxu2 %v7846_v48  ;;  %876 = vmatpush.msrb.mxu3 %v7847_v49  ;;  %v7886_v49 = vld [vmem:[#allocation154_spill] sm:$0xff] }
 0x134   :  { %817 = vmatpush.msrb.mxu0 %v7848_v51  ;;  %837 = vmatpush.msrb.mxu1 %v7849_v55  ;;  %v620_v51 = vadd.f32 %v619_v39, %v7886_v49  ;;  %v4523_v39 = vld [vmem:[#allocation6 + $0x1d0] sm:$0xff]  ;;  %v4544_v49 = vld [vmem:[#allocation6 + $0x188] sm:$0xff] }
 0x135   :  { %857 = vmatpush.msrb.mxu2 %v7850_v56  ;;  %877 = vmatpush.msrb.mxu3 %v7851_v61 }
 0x136   :  { %818 = vmatpush.msrb.mxu0 %v7852_v63  ;;  %838 = vmatpush.msrb.mxu1 %v7853_v59 }
 0x137   :  { %858 = vmatpush.msrb.mxu2 %v7854_v60  ;;  %878 = vmatpush.msrb.mxu3 %v7855_v62 }
 0x138   :  { %819 = vmatpush.msrb.mxu0 %v7856_v42  ;;  %839 = vmatpush.msrb.mxu1 %v7857_v57  ;;  %v4486_v57 = vperm.slane %v308_v29, 3 }
 0x139   :  { %859 = vmatpush.msrb.mxu2 %v7858_v50  ;;  %879 = vmatpush.msrb.mxu3 %v7859_v0 }
 0x13a   :  { %820 = vmatpush.msrb.mxu0 %v7860_v1  ;;  %840 = vmatpush.msrb.mxu1 %v7861_v2 }
 0x13b   :  { %860 = vmatpush.msrb.mxu2 %v7862_v3  ;;  %880 = vmatpush.msrb.mxu3 %v7863_v4 }
 0x13c   :  { %821 = vmatpush.msrb.mxu0 %v7864_v5  ;;  %841 = vmatpush.msrb.mxu1 %v7865_v6  ;;  %v4489_v5 = vperm.slane %v308_v29, 2 }
 0x13d   :  { %861 = vmatpush.msrb.mxu2 %v7866_v7  ;;  %881 = vmatpush.msrb.mxu3 %v7867_v8 }
 0x13e   :  { %822 = vmatpush.msrb.mxu0 %v7868_v9  ;;  %842 = vmatpush.msrb.mxu1 %v7869_v10 }
 0x13f   :  { %862 = vmatpush.msrb.mxu2 %v7870_v11  ;;  %882 = vmatpush.msrb.mxu3 %v7871_v12 }
 0x140   :  { %823 = vmatpush.msrb.mxu0 %v7872_v13  ;;  %843 = vmatpush.msrb.mxu1 %v7873_v14 }
 0x141   :  { %863 = vmatpush.msrb.mxu2 %v7874_v15  ;;  %883 = vmatpush.msrb.mxu3 %v7875_v16 }
 0x142   :  { %824 = vmatpush.msrb.mxu0 %v7876_v17  ;;  %844 = vmatpush.msrb.mxu1 %v7877_v18 }
 0x143   :  { %864 = vmatpush.msrb.mxu2 %v4228_v53  ;;  %884 = vmatpush.msrb.mxu3 %v7878_v19 }
 0x144   :  { %825 = vmatpush.msrb.mxu0 %v7879_v20  ;;  %845 = vmatpush.msrb.mxu1 %v7880_v21 }
 0x145   :  { %865 = vmatpush.msrb.mxu2 %v7881_v22  ;;  %885 = vmatpush.msrb.mxu3 %v7882_v23 }
 0x146   :  { %826 = vmatpush.msrb.mxu0 %v4248_v54  ;;  %846 = vmatpush.msrb.mxu1 %v4250_v52 }
 0x147   :  { %866 = vmatpush.msrb.mxu2 %v7883_v24  ;;  %886 = vmatpush.msrb.mxu3 %v4256_v58 }
 0x15f   :  { %v472_v25 = vpop.f32.mrf.mxu1  ;;  %v452_v27 = vpop.f32.mrf.mxu0 }
 0x160   :  { %v453_v37 = vadd.f32 %v452_v27, %v4475_v32  ;;  %v473_v40 = vadd.f32 %v472_v25, %v4477_v33 }
 0x166   :  { %v492_v53 = vpop.f32.mrf.mxu2  ;;  %v512_v26 = vpop.f32.mrf.mxu3 }
 0x167   :  { %v513_v0 = vadd.f32 %v512_v26, %v4486_v57  ;;  %v493_v8 = vadd.f32 %v492_v53, %v4489_v5 }
 0x169   :  { %v552_v28 = vpop.f32.mrf.mxu1  ;;  %v532_v34 = vpop.f32.mrf.mxu0 }
 0x16a   :  { %v595_v41 = vadd.f32 %v532_v34, %v453_v37  ;;  %v596_v44 = vadd.f32 %v552_v28, %v473_v40  ;;  %v4511_v34 = vld [vmem:[#allocation6 + $0x1f0] sm:$0xff]  ;;  %v4520_v37 = vld [vmem:[#allocation6 + $0x1c8] sm:$0xff]  ;;  %v4526_v40 = vld [vmem:[#allocation6 + $0x1d8] sm:$0xff] }
 0x16c   :  { %v599_v61 = vmul.f32 0.5, %v595_v41  ;;  %v600_v60 = vmul.f32 0.5, %v596_v44  ;;  %v4532_v44 = vld [vmem:[#allocation6 + $0x1a8] sm:$0xff] }
 0x16e   :  { %2733 = vtanh.f32 %v599_v61  ;;  %v4553_v61 = vld [vmem:[#allocation6 + $0x160] sm:$0xff] }
 0x16f   :  { %2735 = vtanh.f32 %v600_v60  ;;  %v4562_v60 = vld [vmem:[#allocation6 + $0x178] sm:$0xff] }
 0x170   :  { %v572_v30 = vpop.f32.mrf.mxu2  ;;  %v592_v31 = vpop.f32.mrf.mxu3 }
 0x171   :  { %v598_v3 = vadd.f32 %v592_v31, %v513_v0  ;;  %v597_v12 = vadd.f32 %v572_v30, %v493_v8  ;;  %v4505_v30 = vld [vmem:[#allocation6 + $0x1e0] sm:$0xff]  ;;  %v4508_v31 = vld [vmem:[#allocation6 + $0x1e8] sm:$0xff]  ;;  %v4574_v0 = vld [vmem:[#allocation6 + $0x158] sm:$0xff] }
 0x172   :  { %v4595_v8 = vld [vmem:[#allocation6 + $0x110] sm:$0xff] }
 0x173   :  { %v601_v20 = vmul.f32 0.5, %v597_v12  ;;  %v4607_v12 = vld [vmem:[#allocation6 + $0xf0] sm:$0xff] }
 0x174   :  { %v2734_v2 = vpop.eup %2733  ;;  %7888 = vst [vmem:[#allocation20_spill] sm:$0xff] %v4607_v12 }
 0x175   :  { %v2736_v4 = vpop.eup %2735  ;;  %v605_v9 = vmul.f32 0.5, %v2734_v2  ;;  %v4580_v2 = vld [vmem:[#allocation6 + $0x128] sm:$0xff] }
 0x176   :  { %v606_v10 = vmul.f32 0.5, %v2736_v4  ;;  %v4586_v4 = vld [vmem:[#allocation6 + $0x138] sm:$0xff] }
 0x177   :  { %v608_v15 = vadd.f32 0.5, %v605_v9  ;;  %v4598_v9 = vld [vmem:[#allocation6 + $0x118] sm:$0xff] }
 0x178   :  { %v609_v16 = vadd.f32 0.5, %v606_v10  ;;  %v4601_v10 = vld [vmem:[#allocation6 + $0xe0] sm:$0xff] }
 0x17a   :  { %v612_v22 = vmul.f32 0.0, %v609_v16  ;;  %v4619_v16 = vld [vmem:[#allocation6 + $0xd0] sm:$0xff] }
 0x17b   :  { %7892 = vst [vmem:[#allocation22_spill] sm:$0xff] %v4619_v16 }
 0x183   :  { %v658_v36 = vpop.f32.mrf.mxu1  ;;  %v638_v56 = vpop.f32.mrf.mxu0 }
 0x184   :  { %v705_v43 = vrot.slane %v658_v36, 7  ;;  %v4517_v36 = vld [vmem:[#allocation6 + $0x1c0] sm:$0xff] }
 0x186   :  { %v708_v63 = vsel %vm400_vm0, %v638_v56, %v705_v43  ;;  %v4529_v43 = vld [vmem:[#allocation6 + $0x1a0] sm:$0xff]  ;;  %v4550_v56 = vld [vmem:[#allocation6 + $0x198] sm:$0xff] }
 0x18a   :  { %v678_v45 = vpop.f32.mrf.mxu2  ;;  %v698_v47 = vpop.f32.mrf.mxu3 }
 0x18b   :  { %v706_v48 = vrot.slane %v678_v45, 6  ;;  %v707_v55 = vrot.slane %v698_v47, 5  ;;  %v4535_v45 = vld [vmem:[#allocation6 + $0x1b0] sm:$0xff]  ;;  %v4538_v47 = vld [vmem:[#allocation6 + $0x1b8] sm:$0xff] }
 0x18d   :  { %v709_v59 = vsel %vm402_vm1, %v706_v48, %v707_v55  ;;  %v4541_v48 = vld [vmem:[#allocation6 + $0x180] sm:$0xff]  ;;  %v4547_v55 = vld [vmem:[#allocation6 + $0x190] sm:$0xff] }
 0x18e   :  { %v710_v62 = vsel %vm404_vm2, %v708_v63, %v709_v59  ;;  %v4556_v63 = vld [vmem:[#allocation6 + $0x168] sm:$0xff]  ;;  %v4559_v59 = vld [vmem:[#allocation6 + $0x170] sm:$0xff] }
 0x18f   :  { %v712_v42 = vadd.f32 %v710_v62, %v620_v51  ;;  %v4565_v62 = vld [vmem:[#allocation6 + $0x140] sm:$0xff] }
 0x191   :  { %v713_v50 = vmul.f32 0.5, %v712_v42  ;;  %v718_v1 = vrot.slane %v712_v42, 3  ;;  %v4568_v42 = vld [vmem:[#allocation6 + $0x148] sm:$0xff] }
 0x193   :  { %2737 = vtanh.f32 %v713_v50  ;;  %v4571_v50 = vld [vmem:[#allocation6 + $0x150] sm:$0xff] }
 0x194   :  { %2739 = vtanh.f32 %v718_v1  ;;  %v4577_v1 = vld [vmem:[#allocation6 + $0x120] sm:$0xff] }
 0x195   :  { %2741 = vtanh.f32 %v598_v3  ;;  %v4583_v3 = vld [vmem:[#allocation6 + $0x130] sm:$0xff] }
 0x199   :  { %v2738_v6 = vpop.eup %2737 }
 0x19a   :  { %v715_v7 = vmul.f32 0.5, %v2738_v6  ;;  %v2740_v14 = vpop.eup %2739  ;;  %v4589_v6 = vld [vmem:[#allocation6 + $0x100] sm:$0xff] }
 0x19b   :  { %v2742_v19 = vpop.eup %2741 }
 0x19c   :  { %v716_v11 = vadd.f32 0.5, %v715_v7  ;;  %v613_v25 = vmul.f32 %v2742_v19, %v608_v15  ;;  %v4592_v7 = vld [vmem:[#allocation6 + $0x108] sm:$0xff] }
 0x19d   :  { %v4616_v15 = vld [vmem:[#allocation6 + $0xc8] sm:$0xff] }
 0x19e   :  { %v722_v13 = vrot.slane %v716_v11, 1  ;;  %v725_v18 = vmul.f32 %v2740_v14, %v716_v11  ;;  %v4496_v53 = vadd.f32 %v613_v25, %v612_v22  ;;  %v728_v26 = vrot.slane %v716_v11, 2  ;;  %v4604_v11 = vld [vmem:[#allocation6 + $0xe8] sm:$0xff]  ;;  %v4613_v14 = vld [vmem:[#allocation6 + $0xc0] sm:$0xff]  ;;  %7891 = vst [vmem:[#allocation21_spill] sm:$0xff] %v4616_v15  ;;  %v4634_v22 = vld [vmem:[#allocation6 + $0xb8] sm:$0xff] }
 0x19f   :  { %7887 = vst [vmem:[#allocation19_spill] sm:$0xff] %v4604_v11  ;;  %v4628_v19 = vld [vmem:[#allocation6 + $0xa8] sm:$0xff]  ;;  %v4637_v25 = vld [vmem:[#allocation6 + $0x80] sm:$0xff] }
 0x1a0   :  { %v724_v17 = vmul.f32 %v722_v13, %v4266_v46  ;;  %v4610_v13 = vld [vmem:[#allocation6 + $0xf8] sm:$0xff]  ;;  %7890 = vst [vmem:[#allocation26_spill] sm:$0xff] %v4613_v14 }
 0x1a1   :  { %7889 = vst [vmem:[#allocation27_spill] sm:$0xff] %v4610_v13 }
 0x1a2   :  { %v4493_v21 = vadd.f32 %v725_v18, %v724_v17  ;;  %v4622_v17 = vld [vmem:[#allocation6 + $0xd8] sm:$0xff]  ;;  %v4625_v18 = vld [vmem:[#allocation6 + $0xa0] sm:$0xff]  ;;  %7895 = vst [vmem:[#allocation24_spill] sm:$0xff] %v4628_v19 }
 0x1a3   :  { %7893 = vst [vmem:[#allocation31_spill] sm:$0xff] %v4622_v17 }
 0x1a4   :  { %2743 = vtanh.f32 %v4493_v21  ;;  %7894 = vst [vmem:[#allocation30_spill] sm:$0xff] %v4625_v18 }
 0x1a5   :  { %2745 = vtanh.f32 %v601_v20  ;;  %v4631_v20 = vld [vmem:[#allocation6 + $0xb0] sm:$0xff]  ;;  %7897 = vst [vmem:[#allocation35_spill] sm:$0xff] %v4634_v22 }
 0x1a6   :  { %2747 = vtanh.f32 %v4496_v53  ;;  %7896 = vst [vmem:[#allocation25_spill] sm:$0xff] %v4631_v20 }
 0x1a7   :  { %7898 = vst [vmem:[#allocation34_spill] sm:$0xff] %v4637_v25 }
 0x1aa   :  { %v2744_v27 = vpop.eup %2743 }
 0x1ab   :  { %v4498_v28 = vmul.f32 %v2744_v27, %v728_v26  ;;  %v2746_v29 = vpop.eup %2745  ;;  %v4640_v26 = vld [vmem:[#allocation6 + $0x88] sm:$0xff]  ;;  %v4643_v27 = vld [vmem:[#allocation6 + $0x90] sm:$0xff] }
 0x1ac   :  { %v607_v46 = vmul.f32 0.5, %v2746_v29  ;;  %v2748_v38 = vpop.eup %2747  ;;  %7899 = vst [vmem:[#allocation28_spill] sm:$0xff] %v4640_v26  ;;  %v4646_v29 = vld [vmem:[#allocation6 + $0x98] sm:$0xff] }
 0x1ad   :  { %747 = vmatmul.f32.vlgmr.msra.gmra.mxu0 %v4498_v28  ;;  %767 = vmatmul.f32.vlgmr.msra.gmra.mxu1 %v4498_v28  ;;  %7900 = vst [vmem:[#allocation29_spill] sm:$0xff] %v4643_v27 }
 0x1ae   :  { %787 = vmatmul.f32.vlgmr.msra.gmra.mxu2 %v4498_v28  ;;  %807 = vmatmul.f32.vlgmr.msra.gmra.mxu3 %v4498_v28  ;;  %v610_v41 = vadd.f32 0.5, %v607_v46  ;;  %7901 = vst [vmem:[#allocation39_spill] sm:$0xff] %v4646_v29  ;;  %v4649_v46 = vld [vmem:[#allocation6 + $0x60] sm:$0xff] }
 0x1af   :  { %917 = vmatpush.msra.mxu0 %v4505_v30  ;;  %937 = vmatpush.msra.mxu1 %v4508_v31  ;;  %7902 = vst [vmem:[#allocation38_spill] sm:$0xff] %v4649_v46 }
 0x1b0   :  { %957 = vmatpush.msra.mxu2 %v4511_v34  ;;  %977 = vmatpush.msra.mxu3 %v4514_v35  ;;  %v616_v51 = vmul.f32 %v2748_v38, %v610_v41  ;;  %v4652_v38 = vld [vmem:[#allocation6 + $0x68] sm:$0xff]  ;;  %v4655_v41 = vld [vmem:[#allocation6 + $0x70] sm:$0xff] }
 0x1b1   :  { %918 = vmatpush.msra.mxu0 %v4517_v36  ;;  %938 = vmatpush.msra.mxu1 %v4520_v37  ;;  %7903 = vst [vmem:[#allocation32_spill] sm:$0xff] %v4652_v38 }
 0x1b2   :  { %958 = vmatpush.msra.mxu2 %v4523_v39  ;;  %978 = vmatpush.msra.mxu3 %v4526_v40  ;;  %7904 = vst [vmem:[#allocation33_spill] sm:$0xff] %v4655_v41 }
 0x1b3   :  { %919 = vmatpush.msra.mxu0 %v4529_v43  ;;  %939 = vmatpush.msra.mxu1 %v4532_v44 }
 0x1b4   :  { %959 = vmatpush.msra.mxu2 %v4535_v45  ;;  %979 = vmatpush.msra.mxu3 %v4538_v47 }
 0x1b5   :  { %920 = vmatpush.msra.mxu0 %v4541_v48  ;;  %940 = vmatpush.msra.mxu1 %v4544_v49 }
 0x1b6   :  { %960 = vmatpush.msra.mxu2 %v4547_v55  ;;  %980 = vmatpush.msra.mxu3 %v4550_v56 }
 0x1b7   :  { %827 = vmatmul.f32.vlgmr.msrb.gmra.mxu0 %v616_v51  ;;  %847 = vmatmul.f32.vlgmr.msrb.gmra.mxu1 %v616_v51 }
 0x1b8   :  { %867 = vmatmul.f32.vlgmr.msrb.gmra.mxu2 %v616_v51  ;;  %887 = vmatmul.f32.vlgmr.msrb.gmra.mxu3 %v616_v51  ;;  %v4658_v51 = vld [vmem:[#allocation6 + $0x78] sm:$0xff] }
 0x1b9   :  { %921 = vmatpush.msra.mxu0 %v4553_v61  ;;  %941 = vmatpush.msra.mxu1 %v4556_v63  ;;  %7905 = vst [vmem:[#allocation40_spill] sm:$0xff] %v4658_v51 }
 0x1ba   :  { %961 = vmatpush.msra.mxu2 %v4559_v59  ;;  %981 = vmatpush.msra.mxu3 %v4562_v60 }
 0x1bb   :  { %922 = vmatpush.msra.mxu0 %v4565_v62  ;;  %942 = vmatpush.msra.mxu1 %v4568_v42 }
 0x1bc   :  { %962 = vmatpush.msra.mxu2 %v4571_v50  ;;  %982 = vmatpush.msra.mxu3 %v4574_v0 }
 0x1bd   :  { %923 = vmatpush.msra.mxu0 %v4577_v1  ;;  %943 = vmatpush.msra.mxu1 %v4580_v2 }
 0x1be   :  { %963 = vmatpush.msra.mxu2 %v4583_v3  ;;  %983 = vmatpush.msra.mxu3 %v4586_v4 }
 0x1bf   :  { %924 = vmatpush.msra.mxu0 %v4589_v6  ;;  %944 = vmatpush.msra.mxu1 %v4592_v7 }
 0x1c0   :  { %964 = vmatpush.msra.mxu2 %v4595_v8  ;;  %984 = vmatpush.msra.mxu3 %v4598_v9 }
 0x1c1   :  { %925 = vmatpush.msra.mxu0 %v4601_v10  ;;  %945 = vmatpush.msra.mxu1 %v4604_v11 }
 0x1c2   :  { %965 = vmatpush.msra.mxu2 %v4607_v12  ;;  %985 = vmatpush.msra.mxu3 %v4610_v13 }
 0x1c3   :  { %926 = vmatpush.msra.mxu0 %v4613_v14  ;;  %946 = vmatpush.msra.mxu1 %v4616_v15  ;;  %v5083_v15 = vld [vmem:[#allocation7] sm:$0xf] }
 0x1c4   :  { %966 = vmatpush.msra.mxu2 %v4619_v16  ;;  %986 = vmatpush.msra.mxu3 %v4622_v17 }
 0x1c5   :  { %927 = vmatpush.msra.mxu0 %v4625_v18  ;;  %947 = vmatpush.msra.mxu1 %v4628_v19 }
 0x1c6   :  { %967 = vmatpush.msra.mxu2 %v4631_v20  ;;  %987 = vmatpush.msra.mxu3 %v4634_v22 }
 0x1c7   :  { %928 = vmatpush.msra.mxu0 %v4637_v25  ;;  %948 = vmatpush.msra.mxu1 %v4640_v26 }
 0x1c8   :  { %968 = vmatpush.msra.mxu2 %v4643_v27  ;;  %988 = vmatpush.msra.mxu3 %v4646_v29  ;;  %v4661_v27 = vld [vmem:[#allocation6 + $0x40] sm:$0xff]  ;;  %v4664_v29 = vld [vmem:[#allocation6 + $0x48] sm:$0xff] }
 0x1c9   :  { %929 = vmatpush.msra.mxu0 %v4649_v46  ;;  %949 = vmatpush.msra.mxu1 %v4652_v38  ;;  %7906 = vst [vmem:[#allocation41_spill] sm:$0xff] %v4661_v27  ;;  %v4667_v46 = vld [vmem:[#allocation6 + $0x50] sm:$0xff]  ;;  %v4670_v38 = vld [vmem:[#allocation6 + $0x58] sm:$0xff] }
 0x1ca   :  { %969 = vmatpush.msra.mxu2 %v4655_v41  ;;  %989 = vmatpush.msra.mxu3 %v4658_v51  ;;  %7907 = vst [vmem:[#allocation36_spill] sm:$0xff] %v4664_v29  ;;  %v4673_v41 = vld [vmem:[#allocation6 + $0x20] sm:$0xff]  ;;  %v4676_v51 = vld [vmem:[#allocation6 + $0x28] sm:$0xff] }
 0x1cb   :  { %930 = vmatpush.msra.mxu0 %v4661_v27  ;;  %950 = vmatpush.msra.mxu1 %v4664_v29  ;;  %7908 = vst [vmem:[#allocation37_spill] sm:$0xff] %v4667_v46  ;;  %v4679_v27 = vld [vmem:[#allocation6 + $0x30] sm:$0xff]  ;;  %v4682_v29 = vld [vmem:[#allocation6 + $0x38] sm:$0xff] }
 0x1cc   :  { %970 = vmatpush.msra.mxu2 %v4667_v46  ;;  %7909 = vst [vmem:[#allocation44_spill] sm:$0xff] %v4670_v38  ;;  %990 = vmatpush.msra.mxu3 %v4670_v38  ;;  %v4685_v46 = vld [vmem:[#allocation6] sm:$0xff]  ;;  %v4688_v38 = vld [vmem:[#allocation6 + $0x8] sm:$0xff] }
 0x1cd   :  { %7910 = vst [vmem:[#allocation45_spill] sm:$0xff] %v4673_v41  ;;  %931 = vmatpush.msra.mxu0 %v4673_v41  ;;  %951 = vmatpush.msra.mxu1 %v4676_v51  ;;  %v4691_v41 = vld [vmem:[#allocation6 + $0x10] sm:$0xff] }
 0x1ce   :  { %7911 = vst [vmem:[#allocation42_spill] sm:$0xff] %v4676_v51  ;;  %971 = vmatpush.msra.mxu2 %v4679_v27  ;;  %991 = vmatpush.msra.mxu3 %v4682_v29  ;;  %v4694_v51 = vld [vmem:[#allocation6 + $0x18] sm:$0xff] }
 0x1cf   :  { %7912 = vst [vmem:[#allocation43_spill] sm:$0xff] %v4679_v27  ;;  %932 = vmatpush.msra.mxu0 %v4685_v46  ;;  %952 = vmatpush.msra.mxu1 %v4688_v38 }
 0x1d0   :  { %7913 = vst [vmem:[#allocation48_spill] sm:$0xff] %v4682_v29  ;;  %972 = vmatpush.msra.mxu2 %v4691_v41  ;;  %992 = vmatpush.msra.mxu3 %v4694_v51  ;;  %v4713_v29 = vld [vmem:[#allocation9 + $0x1c0] sm:$0xff] }
 0x1d1   :  { %7914 = vst [vmem:[#allocation49_spill] sm:$0xff] %v4685_v46  ;;  %933 = vmatmul.f32.vlgmr.msra.gmra.mxu0 %v4498_v28  ;;  %953 = vmatmul.f32.vlgmr.msra.gmra.mxu1 %v4498_v28  ;;  %v4701_v46 = vld [vmem:[#allocation9 + $0x1e0] sm:$0xff] }
 0x1d2   :  { %7915 = vst [vmem:[#allocation46_spill] sm:$0xff] %v4688_v38  ;;  %973 = vmatmul.f32.vlgmr.msra.gmra.mxu2 %v4498_v28  ;;  %993 = vmatmul.f32.vlgmr.msra.gmra.mxu3 %v4498_v28  ;;  %v4704_v38 = vld [vmem:[#allocation9 + $0x1e8] sm:$0xff] }
 0x1d3   :  { %7916 = vst [vmem:[#allocation47_spill] sm:$0xff] %v4691_v41  ;;  %1027 = vmatpush.msrb.mxu0 %v4701_v46  ;;  %1047 = vmatpush.msrb.mxu1 %v4704_v38  ;;  %v4707_v41 = vld [vmem:[#allocation9 + $0x1f0] sm:$0xff]  ;;  %v4716_v28 = vld [vmem:[#allocation9 + $0x1c8] sm:$0xff] }
 0x1d4   :  { %7917 = vst [vmem:[#allocation52_spill] sm:$0xff] %v4694_v51  ;;  %1067 = vmatpush.msrb.mxu2 %v4707_v41  ;;  %v4710_v51 = vld [vmem:[#allocation9 + $0x1f8] sm:$0xff] }
 0x1d5   :  { %7918 = vst [vmem:[#allocation53_spill] sm:$0xff] %v4701_v46  ;;  %1087 = vmatpush.msrb.mxu3 %v4710_v51  ;;  %1028 = vmatpush.msrb.mxu0 %v4713_v29  ;;  %v4719_v46 = vld [vmem:[#allocation9 + $0x1d0] sm:$0xff] }
 0x1d6   :  { %7919 = vst [vmem:[#allocation50_spill] sm:$0xff] %v4704_v38  ;;  %1048 = vmatpush.msrb.mxu1 %v4716_v28  ;;  %1068 = vmatpush.msrb.mxu2 %v4719_v46  ;;  %v4722_v38 = vld [vmem:[#allocation9 + $0x1d8] sm:$0xff] }
 0x1d7   :  { %7920 = vst [vmem:[#allocation51_spill] sm:$0xff] %v4707_v41  ;;  %1088 = vmatpush.msrb.mxu3 %v4722_v38  ;;  %v4725_v41 = vld [vmem:[#allocation9 + $0x1a0] sm:$0xff] }
 0x1d8   :  { %7921 = vst [vmem:[#allocation56_spill] sm:$0xff] %v4710_v51  ;;  %1029 = vmatpush.msrb.mxu0 %v4725_v41  ;;  %v4728_v51 = vld [vmem:[#allocation9 + $0x1a8] sm:$0xff] }
 0x1d9   :  { %7922 = vst [vmem:[#allocation57_spill] sm:$0xff] %v4713_v29  ;;  %1049 = vmatpush.msrb.mxu1 %v4728_v51  ;;  %v4731_v29 = vld [vmem:[#allocation9 + $0x1b0] sm:$0xff] }
 0x1da   :  { %7923 = vst [vmem:[#allocation54_spill] sm:$0xff] %v4716_v28  ;;  %1069 = vmatpush.msrb.mxu2 %v4731_v29  ;;  %v4734_v28 = vld [vmem:[#allocation9 + $0x1b8] sm:$0xff] }
 0x1db   :  { %7924 = vst [vmem:[#allocation55_spill] sm:$0xff] %v4719_v46  ;;  %1089 = vmatpush.msrb.mxu3 %v4734_v28  ;;  %v4737_v46 = vld [vmem:[#allocation9 + $0x180] sm:$0xff] }
 0x1dc   :  { %7925 = vst [vmem:[#allocation60_spill] sm:$0xff] %v4722_v38  ;;  %1030 = vmatpush.msrb.mxu0 %v4737_v46  ;;  %v4740_v38 = vld [vmem:[#allocation9 + $0x188] sm:$0xff] }
 0x1dd   :  { %7926 = vst [vmem:[#allocation61_spill] sm:$0xff] %v4725_v41  ;;  %1050 = vmatpush.msrb.mxu1 %v4740_v38  ;;  %v4743_v41 = vld [vmem:[#allocation9 + $0x190] sm:$0xff] }
 0x1de   :  { %7927 = vst [vmem:[#allocation58_spill] sm:$0xff] %v4728_v51  ;;  %1070 = vmatpush.msrb.mxu2 %v4743_v41  ;;  %v4746_v51 = vld [vmem:[#allocation9 + $0x198] sm:$0xff] }
 0x1df   :  { %7928 = vst [vmem:[#allocation59_spill] sm:$0xff] %v4731_v29  ;;  %1090 = vmatpush.msrb.mxu3 %v4746_v51  ;;  %v4749_v29 = vld [vmem:[#allocation9 + $0x160] sm:$0xff] }
 0x1e0   :  { %7929 = vst [vmem:[#allocation64_spill] sm:$0xff] %v4734_v28  ;;  %1031 = vmatpush.msrb.mxu0 %v4749_v29  ;;  %v4752_v28 = vld [vmem:[#allocation9 + $0x168] sm:$0xff] }
 0x1e1   :  { %7930 = vst [vmem:[#allocation65_spill] sm:$0xff] %v4737_v46  ;;  %1051 = vmatpush.msrb.mxu1 %v4752_v28  ;;  %v4755_v46 = vld [vmem:[#allocation9 + $0x170] sm:$0xff] }
 0x1e2   :  { %7931 = vst [vmem:[#allocation62_spill] sm:$0xff] %v4740_v38  ;;  %1071 = vmatpush.msrb.mxu2 %v4755_v46  ;;  %v4758_v38 = vld [vmem:[#allocation9 + $0x178] sm:$0xff] }
 0x1e3   :  { %7932 = vst [vmem:[#allocation63_spill] sm:$0xff] %v4743_v41  ;;  %1091 = vmatpush.msrb.mxu3 %v4758_v38  ;;  %v4761_v41 = vld [vmem:[#allocation9 + $0x140] sm:$0xff] }
 0x1e4   :  { %7933 = vst [vmem:[#allocation68_spill] sm:$0xff] %v4746_v51  ;;  %1032 = vmatpush.msrb.mxu0 %v4761_v41  ;;  %v4764_v51 = vld [vmem:[#allocation9 + $0x148] sm:$0xff] }
 0x1e5   :  { %7934 = vst [vmem:[#allocation69_spill] sm:$0xff] %v4749_v29  ;;  %1052 = vmatpush.msrb.mxu1 %v4764_v51  ;;  %v4767_v29 = vld [vmem:[#allocation9 + $0x150] sm:$0xff] }
 0x1e6   :  { %7935 = vst [vmem:[#allocation66_spill] sm:$0xff] %v4752_v28  ;;  %1072 = vmatpush.msrb.mxu2 %v4767_v29  ;;  %v4770_v28 = vld [vmem:[#allocation9 + $0x158] sm:$0xff] }
 0x1e7   :  { %7936 = vst [vmem:[#allocation67_spill] sm:$0xff] %v4755_v46  ;;  %1092 = vmatpush.msrb.mxu3 %v4770_v28  ;;  %v4773_v46 = vld [vmem:[#allocation9 + $0x120] sm:$0xff] }
 0x1e8   :  { %7937 = vst [vmem:[#allocation72_spill] sm:$0xff] %v4758_v38  ;;  %1033 = vmatpush.msrb.mxu0 %v4773_v46  ;;  %v4776_v38 = vld [vmem:[#allocation9 + $0x128] sm:$0xff] }
 0x1e9   :  { %7938 = vst [vmem:[#allocation73_spill] sm:$0xff] %v4761_v41  ;;  %1053 = vmatpush.msrb.mxu1 %v4776_v38  ;;  %v4779_v41 = vld [vmem:[#allocation9 + $0x130] sm:$0xff] }
 0x1ea   :  { %7939 = vst [vmem:[#allocation70_spill] sm:$0xff] %v4764_v51  ;;  %1073 = vmatpush.msrb.mxu2 %v4779_v41  ;;  %v4782_v51 = vld [vmem:[#allocation9 + $0x138] sm:$0xff] }
 0x1eb   :  { %7940 = vst [vmem:[#allocation71_spill] sm:$0xff] %v4767_v29  ;;  %1093 = vmatpush.msrb.mxu3 %v4782_v51  ;;  %v4785_v29 = vld [vmem:[#allocation9 + $0x100] sm:$0xff] }
 0x1ec   :  { %7941 = vst [vmem:[#allocation76_spill] sm:$0xff] %v4770_v28  ;;  %1034 = vmatpush.msrb.mxu0 %v4785_v29  ;;  %v4788_v28 = vld [vmem:[#allocation9 + $0x108] sm:$0xff] }
 0x1ed   :  { %7942 = vst [vmem:[#allocation77_spill] sm:$0xff] %v4773_v46  ;;  %1054 = vmatpush.msrb.mxu1 %v4788_v28  ;;  %v4791_v46 = vld [vmem:[#allocation9 + $0x110] sm:$0xff] }
 0x1ee   :  { %7943 = vst [vmem:[#allocation74_spill] sm:$0xff] %v4776_v38  ;;  %1074 = vmatpush.msrb.mxu2 %v4791_v46  ;;  %v4794_v38 = vld [vmem:[#allocation9 + $0x118] sm:$0xff] }
 0x1ef   :  { %7944 = vst [vmem:[#allocation75_spill] sm:$0xff] %v4779_v41  ;;  %1094 = vmatpush.msrb.mxu3 %v4794_v38  ;;  %v4797_v41 = vld [vmem:[#allocation9 + $0xe0] sm:$0xff] }
 0x1f0   :  { %7945 = vst [vmem:[#allocation80_spill] sm:$0xff] %v4782_v51  ;;  %1035 = vmatpush.msrb.mxu0 %v4797_v41  ;;  %v4800_v51 = vld [vmem:[#allocation9 + $0xe8] sm:$0xff] }
 0x1f1   :  { %7946 = vst [vmem:[#allocation81_spill] sm:$0xff] %v4785_v29  ;;  %1055 = vmatpush.msrb.mxu1 %v4800_v51  ;;  %v4803_v29 = vld [vmem:[#allocation9 + $0xf0] sm:$0xff] }
 0x1f2   :  { %7947 = vst [vmem:[#allocation78_spill] sm:$0xff] %v4788_v28  ;;  %1075 = vmatpush.msrb.mxu2 %v4803_v29  ;;  %v4806_v28 = vld [vmem:[#allocation9 + $0xf8] sm:$0xff] }
 0x1f3   :  { %7948 = vst [vmem:[#allocation79_spill] sm:$0xff] %v4791_v46  ;;  %1095 = vmatpush.msrb.mxu3 %v4806_v28  ;;  %v4809_v46 = vld [vmem:[#allocation9 + $0xc0] sm:$0xff] }
 0x1f4   :  { %7949 = vst [vmem:[#allocation84_spill] sm:$0xff] %v4794_v38  ;;  %1036 = vmatpush.msrb.mxu0 %v4809_v46  ;;  %v4812_v38 = vld [vmem:[#allocation9 + $0xc8] sm:$0xff] }
 0x1f5   :  { %7950 = vst [vmem:[#allocation85_spill] sm:$0xff] %v4797_v41  ;;  %1056 = vmatpush.msrb.mxu1 %v4812_v38  ;;  %v4815_v41 = vld [vmem:[#allocation9 + $0xd0] sm:$0xff] }
 0x1f6   :  { %7951 = vst [vmem:[#allocation82_spill] sm:$0xff] %v4800_v51  ;;  %1076 = vmatpush.msrb.mxu2 %v4815_v41  ;;  %v4818_v51 = vld [vmem:[#allocation9 + $0xd8] sm:$0xff] }
 0x1f7   :  { %7952 = vst [vmem:[#allocation83_spill] sm:$0xff] %v4803_v29  ;;  %1096 = vmatpush.msrb.mxu3 %v4818_v51  ;;  %v4821_v29 = vld [vmem:[#allocation9 + $0xa0] sm:$0xff] }
 0x1f8   :  { %7953 = vst [vmem:[#allocation88_spill] sm:$0xff] %v4806_v28  ;;  %1037 = vmatpush.msrb.mxu0 %v4821_v29  ;;  %v4824_v28 = vld [vmem:[#allocation9 + $0xa8] sm:$0xff] }
 0x1f9   :  { %7954 = vst [vmem:[#allocation89_spill] sm:$0xff] %v4809_v46  ;;  %1057 = vmatpush.msrb.mxu1 %v4824_v28  ;;  %v4827_v46 = vld [vmem:[#allocation9 + $0xb0] sm:$0xff] }
 0x1fa   :  { %7955 = vst [vmem:[#allocation86_spill] sm:$0xff] %v4812_v38  ;;  %1077 = vmatpush.msrb.mxu2 %v4827_v46  ;;  %v4830_v38 = vld [vmem:[#allocation9 + $0xb8] sm:$0xff] }
 0x1fb   :  { %7956 = vst [vmem:[#allocation87_spill] sm:$0xff] %v4815_v41  ;;  %1097 = vmatpush.msrb.mxu3 %v4830_v38  ;;  %v4833_v41 = vld [vmem:[#allocation9 + $0x80] sm:$0xff] }
 0x1fc   :  { %7957 = vst [vmem:[#allocation92_spill] sm:$0xff] %v4818_v51  ;;  %1038 = vmatpush.msrb.mxu0 %v4833_v41  ;;  %v4836_v51 = vld [vmem:[#allocation9 + $0x88] sm:$0xff] }
 0x1fd   :  { %7958 = vst [vmem:[#allocation93_spill] sm:$0xff] %v4821_v29  ;;  %1058 = vmatpush.msrb.mxu1 %v4836_v51  ;;  %v4839_v29 = vld [vmem:[#allocation9 + $0x90] sm:$0xff] }
 0x1fe   :  { %7959 = vst [vmem:[#allocation90_spill] sm:$0xff] %v4824_v28  ;;  %1078 = vmatpush.msrb.mxu2 %v4839_v29  ;;  %v4842_v28 = vld [vmem:[#allocation9 + $0x98] sm:$0xff] }
 0x1ff   :  { %7960 = vst [vmem:[#allocation91_spill] sm:$0xff] %v4827_v46  ;;  %1098 = vmatpush.msrb.mxu3 %v4842_v28  ;;  %v4845_v46 = vld [vmem:[#allocation9 + $0x60] sm:$0xff] }
 0x200   :  { %7961 = vst [vmem:[#allocation94_spill] sm:$0xff] %v4830_v38  ;;  %1039 = vmatpush.msrb.mxu0 %v4845_v46  ;;  %v4848_v38 = vld [vmem:[#allocation9 + $0x68] sm:$0xff] }
 0x201   :  { %7962 = vst [vmem:[#allocation95_spill] sm:$0xff] %v4833_v41  ;;  %1059 = vmatpush.msrb.mxu1 %v4848_v38  ;;  %v4851_v41 = vld [vmem:[#allocation9 + $0x70] sm:$0xff] }
 0x202   :  { %7963 = vst [vmem:[#allocation96_spill] sm:$0xff] %v4836_v51  ;;  %1079 = vmatpush.msrb.mxu2 %v4851_v41  ;;  %v4854_v51 = vld [vmem:[#allocation9 + $0x78] sm:$0xff] }
 0x203   :  { %7964 = vst [vmem:[#allocation97_spill] sm:$0xff] %v4839_v29  ;;  %1099 = vmatpush.msrb.mxu3 %v4854_v51  ;;  %v4857_v29 = vld [vmem:[#allocation9 + $0x40] sm:$0xff] }
 0x204   :  { %7965 = vst [vmem:[#allocation98_spill] sm:$0xff] %v4842_v28  ;;  %1040 = vmatpush.msrb.mxu0 %v4857_v29  ;;  %v4860_v28 = vld [vmem:[#allocation9 + $0x48] sm:$0xff] }
 0x205   :  { %7966 = vst [vmem:[#allocation99_spill] sm:$0xff] %v4845_v46  ;;  %1060 = vmatpush.msrb.mxu1 %v4860_v28  ;;  %v4863_v46 = vld [vmem:[#allocation9 + $0x50] sm:$0xff] }
 0x206   :  { %7967 = vst [vmem:[#allocation100_spill] sm:$0xff] %v4848_v38  ;;  %1080 = vmatpush.msrb.mxu2 %v4863_v46  ;;  %v4866_v38 = vld [vmem:[#allocation9 + $0x58] sm:$0xff] }
 0x207   :  { %7968 = vst [vmem:[#allocation101_spill] sm:$0xff] %v4851_v41  ;;  %1100 = vmatpush.msrb.mxu3 %v4866_v38  ;;  %v4869_v41 = vld [vmem:[#allocation9 + $0x20] sm:$0xff] }
 0x208   :  { %7969 = vst [vmem:[#allocation102_spill] sm:$0xff] %v4854_v51  ;;  %1041 = vmatpush.msrb.mxu0 %v4869_v41  ;;  %v4872_v51 = vld [vmem:[#allocation9 + $0x28] sm:$0xff] }
 0x209   :  { %7970 = vst [vmem:[#allocation103_spill] sm:$0xff] %v4857_v29  ;;  %1061 = vmatpush.msrb.mxu1 %v4872_v51  ;;  %v4875_v29 = vld [vmem:[#allocation9 + $0x30] sm:$0xff] }
 0x20a   :  { %7971 = vst [vmem:[#allocation104_spill] sm:$0xff] %v4860_v28  ;;  %1081 = vmatpush.msrb.mxu2 %v4875_v29  ;;  %v4878_v28 = vld [vmem:[#allocation9 + $0x38] sm:$0xff] }
 0x20b   :  { %7972 = vst [vmem:[#allocation105_spill] sm:$0xff] %v4863_v46  ;;  %1101 = vmatpush.msrb.mxu3 %v4878_v28  ;;  %v4881_v46 = vld [vmem:[#allocation9] sm:$0xff] }
 0x20c   :  { %7973 = vst [vmem:[#allocation106_spill] sm:$0xff] %v4866_v38  ;;  %1042 = vmatpush.msrb.mxu0 %v4881_v46  ;;  %v4884_v38 = vld [vmem:[#allocation9 + $0x8] sm:$0xff] }
 0x20d   :  { %7974 = vst [vmem:[#allocation107_spill] sm:$0xff] %v4869_v41  ;;  %1062 = vmatpush.msrb.mxu1 %v4884_v38  ;;  %v4887_v41 = vld [vmem:[#allocation9 + $0x10] sm:$0xff] }
 0x20e   :  { %7975 = vst [vmem:[#allocation108_spill] sm:$0xff] %v4872_v51  ;;  %1082 = vmatpush.msrb.mxu2 %v4887_v41  ;;  %v4890_v51 = vld [vmem:[#allocation9 + $0x18] sm:$0xff] }
 0x20f   :  { %7976 = vst [vmem:[#allocation109_spill] sm:$0xff] %v4875_v29  ;;  %1102 = vmatpush.msrb.mxu3 %v4890_v51  ;;  %v4893_v29 = vld [vmem:[#allocation10 + $0x1e0] sm:$0xff] }
 0x210   :  { %7977 = vst [vmem:[#allocation110_spill] sm:$0xff] %v4878_v28  ;;  %1107 = vmatpush.msra.mxu0 %v4893_v29  ;;  %v4896_v28 = vld [vmem:[#allocation10 + $0x1e8] sm:$0xff] }
 0x211   :  { %7978 = vst [vmem:[#allocation111_spill] sm:$0xff] %v4881_v46  ;;  %1127 = vmatpush.msra.mxu1 %v4896_v28  ;;  %v4899_v46 = vld [vmem:[#allocation10 + $0x1f0] sm:$0xff] }
 0x212   :  { %7979 = vst [vmem:[#allocation112_spill] sm:$0xff] %v4884_v38  ;;  %1147 = vmatpush.msra.mxu2 %v4899_v46  ;;  %v4902_v38 = vld [vmem:[#allocation10 + $0x1f8] sm:$0xff] }
 0x213   :  { %7980 = vst [vmem:[#allocation113_spill] sm:$0xff] %v4887_v41  ;;  %1167 = vmatpush.msra.mxu3 %v4902_v38  ;;  %v4905_v41 = vld [vmem:[#allocation10 + $0x1c0] sm:$0xff] }
 0x214   :  { %7981 = vst [vmem:[#allocation114_spill] sm:$0xff] %v4890_v51  ;;  %1108 = vmatpush.msra.mxu0 %v4905_v41  ;;  %v4908_v51 = vld [vmem:[#allocation10 + $0x1c8] sm:$0xff] }
 0x215   :  { %7982 = vst [vmem:[#allocation115_spill] sm:$0xff] %v4893_v29  ;;  %1128 = vmatpush.msra.mxu1 %v4908_v51  ;;  %v4911_v29 = vld [vmem:[#allocation10 + $0x1d0] sm:$0xff] }
 0x216   :  { %7983 = vst [vmem:[#allocation116_spill] sm:$0xff] %v4896_v28  ;;  %1148 = vmatpush.msra.mxu2 %v4911_v29  ;;  %v4914_v28 = vld [vmem:[#allocation10 + $0x1d8] sm:$0xff] }
 0x217   :  { %7984 = vst [vmem:[#allocation117_spill] sm:$0xff] %v4899_v46  ;;  %1168 = vmatpush.msra.mxu3 %v4914_v28  ;;  %v4917_v46 = vld [vmem:[#allocation10 + $0x1a0] sm:$0xff] }
 0x218   :  { %7985 = vst [vmem:[#allocation118_spill] sm:$0xff] %v4902_v38  ;;  %1109 = vmatpush.msra.mxu0 %v4917_v46  ;;  %v4920_v38 = vld [vmem:[#allocation10 + $0x1a8] sm:$0xff] }
 0x219   :  { %7986 = vst [vmem:[#allocation119_spill] sm:$0xff] %v4905_v41  ;;  %1129 = vmatpush.msra.mxu1 %v4920_v38  ;;  %v4923_v41 = vld [vmem:[#allocation10 + $0x1b0] sm:$0xff] }
 0x21a   :  { %7987 = vst [vmem:[#allocation120_spill] sm:$0xff] %v4908_v51  ;;  %1149 = vmatpush.msra.mxu2 %v4923_v41  ;;  %v4926_v51 = vld [vmem:[#allocation10 + $0x1b8] sm:$0xff] }
 0x21b   :  { %7988 = vst [vmem:[#allocation121_spill] sm:$0xff] %v4911_v29  ;;  %1169 = vmatpush.msra.mxu3 %v4926_v51  ;;  %v4929_v29 = vld [vmem:[#allocation10 + $0x180] sm:$0xff] }
 0x21c   :  { %7989 = vst [vmem:[#allocation122_spill] sm:$0xff] %v4914_v28  ;;  %1110 = vmatpush.msra.mxu0 %v4929_v29  ;;  %v4932_v28 = vld [vmem:[#allocation10 + $0x188] sm:$0xff] }
 0x21d   :  { %7990 = vst [vmem:[#allocation123_spill] sm:$0xff] %v4917_v46  ;;  %1130 = vmatpush.msra.mxu1 %v4932_v28  ;;  %v4935_v46 = vld [vmem:[#allocation10 + $0x190] sm:$0xff] }
 0x21e   :  { %7991 = vst [vmem:[#allocation124_spill] sm:$0xff] %v4920_v38  ;;  %1150 = vmatpush.msra.mxu2 %v4935_v46  ;;  %v4938_v38 = vld [vmem:[#allocation10 + $0x198] sm:$0xff] }
 0x21f   :  { %7992 = vst [vmem:[#allocation125_spill] sm:$0xff] %v4923_v41  ;;  %1170 = vmatpush.msra.mxu3 %v4938_v38  ;;  %v4941_v41 = vld [vmem:[#allocation10 + $0x160] sm:$0xff] }
 0x220   :  { %7993 = vst [vmem:[#allocation126_spill] sm:$0xff] %v4926_v51  ;;  %1111 = vmatpush.msra.mxu0 %v4941_v41  ;;  %v4944_v51 = vld [vmem:[#allocation10 + $0x168] sm:$0xff] }
 0x221   :  { %7994 = vst [vmem:[#allocation127_spill] sm:$0xff] %v4929_v29  ;;  %1131 = vmatpush.msra.mxu1 %v4944_v51  ;;  %v4947_v29 = vld [vmem:[#allocation10 + $0x170] sm:$0xff] }
 0x222   :  { %7995 = vst [vmem:[#allocation128_spill] sm:$0xff] %v4932_v28  ;;  %1151 = vmatpush.msra.mxu2 %v4947_v29  ;;  %v4950_v28 = vld [vmem:[#allocation10 + $0x178] sm:$0xff] }
 0x223   :  { %7996 = vst [vmem:[#allocation129_spill] sm:$0xff] %v4935_v46  ;;  %1171 = vmatpush.msra.mxu3 %v4950_v28  ;;  %v4953_v46 = vld [vmem:[#allocation10 + $0x140] sm:$0xff] }
 0x224   :  { %7997 = vst [vmem:[#allocation130_spill] sm:$0xff] %v4938_v38  ;;  %1112 = vmatpush.msra.mxu0 %v4953_v46  ;;  %v4956_v38 = vld [vmem:[#allocation10 + $0x148] sm:$0xff] }
 0x225   :  { %7998 = vst [vmem:[#allocation131_spill] sm:$0xff] %v4941_v41  ;;  %1132 = vmatpush.msra.mxu1 %v4956_v38  ;;  %v4959_v41 = vld [vmem:[#allocation10 + $0x150] sm:$0xff] }
 0x226   :  { %7999 = vst [vmem:[#allocation132_spill] sm:$0xff] %v4944_v51  ;;  %1152 = vmatpush.msra.mxu2 %v4959_v41  ;;  %v4962_v51 = vld [vmem:[#allocation10 + $0x158] sm:$0xff] }
 0x227   :  { %8000 = vst [vmem:[#allocation133_spill] sm:$0xff] %v4947_v29  ;;  %1172 = vmatpush.msra.mxu3 %v4962_v51  ;;  %v4965_v29 = vld [vmem:[#allocation10 + $0x120] sm:$0xff] }
 0x228   :  { %8001 = vst [vmem:[#allocation134_spill] sm:$0xff] %v4950_v28  ;;  %1113 = vmatpush.msra.mxu0 %v4965_v29  ;;  %v4968_v28 = vld [vmem:[#allocation10 + $0x128] sm:$0xff] }
 0x229   :  { %8002 = vst [vmem:[#allocation135_spill] sm:$0xff] %v4953_v46  ;;  %1133 = vmatpush.msra.mxu1 %v4968_v28  ;;  %v4971_v46 = vld [vmem:[#allocation10 + $0x130] sm:$0xff] }
 0x22a   :  { %8003 = vst [vmem:[#allocation136_spill] sm:$0xff] %v4956_v38  ;;  %1153 = vmatpush.msra.mxu2 %v4971_v46  ;;  %v4974_v38 = vld [vmem:[#allocation10 + $0x138] sm:$0xff] }
 0x22b   :  { %8004 = vst [vmem:[#allocation137_spill] sm:$0xff] %v4959_v41  ;;  %1173 = vmatpush.msra.mxu3 %v4974_v38  ;;  %v4977_v41 = vld [vmem:[#allocation10 + $0x100] sm:$0xff] }
 0x22c   :  { %8005 = vst [vmem:[#allocation138_spill] sm:$0xff] %v4962_v51  ;;  %1114 = vmatpush.msra.mxu0 %v4977_v41  ;;  %v4980_v51 = vld [vmem:[#allocation10 + $0x108] sm:$0xff] }
 0x22d   :  { %8006 = vst [vmem:[#allocation139_spill] sm:$0xff] %v4965_v29  ;;  %1134 = vmatpush.msra.mxu1 %v4980_v51  ;;  %v4983_v29 = vld [vmem:[#allocation10 + $0x110] sm:$0xff] }
 0x22e   :  { %8007 = vst [vmem:[#allocation140_spill] sm:$0xff] %v4968_v28  ;;  %1154 = vmatpush.msra.mxu2 %v4983_v29  ;;  %v4986_v28 = vld [vmem:[#allocation10 + $0x118] sm:$0xff] }
 0x22f   :  { %8008 = vst [vmem:[#allocation141_spill] sm:$0xff] %v4971_v46  ;;  %1174 = vmatpush.msra.mxu3 %v4986_v28  ;;  %v4989_v46 = vld [vmem:[#allocation10 + $0xe0] sm:$0xff] }
 0x230   :  { %8009 = vst [vmem:[#allocation142_spill] sm:$0xff] %v4974_v38  ;;  %1115 = vmatpush.msra.mxu0 %v4989_v46  ;;  %v4992_v38 = vld [vmem:[#allocation10 + $0xe8] sm:$0xff] }
 0x231   :  { %8010 = vst [vmem:[#allocation143_spill] sm:$0xff] %v4977_v41  ;;  %1135 = vmatpush.msra.mxu1 %v4992_v38  ;;  %v4995_v41 = vld [vmem:[#allocation10 + $0xf0] sm:$0xff] }
 0x232   :  { %8011 = vst [vmem:[#allocation144_spill] sm:$0xff] %v4980_v51  ;;  %1155 = vmatpush.msra.mxu2 %v4995_v41  ;;  %v4998_v51 = vld [vmem:[#allocation10 + $0xf8] sm:$0xff] }
 0x233   :  { %8012 = vst [vmem:[#allocation146_spill] sm:$0xff] %v4983_v29  ;;  %1175 = vmatpush.msra.mxu3 %v4998_v51  ;;  %v5001_v29 = vld [vmem:[#allocation10 + $0xc0] sm:$0xff] }
 0x234   :  { %8013 = vst [vmem:[#allocation147_spill] sm:$0xff] %v4986_v28  ;;  %1116 = vmatpush.msra.mxu0 %v5001_v29  ;;  %v5004_v28 = vld [vmem:[#allocation10 + $0xc8] sm:$0xff] }
 0x235   :  { %8014 = vst [vmem:[#allocation148_spill] sm:$0xff] %v4989_v46  ;;  %1136 = vmatpush.msra.mxu1 %v5004_v28  ;;  %v5007_v46 = vld [vmem:[#allocation10 + $0xd0] sm:$0xff] }
 0x236   :  { %8015 = vst [vmem:[#allocation149_spill] sm:$0xff] %v4992_v38  ;;  %1156 = vmatpush.msra.mxu2 %v5007_v46  ;;  %v5010_v38 = vld [vmem:[#allocation10 + $0xd8] sm:$0xff] }
 0x237   :  { %8016 = vst [vmem:[#allocation150_spill] sm:$0xff] %v4995_v41  ;;  %1176 = vmatpush.msra.mxu3 %v5010_v38  ;;  %v5013_v41 = vld [vmem:[#allocation10 + $0xa0] sm:$0xff] }
 0x238   :  { %8017 = vst [vmem:[#allocation151_spill] sm:$0xff] %v4998_v51  ;;  %1117 = vmatpush.msra.mxu0 %v5013_v41  ;;  %v5016_v51 = vld [vmem:[#allocation10 + $0xa8] sm:$0xff] }
 0x239   :  { %8018 = vst [vmem:[#allocation152_spill] sm:$0xff] %v5001_v29  ;;  %1137 = vmatpush.msra.mxu1 %v5016_v51  ;;  %v5019_v29 = vld [vmem:[#allocation10 + $0xb0] sm:$0xff] }
 0x23a   :  { %8019 = vst [vmem:[#allocation153_spill] sm:$0xff] %v5004_v28  ;;  %1157 = vmatpush.msra.mxu2 %v5019_v29  ;;  %v5022_v28 = vld [vmem:[#allocation10 + $0xb8] sm:$0xff] }
 0x23b   :  { %8020 = vst [vmem:[#allocation155_spill] sm:$0xff] %v5007_v46  ;;  %1177 = vmatpush.msra.mxu3 %v5022_v28  ;;  %v5025_v46 = vld [vmem:[#allocation10 + $0x80] sm:$0xff] }
 0x23c   :  { %8021 = vst [vmem:[#allocation156_spill] sm:$0xff] %v5010_v38  ;;  %1118 = vmatpush.msra.mxu0 %v5025_v46  ;;  %v5028_v38 = vld [vmem:[#allocation10 + $0x88] sm:$0xff] }
 0x23d   :  { %8022 = vst [vmem:[#allocation157_spill] sm:$0xff] %v5013_v41  ;;  %1138 = vmatpush.msra.mxu1 %v5028_v38  ;;  %v5031_v41 = vld [vmem:[#allocation10 + $0x90] sm:$0xff] }
 0x23e   :  { %8023 = vst [vmem:[#allocation158_spill] sm:$0xff] %v5016_v51  ;;  %1158 = vmatpush.msra.mxu2 %v5031_v41  ;;  %v5034_v51 = vld [vmem:[#allocation10 + $0x98] sm:$0xff] }
 0x23f   :  { %8024 = vst [vmem:[#allocation159_spill] sm:$0xff] %v5019_v29  ;;  %1178 = vmatpush.msra.mxu3 %v5034_v51  ;;  %v5037_v29 = vld [vmem:[#allocation10 + $0x60] sm:$0xff] }
 0x240   :  { %8025 = vst [vmem:[#allocation160_spill] sm:$0xff] %v5022_v28  ;;  %1119 = vmatpush.msra.mxu0 %v5037_v29  ;;  %v5040_v28 = vld [vmem:[#allocation10 + $0x68] sm:$0xff] }
 0x241   :  { %8026 = vst [vmem:[#allocation161_spill] sm:$0xff] %v5025_v46  ;;  %1139 = vmatpush.msra.mxu1 %v5040_v28  ;;  %v5043_v46 = vld [vmem:[#allocation10 + $0x70] sm:$0xff] }
 0x242   :  { %8027 = vst [vmem:[#allocation162_spill] sm:$0xff] %v5028_v38  ;;  %1159 = vmatpush.msra.mxu2 %v5043_v46  ;;  %v5046_v38 = vld [vmem:[#allocation10 + $0x78] sm:$0xff] }
 0x243   :  { %8028 = vst [vmem:[#allocation163_spill] sm:$0xff] %v5031_v41  ;;  %1179 = vmatpush.msra.mxu3 %v5046_v38  ;;  %v5049_v41 = vld [vmem:[#allocation10 + $0x40] sm:$0xff] }
 0x244   :  { %8029 = vst [vmem:[#allocation145_spill] sm:$0xff] %v5034_v51  ;;  %1120 = vmatpush.msra.mxu0 %v5049_v41  ;;  %v5052_v51 = vld [vmem:[#allocation10 + $0x48] sm:$0xff] }
 0x245   :  { %8030 = vst [vmem:[#allocation154_spill] sm:$0xff] %v5037_v29  ;;  %1140 = vmatpush.msra.mxu1 %v5052_v51  ;;  %v5055_v29 = vld [vmem:[#allocation10 + $0x50] sm:$0xff] }
 0x246   :  { %8031 = vst [vmem:[#allocation164_spill] sm:$0xff] %v5040_v28  ;;  %1160 = vmatpush.msra.mxu2 %v5055_v29  ;;  %v5058_v28 = vld [vmem:[#allocation10 + $0x58] sm:$0xff] }
 0x247   :  { %8032 = vst [vmem:[#allocation165_spill] sm:$0xff] %v5043_v46  ;;  %1180 = vmatpush.msra.mxu3 %v5058_v28  ;;  %v5061_v46 = vld [vmem:[#allocation10 + $0x20] sm:$0xff] }
 0x248   :  { %8033 = vst [vmem:[#allocation166_spill] sm:$0xff] %v5046_v38  ;;  %1121 = vmatpush.msra.mxu0 %v5061_v46  ;;  %v5064_v38 = vld [vmem:[#allocation10 + $0x28] sm:$0xff] }
 0x249   :  { %8034 = vst [vmem:[#allocation167_spill] sm:$0xff] %v5049_v41  ;;  %1141 = vmatpush.msra.mxu1 %v5064_v38  ;;  %v5067_v41 = vld [vmem:[#allocation10 + $0x30] sm:$0xff]  ;;  %1181 = vmatpush.msra.mxu3 %v7882_v23 }
 0x24a   :  { %8035 = vst [vmem:[#allocation168_spill] sm:$0xff] %v5052_v51  ;;  %1161 = vmatpush.msra.mxu2 %v5067_v41  ;;  %1122 = vmatpush.msra.mxu0 %v4248_v54  ;;  %v748_v51 = vpop.f32.mrf.mxu0 }
 0x24b   :  { %8036 = vst [vmem:[#allocation169_spill] sm:$0xff] %v5055_v29  ;;  %1142 = vmatpush.msra.mxu1 %v4250_v52  ;;  %1182 = vmatpush.msra.mxu3 %v4256_v58  ;;  %v808_v29 = vpop.f32.mrf.mxu3  ;;  %v749_v23 = vadd.f32 %v748_v51, %v4475_v32  ;;  %v5079_v52 = vld [vmem:[%s6973_s1] sm:$0xf] }
 0x24c   :  { %8037 = vst [vmem:[#allocation170_spill] sm:$0xff] %v5058_v28  ;;  %1162 = vmatpush.msra.mxu2 %v7883_v24  ;;  %v768_v28 = vpop.f32.mrf.mxu1 }
 0x24d   :  { %8038 = vst [vmem:[#allocation171_spill] sm:$0xff] %v5061_v46  ;;  %v788_v46 = vpop.f32.mrf.mxu2  ;;  %v769_v58 = vadd.f32 %v768_v28, %v4477_v33 }
 0x24e   :  { %8039 = vst [vmem:[#allocation172_spill] sm:$0xff] %v5064_v38 }
 0x24f   :  { %8040 = vst [vmem:[#allocation173_spill] sm:$0xff] %v5067_v41  ;;  %v914_v41 = vstv %s2711_s30 }
 0x250   :  { %v915_v54 = vmul.f32 %v5079_v52, %v914_v41 }
 0x252   :  { %v828_v25 = vpop.f32.mrf.mxu0  ;;  %v916_v14 = vadd.f32 %v5083_v15, %v915_v54 }
 0x253   :  { %v888_v26 = vpop.f32.mrf.mxu3  ;;  %v891_v24 = vadd.f32 %v828_v25, %v749_v23 }
 0x254   :  { %v848_v38 = vpop.f32.mrf.mxu1 }
 0x255   :  { %v868_v27 = vpop.f32.mrf.mxu2  ;;  %v892_v19 = vadd.f32 %v848_v38, %v769_v58  ;;  %v895_v13 = vmul.f32 0.5, %v891_v24 }
 0x257   :  { %v896_v41 = vmul.f32 0.5, %v892_v19  ;;  %2749 = vtanh.f32 %v895_v13 }
 0x259   :  { %2751 = vtanh.f32 %v896_v41 }
 0x25a   :  { %v934_v32 = vpop.f32.mrf.mxu0 }
 0x25b   :  { %v994_v17 = vpop.f32.mrf.mxu3 }
 0x25c   :  { %v954_v22 = vpop.f32.mrf.mxu1  ;;  %v1003_v51 = vrot.slane %v994_v17, 5 }
 0x25d   :  { %v1001_v20 = vrot.slane %v954_v22, 7  ;;  %v974_v18 = vpop.f32.mrf.mxu2  ;;  %v2750_v23 = vpop.eup %2749 }
 0x25e   :  { %v1002_v16 = vrot.slane %v974_v18, 6  ;;  %v809_v18 = vadd.f32 %v808_v29, %v4486_v57 }
 0x25f   :  { %v1004_v12 = vsel %vm400_vm0, %v934_v32, %v1001_v20  ;;  %v2752_v17 = vpop.eup %2751  ;;  %v789_v32 = vadd.f32 %v788_v46, %v4489_v5 }
 0x260   :  { %v1005_v11 = vsel %vm402_vm1, %v1002_v16, %v1003_v51  ;;  %v894_v54 = vadd.f32 %v888_v26, %v809_v18  ;;  %v901_v16 = vmul.f32 0.5, %v2750_v23  ;;  %v902_v19 = vmul.f32 0.5, %v2752_v17 }
 0x261   :  { %v1006_v28 = vsel %vm404_vm2, %v1004_v12, %v1005_v11  ;;  %v893_v12 = vadd.f32 %v868_v27, %v789_v32  ;;  %v8075_v32 = vld [vmem:[#allocation56_spill] sm:$0xff] }
 0x262   :  { %v1008_v25 = vadd.f32 %v1006_v28, %v916_v14  ;;  %v904_v20 = vadd.f32 0.5, %v901_v16  ;;  %v905_v51 = vadd.f32 0.5, %v902_v19  ;;  %v8076_v16 = vld [vmem:[#allocation57_spill] sm:$0xff]  ;;  %v8077_v19 = vld [vmem:[#allocation54_spill] sm:$0xff] }
 0x263   :  { %v897_v26 = vmul.f32 0.5, %v893_v12  ;;  %v8079_v12 = vld [vmem:[#allocation60_spill] sm:$0xff] }
 0x264   :  { %v1009_v22 = vmul.f32 0.5, %v1008_v25  ;;  %v1014_v38 = vrot.slane %v1008_v25, 3 }
 0x266   :  { %2753 = vtanh.f32 %v1009_v22  ;;  %v908_v22 = vmul.f32 %v905_v51, %v4496_v53  ;;  %v8083_v51 = vld [vmem:[#allocation64_spill] sm:$0xff] }
 0x267   :  { %2755 = vtanh.f32 %v1014_v38 }
 0x268   :  { %2757 = vtanh.f32 %v894_v54 }
 0x26c   :  { %v2754_v58 = vpop.eup %2753 }
 0x26d   :  { %v1011_v24 = vmul.f32 0.5, %v2754_v58  ;;  %v2756_v14 = vpop.eup %2755  ;;  %v8073_v58 = vld [vmem:[#allocation50_spill] sm:$0xff] }
 0x26e   :  { %v2758_v28 = vpop.eup %2757 }
 0x26f   :  { %v1012_v11 = vadd.f32 0.5, %v1011_v24  ;;  %v909_v18 = vmul.f32 %v2758_v28, %v904_v20  ;;  %v8074_v24 = vld [vmem:[#allocation51_spill] sm:$0xff] }
 0x270   :  { %v8082_v20 = vld [vmem:[#allocation59_spill] sm:$0xff] }
 0x271   :  { %v1018_v13 = vrot.slane %v1012_v11, 1  ;;  %v1021_v41 = vmul.f32 %v2756_v14, %v1012_v11  ;;  %v5096_v46 = vadd.f32 %v909_v18, %v908_v22  ;;  %v1024_v27 = vrot.slane %v1012_v11, 2  ;;  %v8078_v11 = vld [vmem:[#allocation55_spill] sm:$0xff]  ;;  %v8081_v14 = vld [vmem:[#allocation58_spill] sm:$0xff]  ;;  %v8088_v22 = vld [vmem:[#allocation69_spill] sm:$0xff] }
 0x272   :  { %v8086_v28 = vld [vmem:[#allocation63_spill] sm:$0xff]  ;;  %v8089_v18 = vld [vmem:[#allocation66_spill] sm:$0xff] }
 0x273   :  { %v1020_v29 = vmul.f32 %v1018_v13, %v4493_v21  ;;  %v8080_v13 = vld [vmem:[#allocation61_spill] sm:$0xff] }
 0x275   :  { %v5092_v25 = vadd.f32 %v1021_v41, %v1020_v29  ;;  %v8084_v29 = vld [vmem:[#allocation65_spill] sm:$0xff]  ;;  %v8085_v41 = vld [vmem:[#allocation62_spill] sm:$0xff] }
 0x277   :  { %2759 = vtanh.f32 %v5092_v25 }
 0x278   :  { %2761 = vtanh.f32 %v897_v26  ;;  %v8087_v26 = vld [vmem:[#allocation68_spill] sm:$0xff] }
 0x279   :  { %2763 = vtanh.f32 %v5096_v46 }
 0x27d   :  { %v2760_v38 = vpop.eup %2759 }
 0x27e   :  { %v5098_v23 = vmul.f32 %v2760_v38, %v1024_v27  ;;  %v2762_v54 = vpop.eup %2761  ;;  %v8090_v27 = vld [vmem:[#allocation67_spill] sm:$0xff]  ;;  %v8091_v38 = vld [vmem:[#allocation72_spill] sm:$0xff] }
 0x27f   :  { %v903_v21 = vmul.f32 0.5, %v2762_v54  ;;  %v2764_v53 = vpop.eup %2763  ;;  %v8093_v54 = vld [vmem:[#allocation70_spill] sm:$0xff] }
 0x280   :  { %1043 = vmatmul.f32.vlgmr.msrb.gmra.mxu0 %v5098_v23  ;;  %1063 = vmatmul.f32.vlgmr.msrb.gmra.mxu1 %v5098_v23 }
 0x281   :  { %1083 = vmatmul.f32.vlgmr.msrb.gmra.mxu2 %v5098_v23  ;;  %1103 = vmatmul.f32.vlgmr.msrb.gmra.mxu3 %v5098_v23  ;;  %v906_v17 = vadd.f32 0.5, %v903_v21  ;;  %v8094_v21 = vld [vmem:[#allocation71_spill] sm:$0xff] }
 0x282   :  { %1213 = vmatpush.msrb.mxu0 %v4505_v30  ;;  %1233 = vmatpush.msrb.mxu1 %v4508_v31  ;;  %v8041_v31 = vld [vmem:[#allocation19_spill] sm:$0xff] }
 0x283   :  { %1253 = vmatpush.msrb.mxu2 %v4511_v34  ;;  %1273 = vmatpush.msrb.mxu3 %v4514_v35  ;;  %v912_v30 = vmul.f32 %v2764_v53, %v906_v17  ;;  %v8042_v34 = vld [vmem:[#allocation20_spill] sm:$0xff]  ;;  %v8043_v35 = vld [vmem:[#allocation27_spill] sm:$0xff]  ;;  %v8096_v17 = vld [vmem:[#allocation77_spill] sm:$0xff] }
 0x284   :  { %1214 = vmatpush.msrb.mxu0 %v4517_v36  ;;  %1234 = vmatpush.msrb.mxu1 %v4520_v37  ;;  %v8044_v36 = vld [vmem:[#allocation26_spill] sm:$0xff]  ;;  %v8045_v37 = vld [vmem:[#allocation21_spill] sm:$0xff]  ;;  %v8095_v53 = vld [vmem:[#allocation76_spill] sm:$0xff] }
 0x285   :  { %1254 = vmatpush.msrb.mxu2 %v4523_v39  ;;  %1274 = vmatpush.msrb.mxu3 %v4526_v40  ;;  %v8046_v39 = vld [vmem:[#allocation22_spill] sm:$0xff]  ;;  %v8047_v40 = vld [vmem:[#allocation31_spill] sm:$0xff] }
 0x286   :  { %1215 = vmatpush.msrb.mxu0 %v4529_v43  ;;  %1235 = vmatpush.msrb.mxu1 %v4532_v44  ;;  %v8048_v43 = vld [vmem:[#allocation30_spill] sm:$0xff]  ;;  %v8049_v44 = vld [vmem:[#allocation24_spill] sm:$0xff] }
 0x287   :  { %1255 = vmatpush.msrb.mxu2 %v4535_v45  ;;  %1275 = vmatpush.msrb.mxu3 %v4538_v47  ;;  %v8050_v45 = vld [vmem:[#allocation25_spill] sm:$0xff]  ;;  %v8051_v47 = vld [vmem:[#allocation35_spill] sm:$0xff] }
 0x288   :  { %1216 = vmatpush.msrb.mxu0 %v4541_v48  ;;  %1236 = vmatpush.msrb.mxu1 %v4544_v49  ;;  %v8052_v48 = vld [vmem:[#allocation34_spill] sm:$0xff]  ;;  %v8053_v49 = vld [vmem:[#allocation28_spill] sm:$0xff] }
 0x289   :  { %1256 = vmatpush.msrb.mxu2 %v4547_v55  ;;  %1276 = vmatpush.msrb.mxu3 %v4550_v56  ;;  %v8054_v55 = vld [vmem:[#allocation29_spill] sm:$0xff]  ;;  %v8055_v56 = vld [vmem:[#allocation39_spill] sm:$0xff] }
 0x28a   :  { %1123 = vmatmul.f32.vlgmr.msra.gmra.mxu0 %v912_v30  ;;  %1143 = vmatmul.f32.vlgmr.msra.gmra.mxu1 %v912_v30 }
 0x28b   :  { %1163 = vmatmul.f32.vlgmr.msra.gmra.mxu2 %v912_v30  ;;  %1183 = vmatmul.f32.vlgmr.msra.gmra.mxu3 %v912_v30  ;;  %v8097_v30 = vld [vmem:[#allocation74_spill] sm:$0xff] }
 0x28c   :  { %1217 = vmatpush.msrb.mxu0 %v4553_v61  ;;  %1237 = vmatpush.msrb.mxu1 %v4556_v63  ;;  %v8056_v61 = vld [vmem:[#allocation38_spill] sm:$0xff]  ;;  %v8057_v63 = vld [vmem:[#allocation32_spill] sm:$0xff] }
 0x28d   :  { %1257 = vmatpush.msrb.mxu2 %v4559_v59  ;;  %1277 = vmatpush.msrb.mxu3 %v4562_v60  ;;  %v8058_v59 = vld [vmem:[#allocation33_spill] sm:$0xff]  ;;  %v8059_v60 = vld [vmem:[#allocation40_spill] sm:$0xff] }
 0x28e   :  { %1218 = vmatpush.msrb.mxu0 %v4565_v62  ;;  %1238 = vmatpush.msrb.mxu1 %v4568_v42  ;;  %v8060_v62 = vld [vmem:[#allocation41_spill] sm:$0xff]  ;;  %v8061_v42 = vld [vmem:[#allocation36_spill] sm:$0xff] }
 0x28f   :  { %1258 = vmatpush.msrb.mxu2 %v4571_v50  ;;  %1278 = vmatpush.msrb.mxu3 %v4574_v0  ;;  %v8062_v50 = vld [vmem:[#allocation37_spill] sm:$0xff]  ;;  %v8063_v0 = vld [vmem:[#allocation44_spill] sm:$0xff] }
 0x290   :  { %1219 = vmatpush.msrb.mxu0 %v4577_v1  ;;  %1239 = vmatpush.msrb.mxu1 %v4580_v2  ;;  %v8064_v1 = vld [vmem:[#allocation45_spill] sm:$0xff]  ;;  %v8065_v2 = vld [vmem:[#allocation42_spill] sm:$0xff] }
 0x291   :  { %1259 = vmatpush.msrb.mxu2 %v4583_v3  ;;  %1279 = vmatpush.msrb.mxu3 %v4586_v4  ;;  %v8066_v3 = vld [vmem:[#allocation43_spill] sm:$0xff]  ;;  %v8067_v4 = vld [vmem:[#allocation48_spill] sm:$0xff] }
 0x292   :  { %1220 = vmatpush.msrb.mxu0 %v4589_v6  ;;  %1240 = vmatpush.msrb.mxu1 %v4592_v7  ;;  %v8068_v6 = vld [vmem:[#allocation49_spill] sm:$0xff]  ;;  %v8069_v7 = vld [vmem:[#allocation46_spill] sm:$0xff] }
 0x293   :  { %1260 = vmatpush.msrb.mxu2 %v4595_v8  ;;  %1280 = vmatpush.msrb.mxu3 %v4598_v9  ;;  %v8070_v8 = vld [vmem:[#allocation47_spill] sm:$0xff]  ;;  %v8071_v9 = vld [vmem:[#allocation52_spill] sm:$0xff] }
 0x294   :  { %1221 = vmatpush.msrb.mxu0 %v4601_v10  ;;  %1241 = vmatpush.msrb.mxu1 %v8041_v31  ;;  %v8072_v10 = vld [vmem:[#allocation53_spill] sm:$0xff]  ;;  %v8098_v31 = vld [vmem:[#allocation75_spill] sm:$0xff] }
 0x295   :  { %1261 = vmatpush.msrb.mxu2 %v8042_v34  ;;  %1281 = vmatpush.msrb.mxu3 %v8043_v35  ;;  %v8099_v34 = vld [vmem:[#allocation80_spill] sm:$0xff]  ;;  %v8100_v35 = vld [vmem:[#allocation81_spill] sm:$0xff] }
 0x296   :  { %1222 = vmatpush.msrb.mxu0 %v8044_v36  ;;  %1242 = vmatpush.msrb.mxu1 %v8045_v37  ;;  %v8101_v36 = vld [vmem:[#allocation78_spill] sm:$0xff]  ;;  %v8102_v37 = vld [vmem:[#allocation79_spill] sm:$0xff] }
 0x297   :  { %1262 = vmatpush.msrb.mxu2 %v8046_v39  ;;  %1282 = vmatpush.msrb.mxu3 %v8047_v40  ;;  %v8103_v39 = vld [vmem:[#allocation84_spill] sm:$0xff]  ;;  %v8104_v40 = vld [vmem:[#allocation85_spill] sm:$0xff] }
 0x298   :  { %1223 = vmatpush.msrb.mxu0 %v8048_v43  ;;  %1243 = vmatpush.msrb.mxu1 %v8049_v44  ;;  %v8105_v43 = vld [vmem:[#allocation82_spill] sm:$0xff]  ;;  %v8106_v44 = vld [vmem:[#allocation83_spill] sm:$0xff] }
 0x299   :  { %1263 = vmatpush.msrb.mxu2 %v8050_v45  ;;  %1283 = vmatpush.msrb.mxu3 %v8051_v47  ;;  %v8107_v45 = vld [vmem:[#allocation88_spill] sm:$0xff]  ;;  %v8108_v47 = vld [vmem:[#allocation89_spill] sm:$0xff] }
 0x29a   :  { %1224 = vmatpush.msrb.mxu0 %v8052_v48  ;;  %1244 = vmatpush.msrb.mxu1 %v8053_v49  ;;  %v8109_v48 = vld [vmem:[#allocation86_spill] sm:$0xff]  ;;  %v8110_v49 = vld [vmem:[#allocation87_spill] sm:$0xff] }
 0x29b   :  { %1264 = vmatpush.msrb.mxu2 %v8054_v55  ;;  %1284 = vmatpush.msrb.mxu3 %v8055_v56  ;;  %v8111_v55 = vld [vmem:[#allocation92_spill] sm:$0xff]  ;;  %v8112_v56 = vld [vmem:[#allocation93_spill] sm:$0xff] }
 0x29c   :  { %1225 = vmatpush.msrb.mxu0 %v8056_v61  ;;  %1245 = vmatpush.msrb.mxu1 %v8057_v63  ;;  %v8113_v61 = vld [vmem:[#allocation90_spill] sm:$0xff]  ;;  %v8114_v63 = vld [vmem:[#allocation91_spill] sm:$0xff] }
 0x29d   :  { %1265 = vmatpush.msrb.mxu2 %v8058_v59  ;;  %1285 = vmatpush.msrb.mxu3 %v8059_v60  ;;  %v8115_v59 = vld [vmem:[#allocation94_spill] sm:$0xff]  ;;  %v8116_v60 = vld [vmem:[#allocation95_spill] sm:$0xff] }
 0x29e   :  { %1226 = vmatpush.msrb.mxu0 %v8060_v62  ;;  %1246 = vmatpush.msrb.mxu1 %v8061_v42  ;;  %v8117_v62 = vld [vmem:[#allocation96_spill] sm:$0xff]  ;;  %v8118_v42 = vld [vmem:[#allocation97_spill] sm:$0xff] }
 0x29f   :  { %1266 = vmatpush.msrb.mxu2 %v8062_v50  ;;  %1286 = vmatpush.msrb.mxu3 %v8063_v0  ;;  %v8119_v50 = vld [vmem:[#allocation98_spill] sm:$0xff]  ;;  %v8120_v0 = vld [vmem:[#allocation99_spill] sm:$0xff] }
 0x2a0   :  { %1227 = vmatpush.msrb.mxu0 %v8064_v1  ;;  %1247 = vmatpush.msrb.mxu1 %v8065_v2  ;;  %v8121_v1 = vld [vmem:[#allocation100_spill] sm:$0xff]  ;;  %v8122_v2 = vld [vmem:[#allocation101_spill] sm:$0xff] }
 0x2a1   :  { %1267 = vmatpush.msrb.mxu2 %v8066_v3  ;;  %1287 = vmatpush.msrb.mxu3 %v8067_v4  ;;  %v8123_v3 = vld [vmem:[#allocation102_spill] sm:$0xff]  ;;  %v8124_v4 = vld [vmem:[#allocation103_spill] sm:$0xff] }
 0x2a2   :  { %1228 = vmatpush.msrb.mxu0 %v8068_v6  ;;  %1248 = vmatpush.msrb.mxu1 %v8069_v7  ;;  %v8125_v6 = vld [vmem:[#allocation104_spill] sm:$0xff]  ;;  %v8126_v7 = vld [vmem:[#allocation105_spill] sm:$0xff] }
 0x2a3   :  { %1268 = vmatpush.msrb.mxu2 %v8070_v8  ;;  %1288 = vmatpush.msrb.mxu3 %v8071_v9  ;;  %v8127_v8 = vld [vmem:[#allocation106_spill] sm:$0xff]  ;;  %v8128_v9 = vld [vmem:[#allocation107_spill] sm:$0xff] }
 0x2a4   :  { %1229 = vmatmul.f32.vlgmr.msrb.gmra.mxu0 %v5098_v23  ;;  %1249 = vmatmul.f32.vlgmr.msrb.gmra.mxu1 %v5098_v23 }
 0x2a5   :  { %1269 = vmatmul.f32.vlgmr.msrb.gmra.mxu2 %v5098_v23  ;;  %1289 = vmatmul.f32.vlgmr.msrb.gmra.mxu3 %v5098_v23  ;;  %v8092_v23 = vld [vmem:[#allocation73_spill] sm:$0xff] }
 0x2a6   :  { %1323 = vmatpush.msra.mxu0 %v8072_v10  ;;  %1343 = vmatpush.msra.mxu1 %v8073_v58  ;;  %v8129_v10 = vld [vmem:[#allocation108_spill] sm:$0xff]  ;;  %v8130_v58 = vld [vmem:[#allocation109_spill] sm:$0xff] }
 0x2a7   :  { %1363 = vmatpush.msra.mxu2 %v8074_v24  ;;  %1383 = vmatpush.msra.mxu3 %v8075_v32  ;;  %v8131_v24 = vld [vmem:[#allocation110_spill] sm:$0xff]  ;;  %v8132_v32 = vld [vmem:[#allocation111_spill] sm:$0xff] }
 0x2a8   :  { %1324 = vmatpush.msra.mxu0 %v8076_v16  ;;  %1344 = vmatpush.msra.mxu1 %v8077_v19  ;;  %v8133_v16 = vld [vmem:[#allocation112_spill] sm:$0xff]  ;;  %v8134_v19 = vld [vmem:[#allocation113_spill] sm:$0xff] }
 0x2a9   :  { %1364 = vmatpush.msra.mxu2 %v8078_v11  ;;  %1384 = vmatpush.msra.mxu3 %v8079_v12  ;;  %v8135_v11 = vld [vmem:[#allocation114_spill] sm:$0xff]  ;;  %v8136_v12 = vld [vmem:[#allocation115_spill] sm:$0xff] }
 0x2aa   :  { %1325 = vmatpush.msra.mxu0 %v8080_v13  ;;  %1345 = vmatpush.msra.mxu1 %v8081_v14  ;;  %v8137_v13 = vld [vmem:[#allocation116_spill] sm:$0xff]  ;;  %v8138_v14 = vld [vmem:[#allocation117_spill] sm:$0xff] }
 0x2ab   :  { %1365 = vmatpush.msra.mxu2 %v8082_v20  ;;  %1385 = vmatpush.msra.mxu3 %v8083_v51  ;;  %v8139_v20 = vld [vmem:[#allocation118_spill] sm:$0xff]  ;;  %v8140_v51 = vld [vmem:[#allocation119_spill] sm:$0xff] }
 0x2ac   :  { %1326 = vmatpush.msra.mxu0 %v8084_v29  ;;  %1346 = vmatpush.msra.mxu1 %v8085_v41  ;;  %v8141_v29 = vld [vmem:[#allocation120_spill] sm:$0xff]  ;;  %v8142_v41 = vld [vmem:[#allocation121_spill] sm:$0xff] }
 0x2ad   :  { %1366 = vmatpush.msra.mxu2 %v8086_v28  ;;  %1386 = vmatpush.msra.mxu3 %v8087_v26  ;;  %v8143_v28 = vld [vmem:[#allocation122_spill] sm:$0xff]  ;;  %v8144_v26 = vld [vmem:[#allocation123_spill] sm:$0xff] }
 0x2ae   :  { %1327 = vmatpush.msra.mxu0 %v8088_v22  ;;  %1347 = vmatpush.msra.mxu1 %v8089_v18  ;;  %v8145_v22 = vld [vmem:[#allocation124_spill] sm:$0xff]  ;;  %v8146_v18 = vld [vmem:[#allocation125_spill] sm:$0xff] }
 0x2af   :  { %1367 = vmatpush.msra.mxu2 %v8090_v27  ;;  %1387 = vmatpush.msra.mxu3 %v8091_v38  ;;  %v8147_v27 = vld [vmem:[#allocation126_spill] sm:$0xff]  ;;  %v8148_v38 = vld [vmem:[#allocation127_spill] sm:$0xff] }
 0x2b0   :  { %1328 = vmatpush.msra.mxu0 %v8092_v23  ;;  %1348 = vmatpush.msra.mxu1 %v8093_v54  ;;  %v8149_v23 = vld [vmem:[#allocation128_spill] sm:$0xff]  ;;  %v8150_v54 = vld [vmem:[#allocation129_spill] sm:$0xff] }
 0x2b1   :  { %1368 = vmatpush.msra.mxu2 %v8094_v21  ;;  %1388 = vmatpush.msra.mxu3 %v8095_v53  ;;  %v8151_v21 = vld [vmem:[#allocation130_spill] sm:$0xff]  ;;  %v8152_v53 = vld [vmem:[#allocation131_spill] sm:$0xff] }
 0x2b2   :  { %1329 = vmatpush.msra.mxu0 %v8096_v17  ;;  %1349 = vmatpush.msra.mxu1 %v8097_v30  ;;  %v8153_v17 = vld [vmem:[#allocation132_spill] sm:$0xff]  ;;  %v8154_v30 = vld [vmem:[#allocation133_spill] sm:$0xff] }
 0x2b3   :  { %1369 = vmatpush.msra.mxu2 %v8098_v31  ;;  %1389 = vmatpush.msra.mxu3 %v8099_v34  ;;  %v8155_v31 = vld [vmem:[#allocation134_spill] sm:$0xff]  ;;  %v8156_v34 = vld [vmem:[#allocation135_spill] sm:$0xff] }
 0x2b4   :  { %1330 = vmatpush.msra.mxu0 %v8100_v35  ;;  %1350 = vmatpush.msra.mxu1 %v8101_v36  ;;  %v8157_v35 = vld [vmem:[#allocation136_spill] sm:$0xff]  ;;  %v8158_v36 = vld [vmem:[#allocation137_spill] sm:$0xff] }
 0x2b5   :  { %1370 = vmatpush.msra.mxu2 %v8102_v37  ;;  %1390 = vmatpush.msra.mxu3 %v8103_v39  ;;  %v8159_v37 = vld [vmem:[#allocation138_spill] sm:$0xff]  ;;  %v8160_v39 = vld [vmem:[#allocation139_spill] sm:$0xff] }
 0x2b6   :  { %1331 = vmatpush.msra.mxu0 %v8104_v40  ;;  %1351 = vmatpush.msra.mxu1 %v8105_v43  ;;  %v8161_v40 = vld [vmem:[#allocation140_spill] sm:$0xff]  ;;  %v8162_v43 = vld [vmem:[#allocation141_spill] sm:$0xff] }
 0x2b7   :  { %1371 = vmatpush.msra.mxu2 %v8106_v44  ;;  %1391 = vmatpush.msra.mxu3 %v8107_v45  ;;  %v8163_v44 = vld [vmem:[#allocation142_spill] sm:$0xff]  ;;  %v8164_v45 = vld [vmem:[#allocation143_spill] sm:$0xff] }
 0x2b8   :  { %1332 = vmatpush.msra.mxu0 %v8108_v47  ;;  %1352 = vmatpush.msra.mxu1 %v8109_v48  ;;  %v8165_v47 = vld [vmem:[#allocation144_spill] sm:$0xff]  ;;  %v8166_v48 = vld [vmem:[#allocation146_spill] sm:$0xff] }
 0x2b9   :  { %1372 = vmatpush.msra.mxu2 %v8110_v49  ;;  %1392 = vmatpush.msra.mxu3 %v8111_v55  ;;  %v8167_v49 = vld [vmem:[#allocation147_spill] sm:$0xff]  ;;  %v8168_v55 = vld [vmem:[#allocation148_spill] sm:$0xff] }
 0x2ba   :  { %1333 = vmatpush.msra.mxu0 %v8112_v56  ;;  %1353 = vmatpush.msra.mxu1 %v8113_v61  ;;  %v8169_v56 = vld [vmem:[#allocation149_spill] sm:$0xff]  ;;  %v8170_v61 = vld [vmem:[#allocation150_spill] sm:$0xff] }
 0x2bb   :  { %1373 = vmatpush.msra.mxu2 %v8114_v63  ;;  %1393 = vmatpush.msra.mxu3 %v8115_v59  ;;  %v8171_v63 = vld [vmem:[#allocation151_spill] sm:$0xff]  ;;  %v8172_v59 = vld [vmem:[#allocation152_spill] sm:$0xff] }
 0x2bc   :  { %1334 = vmatpush.msra.mxu0 %v8116_v60  ;;  %1354 = vmatpush.msra.mxu1 %v8117_v62  ;;  %v8173_v60 = vld [vmem:[#allocation153_spill] sm:$0xff]  ;;  %v8174_v62 = vld [vmem:[#allocation155_spill] sm:$0xff] }
 0x2bd   :  { %1374 = vmatpush.msra.mxu2 %v8118_v42  ;;  %1394 = vmatpush.msra.mxu3 %v8119_v50  ;;  %v8175_v42 = vld [vmem:[#allocation156_spill] sm:$0xff]  ;;  %v8176_v50 = vld [vmem:[#allocation157_spill] sm:$0xff] }
 0x2be   :  { %1335 = vmatpush.msra.mxu0 %v8120_v0  ;;  %1355 = vmatpush.msra.mxu1 %v8121_v1  ;;  %v8177_v0 = vld [vmem:[#allocation158_spill] sm:$0xff]  ;;  %v8178_v1 = vld [vmem:[#allocation159_spill] sm:$0xff] }
 0x2bf   :  { %1375 = vmatpush.msra.mxu2 %v8122_v2  ;;  %1395 = vmatpush.msra.mxu3 %v8123_v3  ;;  %v8179_v2 = vld [vmem:[#allocation160_spill] sm:$0xff]  ;;  %v8180_v3 = vld [vmem:[#allocation161_spill] sm:$0xff] }
 0x2c0   :  { %1336 = vmatpush.msra.mxu0 %v8124_v4  ;;  %1356 = vmatpush.msra.mxu1 %v8125_v6  ;;  %v8181_v4 = vld [vmem:[#allocation162_spill] sm:$0xff]  ;;  %v8182_v6 = vld [vmem:[#allocation163_spill] sm:$0xff] }
 0x2c1   :  { %1376 = vmatpush.msra.mxu2 %v8126_v7  ;;  %1396 = vmatpush.msra.mxu3 %v8127_v8  ;;  %v8183_v7 = vld [vmem:[#allocation145_spill] sm:$0xff]  ;;  %v8184_v8 = vld [vmem:[#allocation154_spill] sm:$0xff] }
 0x2c2   :  { %1337 = vmatpush.msra.mxu0 %v8128_v9  ;;  %1357 = vmatpush.msra.mxu1 %v8129_v10  ;;  %v8185_v9 = vld [vmem:[#allocation164_spill] sm:$0xff]  ;;  %v8186_v10 = vld [vmem:[#allocation165_spill] sm:$0xff] }
 0x2c3   :  { %1377 = vmatpush.msra.mxu2 %v8130_v58  ;;  %1397 = vmatpush.msra.mxu3 %v8131_v24  ;;  %v8187_v58 = vld [vmem:[#allocation166_spill] sm:$0xff]  ;;  %v8188_v24 = vld [vmem:[#allocation167_spill] sm:$0xff] }
 0x2c4   :  { %1338 = vmatpush.msra.mxu0 %v8132_v32  ;;  %1358 = vmatpush.msra.mxu1 %v8133_v16  ;;  %v8189_v32 = vld [vmem:[#allocation168_spill] sm:$0xff]  ;;  %v8190_v16 = vld [vmem:[#allocation169_spill] sm:$0xff] }
 0x2c5   :  { %1378 = vmatpush.msra.mxu2 %v8134_v19  ;;  %1398 = vmatpush.msra.mxu3 %v8135_v11  ;;  %v8191_v19 = vld [vmem:[#allocation170_spill] sm:$0xff]  ;;  %v8192_v11 = vld [vmem:[#allocation171_spill] sm:$0xff] }
 0x2c6   :  { %1403 = vmatpush.msrb.mxu0 %v8136_v12  ;;  %1423 = vmatpush.msrb.mxu1 %v8137_v13  ;;  %v8193_v12 = vld [vmem:[#allocation172_spill] sm:$0xff]  ;;  %v8194_v13 = vld [vmem:[#allocation173_spill] sm:$0xff] }
 0x2c7   :  { %1443 = vmatpush.msrb.mxu2 %v8138_v14  ;;  %1463 = vmatpush.msrb.mxu3 %v8139_v20  ;;  %v5296_v14 = vld [vmem:[#allocation10 + $0x38] sm:$0xff]  ;;  %v5299_v20 = vld [vmem:[#allocation10] sm:$0xff] }
 0x2c8   :  { %1404 = vmatpush.msrb.mxu0 %v8140_v51  ;;  %1424 = vmatpush.msrb.mxu1 %v8141_v29  ;;  %v5302_v51 = vld [vmem:[#allocation10 + $0x8] sm:$0xff]  ;;  %v5305_v29 = vld [vmem:[#allocation10 + $0x10] sm:$0xff] }
 0x2c9   :  { %1444 = vmatpush.msrb.mxu2 %v8142_v41  ;;  %1464 = vmatpush.msrb.mxu3 %v8143_v28  ;;  %v5308_v41 = vld [vmem:[#allocation10 + $0x18] sm:$0xff] }
 0x2ca   :  { %1405 = vmatpush.msrb.mxu0 %v8144_v26  ;;  %1425 = vmatpush.msrb.mxu1 %v8145_v22 }
 0x2cb   :  { %1445 = vmatpush.msrb.mxu2 %v8146_v18  ;;  %1465 = vmatpush.msrb.mxu3 %v8147_v27 }
 0x2cc   :  { %1406 = vmatpush.msrb.mxu0 %v8148_v38  ;;  %1426 = vmatpush.msrb.mxu1 %v8149_v23 }
 0x2cd   :  { %1446 = vmatpush.msrb.mxu2 %v8150_v54  ;;  %1466 = vmatpush.msrb.mxu3 %v8151_v21  ;;  %v1210_v21 = vstv %s2712_s10 }
 0x2ce   :  { %1407 = vmatpush.msrb.mxu0 %v8152_v53  ;;  %1427 = vmatpush.msrb.mxu1 %v8153_v17  ;;  %v8195_v17 = vld [vmem:[#allocation23_spill] sm:$0xff] }
 0x2cf   :  { %1447 = vmatpush.msrb.mxu2 %v8154_v30  ;;  %1467 = vmatpush.msrb.mxu3 %v8155_v31  ;;  %v1211_v31 = vmul.f32 %v5079_v52, %v1210_v21  ;;  %v5349_v21 = vld [vmem:[#allocation6 + $0x1c8] sm:$0xff] }
 0x2d0   :  { %1408 = vmatpush.msrb.mxu0 %v8156_v34  ;;  %1428 = vmatpush.msrb.mxu1 %v8157_v35 }
 0x2d1   :  { %1448 = vmatpush.msrb.mxu2 %v8158_v36  ;;  %1468 = vmatpush.msrb.mxu3 %v8159_v37 }
 0x2d2   :  { %1409 = vmatpush.msrb.mxu0 %v8160_v39  ;;  %1429 = vmatpush.msrb.mxu1 %v8161_v40 }
 0x2d3   :  { %1449 = vmatpush.msrb.mxu2 %v8162_v43  ;;  %1469 = vmatpush.msrb.mxu3 %v8163_v44  ;;  %v1212_v44 = vadd.f32 %v5083_v15, %v1211_v31  ;;  %v5355_v31 = vld [vmem:[#allocation6 + $0x1d8] sm:$0xff] }
 0x2d4   :  { %1410 = vmatpush.msrb.mxu0 %v8164_v45  ;;  %1430 = vmatpush.msrb.mxu1 %v8165_v47 }
 0x2d5   :  { %1450 = vmatpush.msrb.mxu2 %v8166_v48  ;;  %1470 = vmatpush.msrb.mxu3 %v8167_v49 }
 0x2d6   :  { %1411 = vmatpush.msrb.mxu0 %v8168_v55  ;;  %1431 = vmatpush.msrb.mxu1 %v8169_v56 }
 0x2d7   :  { %1451 = vmatpush.msrb.mxu2 %v8170_v61  ;;  %1471 = vmatpush.msrb.mxu3 %v8171_v63 }
 0x2d8   :  { %1412 = vmatpush.msrb.mxu0 %v8172_v59  ;;  %1432 = vmatpush.msrb.mxu1 %v8173_v60 }
 0x2d9   :  { %1452 = vmatpush.msrb.mxu2 %v8174_v62  ;;  %1472 = vmatpush.msrb.mxu3 %v8175_v42 }
 0x2da   :  { %1413 = vmatpush.msrb.mxu0 %v8176_v50  ;;  %1433 = vmatpush.msrb.mxu1 %v8177_v0 }
 0x2db   :  { %1453 = vmatpush.msrb.mxu2 %v8178_v1  ;;  %1473 = vmatpush.msrb.mxu3 %v8179_v2 }
 0x2dc   :  { %1414 = vmatpush.msrb.mxu0 %v8180_v3  ;;  %1434 = vmatpush.msrb.mxu1 %v8181_v4 }
 0x2dd   :  { %1454 = vmatpush.msrb.mxu2 %v8182_v6  ;;  %1474 = vmatpush.msrb.mxu3 %v8183_v7 }
 0x2de   :  { %1415 = vmatpush.msrb.mxu0 %v8184_v8  ;;  %1435 = vmatpush.msrb.mxu1 %v8185_v9 }
 0x2df   :  { %1455 = vmatpush.msrb.mxu2 %v8186_v10  ;;  %1475 = vmatpush.msrb.mxu3 %v8187_v58 }
 0x2e0   :  { %1416 = vmatpush.msrb.mxu0 %v8188_v24  ;;  %1436 = vmatpush.msrb.mxu1 %v8189_v32 }
 0x2e1   :  { %1456 = vmatpush.msrb.mxu2 %v8190_v16  ;;  %1476 = vmatpush.msrb.mxu3 %v8191_v19 }
 0x2e2   :  { %1417 = vmatpush.msrb.mxu0 %v8192_v11  ;;  %1437 = vmatpush.msrb.mxu1 %v8193_v12 }
 0x2e3   :  { %1457 = vmatpush.msrb.mxu2 %v8194_v13  ;;  %1477 = vmatpush.msrb.mxu3 %v5296_v14 }
 0x2e4   :  { %1418 = vmatpush.msrb.mxu0 %v5299_v20  ;;  %1438 = vmatpush.msrb.mxu1 %v5302_v51 }
 0x2e5   :  { %1458 = vmatpush.msrb.mxu2 %v5305_v29  ;;  %1478 = vmatpush.msrb.mxu3 %v5308_v41 }
 0x2fd   :  { %v1064_v28 = vpop.f32.mrf.mxu1  ;;  %v1044_v18 = vpop.f32.mrf.mxu0 }
 0x2fe   :  { %v1045_v30 = vadd.f32 %v1044_v18, %v8195_v17  ;;  %v1065_v34 = vadd.f32 %v1064_v28, %v4477_v33 }
 0x304   :  { %v1084_v26 = vpop.f32.mrf.mxu2  ;;  %v1104_v22 = vpop.f32.mrf.mxu3 }
 0x305   :  { %v1105_v59 = vadd.f32 %v1104_v22, %v4486_v57  ;;  %v1085_v1 = vadd.f32 %v1084_v26, %v4489_v5 }
 0x307   :  { %v1144_v27 = vpop.f32.mrf.mxu1  ;;  %v1124_v54 = vpop.f32.mrf.mxu0 }
 0x308   :  { %v1187_v35 = vadd.f32 %v1124_v54, %v1045_v30  ;;  %v1188_v37 = vadd.f32 %v1144_v27, %v1065_v34  ;;  %v5337_v27 = vld [vmem:[#allocation6 + $0x1e8] sm:$0xff]  ;;  %v5346_v54 = vld [vmem:[#allocation6 + $0x1c0] sm:$0xff]  ;;  %v5352_v30 = vld [vmem:[#allocation6 + $0x1d0] sm:$0xff] }
 0x30a   :  { %v1191_v48 = vmul.f32 0.5, %v1187_v35  ;;  %v1192_v56 = vmul.f32 0.5, %v1188_v37  ;;  %v5358_v35 = vld [vmem:[#allocation6 + $0x1a0] sm:$0xff]  ;;  %v5364_v37 = vld [vmem:[#allocation6 + $0x1b0] sm:$0xff] }
 0x30c   :  { %2765 = vtanh.f32 %v1191_v48  ;;  %v5382_v48 = vld [vmem:[#allocation6 + $0x160] sm:$0xff] }
 0x30d   :  { %2767 = vtanh.f32 %v1192_v56  ;;  %v5391_v56 = vld [vmem:[#allocation6 + $0x178] sm:$0xff] }
 0x30e   :  { %v1164_v38 = vpop.f32.mrf.mxu2  ;;  %v1184_v23 = vpop.f32.mrf.mxu3 }
 0x30f   :  { %v1190_v15 = vadd.f32 %v1184_v23, %v1105_v59  ;;  %v1189_v6 = vadd.f32 %v1164_v38, %v1085_v1  ;;  %v5340_v38 = vld [vmem:[#allocation6 + $0x1f0] sm:$0xff]  ;;  %v5343_v23 = vld [vmem:[#allocation6 + $0x1f8] sm:$0xff] }
 0x310   :  { %v5403_v59 = vld [vmem:[#allocation6 + $0x158] sm:$0xff]  ;;  %v5424_v1 = vld [vmem:[#allocation6 + $0x110] sm:$0xff] }
 0x311   :  { %v1193_v16 = vmul.f32 0.5, %v1189_v6  ;;  %v5436_v6 = vld [vmem:[#allocation6 + $0xf0] sm:$0xff] }
 0x312   :  { %v2766_v62 = vpop.eup %2765  ;;  %8197 = vst [vmem:[#allocation20_spill] sm:$0xff] %v5436_v6 }
 0x313   :  { %v2768_v42 = vpop.eup %2767  ;;  %v1197_v2 = vmul.f32 0.5, %v2766_v62  ;;  %v5409_v62 = vld [vmem:[#allocation6 + $0x128] sm:$0xff] }
 0x314   :  { %v1198_v3 = vmul.f32 0.5, %v2768_v42  ;;  %v5415_v42 = vld [vmem:[#allocation6 + $0x138] sm:$0xff] }
 0x315   :  { %v1200_v9 = vadd.f32 0.5, %v1197_v2  ;;  %v5427_v2 = vld [vmem:[#allocation6 + $0x118] sm:$0xff] }
 0x316   :  { %v1201_v10 = vadd.f32 0.5, %v1198_v3  ;;  %v5430_v3 = vld [vmem:[#allocation6 + $0xe0] sm:$0xff] }
 0x318   :  { %v1204_v11 = vmul.f32 %v1201_v10, %v5096_v46  ;;  %v5334_v46 = vld [vmem:[#allocation6 + $0x1e0] sm:$0xff]  ;;  %v5448_v10 = vld [vmem:[#allocation6 + $0xd0] sm:$0xff] }
 0x319   :  { %8201 = vst [vmem:[#allocation22_spill] sm:$0xff] %v5448_v10 }
 0x321   :  { %v1250_v53 = vpop.f32.mrf.mxu1  ;;  %v1230_v47 = vpop.f32.mrf.mxu0 }
 0x322   :  { %v1297_v36 = vrot.slane %v1250_v53, 7 }
 0x324   :  { %v1300_v49 = vsel %vm400_vm0, %v1230_v47, %v1297_v36  ;;  %v5361_v36 = vld [vmem:[#allocation6 + $0x1a8] sm:$0xff]  ;;  %v5379_v47 = vld [vmem:[#allocation6 + $0x198] sm:$0xff] }
 0x328   :  { %v1270_v39 = vpop.f32.mrf.mxu2  ;;  %v1290_v40 = vpop.f32.mrf.mxu3 }
 0x329   :  { %v1298_v43 = vrot.slane %v1270_v39, 6  ;;  %v1299_v45 = vrot.slane %v1290_v40, 5  ;;  %v5367_v39 = vld [vmem:[#allocation6 + $0x1b8] sm:$0xff]  ;;  %v5370_v40 = vld [vmem:[#allocation6 + $0x180] sm:$0xff] }
 0x32b   :  { %v1301_v55 = vsel %vm402_vm1, %v1298_v43, %v1299_v45  ;;  %v5373_v43 = vld [vmem:[#allocation6 + $0x188] sm:$0xff]  ;;  %v5376_v45 = vld [vmem:[#allocation6 + $0x190] sm:$0xff] }
 0x32c   :  { %v1302_v52 = vsel %vm404_vm2, %v1300_v49, %v1301_v55  ;;  %v5385_v49 = vld [vmem:[#allocation6 + $0x168] sm:$0xff]  ;;  %v5388_v55 = vld [vmem:[#allocation6 + $0x170] sm:$0xff] }
 0x32d   :  { %v1304_v61 = vadd.f32 %v1302_v52, %v1212_v44  ;;  %v5394_v52 = vld [vmem:[#allocation6 + $0x140] sm:$0xff] }
 0x32f   :  { %v1305_v63 = vmul.f32 0.5, %v1304_v61  ;;  %v1310_v60 = vrot.slane %v1304_v61, 3  ;;  %v5397_v61 = vld [vmem:[#allocation6 + $0x148] sm:$0xff] }
 0x331   :  { %2769 = vtanh.f32 %v1305_v63  ;;  %v5400_v63 = vld [vmem:[#allocation6 + $0x150] sm:$0xff] }
 0x332   :  { %2771 = vtanh.f32 %v1310_v60  ;;  %v5406_v60 = vld [vmem:[#allocation6 + $0x120] sm:$0xff] }
 0x333   :  { %2773 = vtanh.f32 %v1190_v15  ;;  %v5412_v15 = vld [vmem:[#allocation6 + $0x130] sm:$0xff] }
 0x337   :  { %v2770_v50 = vpop.eup %2769 }
 0x338   :  { %v1307_v0 = vmul.f32 0.5, %v2770_v50  ;;  %v2772_v8 = vpop.eup %2771  ;;  %v5418_v50 = vld [vmem:[#allocation6 + $0x100] sm:$0xff] }
 0x339   :  { %v2774_v32 = vpop.eup %2773 }
 0x33a   :  { %v1308_v4 = vadd.f32 0.5, %v1307_v0  ;;  %v1205_v12 = vmul.f32 %v2774_v32, %v1200_v9  ;;  %v5421_v0 = vld [vmem:[#allocation6 + $0x108] sm:$0xff] }
 0x33b   :  { %v5445_v9 = vld [vmem:[#allocation6 + $0xc8] sm:$0xff] }
 0x33c   :  { %v1314_v7 = vrot.slane %v1308_v4, 1  ;;  %v1317_v24 = vmul.f32 %v2772_v8, %v1308_v4  ;;  %v5325_v13 = vadd.f32 %v1205_v12, %v1204_v11  ;;  %v1320_v28 = vrot.slane %v1308_v4, 2  ;;  %v5433_v4 = vld [vmem:[#allocation6 + $0xe8] sm:$0xff]  ;;  %v5442_v8 = vld [vmem:[#allocation6 + $0xc0] sm:$0xff]  ;;  %8200 = vst [vmem:[#allocation21_spill] sm:$0xff] %v5445_v9  ;;  %v5463_v11 = vld [vmem:[#allocation6 + $0xb8] sm:$0xff] }
 0x33d   :  { %8196 = vst [vmem:[#allocation19_spill] sm:$0xff] %v5433_v4  ;;  %v5457_v32 = vld [vmem:[#allocation6 + $0xa8] sm:$0xff]  ;;  %v5466_v12 = vld [vmem:[#allocation6 + $0x80] sm:$0xff] }
 0x33e   :  { %v1316_v58 = vmul.f32 %v1314_v7, %v5092_v25  ;;  %v5439_v7 = vld [vmem:[#allocation6 + $0xf8] sm:$0xff]  ;;  %8199 = vst [vmem:[#allocation26_spill] sm:$0xff] %v5442_v8 }
 0x33f   :  { %8198 = vst [vmem:[#allocation27_spill] sm:$0xff] %v5439_v7 }
 0x340   :  { %v5321_v19 = vadd.f32 %v1317_v24, %v1316_v58  ;;  %v5451_v58 = vld [vmem:[#allocation6 + $0xd8] sm:$0xff]  ;;  %v5454_v24 = vld [vmem:[#allocation6 + $0xa0] sm:$0xff]  ;;  %8204 = vst [vmem:[#allocation24_spill] sm:$0xff] %v5457_v32 }
 0x341   :  { %8202 = vst [vmem:[#allocation31_spill] sm:$0xff] %v5451_v58 }
 0x342   :  { %2775 = vtanh.f32 %v5321_v19  ;;  %8203 = vst [vmem:[#allocation30_spill] sm:$0xff] %v5454_v24 }
 0x343   :  { %2777 = vtanh.f32 %v1193_v16  ;;  %v5460_v16 = vld [vmem:[#allocation6 + $0xb0] sm:$0xff]  ;;  %8206 = vst [vmem:[#allocation35_spill] sm:$0xff] %v5463_v11 }
 0x344   :  { %2779 = vtanh.f32 %v5325_v13  ;;  %8205 = vst [vmem:[#allocation25_spill] sm:$0xff] %v5460_v16 }
 0x345   :  { %8207 = vst [vmem:[#allocation34_spill] sm:$0xff] %v5466_v12 }
 0x348   :  { %v2776_v26 = vpop.eup %2775 }
 0x349   :  { %v5327_v22 = vmul.f32 %v2776_v26, %v1320_v28  ;;  %v2778_v18 = vpop.eup %2777  ;;  %v5469_v28 = vld [vmem:[#allocation6 + $0x88] sm:$0xff]  ;;  %v5472_v26 = vld [vmem:[#allocation6 + $0x90] sm:$0xff] }
 0x34a   :  { %v1199_v25 = vmul.f32 0.5, %v2778_v18  ;;  %v2780_v53 = vpop.eup %2779  ;;  %8208 = vst [vmem:[#allocation28_spill] sm:$0xff] %v5469_v28  ;;  %v5475_v18 = vld [vmem:[#allocation6 + $0x98] sm:$0xff] }
 0x34b   :  { %1339 = vmatmul.f32.vlgmr.msra.gmra.mxu0 %v5327_v22  ;;  %1359 = vmatmul.f32.vlgmr.msra.gmra.mxu1 %v5327_v22  ;;  %8209 = vst [vmem:[#allocation29_spill] sm:$0xff] %v5472_v26 }
 0x34c   :  { %1379 = vmatmul.f32.vlgmr.msra.gmra.mxu2 %v5327_v22  ;;  %1399 = vmatmul.f32.vlgmr.msra.gmra.mxu3 %v5327_v22  ;;  %v1202_v34 = vadd.f32 0.5, %v1199_v25  ;;  %8210 = vst [vmem:[#allocation39_spill] sm:$0xff] %v5475_v18  ;;  %v5478_v25 = vld [vmem:[#allocation6 + $0x60] sm:$0xff] }
 0x34d   :  { %1509 = vmatpush.msra.mxu0 %v5334_v46  ;;  %1529 = vmatpush.msra.mxu1 %v5337_v27  ;;  %8211 = vst [vmem:[#allocation38_spill] sm:$0xff] %v5478_v25 }
 0x34e   :  { %1549 = vmatpush.msra.mxu2 %v5340_v38  ;;  %1569 = vmatpush.msra.mxu3 %v5343_v23  ;;  %v1208_v44 = vmul.f32 %v2780_v53, %v1202_v34  ;;  %v5481_v53 = vld [vmem:[#allocation6 + $0x68] sm:$0xff]  ;;  %v5484_v34 = vld [vmem:[#allocation6 + $0x70] sm:$0xff] }
 0x34f   :  { %1510 = vmatpush.msra.mxu0 %v5346_v54  ;;  %1530 = vmatpush.msra.mxu1 %v5349_v21  ;;  %8212 = vst [vmem:[#allocation32_spill] sm:$0xff] %v5481_v53 }
 0x350   :  { %1550 = vmatpush.msra.mxu2 %v5352_v30  ;;  %1570 = vmatpush.msra.mxu3 %v5355_v31  ;;  %8213 = vst [vmem:[#allocation33_spill] sm:$0xff] %v5484_v34 }
 0x351   :  { %1511 = vmatpush.msra.mxu0 %v5358_v35  ;;  %1531 = vmatpush.msra.mxu1 %v5361_v36 }
 0x352   :  { %1551 = vmatpush.msra.mxu2 %v5364_v37  ;;  %1571 = vmatpush.msra.mxu3 %v5367_v39 }
 0x353   :  { %1512 = vmatpush.msra.mxu0 %v5370_v40  ;;  %1532 = vmatpush.msra.mxu1 %v5373_v43 }
 0x354   :  { %1552 = vmatpush.msra.mxu2 %v5376_v45  ;;  %1572 = vmatpush.msra.mxu3 %v5379_v47 }
 0x355   :  { %1419 = vmatmul.f32.vlgmr.msrb.gmra.mxu0 %v1208_v44  ;;  %1439 = vmatmul.f32.vlgmr.msrb.gmra.mxu1 %v1208_v44 }
 0x356   :  { %1459 = vmatmul.f32.vlgmr.msrb.gmra.mxu2 %v1208_v44  ;;  %1479 = vmatmul.f32.vlgmr.msrb.gmra.mxu3 %v1208_v44  ;;  %v5487_v44 = vld [vmem:[#allocation6 + $0x78] sm:$0xff] }
 0x357   :  { %1513 = vmatpush.msra.mxu0 %v5382_v48  ;;  %1533 = vmatpush.msra.mxu1 %v5385_v49  ;;  %8214 = vst [vmem:[#allocation40_spill] sm:$0xff] %v5487_v44 }
 0x358   :  { %1553 = vmatpush.msra.mxu2 %v5388_v55  ;;  %1573 = vmatpush.msra.mxu3 %v5391_v56 }
 0x359   :  { %1514 = vmatpush.msra.mxu0 %v5394_v52  ;;  %1534 = vmatpush.msra.mxu1 %v5397_v61 }
 0x35a   :  { %1554 = vmatpush.msra.mxu2 %v5400_v63  ;;  %1574 = vmatpush.msra.mxu3 %v5403_v59 }
 0x35b   :  { %1515 = vmatpush.msra.mxu0 %v5406_v60  ;;  %1535 = vmatpush.msra.mxu1 %v5409_v62 }
 0x35c   :  { %1555 = vmatpush.msra.mxu2 %v5412_v15  ;;  %1575 = vmatpush.msra.mxu3 %v5415_v42 }
 0x35d   :  { %1516 = vmatpush.msra.mxu0 %v5418_v50  ;;  %1536 = vmatpush.msra.mxu1 %v5421_v0 }
 0x35e   :  { %1556 = vmatpush.msra.mxu2 %v5424_v1  ;;  %1576 = vmatpush.msra.mxu3 %v5427_v2 }
 0x35f   :  { %1517 = vmatpush.msra.mxu0 %v5430_v3  ;;  %1537 = vmatpush.msra.mxu1 %v5433_v4 }
 0x360   :  { %1557 = vmatpush.msra.mxu2 %v5436_v6  ;;  %1577 = vmatpush.msra.mxu3 %v5439_v7 }
 0x361   :  { %1518 = vmatpush.msra.mxu0 %v5442_v8  ;;  %1538 = vmatpush.msra.mxu1 %v5445_v9  ;;  %v5912_v9 = vld [vmem:[#allocation7] sm:$0xf] }
 0x362   :  { %1558 = vmatpush.msra.mxu2 %v5448_v10  ;;  %1578 = vmatpush.msra.mxu3 %v5451_v58 }
 0x363   :  { %1519 = vmatpush.msra.mxu0 %v5454_v24  ;;  %1539 = vmatpush.msra.mxu1 %v5457_v32 }
 0x364   :  { %1559 = vmatpush.msra.mxu2 %v5460_v16  ;;  %1579 = vmatpush.msra.mxu3 %v5463_v11 }
 0x365   :  { %1520 = vmatpush.msra.mxu0 %v5466_v12  ;;  %1540 = vmatpush.msra.mxu1 %v5469_v28 }
 0x366   :  { %1560 = vmatpush.msra.mxu2 %v5472_v26  ;;  %1580 = vmatpush.msra.mxu3 %v5475_v18  ;;  %v5490_v26 = vld [vmem:[#allocation6 + $0x40] sm:$0xff]  ;;  %v5493_v18 = vld [vmem:[#allocation6 + $0x48] sm:$0xff] }
 0x367   :  { %1521 = vmatpush.msra.mxu0 %v5478_v25  ;;  %1541 = vmatpush.msra.mxu1 %v5481_v53  ;;  %8215 = vst [vmem:[#allocation41_spill] sm:$0xff] %v5490_v26  ;;  %v5496_v25 = vld [vmem:[#allocation6 + $0x50] sm:$0xff]  ;;  %v5499_v53 = vld [vmem:[#allocation6 + $0x58] sm:$0xff] }
 0x368   :  { %1561 = vmatpush.msra.mxu2 %v5484_v34  ;;  %1581 = vmatpush.msra.mxu3 %v5487_v44  ;;  %8216 = vst [vmem:[#allocation36_spill] sm:$0xff] %v5493_v18  ;;  %v5502_v34 = vld [vmem:[#allocation6 + $0x20] sm:$0xff]  ;;  %v5505_v44 = vld [vmem:[#allocation6 + $0x28] sm:$0xff] }
 0x369   :  { %1522 = vmatpush.msra.mxu0 %v5490_v26  ;;  %1542 = vmatpush.msra.mxu1 %v5493_v18  ;;  %8217 = vst [vmem:[#allocation37_spill] sm:$0xff] %v5496_v25  ;;  %v5508_v26 = vld [vmem:[#allocation6 + $0x30] sm:$0xff]  ;;  %v5511_v18 = vld [vmem:[#allocation6 + $0x38] sm:$0xff] }
 0x36a   :  { %1562 = vmatpush.msra.mxu2 %v5496_v25  ;;  %8218 = vst [vmem:[#allocation44_spill] sm:$0xff] %v5499_v53  ;;  %1582 = vmatpush.msra.mxu3 %v5499_v53  ;;  %v5514_v25 = vld [vmem:[#allocation6] sm:$0xff]  ;;  %v5517_v53 = vld [vmem:[#allocation6 + $0x8] sm:$0xff] }
 0x36b   :  { %8219 = vst [vmem:[#allocation45_spill] sm:$0xff] %v5502_v34  ;;  %1523 = vmatpush.msra.mxu0 %v5502_v34  ;;  %1543 = vmatpush.msra.mxu1 %v5505_v44  ;;  %v5520_v34 = vld [vmem:[#allocation6 + $0x10] sm:$0xff] }
 0x36c   :  { %8220 = vst [vmem:[#allocation42_spill] sm:$0xff] %v5505_v44  ;;  %1563 = vmatpush.msra.mxu2 %v5508_v26  ;;  %1583 = vmatpush.msra.mxu3 %v5511_v18  ;;  %v5523_v44 = vld [vmem:[#allocation6 + $0x18] sm:$0xff] }
 0x36d   :  { %8221 = vst [vmem:[#allocation43_spill] sm:$0xff] %v5508_v26  ;;  %1524 = vmatpush.msra.mxu0 %v5514_v25  ;;  %1544 = vmatpush.msra.mxu1 %v5517_v53 }
 0x36e   :  { %8222 = vst [vmem:[#allocation48_spill] sm:$0xff] %v5511_v18  ;;  %1564 = vmatpush.msra.mxu2 %v5520_v34  ;;  %1584 = vmatpush.msra.mxu3 %v5523_v44  ;;  %v5542_v18 = vld [vmem:[#allocation9 + $0x1c0] sm:$0xff] }
 0x36f   :  { %8223 = vst [vmem:[#allocation49_spill] sm:$0xff] %v5514_v25  ;;  %1525 = vmatmul.f32.vlgmr.msra.gmra.mxu0 %v5327_v22  ;;  %1545 = vmatmul.f32.vlgmr.msra.gmra.mxu1 %v5327_v22  ;;  %v5530_v25 = vld [vmem:[#allocation9 + $0x1e0] sm:$0xff] }
 0x370   :  { %8224 = vst [vmem:[#allocation46_spill] sm:$0xff] %v5517_v53  ;;  %1565 = vmatmul.f32.vlgmr.msra.gmra.mxu2 %v5327_v22  ;;  %1585 = vmatmul.f32.vlgmr.msra.gmra.mxu3 %v5327_v22  ;;  %v5533_v53 = vld [vmem:[#allocation9 + $0x1e8] sm:$0xff] }
 0x371   :  { %8225 = vst [vmem:[#allocation47_spill] sm:$0xff] %v5520_v34  ;;  %1619 = vmatpush.msrb.mxu0 %v5530_v25  ;;  %1639 = vmatpush.msrb.mxu1 %v5533_v53  ;;  %v5536_v34 = vld [vmem:[#allocation9 + $0x1f0] sm:$0xff]  ;;  %v5545_v22 = vld [vmem:[#allocation9 + $0x1c8] sm:$0xff] }
 0x372   :  { %8226 = vst [vmem:[#allocation52_spill] sm:$0xff] %v5523_v44  ;;  %1659 = vmatpush.msrb.mxu2 %v5536_v34  ;;  %v5539_v44 = vld [vmem:[#allocation9 + $0x1f8] sm:$0xff] }
 0x373   :  { %8227 = vst [vmem:[#allocation53_spill] sm:$0xff] %v5530_v25  ;;  %1679 = vmatpush.msrb.mxu3 %v5539_v44  ;;  %1620 = vmatpush.msrb.mxu0 %v5542_v18  ;;  %v5548_v25 = vld [vmem:[#allocation9 + $0x1d0] sm:$0xff] }
 0x374   :  { %8228 = vst [vmem:[#allocation50_spill] sm:$0xff] %v5533_v53  ;;  %1640 = vmatpush.msrb.mxu1 %v5545_v22  ;;  %1660 = vmatpush.msrb.mxu2 %v5548_v25  ;;  %v5551_v53 = vld [vmem:[#allocation9 + $0x1d8] sm:$0xff] }
 0x375   :  { %8229 = vst [vmem:[#allocation51_spill] sm:$0xff] %v5536_v34  ;;  %1680 = vmatpush.msrb.mxu3 %v5551_v53  ;;  %v5554_v34 = vld [vmem:[#allocation9 + $0x1a0] sm:$0xff] }
 0x376   :  { %8230 = vst [vmem:[#allocation56_spill] sm:$0xff] %v5539_v44  ;;  %1621 = vmatpush.msrb.mxu0 %v5554_v34  ;;  %v5557_v44 = vld [vmem:[#allocation9 + $0x1a8] sm:$0xff] }
 0x377   :  { %8231 = vst [vmem:[#allocation57_spill] sm:$0xff] %v5542_v18  ;;  %1641 = vmatpush.msrb.mxu1 %v5557_v44  ;;  %v5560_v18 = vld [vmem:[#allocation9 + $0x1b0] sm:$0xff] }
 0x378   :  { %8232 = vst [vmem:[#allocation54_spill] sm:$0xff] %v5545_v22  ;;  %1661 = vmatpush.msrb.mxu2 %v5560_v18  ;;  %v5563_v22 = vld [vmem:[#allocation9 + $0x1b8] sm:$0xff] }
 0x379   :  { %8233 = vst [vmem:[#allocation55_spill] sm:$0xff] %v5548_v25  ;;  %1681 = vmatpush.msrb.mxu3 %v5563_v22  ;;  %v5566_v25 = vld [vmem:[#allocation9 + $0x180] sm:$0xff] }
 0x37a   :  { %8234 = vst [vmem:[#allocation60_spill] sm:$0xff] %v5551_v53  ;;  %1622 = vmatpush.msrb.mxu0 %v5566_v25  ;;  %v5569_v53 = vld [vmem:[#allocation9 + $0x188] sm:$0xff] }
 0x37b   :  { %8235 = vst [vmem:[#allocation61_spill] sm:$0xff] %v5554_v34  ;;  %1642 = vmatpush.msrb.mxu1 %v5569_v53  ;;  %v5572_v34 = vld [vmem:[#allocation9 + $0x190] sm:$0xff] }
 0x37c   :  { %8236 = vst [vmem:[#allocation58_spill] sm:$0xff] %v5557_v44  ;;  %1662 = vmatpush.msrb.mxu2 %v5572_v34  ;;  %v5575_v44 = vld [vmem:[#allocation9 + $0x198] sm:$0xff] }
 0x37d   :  { %8237 = vst [vmem:[#allocation59_spill] sm:$0xff] %v5560_v18  ;;  %1682 = vmatpush.msrb.mxu3 %v5575_v44  ;;  %v5578_v18 = vld [vmem:[#allocation9 + $0x160] sm:$0xff] }
 0x37e   :  { %8238 = vst [vmem:[#allocation64_spill] sm:$0xff] %v5563_v22  ;;  %1623 = vmatpush.msrb.mxu0 %v5578_v18  ;;  %v5581_v22 = vld [vmem:[#allocation9 + $0x168] sm:$0xff] }
 0x37f   :  { %8239 = vst [vmem:[#allocation65_spill] sm:$0xff] %v5566_v25  ;;  %1643 = vmatpush.msrb.mxu1 %v5581_v22  ;;  %v5584_v25 = vld [vmem:[#allocation9 + $0x170] sm:$0xff] }
 0x380   :  { %8240 = vst [vmem:[#allocation62_spill] sm:$0xff] %v5569_v53  ;;  %1663 = vmatpush.msrb.mxu2 %v5584_v25  ;;  %v5587_v53 = vld [vmem:[#allocation9 + $0x178] sm:$0xff] }
 0x381   :  { %8241 = vst [vmem:[#allocation63_spill] sm:$0xff] %v5572_v34  ;;  %1683 = vmatpush.msrb.mxu3 %v5587_v53  ;;  %v5590_v34 = vld [vmem:[#allocation9 + $0x140] sm:$0xff] }
 0x382   :  { %8242 = vst [vmem:[#allocation68_spill] sm:$0xff] %v5575_v44  ;;  %1624 = vmatpush.msrb.mxu0 %v5590_v34  ;;  %v5593_v44 = vld [vmem:[#allocation9 + $0x148] sm:$0xff] }
 0x383   :  { %8243 = vst [vmem:[#allocation69_spill] sm:$0xff] %v5578_v18  ;;  %1644 = vmatpush.msrb.mxu1 %v5593_v44  ;;  %v5596_v18 = vld [vmem:[#allocation9 + $0x150] sm:$0xff] }
 0x384   :  { %8244 = vst [vmem:[#allocation66_spill] sm:$0xff] %v5581_v22  ;;  %1664 = vmatpush.msrb.mxu2 %v5596_v18  ;;  %v5599_v22 = vld [vmem:[#allocation9 + $0x158] sm:$0xff] }
 0x385   :  { %8245 = vst [vmem:[#allocation67_spill] sm:$0xff] %v5584_v25  ;;  %1684 = vmatpush.msrb.mxu3 %v5599_v22  ;;  %v5602_v25 = vld [vmem:[#allocation9 + $0x120] sm:$0xff] }
 0x386   :  { %8246 = vst [vmem:[#allocation72_spill] sm:$0xff] %v5587_v53  ;;  %1625 = vmatpush.msrb.mxu0 %v5602_v25  ;;  %v5605_v53 = vld [vmem:[#allocation9 + $0x128] sm:$0xff] }
 0x387   :  { %8247 = vst [vmem:[#allocation73_spill] sm:$0xff] %v5590_v34  ;;  %1645 = vmatpush.msrb.mxu1 %v5605_v53  ;;  %v5608_v34 = vld [vmem:[#allocation9 + $0x130] sm:$0xff] }
 0x388   :  { %8248 = vst [vmem:[#allocation70_spill] sm:$0xff] %v5593_v44  ;;  %1665 = vmatpush.msrb.mxu2 %v5608_v34  ;;  %v5611_v44 = vld [vmem:[#allocation9 + $0x138] sm:$0xff] }
 0x389   :  { %8249 = vst [vmem:[#allocation71_spill] sm:$0xff] %v5596_v18  ;;  %1685 = vmatpush.msrb.mxu3 %v5611_v44  ;;  %v5614_v18 = vld [vmem:[#allocation9 + $0x100] sm:$0xff] }
 0x38a   :  { %8250 = vst [vmem:[#allocation76_spill] sm:$0xff] %v5599_v22  ;;  %1626 = vmatpush.msrb.mxu0 %v5614_v18  ;;  %v5617_v22 = vld [vmem:[#allocation9 + $0x108] sm:$0xff] }
 0x38b   :  { %8251 = vst [vmem:[#allocation77_spill] sm:$0xff] %v5602_v25  ;;  %1646 = vmatpush.msrb.mxu1 %v5617_v22  ;;  %v5620_v25 = vld [vmem:[#allocation9 + $0x110] sm:$0xff] }
 0x38c   :  { %8252 = vst [vmem:[#allocation74_spill] sm:$0xff] %v5605_v53  ;;  %1666 = vmatpush.msrb.mxu2 %v5620_v25  ;;  %v5623_v53 = vld [vmem:[#allocation9 + $0x118] sm:$0xff] }
 0x38d   :  { %8253 = vst [vmem:[#allocation75_spill] sm:$0xff] %v5608_v34  ;;  %1686 = vmatpush.msrb.mxu3 %v5623_v53  ;;  %v5626_v34 = vld [vmem:[#allocation9 + $0xe0] sm:$0xff] }
 0x38e   :  { %8254 = vst [vmem:[#allocation80_spill] sm:$0xff] %v5611_v44  ;;  %1627 = vmatpush.msrb.mxu0 %v5626_v34  ;;  %v5629_v44 = vld [vmem:[#allocation9 + $0xe8] sm:$0xff] }
 0x38f   :  { %8255 = vst [vmem:[#allocation81_spill] sm:$0xff] %v5614_v18  ;;  %1647 = vmatpush.msrb.mxu1 %v5629_v44  ;;  %v5632_v18 = vld [vmem:[#allocation9 + $0xf0] sm:$0xff] }
 0x390   :  { %8256 = vst [vmem:[#allocation78_spill] sm:$0xff] %v5617_v22  ;;  %1667 = vmatpush.msrb.mxu2 %v5632_v18  ;;  %v5635_v22 = vld [vmem:[#allocation9 + $0xf8] sm:$0xff] }
 0x391   :  { %8257 = vst [vmem:[#allocation79_spill] sm:$0xff] %v5620_v25  ;;  %1687 = vmatpush.msrb.mxu3 %v5635_v22  ;;  %v5638_v25 = vld [vmem:[#allocation9 + $0xc0] sm:$0xff] }
 0x392   :  { %8258 = vst [vmem:[#allocation84_spill] sm:$0xff] %v5623_v53  ;;  %1628 = vmatpush.msrb.mxu0 %v5638_v25  ;;  %v5641_v53 = vld [vmem:[#allocation9 + $0xc8] sm:$0xff] }
 0x393   :  { %8259 = vst [vmem:[#allocation85_spill] sm:$0xff] %v5626_v34  ;;  %1648 = vmatpush.msrb.mxu1 %v5641_v53  ;;  %v5644_v34 = vld [vmem:[#allocation9 + $0xd0] sm:$0xff] }
 0x394   :  { %8260 = vst [vmem:[#allocation82_spill] sm:$0xff] %v5629_v44  ;;  %1668 = vmatpush.msrb.mxu2 %v5644_v34  ;;  %v5647_v44 = vld [vmem:[#allocation9 + $0xd8] sm:$0xff] }
 0x395   :  { %8261 = vst [vmem:[#allocation83_spill] sm:$0xff] %v5632_v18  ;;  %1688 = vmatpush.msrb.mxu3 %v5647_v44  ;;  %v5650_v18 = vld [vmem:[#allocation9 + $0xa0] sm:$0xff] }
 0x396   :  { %8262 = vst [vmem:[#allocation88_spill] sm:$0xff] %v5635_v22  ;;  %1629 = vmatpush.msrb.mxu0 %v5650_v18  ;;  %v5653_v22 = vld [vmem:[#allocation9 + $0xa8] sm:$0xff] }
 0x397   :  { %8263 = vst [vmem:[#allocation89_spill] sm:$0xff] %v5638_v25  ;;  %1649 = vmatpush.msrb.mxu1 %v5653_v22  ;;  %v5656_v25 = vld [vmem:[#allocation9 + $0xb0] sm:$0xff] }
 0x398   :  { %8264 = vst [vmem:[#allocation86_spill] sm:$0xff] %v5641_v53  ;;  %1669 = vmatpush.msrb.mxu2 %v5656_v25  ;;  %v5659_v53 = vld [vmem:[#allocation9 + $0xb8] sm:$0xff] }
 0x399   :  { %8265 = vst [vmem:[#allocation87_spill] sm:$0xff] %v5644_v34  ;;  %1689 = vmatpush.msrb.mxu3 %v5659_v53  ;;  %v5662_v34 = vld [vmem:[#allocation9 + $0x80] sm:$0xff] }
 0x39a   :  { %8266 = vst [vmem:[#allocation92_spill] sm:$0xff] %v5647_v44  ;;  %1630 = vmatpush.msrb.mxu0 %v5662_v34  ;;  %v5665_v44 = vld [vmem:[#allocation9 + $0x88] sm:$0xff] }
 0x39b   :  { %8267 = vst [vmem:[#allocation93_spill] sm:$0xff] %v5650_v18  ;;  %1650 = vmatpush.msrb.mxu1 %v5665_v44  ;;  %v5668_v18 = vld [vmem:[#allocation9 + $0x90] sm:$0xff] }
 0x39c   :  { %8268 = vst [vmem:[#allocation90_spill] sm:$0xff] %v5653_v22  ;;  %1670 = vmatpush.msrb.mxu2 %v5668_v18  ;;  %v5671_v22 = vld [vmem:[#allocation9 + $0x98] sm:$0xff] }
 0x39d   :  { %8269 = vst [vmem:[#allocation91_spill] sm:$0xff] %v5656_v25  ;;  %1690 = vmatpush.msrb.mxu3 %v5671_v22  ;;  %v5674_v25 = vld [vmem:[#allocation9 + $0x60] sm:$0xff] }
 0x39e   :  { %8270 = vst [vmem:[#allocation94_spill] sm:$0xff] %v5659_v53  ;;  %1631 = vmatpush.msrb.mxu0 %v5674_v25  ;;  %v5677_v53 = vld [vmem:[#allocation9 + $0x68] sm:$0xff] }
 0x39f   :  { %8271 = vst [vmem:[#allocation95_spill] sm:$0xff] %v5662_v34  ;;  %1651 = vmatpush.msrb.mxu1 %v5677_v53  ;;  %v5680_v34 = vld [vmem:[#allocation9 + $0x70] sm:$0xff] }
 0x3a0   :  { %8272 = vst [vmem:[#allocation96_spill] sm:$0xff] %v5665_v44  ;;  %1671 = vmatpush.msrb.mxu2 %v5680_v34  ;;  %v5683_v44 = vld [vmem:[#allocation9 + $0x78] sm:$0xff] }
 0x3a1   :  { %8273 = vst [vmem:[#allocation97_spill] sm:$0xff] %v5668_v18  ;;  %1691 = vmatpush.msrb.mxu3 %v5683_v44  ;;  %v5686_v18 = vld [vmem:[#allocation9 + $0x40] sm:$0xff] }
 0x3a2   :  { %8274 = vst [vmem:[#allocation98_spill] sm:$0xff] %v5671_v22  ;;  %1632 = vmatpush.msrb.mxu0 %v5686_v18  ;;  %v5689_v22 = vld [vmem:[#allocation9 + $0x48] sm:$0xff] }
 0x3a3   :  { %8275 = vst [vmem:[#allocation99_spill] sm:$0xff] %v5674_v25  ;;  %1652 = vmatpush.msrb.mxu1 %v5689_v22  ;;  %v5692_v25 = vld [vmem:[#allocation9 + $0x50] sm:$0xff] }
 0x3a4   :  { %8276 = vst [vmem:[#allocation100_spill] sm:$0xff] %v5677_v53  ;;  %1672 = vmatpush.msrb.mxu2 %v5692_v25  ;;  %v5695_v53 = vld [vmem:[#allocation9 + $0x58] sm:$0xff] }
 0x3a5   :  { %8277 = vst [vmem:[#allocation101_spill] sm:$0xff] %v5680_v34  ;;  %1692 = vmatpush.msrb.mxu3 %v5695_v53  ;;  %v5698_v34 = vld [vmem:[#allocation9 + $0x20] sm:$0xff] }
 0x3a6   :  { %8278 = vst [vmem:[#allocation102_spill] sm:$0xff] %v5683_v44  ;;  %1633 = vmatpush.msrb.mxu0 %v5698_v34  ;;  %v5701_v44 = vld [vmem:[#allocation9 + $0x28] sm:$0xff] }
 0x3a7   :  { %8279 = vst [vmem:[#allocation103_spill] sm:$0xff] %v5686_v18  ;;  %1653 = vmatpush.msrb.mxu1 %v5701_v44  ;;  %v5704_v18 = vld [vmem:[#allocation9 + $0x30] sm:$0xff] }
 0x3a8   :  { %8280 = vst [vmem:[#allocation104_spill] sm:$0xff] %v5689_v22  ;;  %1673 = vmatpush.msrb.mxu2 %v5704_v18  ;;  %v5707_v22 = vld [vmem:[#allocation9 + $0x38] sm:$0xff] }
 0x3a9   :  { %8281 = vst [vmem:[#allocation105_spill] sm:$0xff] %v5692_v25  ;;  %1693 = vmatpush.msrb.mxu3 %v5707_v22  ;;  %v5710_v25 = vld [vmem:[#allocation9] sm:$0xff] }
 0x3aa   :  { %8282 = vst [vmem:[#allocation106_spill] sm:$0xff] %v5695_v53  ;;  %1634 = vmatpush.msrb.mxu0 %v5710_v25  ;;  %v5713_v53 = vld [vmem:[#allocation9 + $0x8] sm:$0xff] }
 0x3ab   :  { %8283 = vst [vmem:[#allocation107_spill] sm:$0xff] %v5698_v34  ;;  %1654 = vmatpush.msrb.mxu1 %v5713_v53  ;;  %v5716_v34 = vld [vmem:[#allocation9 + $0x10] sm:$0xff] }
 0x3ac   :  { %8284 = vst [vmem:[#allocation108_spill] sm:$0xff] %v5701_v44  ;;  %1674 = vmatpush.msrb.mxu2 %v5716_v34  ;;  %v5719_v44 = vld [vmem:[#allocation9 + $0x18] sm:$0xff] }
 0x3ad   :  { %8285 = vst [vmem:[#allocation109_spill] sm:$0xff] %v5704_v18  ;;  %1694 = vmatpush.msrb.mxu3 %v5719_v44  ;;  %v5722_v18 = vld [vmem:[#allocation10 + $0x1e0] sm:$0xff] }
 0x3ae   :  { %8286 = vst [vmem:[#allocation110_spill] sm:$0xff] %v5707_v22  ;;  %1699 = vmatpush.msra.mxu0 %v5722_v18  ;;  %v5725_v22 = vld [vmem:[#allocation10 + $0x1e8] sm:$0xff] }
 0x3af   :  { %8287 = vst [vmem:[#allocation111_spill] sm:$0xff] %v5710_v25  ;;  %1719 = vmatpush.msra.mxu1 %v5725_v22  ;;  %v5728_v25 = vld [vmem:[#allocation10 + $0x1f0] sm:$0xff] }
 0x3b0   :  { %8288 = vst [vmem:[#allocation112_spill] sm:$0xff] %v5713_v53  ;;  %1739 = vmatpush.msra.mxu2 %v5728_v25  ;;  %v5731_v53 = vld [vmem:[#allocation10 + $0x1f8] sm:$0xff] }
 0x3b1   :  { %8289 = vst [vmem:[#allocation113_spill] sm:$0xff] %v5716_v34  ;;  %1759 = vmatpush.msra.mxu3 %v5731_v53  ;;  %v5734_v34 = vld [vmem:[#allocation10 + $0x1c0] sm:$0xff] }
 0x3b2   :  { %8290 = vst [vmem:[#allocation114_spill] sm:$0xff] %v5719_v44  ;;  %1700 = vmatpush.msra.mxu0 %v5734_v34  ;;  %v5737_v44 = vld [vmem:[#allocation10 + $0x1c8] sm:$0xff] }
 0x3b3   :  { %8291 = vst [vmem:[#allocation115_spill] sm:$0xff] %v5722_v18  ;;  %1720 = vmatpush.msra.mxu1 %v5737_v44  ;;  %v5740_v18 = vld [vmem:[#allocation10 + $0x1d0] sm:$0xff] }
 0x3b4   :  { %8292 = vst [vmem:[#allocation116_spill] sm:$0xff] %v5725_v22  ;;  %1740 = vmatpush.msra.mxu2 %v5740_v18  ;;  %v5743_v22 = vld [vmem:[#allocation10 + $0x1d8] sm:$0xff] }
 0x3b5   :  { %8293 = vst [vmem:[#allocation117_spill] sm:$0xff] %v5728_v25  ;;  %1760 = vmatpush.msra.mxu3 %v5743_v22  ;;  %v5746_v25 = vld [vmem:[#allocation10 + $0x1a0] sm:$0xff] }
 0x3b6   :  { %8294 = vst [vmem:[#allocation118_spill] sm:$0xff] %v5731_v53  ;;  %1701 = vmatpush.msra.mxu0 %v5746_v25  ;;  %v5749_v53 = vld [vmem:[#allocation10 + $0x1a8] sm:$0xff] }
 0x3b7   :  { %8295 = vst [vmem:[#allocation119_spill] sm:$0xff] %v5734_v34  ;;  %1721 = vmatpush.msra.mxu1 %v5749_v53  ;;  %v5752_v34 = vld [vmem:[#allocation10 + $0x1b0] sm:$0xff] }
 0x3b8   :  { %8296 = vst [vmem:[#allocation120_spill] sm:$0xff] %v5737_v44  ;;  %1741 = vmatpush.msra.mxu2 %v5752_v34  ;;  %v5755_v44 = vld [vmem:[#allocation10 + $0x1b8] sm:$0xff] }
 0x3b9   :  { %8297 = vst [vmem:[#allocation121_spill] sm:$0xff] %v5740_v18  ;;  %1761 = vmatpush.msra.mxu3 %v5755_v44  ;;  %v5758_v18 = vld [vmem:[#allocation10 + $0x180] sm:$0xff] }
 0x3ba   :  { %8298 = vst [vmem:[#allocation122_spill] sm:$0xff] %v5743_v22  ;;  %1702 = vmatpush.msra.mxu0 %v5758_v18  ;;  %v5761_v22 = vld [vmem:[#allocation10 + $0x188] sm:$0xff] }
 0x3bb   :  { %8299 = vst [vmem:[#allocation123_spill] sm:$0xff] %v5746_v25  ;;  %1722 = vmatpush.msra.mxu1 %v5761_v22  ;;  %v5764_v25 = vld [vmem:[#allocation10 + $0x190] sm:$0xff] }
 0x3bc   :  { %8300 = vst [vmem:[#allocation124_spill] sm:$0xff] %v5749_v53  ;;  %1742 = vmatpush.msra.mxu2 %v5764_v25  ;;  %v5767_v53 = vld [vmem:[#allocation10 + $0x198] sm:$0xff] }
 0x3bd   :  { %8301 = vst [vmem:[#allocation125_spill] sm:$0xff] %v5752_v34  ;;  %1762 = vmatpush.msra.mxu3 %v5767_v53  ;;  %v5770_v34 = vld [vmem:[#allocation10 + $0x160] sm:$0xff] }
 0x3be   :  { %8302 = vst [vmem:[#allocation126_spill] sm:$0xff] %v5755_v44  ;;  %1703 = vmatpush.msra.mxu0 %v5770_v34  ;;  %v5773_v44 = vld [vmem:[#allocation10 + $0x168] sm:$0xff] }
 0x3bf   :  { %8303 = vst [vmem:[#allocation127_spill] sm:$0xff] %v5758_v18  ;;  %1723 = vmatpush.msra.mxu1 %v5773_v44  ;;  %v5776_v18 = vld [vmem:[#allocation10 + $0x170] sm:$0xff] }
 0x3c0   :  { %8304 = vst [vmem:[#allocation128_spill] sm:$0xff] %v5761_v22  ;;  %1743 = vmatpush.msra.mxu2 %v5776_v18  ;;  %v5779_v22 = vld [vmem:[#allocation10 + $0x178] sm:$0xff] }
 0x3c1   :  { %8305 = vst [vmem:[#allocation129_spill] sm:$0xff] %v5764_v25  ;;  %1763 = vmatpush.msra.mxu3 %v5779_v22  ;;  %v5782_v25 = vld [vmem:[#allocation10 + $0x140] sm:$0xff] }
 0x3c2   :  { %8306 = vst [vmem:[#allocation130_spill] sm:$0xff] %v5767_v53  ;;  %1704 = vmatpush.msra.mxu0 %v5782_v25  ;;  %v5785_v53 = vld [vmem:[#allocation10 + $0x148] sm:$0xff] }
 0x3c3   :  { %8307 = vst [vmem:[#allocation131_spill] sm:$0xff] %v5770_v34  ;;  %1724 = vmatpush.msra.mxu1 %v5785_v53  ;;  %v5788_v34 = vld [vmem:[#allocation10 + $0x150] sm:$0xff] }
 0x3c4   :  { %8308 = vst [vmem:[#allocation132_spill] sm:$0xff] %v5773_v44  ;;  %1744 = vmatpush.msra.mxu2 %v5788_v34  ;;  %v5791_v44 = vld [vmem:[#allocation10 + $0x158] sm:$0xff] }
 0x3c5   :  { %8309 = vst [vmem:[#allocation133_spill] sm:$0xff] %v5776_v18  ;;  %1764 = vmatpush.msra.mxu3 %v5791_v44  ;;  %v5794_v18 = vld [vmem:[#allocation10 + $0x120] sm:$0xff] }
 0x3c6   :  { %8310 = vst [vmem:[#allocation134_spill] sm:$0xff] %v5779_v22  ;;  %1705 = vmatpush.msra.mxu0 %v5794_v18  ;;  %v5797_v22 = vld [vmem:[#allocation10 + $0x128] sm:$0xff] }
 0x3c7   :  { %8311 = vst [vmem:[#allocation135_spill] sm:$0xff] %v5782_v25  ;;  %1725 = vmatpush.msra.mxu1 %v5797_v22  ;;  %v5800_v25 = vld [vmem:[#allocation10 + $0x130] sm:$0xff] }
 0x3c8   :  { %8312 = vst [vmem:[#allocation136_spill] sm:$0xff] %v5785_v53  ;;  %1745 = vmatpush.msra.mxu2 %v5800_v25  ;;  %v5803_v53 = vld [vmem:[#allocation10 + $0x138] sm:$0xff] }
 0x3c9   :  { %8313 = vst [vmem:[#allocation137_spill] sm:$0xff] %v5788_v34  ;;  %1765 = vmatpush.msra.mxu3 %v5803_v53  ;;  %v5806_v34 = vld [vmem:[#allocation10 + $0x100] sm:$0xff] }
 0x3ca   :  { %8314 = vst [vmem:[#allocation138_spill] sm:$0xff] %v5791_v44  ;;  %1706 = vmatpush.msra.mxu0 %v5806_v34  ;;  %v5809_v44 = vld [vmem:[#allocation10 + $0x108] sm:$0xff] }
 0x3cb   :  { %8315 = vst [vmem:[#allocation139_spill] sm:$0xff] %v5794_v18  ;;  %1726 = vmatpush.msra.mxu1 %v5809_v44  ;;  %v5812_v18 = vld [vmem:[#allocation10 + $0x110] sm:$0xff] }
 0x3cc   :  { %8316 = vst [vmem:[#allocation140_spill] sm:$0xff] %v5797_v22  ;;  %1746 = vmatpush.msra.mxu2 %v5812_v18  ;;  %v5815_v22 = vld [vmem:[#allocation10 + $0x118] sm:$0xff] }
 0x3cd   :  { %8317 = vst [vmem:[#allocation141_spill] sm:$0xff] %v5800_v25  ;;  %1766 = vmatpush.msra.mxu3 %v5815_v22  ;;  %v5818_v25 = vld [vmem:[#allocation10 + $0xe0] sm:$0xff] }
 0x3ce   :  { %8318 = vst [vmem:[#allocation142_spill] sm:$0xff] %v5803_v53  ;;  %1707 = vmatpush.msra.mxu0 %v5818_v25  ;;  %v5821_v53 = vld [vmem:[#allocation10 + $0xe8] sm:$0xff] }
 0x3cf   :  { %8319 = vst [vmem:[#allocation143_spill] sm:$0xff] %v5806_v34  ;;  %1727 = vmatpush.msra.mxu1 %v5821_v53  ;;  %v5824_v34 = vld [vmem:[#allocation10 + $0xf0] sm:$0xff] }
 0x3d0   :  { %8320 = vst [vmem:[#allocation144_spill] sm:$0xff] %v5809_v44  ;;  %1747 = vmatpush.msra.mxu2 %v5824_v34  ;;  %v5827_v44 = vld [vmem:[#allocation10 + $0xf8] sm:$0xff] }
 0x3d1   :  { %8321 = vst [vmem:[#allocation146_spill] sm:$0xff] %v5812_v18  ;;  %1767 = vmatpush.msra.mxu3 %v5827_v44  ;;  %v5830_v18 = vld [vmem:[#allocation10 + $0xc0] sm:$0xff] }
 0x3d2   :  { %8322 = vst [vmem:[#allocation147_spill] sm:$0xff] %v5815_v22  ;;  %1708 = vmatpush.msra.mxu0 %v5830_v18  ;;  %v5833_v22 = vld [vmem:[#allocation10 + $0xc8] sm:$0xff] }
 0x3d3   :  { %8323 = vst [vmem:[#allocation148_spill] sm:$0xff] %v5818_v25  ;;  %1728 = vmatpush.msra.mxu1 %v5833_v22  ;;  %v5836_v25 = vld [vmem:[#allocation10 + $0xd0] sm:$0xff] }
 0x3d4   :  { %8324 = vst [vmem:[#allocation149_spill] sm:$0xff] %v5821_v53  ;;  %1748 = vmatpush.msra.mxu2 %v5836_v25  ;;  %v5839_v53 = vld [vmem:[#allocation10 + $0xd8] sm:$0xff] }
 0x3d5   :  { %8325 = vst [vmem:[#allocation150_spill] sm:$0xff] %v5824_v34  ;;  %1768 = vmatpush.msra.mxu3 %v5839_v53  ;;  %v5842_v34 = vld [vmem:[#allocation10 + $0xa0] sm:$0xff] }
 0x3d6   :  { %8326 = vst [vmem:[#allocation151_spill] sm:$0xff] %v5827_v44  ;;  %1709 = vmatpush.msra.mxu0 %v5842_v34  ;;  %v5845_v44 = vld [vmem:[#allocation10 + $0xa8] sm:$0xff] }
 0x3d7   :  { %8327 = vst [vmem:[#allocation152_spill] sm:$0xff] %v5830_v18  ;;  %1729 = vmatpush.msra.mxu1 %v5845_v44  ;;  %v5848_v18 = vld [vmem:[#allocation10 + $0xb0] sm:$0xff] }
 0x3d8   :  { %8328 = vst [vmem:[#allocation153_spill] sm:$0xff] %v5833_v22  ;;  %1749 = vmatpush.msra.mxu2 %v5848_v18  ;;  %v5851_v22 = vld [vmem:[#allocation10 + $0xb8] sm:$0xff] }
 0x3d9   :  { %8329 = vst [vmem:[#allocation155_spill] sm:$0xff] %v5836_v25  ;;  %1769 = vmatpush.msra.mxu3 %v5851_v22  ;;  %v5854_v25 = vld [vmem:[#allocation10 + $0x80] sm:$0xff] }
 0x3da   :  { %8330 = vst [vmem:[#allocation156_spill] sm:$0xff] %v5839_v53  ;;  %1710 = vmatpush.msra.mxu0 %v5854_v25  ;;  %v5857_v53 = vld [vmem:[#allocation10 + $0x88] sm:$0xff] }
 0x3db   :  { %8331 = vst [vmem:[#allocation157_spill] sm:$0xff] %v5842_v34  ;;  %1730 = vmatpush.msra.mxu1 %v5857_v53  ;;  %v5860_v34 = vld [vmem:[#allocation10 + $0x90] sm:$0xff] }
 0x3dc   :  { %8332 = vst [vmem:[#allocation158_spill] sm:$0xff] %v5845_v44  ;;  %1750 = vmatpush.msra.mxu2 %v5860_v34  ;;  %v5863_v44 = vld [vmem:[#allocation10 + $0x98] sm:$0xff] }
 0x3dd   :  { %8333 = vst [vmem:[#allocation159_spill] sm:$0xff] %v5848_v18  ;;  %1770 = vmatpush.msra.mxu3 %v5863_v44  ;;  %v5866_v18 = vld [vmem:[#allocation10 + $0x60] sm:$0xff] }
 0x3de   :  { %8334 = vst [vmem:[#allocation160_spill] sm:$0xff] %v5851_v22  ;;  %1711 = vmatpush.msra.mxu0 %v5866_v18  ;;  %v5869_v22 = vld [vmem:[#allocation10 + $0x68] sm:$0xff] }
 0x3df   :  { %8335 = vst [vmem:[#allocation161_spill] sm:$0xff] %v5854_v25  ;;  %1731 = vmatpush.msra.mxu1 %v5869_v22  ;;  %v5872_v25 = vld [vmem:[#allocation10 + $0x70] sm:$0xff] }
 0x3e0   :  { %8336 = vst [vmem:[#allocation162_spill] sm:$0xff] %v5857_v53  ;;  %1751 = vmatpush.msra.mxu2 %v5872_v25  ;;  %v5875_v53 = vld [vmem:[#allocation10 + $0x78] sm:$0xff] }
 0x3e1   :  { %8337 = vst [vmem:[#allocation163_spill] sm:$0xff] %v5860_v34  ;;  %1771 = vmatpush.msra.mxu3 %v5875_v53  ;;  %v5878_v34 = vld [vmem:[#allocation10 + $0x40] sm:$0xff] }
 0x3e2   :  { %8338 = vst [vmem:[#allocation145_spill] sm:$0xff] %v5863_v44  ;;  %1712 = vmatpush.msra.mxu0 %v5878_v34  ;;  %v5881_v44 = vld [vmem:[#allocation10 + $0x48] sm:$0xff] }
 0x3e3   :  { %8339 = vst [vmem:[#allocation154_spill] sm:$0xff] %v5866_v18  ;;  %1732 = vmatpush.msra.mxu1 %v5881_v44  ;;  %v5884_v18 = vld [vmem:[#allocation10 + $0x50] sm:$0xff] }
 0x3e4   :  { %8340 = vst [vmem:[#allocation164_spill] sm:$0xff] %v5869_v22  ;;  %1752 = vmatpush.msra.mxu2 %v5884_v18  ;;  %v5887_v22 = vld [vmem:[#allocation10 + $0x58] sm:$0xff] }
 0x3e5   :  { %8341 = vst [vmem:[#allocation165_spill] sm:$0xff] %v5872_v25  ;;  %1772 = vmatpush.msra.mxu3 %v5887_v22  ;;  %v5890_v25 = vld [vmem:[#allocation10 + $0x20] sm:$0xff] }
 0x3e6   :  { %8342 = vst [vmem:[#allocation166_spill] sm:$0xff] %v5875_v53  ;;  %1713 = vmatpush.msra.mxu0 %v5890_v25  ;;  %v5893_v53 = vld [vmem:[#allocation10 + $0x28] sm:$0xff] }
 0x3e7   :  { %8343 = vst [vmem:[#allocation167_spill] sm:$0xff] %v5878_v34  ;;  %1733 = vmatpush.msra.mxu1 %v5893_v53  ;;  %v5896_v34 = vld [vmem:[#allocation10 + $0x30] sm:$0xff]  ;;  %1773 = vmatpush.msra.mxu3 %v5296_v14 }
 0x3e8   :  { %8344 = vst [vmem:[#allocation168_spill] sm:$0xff] %v5881_v44  ;;  %1753 = vmatpush.msra.mxu2 %v5896_v34  ;;  %1714 = vmatpush.msra.mxu0 %v5299_v20  ;;  %v1340_v44 = vpop.f32.mrf.mxu0  ;;  %v5908_v20 = vld [vmem:[%s6973_s1] sm:$0xf] }
 0x3e9   :  { %8345 = vst [vmem:[#allocation169_spill] sm:$0xff] %v5884_v18  ;;  %1734 = vmatpush.msra.mxu1 %v5302_v51  ;;  %1774 = vmatpush.msra.mxu3 %v5308_v41  ;;  %v1400_v18 = vpop.f32.mrf.mxu3  ;;  %v1341_v14 = vadd.f32 %v1340_v44, %v8195_v17 }
 0x3ea   :  { %8346 = vst [vmem:[#allocation170_spill] sm:$0xff] %v5887_v22  ;;  %1754 = vmatpush.msra.mxu2 %v5305_v29  ;;  %v1360_v22 = vpop.f32.mrf.mxu1 }
 0x3eb   :  { %8347 = vst [vmem:[#allocation171_spill] sm:$0xff] %v5890_v25  ;;  %v1380_v25 = vpop.f32.mrf.mxu2  ;;  %v1361_v29 = vadd.f32 %v1360_v22, %v4477_v33 }
 0x3ec   :  { %8348 = vst [vmem:[#allocation172_spill] sm:$0xff] %v5893_v53 }
 0x3ed   :  { %8349 = vst [vmem:[#allocation173_spill] sm:$0xff] %v5896_v34  ;;  %v1506_v34 = vstv %s2713_s11 }
 0x3ee   :  { %v1507_v51 = vmul.f32 %v5908_v20, %v1506_v34 }
 0x3f0   :  { %v1420_v12 = vpop.f32.mrf.mxu0  ;;  %v1508_v8 = vadd.f32 %v5912_v9, %v1507_v51 }
 0x3f1   :  { %v1480_v28 = vpop.f32.mrf.mxu3  ;;  %v1483_v41 = vadd.f32 %v1420_v12, %v1341_v14 }
 0x3f2   :  { %v1440_v53 = vpop.f32.mrf.mxu1 }
 0x3f3   :  { %v1460_v26 = vpop.f32.mrf.mxu2  ;;  %v1484_v32 = vadd.f32 %v1440_v53, %v1361_v29  ;;  %v1487_v7 = vmul.f32 0.5, %v1483_v41 }
 0x3f5   :  { %v1488_v34 = vmul.f32 0.5, %v1484_v32  ;;  %2781 = vtanh.f32 %v1487_v7 }
 0x3f7   :  { %2783 = vtanh.f32 %v1488_v34 }
 0x3f8   :  { %v1526_v17 = vpop.f32.mrf.mxu0 }
 0x3f9   :  { %v1586_v58 = vpop.f32.mrf.mxu3 }
 0x3fa   :  { %v1546_v11 = vpop.f32.mrf.mxu1  ;;  %v1595_v44 = vrot.slane %v1586_v58, 5 }
 0x3fb   :  { %v1593_v16 = vrot.slane %v1546_v11, 7  ;;  %v1566_v24 = vpop.f32.mrf.mxu2  ;;  %v2782_v14 = vpop.eup %2781 }
 0x3fc   :  { %v1594_v10 = vrot.slane %v1566_v24, 6  ;;  %v1401_v24 = vadd.f32 %v1400_v18, %v4486_v57 }
 0x3fd   :  { %v1596_v6 = vsel %vm400_vm0, %v1526_v17, %v1593_v16  ;;  %v2784_v58 = vpop.eup %2783  ;;  %v1381_v17 = vadd.f32 %v1380_v25, %v4489_v5 }
 0x3fe   :  { %v1597_v4 = vsel %vm402_vm1, %v1594_v10, %v1595_v44  ;;  %v1486_v51 = vadd.f32 %v1480_v28, %v1401_v24  ;;  %v1493_v10 = vmul.f32 0.5, %v2782_v14  ;;  %v1494_v32 = vmul.f32 0.5, %v2784_v58 }
 0x3ff   :  { %v1598_v22 = vsel %vm404_vm2, %v1596_v6, %v1597_v4  ;;  %v1485_v6 = vadd.f32 %v1460_v26, %v1381_v17  ;;  %v8384_v17 = vld [vmem:[#allocation56_spill] sm:$0xff] }
 0x400   :  { %v1600_v12 = vadd.f32 %v1598_v22, %v1508_v8  ;;  %v1496_v16 = vadd.f32 0.5, %v1493_v10  ;;  %v1497_v44 = vadd.f32 0.5, %v1494_v32  ;;  %v8385_v10 = vld [vmem:[#allocation57_spill] sm:$0xff]  ;;  %v8386_v32 = vld [vmem:[#allocation54_spill] sm:$0xff] }
 0x401   :  { %v1489_v28 = vmul.f32 0.5, %v1485_v6  ;;  %v8388_v6 = vld [vmem:[#allocation60_spill] sm:$0xff] }
 0x402   :  { %v1601_v11 = vmul.f32 0.5, %v1600_v12  ;;  %v1606_v53 = vrot.slane %v1600_v12, 3 }
 0x404   :  { %2785 = vtanh.f32 %v1601_v11  ;;  %v1500_v11 = vmul.f32 %v1497_v44, %v5325_v13  ;;  %v8392_v44 = vld [vmem:[#allocation64_spill] sm:$0xff] }
 0x405   :  { %2787 = vtanh.f32 %v1606_v53 }
 0x406   :  { %2789 = vtanh.f32 %v1486_v51 }
 0x40a   :  { %v2786_v29 = vpop.eup %2785 }
 0x40b   :  { %v1603_v41 = vmul.f32 0.5, %v2786_v29  ;;  %v2788_v8 = vpop.eup %2787  ;;  %v8382_v29 = vld [vmem:[#allocation50_spill] sm:$0xff] }
 0x40c   :  { %v2790_v22 = vpop.eup %2789 }
 0x40d   :  { %v1604_v4 = vadd.f32 0.5, %v1603_v41  ;;  %v1501_v24 = vmul.f32 %v2790_v22, %v1496_v16  ;;  %v8383_v41 = vld [vmem:[#allocation51_spill] sm:$0xff] }
 0x40e   :  { %v8391_v16 = vld [vmem:[#allocation59_spill] sm:$0xff] }
 0x40f   :  { %v1610_v7 = vrot.slane %v1604_v4, 1  ;;  %v1613_v34 = vmul.f32 %v2788_v8, %v1604_v4  ;;  %v5925_v25 = vadd.f32 %v1501_v24, %v1500_v11  ;;  %v1616_v26 = vrot.slane %v1604_v4, 2  ;;  %v8387_v4 = vld [vmem:[#allocation55_spill] sm:$0xff]  ;;  %v8390_v8 = vld [vmem:[#allocation58_spill] sm:$0xff]  ;;  %v8397_v11 = vld [vmem:[#allocation69_spill] sm:$0xff] }
 0x410   :  { %v8395_v22 = vld [vmem:[#allocation63_spill] sm:$0xff]  ;;  %v8398_v24 = vld [vmem:[#allocation66_spill] sm:$0xff] }
 0x411   :  { %v1612_v18 = vmul.f32 %v1610_v7, %v5321_v19  ;;  %v8389_v7 = vld [vmem:[#allocation61_spill] sm:$0xff] }
 0x413   :  { %v5921_v12 = vadd.f32 %v1613_v34, %v1612_v18  ;;  %v8393_v18 = vld [vmem:[#allocation65_spill] sm:$0xff]  ;;  %v8394_v34 = vld [vmem:[#allocation62_spill] sm:$0xff] }
 0x415   :  { %2791 = vtanh.f32 %v5921_v12 }
 0x416   :  { %2793 = vtanh.f32 %v1489_v28  ;;  %v8396_v28 = vld [vmem:[#allocation68_spill] sm:$0xff] }
 0x417   :  { %2795 = vtanh.f32 %v5925_v25 }
 0x41b   :  { %v2792_v53 = vpop.eup %2791 }
 0x41c   :  { %v5927_v14 = vmul.f32 %v2792_v53, %v1616_v26  ;;  %v2794_v51 = vpop.eup %2793  ;;  %v8399_v26 = vld [vmem:[#allocation67_spill] sm:$0xff]  ;;  %v8400_v53 = vld [vmem:[#allocation72_spill] sm:$0xff] }
 0x41d   :  { %v1495_v19 = vmul.f32 0.5, %v2794_v51  ;;  %v2796_v13 = vpop.eup %2795  ;;  %v8402_v51 = vld [vmem:[#allocation70_spill] sm:$0xff] }
 0x41e   :  { %1635 = vmatmul.f32.vlgmr.msrb.gmra.mxu0 %v5927_v14  ;;  %1655 = vmatmul.f32.vlgmr.msrb.gmra.mxu1 %v5927_v14 }
 0x41f   :  { %1675 = vmatmul.f32.vlgmr.msrb.gmra.mxu2 %v5927_v14  ;;  %1695 = vmatmul.f32.vlgmr.msrb.gmra.mxu3 %v5927_v14  ;;  %v1498_v58 = vadd.f32 0.5, %v1495_v19  ;;  %v8403_v19 = vld [vmem:[#allocation71_spill] sm:$0xff] }
 0x420   :  { %1805 = vmatpush.msrb.mxu0 %v5334_v46  ;;  %1825 = vmatpush.msrb.mxu1 %v5337_v27  ;;  %v8350_v27 = vld [vmem:[#allocation19_spill] sm:$0xff] }
 0x421   :  { %1845 = vmatpush.msrb.mxu2 %v5340_v38  ;;  %1865 = vmatpush.msrb.mxu3 %v5343_v23  ;;  %v1504_v46 = vmul.f32 %v2796_v13, %v1498_v58  ;;  %v8351_v38 = vld [vmem:[#allocation20_spill] sm:$0xff]  ;;  %v8352_v23 = vld [vmem:[#allocation27_spill] sm:$0xff]  ;;  %v8405_v58 = vld [vmem:[#allocation77_spill] sm:$0xff] }
 0x422   :  { %1806 = vmatpush.msrb.mxu0 %v5346_v54  ;;  %1826 = vmatpush.msrb.mxu1 %v5349_v21  ;;  %v8353_v54 = vld [vmem:[#allocation26_spill] sm:$0xff]  ;;  %v8354_v21 = vld [vmem:[#allocation21_spill] sm:$0xff]  ;;  %v8404_v13 = vld [vmem:[#allocation76_spill] sm:$0xff] }
 0x423   :  { %1846 = vmatpush.msrb.mxu2 %v5352_v30  ;;  %1866 = vmatpush.msrb.mxu3 %v5355_v31  ;;  %v8355_v30 = vld [vmem:[#allocation22_spill] sm:$0xff]  ;;  %v8356_v31 = vld [vmem:[#allocation31_spill] sm:$0xff] }
 0x424   :  { %1807 = vmatpush.msrb.mxu0 %v5358_v35  ;;  %1827 = vmatpush.msrb.mxu1 %v5361_v36  ;;  %v8357_v35 = vld [vmem:[#allocation30_spill] sm:$0xff]  ;;  %v8358_v36 = vld [vmem:[#allocation24_spill] sm:$0xff] }
 0x425   :  { %1847 = vmatpush.msrb.mxu2 %v5364_v37  ;;  %1867 = vmatpush.msrb.mxu3 %v5367_v39  ;;  %v8359_v37 = vld [vmem:[#allocation25_spill] sm:$0xff]  ;;  %v8360_v39 = vld [vmem:[#allocation35_spill] sm:$0xff] }
 0x426   :  { %1808 = vmatpush.msrb.mxu0 %v5370_v40  ;;  %1828 = vmatpush.msrb.mxu1 %v5373_v43  ;;  %v8361_v40 = vld [vmem:[#allocation34_spill] sm:$0xff]  ;;  %v8362_v43 = vld [vmem:[#allocation28_spill] sm:$0xff] }
 0x427   :  { %1848 = vmatpush.msrb.mxu2 %v5376_v45  ;;  %1868 = vmatpush.msrb.mxu3 %v5379_v47  ;;  %v8363_v45 = vld [vmem:[#allocation29_spill] sm:$0xff]  ;;  %v8364_v47 = vld [vmem:[#allocation39_spill] sm:$0xff] }
 0x428   :  { %1715 = vmatmul.f32.vlgmr.msra.gmra.mxu0 %v1504_v46  ;;  %1735 = vmatmul.f32.vlgmr.msra.gmra.mxu1 %v1504_v46 }
 0x429   :  { %1755 = vmatmul.f32.vlgmr.msra.gmra.mxu2 %v1504_v46  ;;  %1775 = vmatmul.f32.vlgmr.msra.gmra.mxu3 %v1504_v46  ;;  %v8406_v46 = vld [vmem:[#allocation74_spill] sm:$0xff] }
 0x42a   :  { %1809 = vmatpush.msrb.mxu0 %v5382_v48  ;;  %1829 = vmatpush.msrb.mxu1 %v5385_v49  ;;  %v8365_v48 = vld [vmem:[#allocation38_spill] sm:$0xff]  ;;  %v8366_v49 = vld [vmem:[#allocation32_spill] sm:$0xff] }
 0x42b   :  { %1849 = vmatpush.msrb.mxu2 %v5388_v55  ;;  %1869 = vmatpush.msrb.mxu3 %v5391_v56  ;;  %v8367_v55 = vld [vmem:[#allocation33_spill] sm:$0xff]  ;;  %v8368_v56 = vld [vmem:[#allocation40_spill] sm:$0xff] }
 0x42c   :  { %1810 = vmatpush.msrb.mxu0 %v5394_v52  ;;  %1830 = vmatpush.msrb.mxu1 %v5397_v61  ;;  %v8369_v52 = vld [vmem:[#allocation41_spill] sm:$0xff]  ;;  %v8370_v61 = vld [vmem:[#allocation36_spill] sm:$0xff] }
 0x42d   :  { %1850 = vmatpush.msrb.mxu2 %v5400_v63  ;;  %1870 = vmatpush.msrb.mxu3 %v5403_v59  ;;  %v8371_v63 = vld [vmem:[#allocation37_spill] sm:$0xff]  ;;  %v8372_v59 = vld [vmem:[#allocation44_spill] sm:$0xff] }
 0x42e   :  { %1811 = vmatpush.msrb.mxu0 %v5406_v60  ;;  %1831 = vmatpush.msrb.mxu1 %v5409_v62  ;;  %v8373_v60 = vld [vmem:[#allocation45_spill] sm:$0xff]  ;;  %v8374_v62 = vld [vmem:[#allocation42_spill] sm:$0xff] }
 0x42f   :  { %1851 = vmatpush.msrb.mxu2 %v5412_v15  ;;  %1871 = vmatpush.msrb.mxu3 %v5415_v42  ;;  %v8375_v15 = vld [vmem:[#allocation43_spill] sm:$0xff]  ;;  %v8376_v42 = vld [vmem:[#allocation48_spill] sm:$0xff] }
 0x430   :  { %1812 = vmatpush.msrb.mxu0 %v5418_v50  ;;  %1832 = vmatpush.msrb.mxu1 %v5421_v0  ;;  %v8377_v50 = vld [vmem:[#allocation49_spill] sm:$0xff]  ;;  %v8378_v0 = vld [vmem:[#allocation46_spill] sm:$0xff] }
 0x431   :  { %1852 = vmatpush.msrb.mxu2 %v5424_v1  ;;  %1872 = vmatpush.msrb.mxu3 %v5427_v2  ;;  %v8379_v1 = vld [vmem:[#allocation47_spill] sm:$0xff]  ;;  %v8380_v2 = vld [vmem:[#allocation52_spill] sm:$0xff] }
 0x432   :  { %1813 = vmatpush.msrb.mxu0 %v5430_v3  ;;  %1833 = vmatpush.msrb.mxu1 %v8350_v27  ;;  %v8381_v3 = vld [vmem:[#allocation53_spill] sm:$0xff]  ;;  %v8407_v27 = vld [vmem:[#allocation75_spill] sm:$0xff] }
 0x433   :  { %1853 = vmatpush.msrb.mxu2 %v8351_v38  ;;  %1873 = vmatpush.msrb.mxu3 %v8352_v23  ;;  %v8408_v38 = vld [vmem:[#allocation80_spill] sm:$0xff]  ;;  %v8409_v23 = vld [vmem:[#allocation81_spill] sm:$0xff] }
 0x434   :  { %1814 = vmatpush.msrb.mxu0 %v8353_v54  ;;  %1834 = vmatpush.msrb.mxu1 %v8354_v21  ;;  %v8410_v54 = vld [vmem:[#allocation78_spill] sm:$0xff]  ;;  %v8411_v21 = vld [vmem:[#allocation79_spill] sm:$0xff] }
 0x435   :  { %1854 = vmatpush.msrb.mxu2 %v8355_v30  ;;  %1874 = vmatpush.msrb.mxu3 %v8356_v31  ;;  %v8412_v30 = vld [vmem:[#allocation84_spill] sm:$0xff]  ;;  %v8413_v31 = vld [vmem:[#allocation85_spill] sm:$0xff] }
 0x436   :  { %1815 = vmatpush.msrb.mxu0 %v8357_v35  ;;  %1835 = vmatpush.msrb.mxu1 %v8358_v36  ;;  %v8414_v35 = vld [vmem:[#allocation82_spill] sm:$0xff]  ;;  %v8415_v36 = vld [vmem:[#allocation83_spill] sm:$0xff] }
 0x437   :  { %1855 = vmatpush.msrb.mxu2 %v8359_v37  ;;  %1875 = vmatpush.msrb.mxu3 %v8360_v39  ;;  %v8416_v37 = vld [vmem:[#allocation88_spill] sm:$0xff]  ;;  %v8417_v39 = vld [vmem:[#allocation89_spill] sm:$0xff] }
 0x438   :  { %1816 = vmatpush.msrb.mxu0 %v8361_v40  ;;  %1836 = vmatpush.msrb.mxu1 %v8362_v43  ;;  %v8418_v40 = vld [vmem:[#allocation86_spill] sm:$0xff]  ;;  %v8419_v43 = vld [vmem:[#allocation87_spill] sm:$0xff] }
 0x439   :  { %1856 = vmatpush.msrb.mxu2 %v8363_v45  ;;  %1876 = vmatpush.msrb.mxu3 %v8364_v47  ;;  %v8420_v45 = vld [vmem:[#allocation92_spill] sm:$0xff]  ;;  %v8421_v47 = vld [vmem:[#allocation93_spill] sm:$0xff] }
 0x43a   :  { %1817 = vmatpush.msrb.mxu0 %v8365_v48  ;;  %1837 = vmatpush.msrb.mxu1 %v8366_v49  ;;  %v8422_v48 = vld [vmem:[#allocation90_spill] sm:$0xff]  ;;  %v8423_v49 = vld [vmem:[#allocation91_spill] sm:$0xff] }
 0x43b   :  { %1857 = vmatpush.msrb.mxu2 %v8367_v55  ;;  %1877 = vmatpush.msrb.mxu3 %v8368_v56  ;;  %v8424_v55 = vld [vmem:[#allocation94_spill] sm:$0xff]  ;;  %v8425_v56 = vld [vmem:[#allocation95_spill] sm:$0xff] }
 0x43c   :  { %1818 = vmatpush.msrb.mxu0 %v8369_v52  ;;  %1838 = vmatpush.msrb.mxu1 %v8370_v61  ;;  %v8426_v52 = vld [vmem:[#allocation96_spill] sm:$0xff]  ;;  %v8427_v61 = vld [vmem:[#allocation97_spill] sm:$0xff] }
 0x43d   :  { %1858 = vmatpush.msrb.mxu2 %v8371_v63  ;;  %1878 = vmatpush.msrb.mxu3 %v8372_v59  ;;  %v8428_v63 = vld [vmem:[#allocation98_spill] sm:$0xff]  ;;  %v8429_v59 = vld [vmem:[#allocation99_spill] sm:$0xff] }
 0x43e   :  { %1819 = vmatpush.msrb.mxu0 %v8373_v60  ;;  %1839 = vmatpush.msrb.mxu1 %v8374_v62  ;;  %v8430_v60 = vld [vmem:[#allocation100_spill] sm:$0xff]  ;;  %v8431_v62 = vld [vmem:[#allocation101_spill] sm:$0xff] }
 0x43f   :  { %1859 = vmatpush.msrb.mxu2 %v8375_v15  ;;  %1879 = vmatpush.msrb.mxu3 %v8376_v42  ;;  %v8432_v15 = vld [vmem:[#allocation102_spill] sm:$0xff]  ;;  %v8433_v42 = vld [vmem:[#allocation103_spill] sm:$0xff] }
 0x440   :  { %1820 = vmatpush.msrb.mxu0 %v8377_v50  ;;  %1840 = vmatpush.msrb.mxu1 %v8378_v0  ;;  %v8434_v50 = vld [vmem:[#allocation104_spill] sm:$0xff]  ;;  %v8435_v0 = vld [vmem:[#allocation105_spill] sm:$0xff] }
 0x441   :  { %1860 = vmatpush.msrb.mxu2 %v8379_v1  ;;  %1880 = vmatpush.msrb.mxu3 %v8380_v2  ;;  %v8436_v1 = vld [vmem:[#allocation106_spill] sm:$0xff]  ;;  %v8437_v2 = vld [vmem:[#allocation107_spill] sm:$0xff] }
 0x442   :  { %1821 = vmatmul.f32.vlgmr.msrb.gmra.mxu0 %v5927_v14  ;;  %1841 = vmatmul.f32.vlgmr.msrb.gmra.mxu1 %v5927_v14 }
 0x443   :  { %1861 = vmatmul.f32.vlgmr.msrb.gmra.mxu2 %v5927_v14  ;;  %1881 = vmatmul.f32.vlgmr.msrb.gmra.mxu3 %v5927_v14  ;;  %v8401_v14 = vld [vmem:[#allocation73_spill] sm:$0xff] }
 0x444   :  { %1915 = vmatpush.msra.mxu0 %v8381_v3  ;;  %1935 = vmatpush.msra.mxu1 %v8382_v29  ;;  %v8438_v3 = vld [vmem:[#allocation108_spill] sm:$0xff]  ;;  %v8439_v29 = vld [vmem:[#allocation109_spill] sm:$0xff] }
 0x445   :  { %1955 = vmatpush.msra.mxu2 %v8383_v41  ;;  %1975 = vmatpush.msra.mxu3 %v8384_v17  ;;  %v8440_v41 = vld [vmem:[#allocation110_spill] sm:$0xff]  ;;  %v8441_v17 = vld [vmem:[#allocation111_spill] sm:$0xff] }
 0x446   :  { %1916 = vmatpush.msra.mxu0 %v8385_v10  ;;  %1936 = vmatpush.msra.mxu1 %v8386_v32  ;;  %v8442_v10 = vld [vmem:[#allocation112_spill] sm:$0xff]  ;;  %v8443_v32 = vld [vmem:[#allocation113_spill] sm:$0xff] }
 0x447   :  { %1956 = vmatpush.msra.mxu2 %v8387_v4  ;;  %1976 = vmatpush.msra.mxu3 %v8388_v6  ;;  %v8444_v4 = vld [vmem:[#allocation114_spill] sm:$0xff]  ;;  %v8445_v6 = vld [vmem:[#allocation115_spill] sm:$0xff] }
 0x448   :  { %1917 = vmatpush.msra.mxu0 %v8389_v7  ;;  %1937 = vmatpush.msra.mxu1 %v8390_v8  ;;  %v8446_v7 = vld [vmem:[#allocation116_spill] sm:$0xff]  ;;  %v8447_v8 = vld [vmem:[#allocation117_spill] sm:$0xff] }
 0x449   :  { %1957 = vmatpush.msra.mxu2 %v8391_v16  ;;  %1977 = vmatpush.msra.mxu3 %v8392_v44  ;;  %v8448_v16 = vld [vmem:[#allocation118_spill] sm:$0xff]  ;;  %v8449_v44 = vld [vmem:[#allocation119_spill] sm:$0xff] }
 0x44a   :  { %1918 = vmatpush.msra.mxu0 %v8393_v18  ;;  %1938 = vmatpush.msra.mxu1 %v8394_v34  ;;  %v8450_v18 = vld [vmem:[#allocation120_spill] sm:$0xff]  ;;  %v8451_v34 = vld [vmem:[#allocation121_spill] sm:$0xff] }
 0x44b   :  { %1958 = vmatpush.msra.mxu2 %v8395_v22  ;;  %1978 = vmatpush.msra.mxu3 %v8396_v28  ;;  %v8452_v22 = vld [vmem:[#allocation122_spill] sm:$0xff]  ;;  %v8453_v28 = vld [vmem:[#allocation123_spill] sm:$0xff] }
 0x44c   :  { %1919 = vmatpush.msra.mxu0 %v8397_v11  ;;  %1939 = vmatpush.msra.mxu1 %v8398_v24  ;;  %v8454_v11 = vld [vmem:[#allocation124_spill] sm:$0xff]  ;;  %v8455_v24 = vld [vmem:[#allocation125_spill] sm:$0xff] }
 0x44d   :  { %1959 = vmatpush.msra.mxu2 %v8399_v26  ;;  %1979 = vmatpush.msra.mxu3 %v8400_v53  ;;  %v8456_v26 = vld [vmem:[#allocation126_spill] sm:$0xff]  ;;  %v8457_v53 = vld [vmem:[#allocation127_spill] sm:$0xff] }
 0x44e   :  { %1920 = vmatpush.msra.mxu0 %v8401_v14  ;;  %1940 = vmatpush.msra.mxu1 %v8402_v51  ;;  %v8458_v14 = vld [vmem:[#allocation128_spill] sm:$0xff]  ;;  %v8459_v51 = vld [vmem:[#allocation129_spill] sm:$0xff] }
 0x44f   :  { %1960 = vmatpush.msra.mxu2 %v8403_v19  ;;  %1980 = vmatpush.msra.mxu3 %v8404_v13  ;;  %v8460_v19 = vld [vmem:[#allocation130_spill] sm:$0xff]  ;;  %v8461_v13 = vld [vmem:[#allocation131_spill] sm:$0xff] }
 0x450   :  { %1921 = vmatpush.msra.mxu0 %v8405_v58  ;;  %1941 = vmatpush.msra.mxu1 %v8406_v46  ;;  %v8462_v58 = vld [vmem:[#allocation132_spill] sm:$0xff]  ;;  %v8463_v46 = vld [vmem:[#allocation133_spill] sm:$0xff] }
 0x451   :  { %1961 = vmatpush.msra.mxu2 %v8407_v27  ;;  %1981 = vmatpush.msra.mxu3 %v8408_v38  ;;  %v8464_v27 = vld [vmem:[#allocation134_spill] sm:$0xff]  ;;  %v8465_v38 = vld [vmem:[#allocation135_spill] sm:$0xff] }
 0x452   :  { %1922 = vmatpush.msra.mxu0 %v8409_v23  ;;  %1942 = vmatpush.msra.mxu1 %v8410_v54  ;;  %v8466_v23 = vld [vmem:[#allocation136_spill] sm:$0xff]  ;;  %v8467_v54 = vld [vmem:[#allocation137_spill] sm:$0xff] }
 0x453   :  { %1962 = vmatpush.msra.mxu2 %v8411_v21  ;;  %1982 = vmatpush.msra.mxu3 %v8412_v30  ;;  %v8468_v21 = vld [vmem:[#allocation138_spill] sm:$0xff]  ;;  %v8469_v30 = vld [vmem:[#allocation139_spill] sm:$0xff] }
 0x454   :  { %1923 = vmatpush.msra.mxu0 %v8413_v31  ;;  %1943 = vmatpush.msra.mxu1 %v8414_v35  ;;  %v8470_v31 = vld [vmem:[#allocation140_spill] sm:$0xff]  ;;  %v8471_v35 = vld [vmem:[#allocation141_spill] sm:$0xff] }
 0x455   :  { %1963 = vmatpush.msra.mxu2 %v8415_v36  ;;  %1983 = vmatpush.msra.mxu3 %v8416_v37  ;;  %v8472_v36 = vld [vmem:[#allocation142_spill] sm:$0xff]  ;;  %v8473_v37 = vld [vmem:[#allocation143_spill] sm:$0xff] }
 0x456   :  { %1924 = vmatpush.msra.mxu0 %v8417_v39  ;;  %1944 = vmatpush.msra.mxu1 %v8418_v40  ;;  %v8474_v39 = vld [vmem:[#allocation144_spill] sm:$0xff]  ;;  %v8475_v40 = vld [vmem:[#allocation146_spill] sm:$0xff] }
 0x457   :  { %1964 = vmatpush.msra.mxu2 %v8419_v43  ;;  %1984 = vmatpush.msra.mxu3 %v8420_v45  ;;  %v8476_v43 = vld [vmem:[#allocation147_spill] sm:$0xff]  ;;  %v8477_v45 = vld [vmem:[#allocation148_spill] sm:$0xff] }
 0x458   :  { %1925 = vmatpush.msra.mxu0 %v8421_v47  ;;  %1945 = vmatpush.msra.mxu1 %v8422_v48  ;;  %v8478_v47 = vld [vmem:[#allocation149_spill] sm:$0xff]  ;;  %v8479_v48 = vld [vmem:[#allocation150_spill] sm:$0xff] }
 0x459   :  { %1965 = vmatpush.msra.mxu2 %v8423_v49  ;;  %1985 = vmatpush.msra.mxu3 %v8424_v55  ;;  %v8480_v49 = vld [vmem:[#allocation151_spill] sm:$0xff]  ;;  %v8481_v55 = vld [vmem:[#allocation152_spill] sm:$0xff] }
 0x45a   :  { %1926 = vmatpush.msra.mxu0 %v8425_v56  ;;  %1946 = vmatpush.msra.mxu1 %v8426_v52  ;;  %v8482_v56 = vld [vmem:[#allocation153_spill] sm:$0xff]  ;;  %v8483_v52 = vld [vmem:[#allocation155_spill] sm:$0xff] }
 0x45b   :  { %1966 = vmatpush.msra.mxu2 %v8427_v61  ;;  %1986 = vmatpush.msra.mxu3 %v8428_v63  ;;  %v8484_v61 = vld [vmem:[#allocation156_spill] sm:$0xff]  ;;  %v8485_v63 = vld [vmem:[#allocation157_spill] sm:$0xff] }
 0x45c   :  { %1927 = vmatpush.msra.mxu0 %v8429_v59  ;;  %1947 = vmatpush.msra.mxu1 %v8430_v60  ;;  %v8486_v59 = vld [vmem:[#allocation158_spill] sm:$0xff]  ;;  %v8487_v60 = vld [vmem:[#allocation159_spill] sm:$0xff] }
 0x45d   :  { %1967 = vmatpush.msra.mxu2 %v8431_v62  ;;  %1987 = vmatpush.msra.mxu3 %v8432_v15  ;;  %v8488_v62 = vld [vmem:[#allocation160_spill] sm:$0xff]  ;;  %v8489_v15 = vld [vmem:[#allocation161_spill] sm:$0xff] }
 0x45e   :  { %1928 = vmatpush.msra.mxu0 %v8433_v42  ;;  %1948 = vmatpush.msra.mxu1 %v8434_v50  ;;  %v8490_v42 = vld [vmem:[#allocation162_spill] sm:$0xff]  ;;  %v8491_v50 = vld [vmem:[#allocation163_spill] sm:$0xff] }
 0x45f   :  { %1968 = vmatpush.msra.mxu2 %v8435_v0  ;;  %1988 = vmatpush.msra.mxu3 %v8436_v1  ;;  %v8492_v0 = vld [vmem:[#allocation145_spill] sm:$0xff]  ;;  %v8493_v1 = vld [vmem:[#allocation154_spill] sm:$0xff] }
 0x460   :  { %1929 = vmatpush.msra.mxu0 %v8437_v2  ;;  %1949 = vmatpush.msra.mxu1 %v8438_v3  ;;  %v8494_v2 = vld [vmem:[#allocation164_spill] sm:$0xff]  ;;  %v8495_v3 = vld [vmem:[#allocation165_spill] sm:$0xff] }
 0x461   :  { %1969 = vmatpush.msra.mxu2 %v8439_v29  ;;  %1989 = vmatpush.msra.mxu3 %v8440_v41  ;;  %v8496_v29 = vld [vmem:[#allocation166_spill] sm:$0xff]  ;;  %v8497_v41 = vld [vmem:[#allocation167_spill] sm:$0xff] }
 0x462   :  { %1930 = vmatpush.msra.mxu0 %v8441_v17  ;;  %1950 = vmatpush.msra.mxu1 %v8442_v10  ;;  %v8498_v17 = vld [vmem:[#allocation168_spill] sm:$0xff]  ;;  %v8499_v10 = vld [vmem:[#allocation169_spill] sm:$0xff] }
 0x463   :  { %1970 = vmatpush.msra.mxu2 %v8443_v32  ;;  %1990 = vmatpush.msra.mxu3 %v8444_v4  ;;  %v8500_v32 = vld [vmem:[#allocation170_spill] sm:$0xff]  ;;  %v8501_v4 = vld [vmem:[#allocation171_spill] sm:$0xff] }
 0x464   :  { %1995 = vmatpush.msrb.mxu0 %v8445_v6  ;;  %2015 = vmatpush.msrb.mxu1 %v8446_v7  ;;  %v8502_v6 = vld [vmem:[#allocation172_spill] sm:$0xff]  ;;  %v8503_v7 = vld [vmem:[#allocation173_spill] sm:$0xff] }
 0x465   :  { %2035 = vmatpush.msrb.mxu2 %v8447_v8  ;;  %2055 = vmatpush.msrb.mxu3 %v8448_v16  ;;  %v6125_v8 = vld [vmem:[#allocation10 + $0x38] sm:$0xff]  ;;  %v6128_v16 = vld [vmem:[#allocation10] sm:$0xff] }
 0x466   :  { %1996 = vmatpush.msrb.mxu0 %v8449_v44  ;;  %2016 = vmatpush.msrb.mxu1 %v8450_v18  ;;  %v6131_v44 = vld [vmem:[#allocation10 + $0x8] sm:$0xff]  ;;  %v6134_v18 = vld [vmem:[#allocation10 + $0x10] sm:$0xff] }
 0x467   :  { %2036 = vmatpush.msrb.mxu2 %v8451_v34  ;;  %2056 = vmatpush.msrb.mxu3 %v8452_v22  ;;  %v6137_v34 = vld [vmem:[#allocation10 + $0x18] sm:$0xff] }
 0x468   :  { %1997 = vmatpush.msrb.mxu0 %v8453_v28  ;;  %2017 = vmatpush.msrb.mxu1 %v8454_v11 }
 0x469   :  { %2037 = vmatpush.msrb.mxu2 %v8455_v24  ;;  %2057 = vmatpush.msrb.mxu3 %v8456_v26 }
 0x46a   :  { %1998 = vmatpush.msrb.mxu0 %v8457_v53  ;;  %2018 = vmatpush.msrb.mxu1 %v8458_v14 }
 0x46b   :  { %2038 = vmatpush.msrb.mxu2 %v8459_v51  ;;  %2058 = vmatpush.msrb.mxu3 %v8460_v19  ;;  %v1802_v19 = vstv %s2714_s3 }
 0x46c   :  { %1999 = vmatpush.msrb.mxu0 %v8461_v13  ;;  %2019 = vmatpush.msrb.mxu1 %v8462_v58  ;;  %v8504_v58 = vld [vmem:[#allocation23_spill] sm:$0xff] }
 0x46d   :  { %2039 = vmatpush.msrb.mxu2 %v8463_v46  ;;  %2059 = vmatpush.msrb.mxu3 %v8464_v27  ;;  %v1803_v27 = vmul.f32 %v5908_v20, %v1802_v19  ;;  %v6178_v19 = vld [vmem:[#allocation6 + $0x1c8] sm:$0xff] }
 0x46e   :  { %2000 = vmatpush.msrb.mxu0 %v8465_v38  ;;  %2020 = vmatpush.msrb.mxu1 %v8466_v23 }
 0x46f   :  { %2040 = vmatpush.msrb.mxu2 %v8467_v54  ;;  %2060 = vmatpush.msrb.mxu3 %v8468_v21 }
 0x470   :  { %2001 = vmatpush.msrb.mxu0 %v8469_v30  ;;  %2021 = vmatpush.msrb.mxu1 %v8470_v31 }
 0x471   :  { %2041 = vmatpush.msrb.mxu2 %v8471_v35  ;;  %2061 = vmatpush.msrb.mxu3 %v8472_v36  ;;  %v1804_v36 = vadd.f32 %v5912_v9, %v1803_v27  ;;  %v6184_v27 = vld [vmem:[#allocation6 + $0x1d8] sm:$0xff] }
 0x472   :  { %2002 = vmatpush.msrb.mxu0 %v8473_v37  ;;  %2022 = vmatpush.msrb.mxu1 %v8474_v39 }
 0x473   :  { %2042 = vmatpush.msrb.mxu2 %v8475_v40  ;;  %2062 = vmatpush.msrb.mxu3 %v8476_v43 }
 0x474   :  { %2003 = vmatpush.msrb.mxu0 %v8477_v45  ;;  %2023 = vmatpush.msrb.mxu1 %v8478_v47 }
 0x475   :  { %2043 = vmatpush.msrb.mxu2 %v8479_v48  ;;  %2063 = vmatpush.msrb.mxu3 %v8480_v49 }
 0x476   :  { %2004 = vmatpush.msrb.mxu0 %v8481_v55  ;;  %2024 = vmatpush.msrb.mxu1 %v8482_v56 }
 0x477   :  { %2044 = vmatpush.msrb.mxu2 %v8483_v52  ;;  %2064 = vmatpush.msrb.mxu3 %v8484_v61 }
 0x478   :  { %2005 = vmatpush.msrb.mxu0 %v8485_v63  ;;  %2025 = vmatpush.msrb.mxu1 %v8486_v59 }
 0x479   :  { %2045 = vmatpush.msrb.mxu2 %v8487_v60  ;;  %2065 = vmatpush.msrb.mxu3 %v8488_v62 }
 0x47a   :  { %2006 = vmatpush.msrb.mxu0 %v8489_v15  ;;  %2026 = vmatpush.msrb.mxu1 %v8490_v42 }
 0x47b   :  { %2046 = vmatpush.msrb.mxu2 %v8491_v50  ;;  %2066 = vmatpush.msrb.mxu3 %v8492_v0 }
 0x47c   :  { %2007 = vmatpush.msrb.mxu0 %v8493_v1  ;;  %2027 = vmatpush.msrb.mxu1 %v8494_v2 }
 0x47d   :  { %2047 = vmatpush.msrb.mxu2 %v8495_v3  ;;  %2067 = vmatpush.msrb.mxu3 %v8496_v29 }
 0x47e   :  { %2008 = vmatpush.msrb.mxu0 %v8497_v41  ;;  %2028 = vmatpush.msrb.mxu1 %v8498_v17 }
 0x47f   :  { %2048 = vmatpush.msrb.mxu2 %v8499_v10  ;;  %2068 = vmatpush.msrb.mxu3 %v8500_v32 }
 0x480   :  { %2009 = vmatpush.msrb.mxu0 %v8501_v4  ;;  %2029 = vmatpush.msrb.mxu1 %v8502_v6 }
 0x481   :  { %2049 = vmatpush.msrb.mxu2 %v8503_v7  ;;  %2069 = vmatpush.msrb.mxu3 %v6125_v8 }
 0x482   :  { %2010 = vmatpush.msrb.mxu0 %v6128_v16  ;;  %2030 = vmatpush.msrb.mxu1 %v6131_v44 }
 0x483   :  { %2050 = vmatpush.msrb.mxu2 %v6134_v18  ;;  %2070 = vmatpush.msrb.mxu3 %v6137_v34 }
 0x49b   :  { %v1656_v22 = vpop.f32.mrf.mxu1  ;;  %v1636_v24 = vpop.f32.mrf.mxu0 }
 0x49c   :  { %v1637_v46 = vadd.f32 %v1636_v24, %v8504_v58  ;;  %v1657_v38 = vadd.f32 %v1656_v22, %v4477_v33 }
 0x4a2   :  { %v1676_v28 = vpop.f32.mrf.mxu2  ;;  %v1696_v11 = vpop.f32.mrf.mxu3 }
 0x4a3   :  { %v1697_v55 = vadd.f32 %v1696_v11, %v4486_v57  ;;  %v1677_v60 = vadd.f32 %v1676_v28, %v4489_v5 }
 0x4a5   :  { %v1736_v26 = vpop.f32.mrf.mxu1  ;;  %v1716_v51 = vpop.f32.mrf.mxu0 }
 0x4a6   :  { %v1779_v23 = vadd.f32 %v1716_v51, %v1637_v46  ;;  %v1780_v21 = vadd.f32 %v1736_v26, %v1657_v38  ;;  %v6166_v26 = vld [vmem:[#allocation6 + $0x1e8] sm:$0xff]  ;;  %v6175_v51 = vld [vmem:[#allocation6 + $0x1c0] sm:$0xff]  ;;  %v6181_v46 = vld [vmem:[#allocation6 + $0x1d0] sm:$0xff] }
 0x4a8   :  { %v1783_v40 = vmul.f32 0.5, %v1779_v23  ;;  %v1784_v47 = vmul.f32 0.5, %v1780_v21  ;;  %v6187_v23 = vld [vmem:[#allocation6 + $0x1a0] sm:$0xff]  ;;  %v6193_v21 = vld [vmem:[#allocation6 + $0x1b0] sm:$0xff] }
 0x4aa   :  { %2797 = vtanh.f32 %v1783_v40  ;;  %v6211_v40 = vld [vmem:[#allocation6 + $0x160] sm:$0xff] }
 0x4ab   :  { %2799 = vtanh.f32 %v1784_v47  ;;  %v6220_v47 = vld [vmem:[#allocation6 + $0x178] sm:$0xff] }
 0x4ac   :  { %v1756_v53 = vpop.f32.mrf.mxu2  ;;  %v1776_v14 = vpop.f32.mrf.mxu3 }
 0x4ad   :  { %v1782_v9 = vadd.f32 %v1776_v14, %v1697_v55  ;;  %v1781_v50 = vadd.f32 %v1756_v53, %v1677_v60  ;;  %v6169_v53 = vld [vmem:[#allocation6 + $0x1f0] sm:$0xff]  ;;  %v6172_v14 = vld [vmem:[#allocation6 + $0x1f8] sm:$0xff] }
 0x4ae   :  { %v6232_v55 = vld [vmem:[#allocation6 + $0x158] sm:$0xff]  ;;  %v6253_v60 = vld [vmem:[#allocation6 + $0x110] sm:$0xff] }
 0x4af   :  { %v1785_v10 = vmul.f32 0.5, %v1781_v50  ;;  %v6265_v50 = vld [vmem:[#allocation6 + $0xf0] sm:$0xff] }
 0x4b0   :  { %v2798_v52 = vpop.eup %2797  ;;  %8506 = vst [vmem:[#allocation20_spill] sm:$0xff] %v6265_v50 }
 0x4b1   :  { %v2800_v61 = vpop.eup %2799  ;;  %v1789_v62 = vmul.f32 0.5, %v2798_v52  ;;  %v6238_v52 = vld [vmem:[#allocation6 + $0x128] sm:$0xff] }
 0x4b2   :  { %v1790_v15 = vmul.f32 0.5, %v2800_v61  ;;  %v6244_v61 = vld [vmem:[#allocation6 + $0x138] sm:$0xff] }
 0x4b3   :  { %v1792_v2 = vadd.f32 0.5, %v1789_v62  ;;  %v6256_v62 = vld [vmem:[#allocation6 + $0x118] sm:$0xff] }
 0x4b4   :  { %v1793_v3 = vadd.f32 0.5, %v1790_v15  ;;  %v6259_v15 = vld [vmem:[#allocation6 + $0xe0] sm:$0xff] }
 0x4b6   :  { %v1796_v4 = vmul.f32 %v1793_v3, %v5925_v25  ;;  %v6163_v25 = vld [vmem:[#allocation6 + $0x1e0] sm:$0xff]  ;;  %v6277_v3 = vld [vmem:[#allocation6 + $0xd0] sm:$0xff] }
 0x4b7   :  { %8510 = vst [vmem:[#allocation22_spill] sm:$0xff] %v6277_v3 }
 0x4bf   :  { %v1842_v13 = vpop.f32.mrf.mxu1  ;;  %v1822_v39 = vpop.f32.mrf.mxu0 }
 0x4c0   :  { %v1889_v54 = vrot.slane %v1842_v13, 7 }
 0x4c2   :  { %v1892_v43 = vsel %vm400_vm0, %v1822_v39, %v1889_v54  ;;  %v6190_v54 = vld [vmem:[#allocation6 + $0x1a8] sm:$0xff]  ;;  %v6208_v39 = vld [vmem:[#allocation6 + $0x198] sm:$0xff] }
 0x4c6   :  { %v1862_v30 = vpop.f32.mrf.mxu2  ;;  %v1882_v31 = vpop.f32.mrf.mxu3 }
 0x4c7   :  { %v1890_v35 = vrot.slane %v1862_v30, 6  ;;  %v1891_v37 = vrot.slane %v1882_v31, 5  ;;  %v6196_v30 = vld [vmem:[#allocation6 + $0x1b8] sm:$0xff]  ;;  %v6199_v31 = vld [vmem:[#allocation6 + $0x180] sm:$0xff] }
 0x4c9   :  { %v1893_v45 = vsel %vm402_vm1, %v1890_v35, %v1891_v37  ;;  %v6202_v35 = vld [vmem:[#allocation6 + $0x188] sm:$0xff]  ;;  %v6205_v37 = vld [vmem:[#allocation6 + $0x190] sm:$0xff] }
 0x4ca   :  { %v1894_v20 = vsel %vm404_vm2, %v1892_v43, %v1893_v45  ;;  %v6214_v43 = vld [vmem:[#allocation6 + $0x168] sm:$0xff]  ;;  %v6217_v45 = vld [vmem:[#allocation6 + $0x170] sm:$0xff] }
 0x4cb   :  { %v1896_v48 = vadd.f32 %v1894_v20, %v1804_v36  ;;  %v6223_v20 = vld [vmem:[#allocation6 + $0x140] sm:$0xff] }
 0x4cd   :  { %v1897_v49 = vmul.f32 0.5, %v1896_v48  ;;  %v1902_v56 = vrot.slane %v1896_v48, 3  ;;  %v6226_v48 = vld [vmem:[#allocation6 + $0x148] sm:$0xff] }
 0x4cf   :  { %2801 = vtanh.f32 %v1897_v49  ;;  %v6229_v49 = vld [vmem:[#allocation6 + $0x150] sm:$0xff] }
 0x4d0   :  { %2803 = vtanh.f32 %v1902_v56  ;;  %v6235_v56 = vld [vmem:[#allocation6 + $0x120] sm:$0xff] }
 0x4d1   :  { %2805 = vtanh.f32 %v1782_v9  ;;  %v6241_v9 = vld [vmem:[#allocation6 + $0x130] sm:$0xff] }
 0x4d5   :  { %v2802_v63 = vpop.eup %2801 }
 0x4d6   :  { %v1899_v59 = vmul.f32 0.5, %v2802_v63  ;;  %v2804_v1 = vpop.eup %2803  ;;  %v6247_v63 = vld [vmem:[#allocation6 + $0x100] sm:$0xff] }
 0x4d7   :  { %v2806_v17 = vpop.eup %2805 }
 0x4d8   :  { %v1900_v42 = vadd.f32 0.5, %v1899_v59  ;;  %v1797_v6 = vmul.f32 %v2806_v17, %v1792_v2  ;;  %v6250_v59 = vld [vmem:[#allocation6 + $0x108] sm:$0xff] }
 0x4d9   :  { %v6274_v2 = vld [vmem:[#allocation6 + $0xc8] sm:$0xff] }
 0x4da   :  { %v1906_v0 = vrot.slane %v1900_v42, 1  ;;  %v1909_v41 = vmul.f32 %v2804_v1, %v1900_v42  ;;  %v6154_v7 = vadd.f32 %v1797_v6, %v1796_v4  ;;  %v1912_v22 = vrot.slane %v1900_v42, 2  ;;  %v6262_v42 = vld [vmem:[#allocation6 + $0xe8] sm:$0xff]  ;;  %v6271_v1 = vld [vmem:[#allocation6 + $0xc0] sm:$0xff]  ;;  %8509 = vst [vmem:[#allocation21_spill] sm:$0xff] %v6274_v2  ;;  %v6292_v4 = vld [vmem:[#allocation6 + $0xb8] sm:$0xff] }
 0x4db   :  { %8505 = vst [vmem:[#allocation19_spill] sm:$0xff] %v6262_v42  ;;  %v6286_v17 = vld [vmem:[#allocation6 + $0xa8] sm:$0xff]  ;;  %v6295_v6 = vld [vmem:[#allocation6 + $0x80] sm:$0xff] }
 0x4dc   :  { %v1908_v29 = vmul.f32 %v1906_v0, %v5921_v12  ;;  %v6268_v0 = vld [vmem:[#allocation6 + $0xf8] sm:$0xff]  ;;  %8508 = vst [vmem:[#allocation26_spill] sm:$0xff] %v6271_v1 }
 0x4dd   :  { %8507 = vst [vmem:[#allocation27_spill] sm:$0xff] %v6268_v0 }
 0x4de   :  { %v6150_v32 = vadd.f32 %v1909_v41, %v1908_v29  ;;  %v6280_v29 = vld [vmem:[#allocation6 + $0xd8] sm:$0xff]  ;;  %v6283_v41 = vld [vmem:[#allocation6 + $0xa0] sm:$0xff]  ;;  %8513 = vst [vmem:[#allocation24_spill] sm:$0xff] %v6286_v17 }
 0x4df   :  { %8511 = vst [vmem:[#allocation31_spill] sm:$0xff] %v6280_v29 }
 0x4e0   :  { %2807 = vtanh.f32 %v6150_v32  ;;  %8512 = vst [vmem:[#allocation30_spill] sm:$0xff] %v6283_v41 }
 0x4e1   :  { %2809 = vtanh.f32 %v1785_v10  ;;  %v6289_v10 = vld [vmem:[#allocation6 + $0xb0] sm:$0xff]  ;;  %8515 = vst [vmem:[#allocation35_spill] sm:$0xff] %v6292_v4 }
 0x4e2   :  { %2811 = vtanh.f32 %v6154_v7  ;;  %8514 = vst [vmem:[#allocation25_spill] sm:$0xff] %v6289_v10 }
 0x4e3   :  { %8516 = vst [vmem:[#allocation34_spill] sm:$0xff] %v6295_v6 }
 0x4e6   :  { %v2808_v28 = vpop.eup %2807 }
 0x4e7   :  { %v6156_v11 = vmul.f32 %v2808_v28, %v1912_v22  ;;  %v2810_v24 = vpop.eup %2809  ;;  %v6298_v22 = vld [vmem:[#allocation6 + $0x88] sm:$0xff]  ;;  %v6301_v28 = vld [vmem:[#allocation6 + $0x90] sm:$0xff] }
 0x4e8   :  { %v1791_v12 = vmul.f32 0.5, %v2810_v24  ;;  %v2812_v13 = vpop.eup %2811  ;;  %8517 = vst [vmem:[#allocation28_spill] sm:$0xff] %v6298_v22  ;;  %v6304_v24 = vld [vmem:[#allocation6 + $0x98] sm:$0xff] }
 0x4e9   :  { %1931 = vmatmul.f32.vlgmr.msra.gmra.mxu0 %v6156_v11  ;;  %1951 = vmatmul.f32.vlgmr.msra.gmra.mxu1 %v6156_v11  ;;  %8518 = vst [vmem:[#allocation29_spill] sm:$0xff] %v6301_v28 }
 0x4ea   :  { %1971 = vmatmul.f32.vlgmr.msra.gmra.mxu2 %v6156_v11  ;;  %1991 = vmatmul.f32.vlgmr.msra.gmra.mxu3 %v6156_v11  ;;  %v1794_v38 = vadd.f32 0.5, %v1791_v12  ;;  %8519 = vst [vmem:[#allocation39_spill] sm:$0xff] %v6304_v24  ;;  %v6307_v12 = vld [vmem:[#allocation6 + $0x60] sm:$0xff] }
 0x4eb   :  { %2101 = vmatpush.msra.mxu0 %v6163_v25  ;;  %2121 = vmatpush.msra.mxu1 %v6166_v26  ;;  %8520 = vst [vmem:[#allocation38_spill] sm:$0xff] %v6307_v12 }
 0x4ec   :  { %2141 = vmatpush.msra.mxu2 %v6169_v53  ;;  %2161 = vmatpush.msra.mxu3 %v6172_v14  ;;  %v1800_v36 = vmul.f32 %v2812_v13, %v1794_v38  ;;  %v6310_v13 = vld [vmem:[#allocation6 + $0x68] sm:$0xff]  ;;  %v6313_v38 = vld [vmem:[#allocation6 + $0x70] sm:$0xff] }
 0x4ed   :  { %2102 = vmatpush.msra.mxu0 %v6175_v51  ;;  %2122 = vmatpush.msra.mxu1 %v6178_v19  ;;  %8521 = vst [vmem:[#allocation32_spill] sm:$0xff] %v6310_v13 }
 0x4ee   :  { %2142 = vmatpush.msra.mxu2 %v6181_v46  ;;  %2162 = vmatpush.msra.mxu3 %v6184_v27  ;;  %8522 = vst [vmem:[#allocation33_spill] sm:$0xff] %v6313_v38 }
 0x4ef   :  { %2103 = vmatpush.msra.mxu0 %v6187_v23  ;;  %2123 = vmatpush.msra.mxu1 %v6190_v54 }
 0x4f0   :  { %2143 = vmatpush.msra.mxu2 %v6193_v21  ;;  %2163 = vmatpush.msra.mxu3 %v6196_v30 }
 0x4f1   :  { %2104 = vmatpush.msra.mxu0 %v6199_v31  ;;  %2124 = vmatpush.msra.mxu1 %v6202_v35 }
 0x4f2   :  { %2144 = vmatpush.msra.mxu2 %v6205_v37  ;;  %2164 = vmatpush.msra.mxu3 %v6208_v39 }
 0x4f3   :  { %2011 = vmatmul.f32.vlgmr.msrb.gmra.mxu0 %v1800_v36  ;;  %2031 = vmatmul.f32.vlgmr.msrb.gmra.mxu1 %v1800_v36 }
 0x4f4   :  { %2051 = vmatmul.f32.vlgmr.msrb.gmra.mxu2 %v1800_v36  ;;  %2071 = vmatmul.f32.vlgmr.msrb.gmra.mxu3 %v1800_v36  ;;  %v6316_v36 = vld [vmem:[#allocation6 + $0x78] sm:$0xff] }
 0x4f5   :  { %2105 = vmatpush.msra.mxu0 %v6211_v40  ;;  %2125 = vmatpush.msra.mxu1 %v6214_v43  ;;  %8523 = vst [vmem:[#allocation40_spill] sm:$0xff] %v6316_v36 }
 0x4f6   :  { %2145 = vmatpush.msra.mxu2 %v6217_v45  ;;  %2165 = vmatpush.msra.mxu3 %v6220_v47 }
 0x4f7   :  { %2106 = vmatpush.msra.mxu0 %v6223_v20  ;;  %2126 = vmatpush.msra.mxu1 %v6226_v48 }
 0x4f8   :  { %2146 = vmatpush.msra.mxu2 %v6229_v49  ;;  %2166 = vmatpush.msra.mxu3 %v6232_v55 }
 0x4f9   :  { %2107 = vmatpush.msra.mxu0 %v6235_v56  ;;  %2127 = vmatpush.msra.mxu1 %v6238_v52 }
 0x4fa   :  { %2147 = vmatpush.msra.mxu2 %v6241_v9  ;;  %2167 = vmatpush.msra.mxu3 %v6244_v61 }
 0x4fb   :  { %2108 = vmatpush.msra.mxu0 %v6247_v63  ;;  %2128 = vmatpush.msra.mxu1 %v6250_v59 }
 0x4fc   :  { %2148 = vmatpush.msra.mxu2 %v6253_v60  ;;  %2168 = vmatpush.msra.mxu3 %v6256_v62 }
 0x4fd   :  { %2109 = vmatpush.msra.mxu0 %v6259_v15  ;;  %2129 = vmatpush.msra.mxu1 %v6262_v42 }
 0x4fe   :  { %2149 = vmatpush.msra.mxu2 %v6265_v50  ;;  %2169 = vmatpush.msra.mxu3 %v6268_v0 }
 0x4ff   :  { %2110 = vmatpush.msra.mxu0 %v6271_v1  ;;  %2130 = vmatpush.msra.mxu1 %v6274_v2  ;;  %v6741_v2 = vld [vmem:[#allocation7] sm:$0xf] }
 0x500   :  { %2150 = vmatpush.msra.mxu2 %v6277_v3  ;;  %2170 = vmatpush.msra.mxu3 %v6280_v29 }
 0x501   :  { %2111 = vmatpush.msra.mxu0 %v6283_v41  ;;  %2131 = vmatpush.msra.mxu1 %v6286_v17 }
 0x502   :  { %2151 = vmatpush.msra.mxu2 %v6289_v10  ;;  %2171 = vmatpush.msra.mxu3 %v6292_v4 }
 0x503   :  { %2112 = vmatpush.msra.mxu0 %v6295_v6  ;;  %2132 = vmatpush.msra.mxu1 %v6298_v22 }
 0x504   :  { %2152 = vmatpush.msra.mxu2 %v6301_v28  ;;  %2172 = vmatpush.msra.mxu3 %v6304_v24  ;;  %v6319_v28 = vld [vmem:[#allocation6 + $0x40] sm:$0xff]  ;;  %v6322_v24 = vld [vmem:[#allocation6 + $0x48] sm:$0xff] }
 0x505   :  { %2113 = vmatpush.msra.mxu0 %v6307_v12  ;;  %2133 = vmatpush.msra.mxu1 %v6310_v13  ;;  %8524 = vst [vmem:[#allocation41_spill] sm:$0xff] %v6319_v28  ;;  %v6325_v12 = vld [vmem:[#allocation6 + $0x50] sm:$0xff]  ;;  %v6328_v13 = vld [vmem:[#allocation6 + $0x58] sm:$0xff] }
 0x506   :  { %2153 = vmatpush.msra.mxu2 %v6313_v38  ;;  %2173 = vmatpush.msra.mxu3 %v6316_v36  ;;  %8525 = vst [vmem:[#allocation36_spill] sm:$0xff] %v6322_v24  ;;  %v6331_v38 = vld [vmem:[#allocation6 + $0x20] sm:$0xff]  ;;  %v6334_v36 = vld [vmem:[#allocation6 + $0x28] sm:$0xff] }
 0x507   :  { %2114 = vmatpush.msra.mxu0 %v6319_v28  ;;  %2134 = vmatpush.msra.mxu1 %v6322_v24  ;;  %8526 = vst [vmem:[#allocation37_spill] sm:$0xff] %v6325_v12  ;;  %v6337_v28 = vld [vmem:[#allocation6 + $0x30] sm:$0xff]  ;;  %v6340_v24 = vld [vmem:[#allocation6 + $0x38] sm:$0xff] }
 0x508   :  { %2154 = vmatpush.msra.mxu2 %v6325_v12  ;;  %8527 = vst [vmem:[#allocation44_spill] sm:$0xff] %v6328_v13  ;;  %2174 = vmatpush.msra.mxu3 %v6328_v13  ;;  %v6343_v12 = vld [vmem:[#allocation6] sm:$0xff]  ;;  %v6346_v13 = vld [vmem:[#allocation6 + $0x8] sm:$0xff] }
 0x509   :  { %8528 = vst [vmem:[#allocation45_spill] sm:$0xff] %v6331_v38  ;;  %2115 = vmatpush.msra.mxu0 %v6331_v38  ;;  %2135 = vmatpush.msra.mxu1 %v6334_v36  ;;  %v6349_v38 = vld [vmem:[#allocation6 + $0x10] sm:$0xff] }
 0x50a   :  { %8529 = vst [vmem:[#allocation42_spill] sm:$0xff] %v6334_v36  ;;  %2155 = vmatpush.msra.mxu2 %v6337_v28  ;;  %2175 = vmatpush.msra.mxu3 %v6340_v24  ;;  %v6352_v36 = vld [vmem:[#allocation6 + $0x18] sm:$0xff] }
 0x50b   :  { %8530 = vst [vmem:[#allocation43_spill] sm:$0xff] %v6337_v28  ;;  %2116 = vmatpush.msra.mxu0 %v6343_v12  ;;  %2136 = vmatpush.msra.mxu1 %v6346_v13 }
 0x50c   :  { %8531 = vst [vmem:[#allocation48_spill] sm:$0xff] %v6340_v24  ;;  %2156 = vmatpush.msra.mxu2 %v6349_v38  ;;  %2176 = vmatpush.msra.mxu3 %v6352_v36  ;;  %v6371_v24 = vld [vmem:[#allocation9 + $0x1c0] sm:$0xff] }
 0x50d   :  { %8532 = vst [vmem:[#allocation49_spill] sm:$0xff] %v6343_v12  ;;  %2117 = vmatmul.f32.vlgmr.msra.gmra.mxu0 %v6156_v11  ;;  %2137 = vmatmul.f32.vlgmr.msra.gmra.mxu1 %v6156_v11  ;;  %v6359_v12 = vld [vmem:[#allocation9 + $0x1e0] sm:$0xff] }
 0x50e   :  { %8533 = vst [vmem:[#allocation46_spill] sm:$0xff] %v6346_v13  ;;  %2157 = vmatmul.f32.vlgmr.msra.gmra.mxu2 %v6156_v11  ;;  %2177 = vmatmul.f32.vlgmr.msra.gmra.mxu3 %v6156_v11  ;;  %v6362_v13 = vld [vmem:[#allocation9 + $0x1e8] sm:$0xff] }
 0x50f   :  { %8534 = vst [vmem:[#allocation47_spill] sm:$0xff] %v6349_v38  ;;  %2211 = vmatpush.msrb.mxu0 %v6359_v12  ;;  %2231 = vmatpush.msrb.mxu1 %v6362_v13  ;;  %v6365_v38 = vld [vmem:[#allocation9 + $0x1f0] sm:$0xff]  ;;  %v6374_v11 = vld [vmem:[#allocation9 + $0x1c8] sm:$0xff] }
 0x510   :  { %8535 = vst [vmem:[#allocation52_spill] sm:$0xff] %v6352_v36  ;;  %2251 = vmatpush.msrb.mxu2 %v6365_v38  ;;  %v6368_v36 = vld [vmem:[#allocation9 + $0x1f8] sm:$0xff] }
 0x511   :  { %8536 = vst [vmem:[#allocation53_spill] sm:$0xff] %v6359_v12  ;;  %2271 = vmatpush.msrb.mxu3 %v6368_v36  ;;  %2212 = vmatpush.msrb.mxu0 %v6371_v24  ;;  %v6377_v12 = vld [vmem:[#allocation9 + $0x1d0] sm:$0xff] }
 0x512   :  { %8537 = vst [vmem:[#allocation50_spill] sm:$0xff] %v6362_v13  ;;  %2232 = vmatpush.msrb.mxu1 %v6374_v11  ;;  %2252 = vmatpush.msrb.mxu2 %v6377_v12  ;;  %v6380_v13 = vld [vmem:[#allocation9 + $0x1d8] sm:$0xff] }
 0x513   :  { %8538 = vst [vmem:[#allocation51_spill] sm:$0xff] %v6365_v38  ;;  %2272 = vmatpush.msrb.mxu3 %v6380_v13  ;;  %v6383_v38 = vld [vmem:[#allocation9 + $0x1a0] sm:$0xff] }
 0x514   :  { %8539 = vst [vmem:[#allocation56_spill] sm:$0xff] %v6368_v36  ;;  %2213 = vmatpush.msrb.mxu0 %v6383_v38  ;;  %v6386_v36 = vld [vmem:[#allocation9 + $0x1a8] sm:$0xff] }
 0x515   :  { %8540 = vst [vmem:[#allocation57_spill] sm:$0xff] %v6371_v24  ;;  %2233 = vmatpush.msrb.mxu1 %v6386_v36  ;;  %v6389_v24 = vld [vmem:[#allocation9 + $0x1b0] sm:$0xff] }
 0x516   :  { %8541 = vst [vmem:[#allocation54_spill] sm:$0xff] %v6374_v11  ;;  %2253 = vmatpush.msrb.mxu2 %v6389_v24  ;;  %v6392_v11 = vld [vmem:[#allocation9 + $0x1b8] sm:$0xff] }
 0x517   :  { %8542 = vst [vmem:[#allocation55_spill] sm:$0xff] %v6377_v12  ;;  %2273 = vmatpush.msrb.mxu3 %v6392_v11  ;;  %v6395_v12 = vld [vmem:[#allocation9 + $0x180] sm:$0xff] }
 0x518   :  { %8543 = vst [vmem:[#allocation60_spill] sm:$0xff] %v6380_v13  ;;  %2214 = vmatpush.msrb.mxu0 %v6395_v12  ;;  %v6398_v13 = vld [vmem:[#allocation9 + $0x188] sm:$0xff] }
 0x519   :  { %8544 = vst [vmem:[#allocation61_spill] sm:$0xff] %v6383_v38  ;;  %2234 = vmatpush.msrb.mxu1 %v6398_v13  ;;  %v6401_v38 = vld [vmem:[#allocation9 + $0x190] sm:$0xff] }
 0x51a   :  { %8545 = vst [vmem:[#allocation58_spill] sm:$0xff] %v6386_v36  ;;  %2254 = vmatpush.msrb.mxu2 %v6401_v38  ;;  %v6404_v36 = vld [vmem:[#allocation9 + $0x198] sm:$0xff] }
 0x51b   :  { %8546 = vst [vmem:[#allocation59_spill] sm:$0xff] %v6389_v24  ;;  %2274 = vmatpush.msrb.mxu3 %v6404_v36  ;;  %v6407_v24 = vld [vmem:[#allocation9 + $0x160] sm:$0xff] }
 0x51c   :  { %8547 = vst [vmem:[#allocation64_spill] sm:$0xff] %v6392_v11  ;;  %2215 = vmatpush.msrb.mxu0 %v6407_v24  ;;  %v6410_v11 = vld [vmem:[#allocation9 + $0x168] sm:$0xff] }
 0x51d   :  { %8548 = vst [vmem:[#allocation65_spill] sm:$0xff] %v6395_v12  ;;  %2235 = vmatpush.msrb.mxu1 %v6410_v11  ;;  %v6413_v12 = vld [vmem:[#allocation9 + $0x170] sm:$0xff] }
 0x51e   :  { %8549 = vst [vmem:[#allocation62_spill] sm:$0xff] %v6398_v13  ;;  %2255 = vmatpush.msrb.mxu2 %v6413_v12  ;;  %v6416_v13 = vld [vmem:[#allocation9 + $0x178] sm:$0xff] }
 0x51f   :  { %8550 = vst [vmem:[#allocation63_spill] sm:$0xff] %v6401_v38  ;;  %2275 = vmatpush.msrb.mxu3 %v6416_v13  ;;  %v6419_v38 = vld [vmem:[#allocation9 + $0x140] sm:$0xff] }
 0x520   :  { %8551 = vst [vmem:[#allocation68_spill] sm:$0xff] %v6404_v36  ;;  %2216 = vmatpush.msrb.mxu0 %v6419_v38  ;;  %v6422_v36 = vld [vmem:[#allocation9 + $0x148] sm:$0xff] }
 0x521   :  { %8552 = vst [vmem:[#allocation69_spill] sm:$0xff] %v6407_v24  ;;  %2236 = vmatpush.msrb.mxu1 %v6422_v36  ;;  %v6425_v24 = vld [vmem:[#allocation9 + $0x150] sm:$0xff] }
 0x522   :  { %8553 = vst [vmem:[#allocation66_spill] sm:$0xff] %v6410_v11  ;;  %2256 = vmatpush.msrb.mxu2 %v6425_v24  ;;  %v6428_v11 = vld [vmem:[#allocation9 + $0x158] sm:$0xff] }
 0x523   :  { %8554 = vst [vmem:[#allocation67_spill] sm:$0xff] %v6413_v12  ;;  %2276 = vmatpush.msrb.mxu3 %v6428_v11  ;;  %v6431_v12 = vld [vmem:[#allocation9 + $0x120] sm:$0xff] }
 0x524   :  { %8555 = vst [vmem:[#allocation72_spill] sm:$0xff] %v6416_v13  ;;  %2217 = vmatpush.msrb.mxu0 %v6431_v12  ;;  %v6434_v13 = vld [vmem:[#allocation9 + $0x128] sm:$0xff] }
 0x525   :  { %8556 = vst [vmem:[#allocation73_spill] sm:$0xff] %v6419_v38  ;;  %2237 = vmatpush.msrb.mxu1 %v6434_v13  ;;  %v6437_v38 = vld [vmem:[#allocation9 + $0x130] sm:$0xff] }
 0x526   :  { %8557 = vst [vmem:[#allocation70_spill] sm:$0xff] %v6422_v36  ;;  %2257 = vmatpush.msrb.mxu2 %v6437_v38  ;;  %v6440_v36 = vld [vmem:[#allocation9 + $0x138] sm:$0xff] }
 0x527   :  { %8558 = vst [vmem:[#allocation71_spill] sm:$0xff] %v6425_v24  ;;  %2277 = vmatpush.msrb.mxu3 %v6440_v36  ;;  %v6443_v24 = vld [vmem:[#allocation9 + $0x100] sm:$0xff] }
 0x528   :  { %8559 = vst [vmem:[#allocation76_spill] sm:$0xff] %v6428_v11  ;;  %2218 = vmatpush.msrb.mxu0 %v6443_v24  ;;  %v6446_v11 = vld [vmem:[#allocation9 + $0x108] sm:$0xff] }
 0x529   :  { %8560 = vst [vmem:[#allocation77_spill] sm:$0xff] %v6431_v12  ;;  %2238 = vmatpush.msrb.mxu1 %v6446_v11  ;;  %v6449_v12 = vld [vmem:[#allocation9 + $0x110] sm:$0xff] }
 0x52a   :  { %8561 = vst [vmem:[#allocation74_spill] sm:$0xff] %v6434_v13  ;;  %2258 = vmatpush.msrb.mxu2 %v6449_v12  ;;  %v6452_v13 = vld [vmem:[#allocation9 + $0x118] sm:$0xff] }
 0x52b   :  { %8562 = vst [vmem:[#allocation75_spill] sm:$0xff] %v6437_v38  ;;  %2278 = vmatpush.msrb.mxu3 %v6452_v13  ;;  %v6455_v38 = vld [vmem:[#allocation9 + $0xe0] sm:$0xff] }
 0x52c   :  { %8563 = vst [vmem:[#allocation80_spill] sm:$0xff] %v6440_v36  ;;  %2219 = vmatpush.msrb.mxu0 %v6455_v38  ;;  %v6458_v36 = vld [vmem:[#allocation9 + $0xe8] sm:$0xff] }
 0x52d   :  { %8564 = vst [vmem:[#allocation81_spill] sm:$0xff] %v6443_v24  ;;  %2239 = vmatpush.msrb.mxu1 %v6458_v36  ;;  %v6461_v24 = vld [vmem:[#allocation9 + $0xf0] sm:$0xff] }
 0x52e   :  { %8565 = vst [vmem:[#allocation78_spill] sm:$0xff] %v6446_v11  ;;  %2259 = vmatpush.msrb.mxu2 %v6461_v24  ;;  %v6464_v11 = vld [vmem:[#allocation9 + $0xf8] sm:$0xff] }
 0x52f   :  { %8566 = vst [vmem:[#allocation79_spill] sm:$0xff] %v6449_v12  ;;  %2279 = vmatpush.msrb.mxu3 %v6464_v11  ;;  %v6467_v12 = vld [vmem:[#allocation9 + $0xc0] sm:$0xff] }
 0x530   :  { %8567 = vst [vmem:[#allocation84_spill] sm:$0xff] %v6452_v13  ;;  %2220 = vmatpush.msrb.mxu0 %v6467_v12  ;;  %v6470_v13 = vld [vmem:[#allocation9 + $0xc8] sm:$0xff] }
 0x531   :  { %8568 = vst [vmem:[#allocation85_spill] sm:$0xff] %v6455_v38  ;;  %2240 = vmatpush.msrb.mxu1 %v6470_v13  ;;  %v6473_v38 = vld [vmem:[#allocation9 + $0xd0] sm:$0xff] }
 0x532   :  { %8569 = vst [vmem:[#allocation82_spill] sm:$0xff] %v6458_v36  ;;  %2260 = vmatpush.msrb.mxu2 %v6473_v38  ;;  %v6476_v36 = vld [vmem:[#allocation9 + $0xd8] sm:$0xff] }
 0x533   :  { %8570 = vst [vmem:[#allocation83_spill] sm:$0xff] %v6461_v24  ;;  %2280 = vmatpush.msrb.mxu3 %v6476_v36  ;;  %v6479_v24 = vld [vmem:[#allocation9 + $0xa0] sm:$0xff] }
 0x534   :  { %8571 = vst [vmem:[#allocation88_spill] sm:$0xff] %v6464_v11  ;;  %2221 = vmatpush.msrb.mxu0 %v6479_v24  ;;  %v6482_v11 = vld [vmem:[#allocation9 + $0xa8] sm:$0xff] }
 0x535   :  { %8572 = vst [vmem:[#allocation89_spill] sm:$0xff] %v6467_v12  ;;  %2241 = vmatpush.msrb.mxu1 %v6482_v11  ;;  %v6485_v12 = vld [vmem:[#allocation9 + $0xb0] sm:$0xff] }
 0x536   :  { %8573 = vst [vmem:[#allocation86_spill] sm:$0xff] %v6470_v13  ;;  %2261 = vmatpush.msrb.mxu2 %v6485_v12  ;;  %v6488_v13 = vld [vmem:[#allocation9 + $0xb8] sm:$0xff] }
 0x537   :  { %8574 = vst [vmem:[#allocation87_spill] sm:$0xff] %v6473_v38  ;;  %2281 = vmatpush.msrb.mxu3 %v6488_v13  ;;  %v6491_v38 = vld [vmem:[#allocation9 + $0x80] sm:$0xff] }
 0x538   :  { %8575 = vst [vmem:[#allocation92_spill] sm:$0xff] %v6476_v36  ;;  %2222 = vmatpush.msrb.mxu0 %v6491_v38  ;;  %v6494_v36 = vld [vmem:[#allocation9 + $0x88] sm:$0xff] }
 0x539   :  { %8576 = vst [vmem:[#allocation93_spill] sm:$0xff] %v6479_v24  ;;  %2242 = vmatpush.msrb.mxu1 %v6494_v36  ;;  %v6497_v24 = vld [vmem:[#allocation9 + $0x90] sm:$0xff] }
 0x53a   :  { %8577 = vst [vmem:[#allocation90_spill] sm:$0xff] %v6482_v11  ;;  %2262 = vmatpush.msrb.mxu2 %v6497_v24  ;;  %v6500_v11 = vld [vmem:[#allocation9 + $0x98] sm:$0xff] }
 0x53b   :  { %8578 = vst [vmem:[#allocation91_spill] sm:$0xff] %v6485_v12  ;;  %2282 = vmatpush.msrb.mxu3 %v6500_v11  ;;  %v6503_v12 = vld [vmem:[#allocation9 + $0x60] sm:$0xff] }
 0x53c   :  { %8579 = vst [vmem:[#allocation94_spill] sm:$0xff] %v6488_v13  ;;  %2223 = vmatpush.msrb.mxu0 %v6503_v12  ;;  %v6506_v13 = vld [vmem:[#allocation9 + $0x68] sm:$0xff] }
 0x53d   :  { %8580 = vst [vmem:[#allocation95_spill] sm:$0xff] %v6491_v38  ;;  %2243 = vmatpush.msrb.mxu1 %v6506_v13  ;;  %v6509_v38 = vld [vmem:[#allocation9 + $0x70] sm:$0xff] }
 0x53e   :  { %8581 = vst [vmem:[#allocation96_spill] sm:$0xff] %v6494_v36  ;;  %2263 = vmatpush.msrb.mxu2 %v6509_v38  ;;  %v6512_v36 = vld [vmem:[#allocation9 + $0x78] sm:$0xff] }
 0x53f   :  { %8582 = vst [vmem:[#allocation97_spill] sm:$0xff] %v6497_v24  ;;  %2283 = vmatpush.msrb.mxu3 %v6512_v36  ;;  %v6515_v24 = vld [vmem:[#allocation9 + $0x40] sm:$0xff] }
 0x540   :  { %8583 = vst [vmem:[#allocation98_spill] sm:$0xff] %v6500_v11  ;;  %2224 = vmatpush.msrb.mxu0 %v6515_v24  ;;  %v6518_v11 = vld [vmem:[#allocation9 + $0x48] sm:$0xff] }
 0x541   :  { %8584 = vst [vmem:[#allocation99_spill] sm:$0xff] %v6503_v12  ;;  %2244 = vmatpush.msrb.mxu1 %v6518_v11  ;;  %v6521_v12 = vld [vmem:[#allocation9 + $0x50] sm:$0xff] }
 0x542   :  { %8585 = vst [vmem:[#allocation100_spill] sm:$0xff] %v6506_v13  ;;  %2264 = vmatpush.msrb.mxu2 %v6521_v12  ;;  %v6524_v13 = vld [vmem:[#allocation9 + $0x58] sm:$0xff] }
 0x543   :  { %8586 = vst [vmem:[#allocation101_spill] sm:$0xff] %v6509_v38  ;;  %2284 = vmatpush.msrb.mxu3 %v6524_v13  ;;  %v6527_v38 = vld [vmem:[#allocation9 + $0x20] sm:$0xff] }
 0x544   :  { %8587 = vst [vmem:[#allocation102_spill] sm:$0xff] %v6512_v36  ;;  %2225 = vmatpush.msrb.mxu0 %v6527_v38  ;;  %v6530_v36 = vld [vmem:[#allocation9 + $0x28] sm:$0xff] }
 0x545   :  { %8588 = vst [vmem:[#allocation103_spill] sm:$0xff] %v6515_v24  ;;  %2245 = vmatpush.msrb.mxu1 %v6530_v36  ;;  %v6533_v24 = vld [vmem:[#allocation9 + $0x30] sm:$0xff] }
 0x546   :  { %8589 = vst [vmem:[#allocation104_spill] sm:$0xff] %v6518_v11  ;;  %2265 = vmatpush.msrb.mxu2 %v6533_v24  ;;  %v6536_v11 = vld [vmem:[#allocation9 + $0x38] sm:$0xff] }
 0x547   :  { %8590 = vst [vmem:[#allocation105_spill] sm:$0xff] %v6521_v12  ;;  %2285 = vmatpush.msrb.mxu3 %v6536_v11  ;;  %v6539_v12 = vld [vmem:[#allocation9] sm:$0xff] }
 0x548   :  { %8591 = vst [vmem:[#allocation106_spill] sm:$0xff] %v6524_v13  ;;  %2226 = vmatpush.msrb.mxu0 %v6539_v12  ;;  %v6542_v13 = vld [vmem:[#allocation9 + $0x8] sm:$0xff] }
 0x549   :  { %8592 = vst [vmem:[#allocation107_spill] sm:$0xff] %v6527_v38  ;;  %2246 = vmatpush.msrb.mxu1 %v6542_v13  ;;  %v6545_v38 = vld [vmem:[#allocation9 + $0x10] sm:$0xff] }
 0x54a   :  { %8593 = vst [vmem:[#allocation108_spill] sm:$0xff] %v6530_v36  ;;  %2266 = vmatpush.msrb.mxu2 %v6545_v38  ;;  %v6548_v36 = vld [vmem:[#allocation9 + $0x18] sm:$0xff] }
 0x54b   :  { %8594 = vst [vmem:[#allocation109_spill] sm:$0xff] %v6533_v24  ;;  %2286 = vmatpush.msrb.mxu3 %v6548_v36  ;;  %v6551_v24 = vld [vmem:[#allocation10 + $0x1e0] sm:$0xff] }
 0x54c   :  { %8595 = vst [vmem:[#allocation110_spill] sm:$0xff] %v6536_v11  ;;  %2291 = vmatpush.msra.mxu0 %v6551_v24  ;;  %v6554_v11 = vld [vmem:[#allocation10 + $0x1e8] sm:$0xff] }
 0x54d   :  { %8596 = vst [vmem:[#allocation111_spill] sm:$0xff] %v6539_v12  ;;  %2311 = vmatpush.msra.mxu1 %v6554_v11  ;;  %v6557_v12 = vld [vmem:[#allocation10 + $0x1f0] sm:$0xff] }
 0x54e   :  { %8597 = vst [vmem:[#allocation112_spill] sm:$0xff] %v6542_v13  ;;  %2331 = vmatpush.msra.mxu2 %v6557_v12  ;;  %v6560_v13 = vld [vmem:[#allocation10 + $0x1f8] sm:$0xff] }
 0x54f   :  { %8598 = vst [vmem:[#allocation113_spill] sm:$0xff] %v6545_v38  ;;  %2351 = vmatpush.msra.mxu3 %v6560_v13  ;;  %v6563_v38 = vld [vmem:[#allocation10 + $0x1c0] sm:$0xff] }
 0x550   :  { %8599 = vst [vmem:[#allocation114_spill] sm:$0xff] %v6548_v36  ;;  %2292 = vmatpush.msra.mxu0 %v6563_v38  ;;  %v6566_v36 = vld [vmem:[#allocation10 + $0x1c8] sm:$0xff] }
 0x551   :  { %8600 = vst [vmem:[#allocation115_spill] sm:$0xff] %v6551_v24  ;;  %2312 = vmatpush.msra.mxu1 %v6566_v36  ;;  %v6569_v24 = vld [vmem:[#allocation10 + $0x1d0] sm:$0xff] }
 0x552   :  { %8601 = vst [vmem:[#allocation116_spill] sm:$0xff] %v6554_v11  ;;  %2332 = vmatpush.msra.mxu2 %v6569_v24  ;;  %v6572_v11 = vld [vmem:[#allocation10 + $0x1d8] sm:$0xff] }
 0x553   :  { %8602 = vst [vmem:[#allocation117_spill] sm:$0xff] %v6557_v12  ;;  %2352 = vmatpush.msra.mxu3 %v6572_v11  ;;  %v6575_v12 = vld [vmem:[#allocation10 + $0x1a0] sm:$0xff] }
 0x554   :  { %8603 = vst [vmem:[#allocation118_spill] sm:$0xff] %v6560_v13  ;;  %2293 = vmatpush.msra.mxu0 %v6575_v12  ;;  %v6578_v13 = vld [vmem:[#allocation10 + $0x1a8] sm:$0xff] }
 0x555   :  { %8604 = vst [vmem:[#allocation119_spill] sm:$0xff] %v6563_v38  ;;  %2313 = vmatpush.msra.mxu1 %v6578_v13  ;;  %v6581_v38 = vld [vmem:[#allocation10 + $0x1b0] sm:$0xff] }
 0x556   :  { %8605 = vst [vmem:[#allocation120_spill] sm:$0xff] %v6566_v36  ;;  %2333 = vmatpush.msra.mxu2 %v6581_v38  ;;  %v6584_v36 = vld [vmem:[#allocation10 + $0x1b8] sm:$0xff] }
 0x557   :  { %8606 = vst [vmem:[#allocation121_spill] sm:$0xff] %v6569_v24  ;;  %2353 = vmatpush.msra.mxu3 %v6584_v36  ;;  %v6587_v24 = vld [vmem:[#allocation10 + $0x180] sm:$0xff] }
 0x558   :  { %8607 = vst [vmem:[#allocation122_spill] sm:$0xff] %v6572_v11  ;;  %2294 = vmatpush.msra.mxu0 %v6587_v24  ;;  %v6590_v11 = vld [vmem:[#allocation10 + $0x188] sm:$0xff] }
 0x559   :  { %8608 = vst [vmem:[#allocation123_spill] sm:$0xff] %v6575_v12  ;;  %2314 = vmatpush.msra.mxu1 %v6590_v11  ;;  %v6593_v12 = vld [vmem:[#allocation10 + $0x190] sm:$0xff] }
 0x55a   :  { %8609 = vst [vmem:[#allocation124_spill] sm:$0xff] %v6578_v13  ;;  %2334 = vmatpush.msra.mxu2 %v6593_v12  ;;  %v6596_v13 = vld [vmem:[#allocation10 + $0x198] sm:$0xff] }
 0x55b   :  { %8610 = vst [vmem:[#allocation125_spill] sm:$0xff] %v6581_v38  ;;  %2354 = vmatpush.msra.mxu3 %v6596_v13  ;;  %v6599_v38 = vld [vmem:[#allocation10 + $0x160] sm:$0xff] }
 0x55c   :  { %8611 = vst [vmem:[#allocation126_spill] sm:$0xff] %v6584_v36  ;;  %2295 = vmatpush.msra.mxu0 %v6599_v38  ;;  %v6602_v36 = vld [vmem:[#allocation10 + $0x168] sm:$0xff] }
 0x55d   :  { %8612 = vst [vmem:[#allocation127_spill] sm:$0xff] %v6587_v24  ;;  %2315 = vmatpush.msra.mxu1 %v6602_v36  ;;  %v6605_v24 = vld [vmem:[#allocation10 + $0x170] sm:$0xff] }
 0x55e   :  { %8613 = vst [vmem:[#allocation128_spill] sm:$0xff] %v6590_v11  ;;  %2335 = vmatpush.msra.mxu2 %v6605_v24  ;;  %v6608_v11 = vld [vmem:[#allocation10 + $0x178] sm:$0xff] }
 0x55f   :  { %8614 = vst [vmem:[#allocation129_spill] sm:$0xff] %v6593_v12  ;;  %2355 = vmatpush.msra.mxu3 %v6608_v11  ;;  %v6611_v12 = vld [vmem:[#allocation10 + $0x140] sm:$0xff] }
 0x560   :  { %8615 = vst [vmem:[#allocation130_spill] sm:$0xff] %v6596_v13  ;;  %2296 = vmatpush.msra.mxu0 %v6611_v12  ;;  %v6614_v13 = vld [vmem:[#allocation10 + $0x148] sm:$0xff] }
 0x561   :  { %8616 = vst [vmem:[#allocation131_spill] sm:$0xff] %v6599_v38  ;;  %2316 = vmatpush.msra.mxu1 %v6614_v13  ;;  %v6617_v38 = vld [vmem:[#allocation10 + $0x150] sm:$0xff] }
 0x562   :  { %8617 = vst [vmem:[#allocation132_spill] sm:$0xff] %v6602_v36  ;;  %2336 = vmatpush.msra.mxu2 %v6617_v38  ;;  %v6620_v36 = vld [vmem:[#allocation10 + $0x158] sm:$0xff] }
 0x563   :  { %8618 = vst [vmem:[#allocation133_spill] sm:$0xff] %v6605_v24  ;;  %2356 = vmatpush.msra.mxu3 %v6620_v36  ;;  %v6623_v24 = vld [vmem:[#allocation10 + $0x120] sm:$0xff] }
 0x564   :  { %8619 = vst [vmem:[#allocation134_spill] sm:$0xff] %v6608_v11  ;;  %2297 = vmatpush.msra.mxu0 %v6623_v24  ;;  %v6626_v11 = vld [vmem:[#allocation10 + $0x128] sm:$0xff] }
 0x565   :  { %8620 = vst [vmem:[#allocation135_spill] sm:$0xff] %v6611_v12  ;;  %2317 = vmatpush.msra.mxu1 %v6626_v11  ;;  %v6629_v12 = vld [vmem:[#allocation10 + $0x130] sm:$0xff] }
 0x566   :  { %8621 = vst [vmem:[#allocation136_spill] sm:$0xff] %v6614_v13  ;;  %2337 = vmatpush.msra.mxu2 %v6629_v12  ;;  %v6632_v13 = vld [vmem:[#allocation10 + $0x138] sm:$0xff] }
 0x567   :  { %8622 = vst [vmem:[#allocation137_spill] sm:$0xff] %v6617_v38  ;;  %2357 = vmatpush.msra.mxu3 %v6632_v13  ;;  %v6635_v38 = vld [vmem:[#allocation10 + $0x100] sm:$0xff] }
 0x568   :  { %8623 = vst [vmem:[#allocation138_spill] sm:$0xff] %v6620_v36  ;;  %2298 = vmatpush.msra.mxu0 %v6635_v38  ;;  %v6638_v36 = vld [vmem:[#allocation10 + $0x108] sm:$0xff] }
 0x569   :  { %8624 = vst [vmem:[#allocation139_spill] sm:$0xff] %v6623_v24  ;;  %2318 = vmatpush.msra.mxu1 %v6638_v36  ;;  %v6641_v24 = vld [vmem:[#allocation10 + $0x110] sm:$0xff] }
 0x56a   :  { %8625 = vst [vmem:[#allocation140_spill] sm:$0xff] %v6626_v11  ;;  %2338 = vmatpush.msra.mxu2 %v6641_v24  ;;  %v6644_v11 = vld [vmem:[#allocation10 + $0x118] sm:$0xff] }
 0x56b   :  { %8626 = vst [vmem:[#allocation141_spill] sm:$0xff] %v6629_v12  ;;  %2358 = vmatpush.msra.mxu3 %v6644_v11  ;;  %v6647_v12 = vld [vmem:[#allocation10 + $0xe0] sm:$0xff] }
 0x56c   :  { %8627 = vst [vmem:[#allocation142_spill] sm:$0xff] %v6632_v13  ;;  %2299 = vmatpush.msra.mxu0 %v6647_v12  ;;  %v6650_v13 = vld [vmem:[#allocation10 + $0xe8] sm:$0xff] }
 0x56d   :  { %8628 = vst [vmem:[#allocation143_spill] sm:$0xff] %v6635_v38  ;;  %2319 = vmatpush.msra.mxu1 %v6650_v13  ;;  %v6653_v38 = vld [vmem:[#allocation10 + $0xf0] sm:$0xff] }
 0x56e   :  { %8629 = vst [vmem:[#allocation144_spill] sm:$0xff] %v6638_v36  ;;  %2339 = vmatpush.msra.mxu2 %v6653_v38  ;;  %v6656_v36 = vld [vmem:[#allocation10 + $0xf8] sm:$0xff] }
 0x56f   :  { %8630 = vst [vmem:[#allocation146_spill] sm:$0xff] %v6641_v24  ;;  %2359 = vmatpush.msra.mxu3 %v6656_v36  ;;  %v6659_v24 = vld [vmem:[#allocation10 + $0xc0] sm:$0xff] }
 0x570   :  { %8631 = vst [vmem:[#allocation147_spill] sm:$0xff] %v6644_v11  ;;  %2300 = vmatpush.msra.mxu0 %v6659_v24  ;;  %v6662_v11 = vld [vmem:[#allocation10 + $0xc8] sm:$0xff] }
 0x571   :  { %8632 = vst [vmem:[#allocation148_spill] sm:$0xff] %v6647_v12  ;;  %2320 = vmatpush.msra.mxu1 %v6662_v11  ;;  %v6665_v12 = vld [vmem:[#allocation10 + $0xd0] sm:$0xff] }
 0x572   :  { %8633 = vst [vmem:[#allocation149_spill] sm:$0xff] %v6650_v13  ;;  %2340 = vmatpush.msra.mxu2 %v6665_v12  ;;  %v6668_v13 = vld [vmem:[#allocation10 + $0xd8] sm:$0xff] }
 0x573   :  { %8634 = vst [vmem:[#allocation150_spill] sm:$0xff] %v6653_v38  ;;  %2360 = vmatpush.msra.mxu3 %v6668_v13  ;;  %v6671_v38 = vld [vmem:[#allocation10 + $0xa0] sm:$0xff] }
 0x574   :  { %8635 = vst [vmem:[#allocation151_spill] sm:$0xff] %v6656_v36  ;;  %2301 = vmatpush.msra.mxu0 %v6671_v38  ;;  %v6674_v36 = vld [vmem:[#allocation10 + $0xa8] sm:$0xff] }
 0x575   :  { %8636 = vst [vmem:[#allocation152_spill] sm:$0xff] %v6659_v24  ;;  %2321 = vmatpush.msra.mxu1 %v6674_v36  ;;  %v6677_v24 = vld [vmem:[#allocation10 + $0xb0] sm:$0xff] }
 0x576   :  { %8637 = vst [vmem:[#allocation153_spill] sm:$0xff] %v6662_v11  ;;  %2341 = vmatpush.msra.mxu2 %v6677_v24  ;;  %v6680_v11 = vld [vmem:[#allocation10 + $0xb8] sm:$0xff] }
 0x577   :  { %8638 = vst [vmem:[#allocation155_spill] sm:$0xff] %v6665_v12  ;;  %2361 = vmatpush.msra.mxu3 %v6680_v11  ;;  %v6683_v12 = vld [vmem:[#allocation10 + $0x80] sm:$0xff] }
 0x578   :  { %8639 = vst [vmem:[#allocation156_spill] sm:$0xff] %v6668_v13  ;;  %2302 = vmatpush.msra.mxu0 %v6683_v12  ;;  %v6686_v13 = vld [vmem:[#allocation10 + $0x88] sm:$0xff] }
 0x579   :  { %8640 = vst [vmem:[#allocation157_spill] sm:$0xff] %v6671_v38  ;;  %2322 = vmatpush.msra.mxu1 %v6686_v13  ;;  %v6689_v38 = vld [vmem:[#allocation10 + $0x90] sm:$0xff] }
 0x57a   :  { %8641 = vst [vmem:[#allocation158_spill] sm:$0xff] %v6674_v36  ;;  %2342 = vmatpush.msra.mxu2 %v6689_v38  ;;  %v6692_v36 = vld [vmem:[#allocation10 + $0x98] sm:$0xff] }
 0x57b   :  { %8642 = vst [vmem:[#allocation159_spill] sm:$0xff] %v6677_v24  ;;  %2362 = vmatpush.msra.mxu3 %v6692_v36  ;;  %v6695_v24 = vld [vmem:[#allocation10 + $0x60] sm:$0xff] }
 0x57c   :  { %8643 = vst [vmem:[#allocation160_spill] sm:$0xff] %v6680_v11  ;;  %2303 = vmatpush.msra.mxu0 %v6695_v24  ;;  %v6698_v11 = vld [vmem:[#allocation10 + $0x68] sm:$0xff] }
 0x57d   :  { %8644 = vst [vmem:[#allocation161_spill] sm:$0xff] %v6683_v12  ;;  %2323 = vmatpush.msra.mxu1 %v6698_v11  ;;  %v6701_v12 = vld [vmem:[#allocation10 + $0x70] sm:$0xff] }
 0x57e   :  { %8645 = vst [vmem:[#allocation162_spill] sm:$0xff] %v6686_v13  ;;  %2343 = vmatpush.msra.mxu2 %v6701_v12  ;;  %v6704_v13 = vld [vmem:[#allocation10 + $0x78] sm:$0xff] }
 0x57f   :  { %8646 = vst [vmem:[#allocation163_spill] sm:$0xff] %v6689_v38  ;;  %2363 = vmatpush.msra.mxu3 %v6704_v13  ;;  %v6707_v38 = vld [vmem:[#allocation10 + $0x40] sm:$0xff] }
 0x580   :  { %8647 = vst [vmem:[#allocation145_spill] sm:$0xff] %v6692_v36  ;;  %2304 = vmatpush.msra.mxu0 %v6707_v38  ;;  %v6710_v36 = vld [vmem:[#allocation10 + $0x48] sm:$0xff] }
 0x581   :  { %8648 = vst [vmem:[#allocation154_spill] sm:$0xff] %v6695_v24  ;;  %2324 = vmatpush.msra.mxu1 %v6710_v36  ;;  %v6713_v24 = vld [vmem:[#allocation10 + $0x50] sm:$0xff] }
 0x582   :  { %8649 = vst [vmem:[#allocation164_spill] sm:$0xff] %v6698_v11  ;;  %2344 = vmatpush.msra.mxu2 %v6713_v24  ;;  %v6716_v11 = vld [vmem:[#allocation10 + $0x58] sm:$0xff] }
 0x583   :  { %8650 = vst [vmem:[#allocation165_spill] sm:$0xff] %v6701_v12  ;;  %2364 = vmatpush.msra.mxu3 %v6716_v11  ;;  %v6719_v12 = vld [vmem:[#allocation10 + $0x20] sm:$0xff] }
 0x584   :  { %8651 = vst [vmem:[#allocation166_spill] sm:$0xff] %v6704_v13  ;;  %2305 = vmatpush.msra.mxu0 %v6719_v12  ;;  %v6722_v13 = vld [vmem:[#allocation10 + $0x28] sm:$0xff] }
 0x585   :  { %8652 = vst [vmem:[#allocation167_spill] sm:$0xff] %v6707_v38  ;;  %2325 = vmatpush.msra.mxu1 %v6722_v13  ;;  %v6725_v38 = vld [vmem:[#allocation10 + $0x30] sm:$0xff]  ;;  %2365 = vmatpush.msra.mxu3 %v6125_v8 }
 0x586   :  { %8653 = vst [vmem:[#allocation168_spill] sm:$0xff] %v6710_v36  ;;  %2345 = vmatpush.msra.mxu2 %v6725_v38  ;;  %2306 = vmatpush.msra.mxu0 %v6128_v16  ;;  %v1932_v36 = vpop.f32.mrf.mxu0  ;;  %v6737_v16 = vld [vmem:[%s6973_s1] sm:$0xf]  ;;  %s2716_s1 = sld [smem:[#allocation2 + $0x7]] }
 0x587   :  { %8654 = vst [vmem:[#allocation169_spill] sm:$0xff] %v6713_v24  ;;  %2326 = vmatpush.msra.mxu1 %v6131_v44  ;;  %2366 = vmatpush.msra.mxu3 %v6137_v34  ;;  %v1992_v24 = vpop.f32.mrf.mxu3  ;;  %v1933_v8 = vadd.f32 %v1932_v36, %v8504_v58 }
 0x588   :  { %8655 = vst [vmem:[#allocation170_spill] sm:$0xff] %v6716_v11  ;;  %2346 = vmatpush.msra.mxu2 %v6134_v18  ;;  %v1952_v11 = vpop.f32.mrf.mxu1 }
 0x589   :  { %8656 = vst [vmem:[#allocation171_spill] sm:$0xff] %v6719_v12  ;;  %v1972_v12 = vpop.f32.mrf.mxu2  ;;  %v1953_v18 = vadd.f32 %v1952_v11, %v4477_v33 }
 0x58a   :  { %8657 = vst [vmem:[#allocation172_spill] sm:$0xff] %v6722_v13 }
 0x58b   :  { %8658 = vst [vmem:[#allocation173_spill] sm:$0xff] %v6725_v38  ;;  %v2098_v38 = vstv %s2715_s14 }
 0x58c   :  { %v2099_v44 = vmul.f32 %v6737_v16, %v2098_v38 }
 0x58e   :  { %v2012_v6 = vpop.f32.mrf.mxu0  ;;  %v2100_v1 = vadd.f32 %v6741_v2, %v2099_v44 }
 0x58f   :  { %v2072_v22 = vpop.f32.mrf.mxu3  ;;  %v2075_v34 = vadd.f32 %v2012_v6, %v1933_v8 }
 0x590   :  { %v2032_v13 = vpop.f32.mrf.mxu1 }
 0x591   :  { %v2052_v28 = vpop.f32.mrf.mxu2  ;;  %v2076_v17 = vadd.f32 %v2032_v13, %v1953_v18  ;;  %v2079_v0 = vmul.f32 0.5, %v2075_v34 }
 0x593   :  { %v2080_v38 = vmul.f32 0.5, %v2076_v17  ;;  %2813 = vtanh.f32 %v2079_v0 }
 0x595   :  { %2815 = vtanh.f32 %v2080_v38 }
 0x596   :  { %v2118_v58 = vpop.f32.mrf.mxu0 }
 0x597   :  { %v2178_v29 = vpop.f32.mrf.mxu3 }
 0x598   :  { %v2138_v4 = vpop.f32.mrf.mxu1  ;;  %v2187_v36 = vrot.slane %v2178_v29, 5 }
 0x599   :  { %v2185_v10 = vrot.slane %v2138_v4, 7  ;;  %v2158_v41 = vpop.f32.mrf.mxu2  ;;  %v2814_v8 = vpop.eup %2813 }
 0x59a   :  { %v2186_v3 = vrot.slane %v2158_v41, 6  ;;  %v1993_v41 = vadd.f32 %v1992_v24, %v4486_v57 }
 0x59b   :  { %v2188_v50 = vsel %vm400_vm0, %v2118_v58, %v2185_v10  ;;  %v2816_v29 = vpop.eup %2815  ;;  %v1973_v58 = vadd.f32 %v1972_v12, %v4489_v5 }
 0x59c   :  { %v2189_v42 = vsel %vm402_vm1, %v2186_v3, %v2187_v36  ;;  %v2078_v44 = vadd.f32 %v2072_v22, %v1993_v41  ;;  %v2085_v3 = vmul.f32 0.5, %v2814_v8  ;;  %v2086_v17 = vmul.f32 0.5, %v2816_v29 }
 0x59d   :  { %v2190_v11 = vsel %vm404_vm2, %v2188_v50, %v2189_v42  ;;  %v2077_v50 = vadd.f32 %v2052_v28, %v1973_v58  ;;  %v8693_v58 = vld [vmem:[#allocation56_spill] sm:$0xff] }
 0x59e   :  { %v2192_v6 = vadd.f32 %v2190_v11, %v2100_v1  ;;  %v2088_v10 = vadd.f32 0.5, %v2085_v3  ;;  %v2089_v36 = vadd.f32 0.5, %v2086_v17  ;;  %v8694_v3 = vld [vmem:[#allocation57_spill] sm:$0xff]  ;;  %v8695_v17 = vld [vmem:[#allocation54_spill] sm:$0xff] }
 0x59f   :  { %v2081_v22 = vmul.f32 0.5, %v2077_v50  ;;  %v8697_v50 = vld [vmem:[#allocation60_spill] sm:$0xff] }
 0x5a0   :  { %v2193_v4 = vmul.f32 0.5, %v2192_v6  ;;  %v2198_v13 = vrot.slane %v2192_v6, 3 }
 0x5a2   :  { %2817 = vtanh.f32 %v2193_v4  ;;  %v2092_v4 = vmul.f32 %v2089_v36, %v6154_v7  ;;  %v8701_v36 = vld [vmem:[#allocation64_spill] sm:$0xff] }
 0x5a3   :  { %2819 = vtanh.f32 %v2198_v13 }
 0x5a4   :  { %2821 = vtanh.f32 %v2078_v44 }
 0x5a8   :  { %v2818_v18 = vpop.eup %2817 }
 0x5a9   :  { %v2195_v34 = vmul.f32 0.5, %v2818_v18  ;;  %v2820_v1 = vpop.eup %2819  ;;  %v8691_v18 = vld [vmem:[#allocation50_spill] sm:$0xff] }
 0x5aa   :  { %v2822_v11 = vpop.eup %2821 }
 0x5ab   :  { %v2196_v42 = vadd.f32 0.5, %v2195_v34  ;;  %v2093_v41 = vmul.f32 %v2822_v11, %v2088_v10  ;;  %v8692_v34 = vld [vmem:[#allocation51_spill] sm:$0xff] }
 0x5ac   :  { %v8700_v10 = vld [vmem:[#allocation59_spill] sm:$0xff] }
 0x5ad   :  { %v2202_v0 = vrot.slane %v2196_v42, 1  ;;  %v2205_v38 = vmul.f32 %v2820_v1, %v2196_v42  ;;  %v6754_v12 = vadd.f32 %v2093_v41, %v2092_v4  ;;  %v2208_v28 = vrot.slane %v2196_v42, 2  ;;  %v8696_v42 = vld [vmem:[#allocation55_spill] sm:$0xff]  ;;  %v8699_v1 = vld [vmem:[#allocation58_spill] sm:$0xff]  ;;  %v8706_v4 = vld [vmem:[#allocation69_spill] sm:$0xff] }
 0x5ae   :  { %v8704_v11 = vld [vmem:[#allocation63_spill] sm:$0xff]  ;;  %v8707_v41 = vld [vmem:[#allocation66_spill] sm:$0xff] }
 0x5af   :  { %v2204_v24 = vmul.f32 %v2202_v0, %v6150_v32  ;;  %v8698_v0 = vld [vmem:[#allocation61_spill] sm:$0xff] }
 0x5b1   :  { %v6750_v6 = vadd.f32 %v2205_v38, %v2204_v24  ;;  %v8702_v24 = vld [vmem:[#allocation65_spill] sm:$0xff]  ;;  %v8703_v38 = vld [vmem:[#allocation62_spill] sm:$0xff] }
 0x5b3   :  { %2823 = vtanh.f32 %v6750_v6 }
 0x5b4   :  { %2825 = vtanh.f32 %v2081_v22  ;;  %v8705_v22 = vld [vmem:[#allocation68_spill] sm:$0xff] }
 0x5b5   :  { %2827 = vtanh.f32 %v6754_v12 }
 0x5b9   :  { %v2824_v13 = vpop.eup %2823 }
 0x5ba   :  { %v6756_v8 = vmul.f32 %v2824_v13, %v2208_v28  ;;  %v2826_v44 = vpop.eup %2825  ;;  %v8708_v28 = vld [vmem:[#allocation67_spill] sm:$0xff]  ;;  %v8709_v13 = vld [vmem:[#allocation72_spill] sm:$0xff] }
 0x5bb   :  { %v2087_v32 = vmul.f32 0.5, %v2826_v44  ;;  %v2828_v7 = vpop.eup %2827  ;;  %v8711_v44 = vld [vmem:[#allocation70_spill] sm:$0xff] }
 0x5bc   :  { %2227 = vmatmul.f32.vlgmr.msrb.gmra.mxu0 %v6756_v8  ;;  %2247 = vmatmul.f32.vlgmr.msrb.gmra.mxu1 %v6756_v8 }
 0x5bd   :  { %2267 = vmatmul.f32.vlgmr.msrb.gmra.mxu2 %v6756_v8  ;;  %2287 = vmatmul.f32.vlgmr.msrb.gmra.mxu3 %v6756_v8  ;;  %v2090_v29 = vadd.f32 0.5, %v2087_v32  ;;  %v8712_v32 = vld [vmem:[#allocation71_spill] sm:$0xff] }
 0x5be   :  { %2397 = vmatpush.msrb.mxu0 %v6163_v25  ;;  %2417 = vmatpush.msrb.mxu1 %v6166_v26  ;;  %v8659_v26 = vld [vmem:[#allocation19_spill] sm:$0xff] }
 0x5bf   :  { %2437 = vmatpush.msrb.mxu2 %v6169_v53  ;;  %2457 = vmatpush.msrb.mxu3 %v6172_v14  ;;  %v2096_v25 = vmul.f32 %v2828_v7, %v2090_v29  ;;  %v8660_v53 = vld [vmem:[#allocation20_spill] sm:$0xff]  ;;  %v8661_v14 = vld [vmem:[#allocation27_spill] sm:$0xff]  ;;  %v8714_v29 = vld [vmem:[#allocation77_spill] sm:$0xff] }
 0x5c0   :  { %2398 = vmatpush.msrb.mxu0 %v6175_v51  ;;  %2418 = vmatpush.msrb.mxu1 %v6178_v19  ;;  %v8662_v51 = vld [vmem:[#allocation26_spill] sm:$0xff]  ;;  %v8663_v19 = vld [vmem:[#allocation21_spill] sm:$0xff]  ;;  %v8713_v7 = vld [vmem:[#allocation76_spill] sm:$0xff] }
 0x5c1   :  { %2438 = vmatpush.msrb.mxu2 %v6181_v46  ;;  %2458 = vmatpush.msrb.mxu3 %v6184_v27  ;;  %v8664_v46 = vld [vmem:[#allocation22_spill] sm:$0xff]  ;;  %v8665_v27 = vld [vmem:[#allocation31_spill] sm:$0xff] }
 0x5c2   :  { %2399 = vmatpush.msrb.mxu0 %v6187_v23  ;;  %2419 = vmatpush.msrb.mxu1 %v6190_v54  ;;  %v8666_v23 = vld [vmem:[#allocation30_spill] sm:$0xff]  ;;  %v8667_v54 = vld [vmem:[#allocation24_spill] sm:$0xff] }
 0x5c3   :  { %2439 = vmatpush.msrb.mxu2 %v6193_v21  ;;  %2459 = vmatpush.msrb.mxu3 %v6196_v30  ;;  %v8668_v21 = vld [vmem:[#allocation25_spill] sm:$0xff]  ;;  %v8669_v30 = vld [vmem:[#allocation35_spill] sm:$0xff] }
 0x5c4   :  { %2400 = vmatpush.msrb.mxu0 %v6199_v31  ;;  %2420 = vmatpush.msrb.mxu1 %v6202_v35  ;;  %v8670_v31 = vld [vmem:[#allocation34_spill] sm:$0xff]  ;;  %v8671_v35 = vld [vmem:[#allocation28_spill] sm:$0xff] }
 0x5c5   :  { %2440 = vmatpush.msrb.mxu2 %v6205_v37  ;;  %2460 = vmatpush.msrb.mxu3 %v6208_v39  ;;  %v8672_v37 = vld [vmem:[#allocation29_spill] sm:$0xff]  ;;  %v8673_v39 = vld [vmem:[#allocation39_spill] sm:$0xff] }
 0x5c6   :  { %2307 = vmatmul.f32.vlgmr.msra.gmra.mxu0 %v2096_v25  ;;  %2327 = vmatmul.f32.vlgmr.msra.gmra.mxu1 %v2096_v25 }
 0x5c7   :  { %2347 = vmatmul.f32.vlgmr.msra.gmra.mxu2 %v2096_v25  ;;  %2367 = vmatmul.f32.vlgmr.msra.gmra.mxu3 %v2096_v25  ;;  %v8715_v25 = vld [vmem:[#allocation74_spill] sm:$0xff] }
 0x5c8   :  { %2401 = vmatpush.msrb.mxu0 %v6211_v40  ;;  %2421 = vmatpush.msrb.mxu1 %v6214_v43  ;;  %v8674_v40 = vld [vmem:[#allocation38_spill] sm:$0xff]  ;;  %v8675_v43 = vld [vmem:[#allocation32_spill] sm:$0xff] }
 0x5c9   :  { %2441 = vmatpush.msrb.mxu2 %v6217_v45  ;;  %2461 = vmatpush.msrb.mxu3 %v6220_v47  ;;  %v8676_v45 = vld [vmem:[#allocation33_spill] sm:$0xff]  ;;  %v8677_v47 = vld [vmem:[#allocation40_spill] sm:$0xff] }
 0x5ca   :  { %2402 = vmatpush.msrb.mxu0 %v6223_v20  ;;  %2422 = vmatpush.msrb.mxu1 %v6226_v48  ;;  %v8678_v20 = vld [vmem:[#allocation41_spill] sm:$0xff]  ;;  %v8679_v48 = vld [vmem:[#allocation36_spill] sm:$0xff] }
 0x5cb   :  { %2442 = vmatpush.msrb.mxu2 %v6229_v49  ;;  %2462 = vmatpush.msrb.mxu3 %v6232_v55  ;;  %v8680_v49 = vld [vmem:[#allocation37_spill] sm:$0xff]  ;;  %v8681_v55 = vld [vmem:[#allocation44_spill] sm:$0xff] }
 0x5cc   :  { %2403 = vmatpush.msrb.mxu0 %v6235_v56  ;;  %2423 = vmatpush.msrb.mxu1 %v6238_v52  ;;  %v8682_v56 = vld [vmem:[#allocation45_spill] sm:$0xff]  ;;  %v8683_v52 = vld [vmem:[#allocation42_spill] sm:$0xff] }
 0x5cd   :  { %2443 = vmatpush.msrb.mxu2 %v6241_v9  ;;  %2463 = vmatpush.msrb.mxu3 %v6244_v61  ;;  %v8684_v9 = vld [vmem:[#allocation43_spill] sm:$0xff]  ;;  %v8685_v61 = vld [vmem:[#allocation48_spill] sm:$0xff] }
 0x5ce   :  { %2404 = vmatpush.msrb.mxu0 %v6247_v63  ;;  %2424 = vmatpush.msrb.mxu1 %v6250_v59  ;;  %v8686_v63 = vld [vmem:[#allocation49_spill] sm:$0xff]  ;;  %v8687_v59 = vld [vmem:[#allocation46_spill] sm:$0xff] }
 0x5cf   :  { %2444 = vmatpush.msrb.mxu2 %v6253_v60  ;;  %2464 = vmatpush.msrb.mxu3 %v6256_v62  ;;  %v8688_v60 = vld [vmem:[#allocation47_spill] sm:$0xff]  ;;  %v8689_v62 = vld [vmem:[#allocation52_spill] sm:$0xff] }
 0x5d0   :  { %2405 = vmatpush.msrb.mxu0 %v6259_v15  ;;  %2425 = vmatpush.msrb.mxu1 %v8659_v26  ;;  %v8690_v15 = vld [vmem:[#allocation53_spill] sm:$0xff]  ;;  %v8716_v26 = vld [vmem:[#allocation75_spill] sm:$0xff] }
 0x5d1   :  { %2445 = vmatpush.msrb.mxu2 %v8660_v53  ;;  %2465 = vmatpush.msrb.mxu3 %v8661_v14  ;;  %v8717_v53 = vld [vmem:[#allocation80_spill] sm:$0xff]  ;;  %v8718_v14 = vld [vmem:[#allocation81_spill] sm:$0xff] }
 0x5d2   :  { %2406 = vmatpush.msrb.mxu0 %v8662_v51  ;;  %2426 = vmatpush.msrb.mxu1 %v8663_v19  ;;  %v8719_v51 = vld [vmem:[#allocation78_spill] sm:$0xff]  ;;  %v8720_v19 = vld [vmem:[#allocation79_spill] sm:$0xff] }
 0x5d3   :  { %2446 = vmatpush.msrb.mxu2 %v8664_v46  ;;  %2466 = vmatpush.msrb.mxu3 %v8665_v27  ;;  %v8721_v46 = vld [vmem:[#allocation84_spill] sm:$0xff]  ;;  %v8722_v27 = vld [vmem:[#allocation85_spill] sm:$0xff] }
 0x5d4   :  { %2407 = vmatpush.msrb.mxu0 %v8666_v23  ;;  %2427 = vmatpush.msrb.mxu1 %v8667_v54  ;;  %v8723_v23 = vld [vmem:[#allocation82_spill] sm:$0xff]  ;;  %v8724_v54 = vld [vmem:[#allocation83_spill] sm:$0xff] }
 0x5d5   :  { %2447 = vmatpush.msrb.mxu2 %v8668_v21  ;;  %2467 = vmatpush.msrb.mxu3 %v8669_v30  ;;  %v8725_v21 = vld [vmem:[#allocation88_spill] sm:$0xff]  ;;  %v8726_v30 = vld [vmem:[#allocation89_spill] sm:$0xff] }
 0x5d6   :  { %2408 = vmatpush.msrb.mxu0 %v8670_v31  ;;  %2428 = vmatpush.msrb.mxu1 %v8671_v35  ;;  %v8727_v31 = vld [vmem:[#allocation86_spill] sm:$0xff]  ;;  %v8728_v35 = vld [vmem:[#allocation87_spill] sm:$0xff] }
 0x5d7   :  { %2448 = vmatpush.msrb.mxu2 %v8672_v37  ;;  %2468 = vmatpush.msrb.mxu3 %v8673_v39  ;;  %v8729_v37 = vld [vmem:[#allocation92_spill] sm:$0xff]  ;;  %v8730_v39 = vld [vmem:[#allocation93_spill] sm:$0xff] }
 0x5d8   :  { %2409 = vmatpush.msrb.mxu0 %v8674_v40  ;;  %2429 = vmatpush.msrb.mxu1 %v8675_v43  ;;  %v8731_v40 = vld [vmem:[#allocation90_spill] sm:$0xff]  ;;  %v8732_v43 = vld [vmem:[#allocation91_spill] sm:$0xff] }
 0x5d9   :  { %2449 = vmatpush.msrb.mxu2 %v8676_v45  ;;  %2469 = vmatpush.msrb.mxu3 %v8677_v47  ;;  %v8733_v45 = vld [vmem:[#allocation94_spill] sm:$0xff]  ;;  %v8734_v47 = vld [vmem:[#allocation95_spill] sm:$0xff] }
 0x5da   :  { %2410 = vmatpush.msrb.mxu0 %v8678_v20  ;;  %2430 = vmatpush.msrb.mxu1 %v8679_v48  ;;  %v8735_v20 = vld [vmem:[#allocation96_spill] sm:$0xff]  ;;  %v8736_v48 = vld [vmem:[#allocation97_spill] sm:$0xff] }
 0x5db   :  { %2450 = vmatpush.msrb.mxu2 %v8680_v49  ;;  %2470 = vmatpush.msrb.mxu3 %v8681_v55  ;;  %v8737_v49 = vld [vmem:[#allocation98_spill] sm:$0xff]  ;;  %v8738_v55 = vld [vmem:[#allocation99_spill] sm:$0xff] }
 0x5dc   :  { %2411 = vmatpush.msrb.mxu0 %v8682_v56  ;;  %2431 = vmatpush.msrb.mxu1 %v8683_v52  ;;  %v8739_v56 = vld [vmem:[#allocation100_spill] sm:$0xff]  ;;  %v8740_v52 = vld [vmem:[#allocation101_spill] sm:$0xff] }
 0x5dd   :  { %2451 = vmatpush.msrb.mxu2 %v8684_v9  ;;  %2471 = vmatpush.msrb.mxu3 %v8685_v61  ;;  %v8741_v9 = vld [vmem:[#allocation102_spill] sm:$0xff]  ;;  %v8742_v61 = vld [vmem:[#allocation103_spill] sm:$0xff] }
 0x5de   :  { %2412 = vmatpush.msrb.mxu0 %v8686_v63  ;;  %2432 = vmatpush.msrb.mxu1 %v8687_v59  ;;  %v8743_v63 = vld [vmem:[#allocation104_spill] sm:$0xff]  ;;  %v8744_v59 = vld [vmem:[#allocation105_spill] sm:$0xff] }
 0x5df   :  { %2452 = vmatpush.msrb.mxu2 %v8688_v60  ;;  %2472 = vmatpush.msrb.mxu3 %v8689_v62  ;;  %v8745_v60 = vld [vmem:[#allocation106_spill] sm:$0xff]  ;;  %v8746_v62 = vld [vmem:[#allocation107_spill] sm:$0xff] }
 0x5e0   :  { %2413 = vmatmul.f32.vlgmr.msrb.gmra.mxu0 %v6756_v8  ;;  %2433 = vmatmul.f32.vlgmr.msrb.gmra.mxu1 %v6756_v8 }
 0x5e1   :  { %2453 = vmatmul.f32.vlgmr.msrb.gmra.mxu2 %v6756_v8  ;;  %2473 = vmatmul.f32.vlgmr.msrb.gmra.mxu3 %v6756_v8  ;;  %v8710_v8 = vld [vmem:[#allocation73_spill] sm:$0xff] }
 0x5e2   :  { %2507 = vmatpush.msra.mxu0 %v8690_v15  ;;  %2527 = vmatpush.msra.mxu1 %v8691_v18  ;;  %v8747_v15 = vld [vmem:[#allocation108_spill] sm:$0xff]  ;;  %v8748_v18 = vld [vmem:[#allocation109_spill] sm:$0xff] }
 0x5e3   :  { %2547 = vmatpush.msra.mxu2 %v8692_v34  ;;  %2567 = vmatpush.msra.mxu3 %v8693_v58  ;;  %v8749_v34 = vld [vmem:[#allocation110_spill] sm:$0xff]  ;;  %v8750_v58 = vld [vmem:[#allocation111_spill] sm:$0xff] }
 0x5e4   :  { %2508 = vmatpush.msra.mxu0 %v8694_v3  ;;  %2528 = vmatpush.msra.mxu1 %v8695_v17  ;;  %v8751_v3 = vld [vmem:[#allocation112_spill] sm:$0xff]  ;;  %v8752_v17 = vld [vmem:[#allocation113_spill] sm:$0xff] }
 0x5e5   :  { %2548 = vmatpush.msra.mxu2 %v8696_v42  ;;  %2568 = vmatpush.msra.mxu3 %v8697_v50  ;;  %v8753_v42 = vld [vmem:[#allocation114_spill] sm:$0xff]  ;;  %v8754_v50 = vld [vmem:[#allocation115_spill] sm:$0xff] }
 0x5e6   :  { %2509 = vmatpush.msra.mxu0 %v8698_v0  ;;  %2529 = vmatpush.msra.mxu1 %v8699_v1  ;;  %v8755_v0 = vld [vmem:[#allocation116_spill] sm:$0xff]  ;;  %v8756_v1 = vld [vmem:[#allocation117_spill] sm:$0xff] }
 0x5e7   :  { %2549 = vmatpush.msra.mxu2 %v8700_v10  ;;  %2569 = vmatpush.msra.mxu3 %v8701_v36  ;;  %v8757_v10 = vld [vmem:[#allocation118_spill] sm:$0xff]  ;;  %v8758_v36 = vld [vmem:[#allocation119_spill] sm:$0xff] }
 0x5e8   :  { %2510 = vmatpush.msra.mxu0 %v8702_v24  ;;  %2530 = vmatpush.msra.mxu1 %v8703_v38  ;;  %v8759_v24 = vld [vmem:[#allocation120_spill] sm:$0xff]  ;;  %v8760_v38 = vld [vmem:[#allocation121_spill] sm:$0xff] }
 0x5e9   :  { %2550 = vmatpush.msra.mxu2 %v8704_v11  ;;  %2570 = vmatpush.msra.mxu3 %v8705_v22  ;;  %v8761_v11 = vld [vmem:[#allocation122_spill] sm:$0xff]  ;;  %v8762_v22 = vld [vmem:[#allocation123_spill] sm:$0xff] }
 0x5ea   :  { %2511 = vmatpush.msra.mxu0 %v8706_v4  ;;  %2531 = vmatpush.msra.mxu1 %v8707_v41  ;;  %v8763_v4 = vld [vmem:[#allocation124_spill] sm:$0xff]  ;;  %v8764_v41 = vld [vmem:[#allocation125_spill] sm:$0xff] }
 0x5eb   :  { %2551 = vmatpush.msra.mxu2 %v8708_v28  ;;  %2571 = vmatpush.msra.mxu3 %v8709_v13  ;;  %v8765_v28 = vld [vmem:[#allocation126_spill] sm:$0xff]  ;;  %v8766_v13 = vld [vmem:[#allocation127_spill] sm:$0xff] }
 0x5ec   :  { %2512 = vmatpush.msra.mxu0 %v8710_v8  ;;  %2532 = vmatpush.msra.mxu1 %v8711_v44  ;;  %v8767_v8 = vld [vmem:[#allocation128_spill] sm:$0xff]  ;;  %v8768_v44 = vld [vmem:[#allocation129_spill] sm:$0xff] }
 0x5ed   :  { %2552 = vmatpush.msra.mxu2 %v8712_v32  ;;  %2572 = vmatpush.msra.mxu3 %v8713_v7  ;;  %v8769_v32 = vld [vmem:[#allocation130_spill] sm:$0xff]  ;;  %v8770_v7 = vld [vmem:[#allocation131_spill] sm:$0xff] }
 0x5ee   :  { %2513 = vmatpush.msra.mxu0 %v8714_v29  ;;  %2533 = vmatpush.msra.mxu1 %v8715_v25  ;;  %v8771_v29 = vld [vmem:[#allocation132_spill] sm:$0xff]  ;;  %v8772_v25 = vld [vmem:[#allocation133_spill] sm:$0xff] }
 0x5ef   :  { %2553 = vmatpush.msra.mxu2 %v8716_v26  ;;  %2573 = vmatpush.msra.mxu3 %v8717_v53  ;;  %v8773_v26 = vld [vmem:[#allocation134_spill] sm:$0xff]  ;;  %v8774_v53 = vld [vmem:[#allocation135_spill] sm:$0xff] }
 0x5f0   :  { %2514 = vmatpush.msra.mxu0 %v8718_v14  ;;  %2534 = vmatpush.msra.mxu1 %v8719_v51  ;;  %v8775_v14 = vld [vmem:[#allocation136_spill] sm:$0xff]  ;;  %v8776_v51 = vld [vmem:[#allocation137_spill] sm:$0xff] }
 0x5f1   :  { %2554 = vmatpush.msra.mxu2 %v8720_v19  ;;  %2574 = vmatpush.msra.mxu3 %v8721_v46  ;;  %v8777_v19 = vld [vmem:[#allocation138_spill] sm:$0xff]  ;;  %v8778_v46 = vld [vmem:[#allocation139_spill] sm:$0xff] }
 0x5f2   :  { %2515 = vmatpush.msra.mxu0 %v8722_v27  ;;  %2535 = vmatpush.msra.mxu1 %v8723_v23  ;;  %v8779_v27 = vld [vmem:[#allocation140_spill] sm:$0xff]  ;;  %v8780_v23 = vld [vmem:[#allocation141_spill] sm:$0xff] }
 0x5f3   :  { %2555 = vmatpush.msra.mxu2 %v8724_v54  ;;  %2575 = vmatpush.msra.mxu3 %v8725_v21  ;;  %v8781_v54 = vld [vmem:[#allocation142_spill] sm:$0xff]  ;;  %v8782_v21 = vld [vmem:[#allocation143_spill] sm:$0xff] }
 0x5f4   :  { %2516 = vmatpush.msra.mxu0 %v8726_v30  ;;  %2536 = vmatpush.msra.mxu1 %v8727_v31  ;;  %v8783_v30 = vld [vmem:[#allocation144_spill] sm:$0xff]  ;;  %v8784_v31 = vld [vmem:[#allocation146_spill] sm:$0xff] }
 0x5f5   :  { %2556 = vmatpush.msra.mxu2 %v8728_v35  ;;  %2576 = vmatpush.msra.mxu3 %v8729_v37  ;;  %v8785_v35 = vld [vmem:[#allocation147_spill] sm:$0xff]  ;;  %v8786_v37 = vld [vmem:[#allocation148_spill] sm:$0xff] }
 0x5f6   :  { %2517 = vmatpush.msra.mxu0 %v8730_v39  ;;  %2537 = vmatpush.msra.mxu1 %v8731_v40  ;;  %v8787_v39 = vld [vmem:[#allocation149_spill] sm:$0xff]  ;;  %v8788_v40 = vld [vmem:[#allocation150_spill] sm:$0xff] }
 0x5f7   :  { %2557 = vmatpush.msra.mxu2 %v8732_v43  ;;  %2577 = vmatpush.msra.mxu3 %v8733_v45  ;;  %v8789_v43 = vld [vmem:[#allocation151_spill] sm:$0xff]  ;;  %v8790_v45 = vld [vmem:[#allocation152_spill] sm:$0xff] }
 0x5f8   :  { %2518 = vmatpush.msra.mxu0 %v8734_v47  ;;  %2538 = vmatpush.msra.mxu1 %v8735_v20  ;;  %v8791_v47 = vld [vmem:[#allocation153_spill] sm:$0xff]  ;;  %v8792_v20 = vld [vmem:[#allocation155_spill] sm:$0xff] }
 0x5f9   :  { %2558 = vmatpush.msra.mxu2 %v8736_v48  ;;  %2578 = vmatpush.msra.mxu3 %v8737_v49  ;;  %v8793_v48 = vld [vmem:[#allocation156_spill] sm:$0xff]  ;;  %v8794_v49 = vld [vmem:[#allocation157_spill] sm:$0xff] }
 0x5fa   :  { %2519 = vmatpush.msra.mxu0 %v8738_v55  ;;  %2539 = vmatpush.msra.mxu1 %v8739_v56  ;;  %v8795_v55 = vld [vmem:[#allocation158_spill] sm:$0xff]  ;;  %v8796_v56 = vld [vmem:[#allocation159_spill] sm:$0xff] }
 0x5fb   :  { %2559 = vmatpush.msra.mxu2 %v8740_v52  ;;  %2579 = vmatpush.msra.mxu3 %v8741_v9  ;;  %v8797_v52 = vld [vmem:[#allocation160_spill] sm:$0xff]  ;;  %v8798_v9 = vld [vmem:[#allocation161_spill] sm:$0xff] }
 0x5fc   :  { %2520 = vmatpush.msra.mxu0 %v8742_v61  ;;  %2540 = vmatpush.msra.mxu1 %v8743_v63  ;;  %v8799_v61 = vld [vmem:[#allocation162_spill] sm:$0xff]  ;;  %v8800_v63 = vld [vmem:[#allocation163_spill] sm:$0xff] }
 0x5fd   :  { %2560 = vmatpush.msra.mxu2 %v8744_v59  ;;  %2580 = vmatpush.msra.mxu3 %v8745_v60  ;;  %v8801_v59 = vld [vmem:[#allocation145_spill] sm:$0xff]  ;;  %v8802_v60 = vld [vmem:[#allocation154_spill] sm:$0xff] }
 0x5fe   :  { %2521 = vmatpush.msra.mxu0 %v8746_v62  ;;  %2541 = vmatpush.msra.mxu1 %v8747_v15  ;;  %v8803_v62 = vld [vmem:[#allocation164_spill] sm:$0xff]  ;;  %v8804_v15 = vld [vmem:[#allocation165_spill] sm:$0xff] }
 0x5ff   :  { %2561 = vmatpush.msra.mxu2 %v8748_v18  ;;  %2581 = vmatpush.msra.mxu3 %v8749_v34  ;;  %v8805_v18 = vld [vmem:[#allocation166_spill] sm:$0xff]  ;;  %v8806_v34 = vld [vmem:[#allocation167_spill] sm:$0xff] }
 0x600   :  { %2522 = vmatpush.msra.mxu0 %v8750_v58  ;;  %2542 = vmatpush.msra.mxu1 %v8751_v3  ;;  %v8807_v58 = vld [vmem:[#allocation168_spill] sm:$0xff]  ;;  %v8808_v3 = vld [vmem:[#allocation169_spill] sm:$0xff] }
 0x601   :  { %2562 = vmatpush.msra.mxu2 %v8752_v17  ;;  %2582 = vmatpush.msra.mxu3 %v8753_v42  ;;  %v8809_v17 = vld [vmem:[#allocation170_spill] sm:$0xff]  ;;  %v8810_v42 = vld [vmem:[#allocation171_spill] sm:$0xff] }
 0x602   :  { %2587 = vmatpush.msrb.mxu0 %v8754_v50  ;;  %2607 = vmatpush.msrb.mxu1 %v8755_v0  ;;  %v8811_v50 = vld [vmem:[#allocation172_spill] sm:$0xff]  ;;  %v8812_v0 = vld [vmem:[#allocation173_spill] sm:$0xff] }
 0x603   :  { %2627 = vmatpush.msrb.mxu2 %v8756_v1  ;;  %2647 = vmatpush.msrb.mxu3 %v8757_v10  ;;  %v3432_v1 = vld [vmem:[#allocation10 + $0x38] sm:$0xff]  ;;  %v3433_v10 = vld [vmem:[#allocation10] sm:$0xff] }
 0x604   :  { %2588 = vmatpush.msrb.mxu0 %v8758_v36  ;;  %2608 = vmatpush.msrb.mxu1 %v8759_v24  ;;  %v3434_v36 = vld [vmem:[#allocation10 + $0x8] sm:$0xff]  ;;  %v3435_v24 = vld [vmem:[#allocation10 + $0x10] sm:$0xff] }
 0x605   :  { %2628 = vmatpush.msrb.mxu2 %v8760_v38  ;;  %2648 = vmatpush.msrb.mxu3 %v8761_v11  ;;  %v3436_v38 = vld [vmem:[#allocation10 + $0x18] sm:$0xff] }
 0x606   :  { %2589 = vmatpush.msrb.mxu0 %v8762_v22  ;;  %2609 = vmatpush.msrb.mxu1 %v8763_v4 }
 0x607   :  { %2629 = vmatpush.msrb.mxu2 %v8764_v41  ;;  %2649 = vmatpush.msrb.mxu3 %v8765_v28 }
 0x608   :  { %2590 = vmatpush.msrb.mxu0 %v8766_v13  ;;  %2610 = vmatpush.msrb.mxu1 %v8767_v8 }
 0x609   :  { %2630 = vmatpush.msrb.mxu2 %v8768_v44  ;;  %2650 = vmatpush.msrb.mxu3 %v8769_v32  ;;  %v2394_v32 = vstv %s2716_s1 }
 0x60a   :  { %2591 = vmatpush.msrb.mxu0 %v8770_v7  ;;  %2611 = vmatpush.msrb.mxu1 %v8771_v29  ;;  %v8813_v7 = vld [vmem:[#allocation23_spill] sm:$0xff] }
 0x60b   :  { %2631 = vmatpush.msrb.mxu2 %v8772_v25  ;;  %2651 = vmatpush.msrb.mxu3 %v8773_v26 }
 0x60c   :  { %2592 = vmatpush.msrb.mxu0 %v8774_v53  ;;  %2612 = vmatpush.msrb.mxu1 %v8775_v14  ;;  %v2395_v53 = vmul.f32 %v6737_v16, %v2394_v32 }
 0x60d   :  { %2632 = vmatpush.msrb.mxu2 %v8776_v51  ;;  %2652 = vmatpush.msrb.mxu3 %v8777_v19 }
 0x60e   :  { %2593 = vmatpush.msrb.mxu0 %v8778_v46  ;;  %2613 = vmatpush.msrb.mxu1 %v8779_v27 }
 0x60f   :  { %2633 = vmatpush.msrb.mxu2 %v8780_v23  ;;  %2653 = vmatpush.msrb.mxu3 %v8781_v54  ;;  %v2396_v54 = vadd.f32 %v6741_v2, %v2395_v53 }
 0x610   :  { %2594 = vmatpush.msrb.mxu0 %v8782_v21  ;;  %2614 = vmatpush.msrb.mxu1 %v8783_v30 }
 0x611   :  { %2634 = vmatpush.msrb.mxu2 %v8784_v31  ;;  %2654 = vmatpush.msrb.mxu3 %v8785_v35 }
 0x612   :  { %2595 = vmatpush.msrb.mxu0 %v8786_v37  ;;  %2615 = vmatpush.msrb.mxu1 %v8787_v39 }
 0x613   :  { %2635 = vmatpush.msrb.mxu2 %v8788_v40  ;;  %2655 = vmatpush.msrb.mxu3 %v8789_v43 }
 0x614   :  { %2596 = vmatpush.msrb.mxu0 %v8790_v45  ;;  %2616 = vmatpush.msrb.mxu1 %v8791_v47 }
 0x615   :  { %2636 = vmatpush.msrb.mxu2 %v8792_v20  ;;  %2656 = vmatpush.msrb.mxu3 %v8793_v48 }
 0x616   :  { %2597 = vmatpush.msrb.mxu0 %v8794_v49  ;;  %2617 = vmatpush.msrb.mxu1 %v8795_v55 }
 0x617   :  { %2637 = vmatpush.msrb.mxu2 %v8796_v56  ;;  %2657 = vmatpush.msrb.mxu3 %v8797_v52 }
 0x618   :  { %2598 = vmatpush.msrb.mxu0 %v8798_v9  ;;  %2618 = vmatpush.msrb.mxu1 %v8799_v61 }
 0x619   :  { %2638 = vmatpush.msrb.mxu2 %v8800_v63  ;;  %2658 = vmatpush.msrb.mxu3 %v8801_v59 }
 0x61a   :  { %2599 = vmatpush.msrb.mxu0 %v8802_v60  ;;  %2619 = vmatpush.msrb.mxu1 %v8803_v62 }
 0x61b   :  { %2639 = vmatpush.msrb.mxu2 %v8804_v15  ;;  %2659 = vmatpush.msrb.mxu3 %v8805_v18 }
 0x61c   :  { %2600 = vmatpush.msrb.mxu0 %v8806_v34  ;;  %2620 = vmatpush.msrb.mxu1 %v8807_v58 }
 0x61d   :  { %2640 = vmatpush.msrb.mxu2 %v8808_v3  ;;  %2660 = vmatpush.msrb.mxu3 %v8809_v17 }
 0x61e   :  { %2601 = vmatpush.msrb.mxu0 %v8810_v42  ;;  %2621 = vmatpush.msrb.mxu1 %v8811_v50 }
 0x61f   :  { %2641 = vmatpush.msrb.mxu2 %v8812_v0  ;;  %2661 = vmatpush.msrb.mxu3 %v3432_v1 }
 0x620   :  { %2602 = vmatpush.msrb.mxu0 %v3433_v10  ;;  %2622 = vmatpush.msrb.mxu1 %v3434_v36 }
 0x621   :  { %2642 = vmatpush.msrb.mxu2 %v3435_v24  ;;  %2662 = vmatpush.msrb.mxu3 %v3436_v38 }
 0x639   :  { %v2248_v11 = vpop.f32.mrf.mxu1  ;;  %v2228_v41 = vpop.f32.mrf.mxu0 }
 0x63a   :  { %v2229_v29 = vadd.f32 %v2228_v41, %v8813_v7  ;;  %v2249_v26 = vadd.f32 %v2248_v11, %v4477_v33 }
 0x640   :  { %v2268_v22 = vpop.f32.mrf.mxu2  ;;  %v2288_v4 = vpop.f32.mrf.mxu3 }
 0x641   :  { %v2289_v45 = vadd.f32 %v2288_v4, %v4486_v57  ;;  %v2269_v55 = vadd.f32 %v2268_v22, %v4489_v5 }
 0x643   :  { %v2328_v28 = vpop.f32.mrf.mxu1  ;;  %v2308_v44 = vpop.f32.mrf.mxu0 }
 0x644   :  { %v2371_v14 = vadd.f32 %v2308_v44, %v2229_v29  ;;  %v2372_v51 = vadd.f32 %v2328_v28, %v2249_v26 }
 0x646   :  { %v2375_v30 = vmul.f32 0.5, %v2371_v14  ;;  %v2376_v35 = vmul.f32 0.5, %v2372_v51 }
 0x648   :  { %2829 = vtanh.f32 %v2375_v30 }
 0x649   :  { %2831 = vtanh.f32 %v2376_v35 }
 0x64a   :  { %v2348_v13 = vpop.f32.mrf.mxu2  ;;  %v2368_v8 = vpop.f32.mrf.mxu3 }
 0x64b   :  { %v2374_v47 = vadd.f32 %v2368_v8, %v2289_v45  ;;  %v2373_v61 = vadd.f32 %v2348_v13, %v2269_v55 }
 0x64d   :  { %v2377_v34 = vmul.f32 0.5, %v2373_v61 }
 0x64e   :  { %v2830_v2 = vpop.eup %2829 }
 0x64f   :  { %v2832_v48 = vpop.eup %2831  ;;  %v2381_v56 = vmul.f32 0.5, %v2830_v2 }
 0x650   :  { %v2382_v52 = vmul.f32 0.5, %v2832_v48 }
 0x651   :  { %v2384_v60 = vadd.f32 0.5, %v2381_v56 }
 0x652   :  { %v2385_v62 = vadd.f32 0.5, %v2382_v52 }
 0x654   :  { %v2388_v17 = vmul.f32 %v2385_v62, %v6754_v12 }
 0x65d   :  { %v2434_v25 = vpop.f32.mrf.mxu1  ;;  %v2414_v31 = vpop.f32.mrf.mxu0 }
 0x65e   :  { %v2481_v19 = vrot.slane %v2434_v25, 7 }
 0x660   :  { %v2484_v37 = vsel %vm400_vm0, %v2414_v31, %v2481_v19 }
 0x664   :  { %v2454_v46 = vpop.f32.mrf.mxu2  ;;  %v2474_v27 = vpop.f32.mrf.mxu3 }
 0x665   :  { %v2482_v23 = vrot.slane %v2454_v46, 6  ;;  %v2483_v21 = vrot.slane %v2474_v27, 5 }
 0x667   :  { %v2485_v39 = vsel %vm402_vm1, %v2482_v23, %v2483_v21 }
 0x668   :  { %v2486_v40 = vsel %vm404_vm2, %v2484_v37, %v2485_v39 }
 0x669   :  { %v2488_v43 = vadd.f32 %v2486_v40, %v2396_v54 }
 0x66b   :  { %v2489_v16 = vmul.f32 0.5, %v2488_v43  ;;  %v2494_v20 = vrot.slane %v2488_v43, 3 }
 0x66d   :  { %2833 = vtanh.f32 %v2489_v16 }
 0x66e   :  { %2835 = vtanh.f32 %v2374_v47 }
 0x66f   :  { %2837 = vtanh.f32 %v2494_v20 }
 0x670   :  { %2839 = vtanh.f32 %v2377_v34 }
 0x673   :  { %v2834_v49 = vpop.eup %2833 }
 0x674   :  { %v2491_v9 = vmul.f32 0.5, %v2834_v49  ;;  %v2836_v59 = vpop.eup %2835 }
 0x675   :  { %v2838_v18 = vpop.eup %2837  ;;  %v2389_v42 = vmul.f32 %v2836_v59, %v2384_v60 }
 0x676   :  { %v2492_v63 = vadd.f32 0.5, %v2491_v9  ;;  %v2840_v1 = vpop.eup %2839 }
 0x677   :  { %v2390_v0 = vadd.f32 %v2389_v42, %v2388_v17  ;;  %v2383_v38 = vmul.f32 0.5, %v2840_v1 }
 0x678   :  { %v2498_v15 = vrot.slane %v2492_v63, 1  ;;  %v2501_v3 = vmul.f32 %v2838_v18, %v2492_v63  ;;  %v2504_v10 = vrot.slane %v2492_v63, 2 }
 0x67a   :  { %v2500_v58 = vmul.f32 %v2498_v15, %v6750_v6  ;;  %v2386_v6 = vadd.f32 0.5, %v2383_v38 }
 0x67c   :  { %v2502_v50 = vadd.f32 %v2501_v3, %v2500_v58 }
 0x67e   :  { %2841 = vtanh.f32 %v2502_v50 }
 0x67f   :  { %2843 = vtanh.f32 %v2390_v0 }
 0x684   :  { %v2842_v36 = vpop.eup %2841 }
 0x685   :  { %v2506_v24 = vmul.f32 %v2842_v36, %v2504_v10  ;;  %v2844_v11 = vpop.eup %2843 }
 0x686   :  { %v2392_v22 = vmul.f32 %v2844_v11, %v2386_v6 }
 0x687   :  { %2523 = vmatmul.f32.vlgmr.msra.gmra.mxu0 %v2506_v24  ;;  %2543 = vmatmul.f32.vlgmr.msra.gmra.mxu1 %v2506_v24 }
 0x688   :  { %2563 = vmatmul.f32.vlgmr.msra.gmra.mxu2 %v2506_v24  ;;  %2583 = vmatmul.f32.vlgmr.msra.gmra.mxu3 %v2506_v24 }
 0x68f   :  { %2603 = vmatmul.f32.vlgmr.msrb.gmra.mxu0 %v2392_v22  ;;  %2623 = vmatmul.f32.vlgmr.msrb.gmra.mxu1 %v2392_v22 }
 0x690   :  { %2643 = vmatmul.f32.vlgmr.msrb.gmra.mxu2 %v2392_v22  ;;  %2663 = vmatmul.f32.vlgmr.msrb.gmra.mxu3 %v2392_v22 }
 0x704   :  { %v2524_v12 = vpop.f32.mrf.mxu0  ;;  %v2544_v4 = vpop.f32.mrf.mxu1 }
 0x705   :  { %v2525_v41 = vadd.f32 %v2524_v12, %v8813_v7  ;;  %v2545_v28 = vadd.f32 %v2544_v4, %v4477_v33 }
 0x70b   :  { %v2564_v13 = vpop.f32.mrf.mxu2  ;;  %v2584_v8 = vpop.f32.mrf.mxu3 }
 0x70c   :  { %v2604_v44 = vpop.f32.mrf.mxu0  ;;  %v2624_v32 = vpop.f32.mrf.mxu1  ;;  %v2565_v14 = vadd.f32 %v2564_v13, %v4489_v5  ;;  %v2585_v51 = vadd.f32 %v2584_v8, %v4486_v57 }
 0x70d   :  { %v2667_v29 = vadd.f32 %v2604_v44, %v2525_v41  ;;  %v2668_v25 = vadd.f32 %v2624_v32, %v2545_v28 }
 0x70f   :  { %v2671_v26 = vmul.f32 0.5, %v2667_v29  ;;  %v2672_v53 = vmul.f32 0.5, %v2668_v25 }
 0x711   :  { %2845 = vtanh.f32 %v2671_v26 }
 0x712   :  { %2847 = vtanh.f32 %v2672_v53 }
 0x713   :  { %v2644_v19 = vpop.f32.mrf.mxu2  ;;  %v2664_v46 = vpop.f32.mrf.mxu3 }
 0x714   :  { %v2669_v27 = vadd.f32 %v2644_v19, %v2565_v14  ;;  %v2670_v7 = vadd.f32 %v2664_v46, %v2585_v51 }
 0x716   :  { %v2673_v23 = vmul.f32 0.5, %v2669_v27  ;;  %2849 = vtanh.f32 %v2670_v7 }
 0x717   :  { %v2846_v33 = vpop.eup %2845 }
 0x718   :  { %v2848_v54 = vpop.eup %2847  ;;  %v2677_v21 = vmul.f32 0.5, %v2846_v33  ;;  %2851 = vtanh.f32 %v2673_v23 }
 0x719   :  { %v2678_v30 = vmul.f32 0.5, %v2848_v54 }
 0x71a   :  { %v2680_v31 = vadd.f32 0.5, %v2677_v21 }
 0x71b   :  { %v2681_v35 = vadd.f32 0.5, %v2678_v30 }
 0x71c   :  { %v2850_v37 = vpop.eup %2849 }
 0x71d   :  { %v2684_v39 = vmul.f32 %v2681_v35, %v2390_v0  ;;  %v2685_v40 = vmul.f32 %v2850_v37, %v2680_v31 }
 0x71e   :  { %v2852_v5 = vpop.eup %2851 }
 0x71f   :  { %v2686_v43 = vadd.f32 %v2685_v40, %v2684_v39  ;;  %v2679_v57 = vmul.f32 0.5, %v2852_v5 }
 0x721   :  { %2853 = vtanh.f32 %v2686_v43  ;;  %v2682_v16 = vadd.f32 0.5, %v2679_v57 }
 0x727   :  { %v2854_v45 = vpop.eup %2853 }
 0x728   :  { %v2688_v47 = vmul.f32 %v2854_v45, %v2682_v16 }
 0x72a   :  { %2689 = vst [vmem:[#allocation13] sm:$0x1] %v2688_v47 }
 0x72b   :  { %2700 = dma.vmem_to_hbm [thread:$0]  %s2696_s18, 16, %s2698_s20, [#allocation4]  }
 0x72c   :  { %3601 = dma.done.wait [#allocation4], 16  }
 0x72d   :  { %3602 = vsyncadd [#allocation4], 4294967280 }
 0x72e   :  { %2705 = vsyncpa [#allocation3], 1 }
 0x72f   :  { %2706 = vsyncpa [#allocation8], 1 }
 0x730   :  { %2707 = vsyncpa [#allocation11], 1 }
 0x731   :  { %2708 = vsyncpa [#allocation4], 1 }
 0x732   :  { %2709 = vsyncpa [#allocation5], 1 }

</bundles_post_ra>
